<compile_context>
chip_gen: v7x
topology: tpu7x:2x2x1
jax: 0.10.0
libtpu: 0.0.40
codegen_flags: <defaults>
</compile_context>

<pallas_src>
import functools

import jax
import jax.numpy as jnp
import numpy as np
from jax.experimental import pallas as pl
from jax.experimental.pallas import tpu as pltpu

# Problem sizes are hard-coded by the PyTorch module's reshapes.
M, PAIRS, C_IN, H, W = 128, 2, 64, 7, 7
C_OUT, KH = 32, 3
S = H * W                  # 49 spatial positions per image, row-major (h*W + w)

# Tiling: flatten a batch tile of BM images onto the lane axis.
BM = 64                    # batch tile -> grid of 2 "parallel" steps
S_PAD = 50                 # pad 49 -> 50 so BM*S_PAD is a multiple of 128
LANES = BM * S_PAD         # 3200 = 25 * 128 (fully lane-dense blocks)
G = M // BM                # grid size (2)


def _conv_roll_kernel(x_ref, w_ref, m_ref, o_ref, *, sh):
    """One grid step: pair-sum, (96,64)@(64,LANES) matmul, tap combine, W-roll.

    x_ref: (1, 2, 64, LANES)   pair-split input, batch*spatial flattened on lanes
    w_ref: (96, 64)            taps stacked: rows [0:32]=h-1, [32:64]=h, [64:96]=h+1
    m_ref: (3, LANES) f32      masks: [0]=h-1 tap valid, [1]=h+1 tap valid,
                               [2]=W-roll wrap selector (w < sh)
    o_ref: (1, 32, LANES)
    """
    xs = x_ref[0, 0, :, :] + x_ref[0, 1, :, :]                        # (64, LANES)
    y = jnp.dot(w_ref[...], xs, preferred_element_type=jnp.float32)   # (96, LANES)

    y0 = y[0:C_OUT, :]              # tap h-1
    y1 = y[C_OUT:2 * C_OUT, :]      # tap h
    y2 = y[2 * C_OUT:, :]           # tap h+1

    m0 = m_ref[0:1, :]
    m2 = m_ref[1:2, :]
    msel = m_ref[2:3, :]

    # out[.., s] = y0[.., s-W]*[h>=1] + y1[.., s] + y2[.., s+W]*[h<=H-2]
    out = (m0 * pltpu.roll(y0, W, axis=1)
           + y1
           + m2 * pltpu.roll(y2, LANES - W, axis=1))

    # torch.roll(out, shift, dim=W) on the flattened lane axis:
    #   rolled[h, w] = out[h, w - sh]        for w >= sh   (main)
    #                = out[h, w + (W - sh)]  for w <  sh   (wrap)
    if sh:
        main = pltpu.roll(out, sh, axis=1)
        wrap = pltpu.roll(out, LANES - (W - sh), axis=1)
        out = main + msel * (wrap - main)

    o_ref[0, :, :] = out.astype(o_ref.dtype)


@functools.partial(jax.jit, static_argnames=("shift_direction",))
def forward(x, weights, shift_direction=1):
    """x: (128,128,7,7) f32 NCHW; weights: (32,64,3) f32. Returns (128,32,7,7)."""
    sh = shift_direction % W

    # Lane-dense relayout (layout plumbing only): (G, 2, 64, BM*S_PAD).
    x5 = x.reshape(G, BM, PAIRS, C_IN, S)
    x5 = jnp.transpose(x5, (0, 2, 3, 1, 4))                    # (G, 2, 64, BM, S)
    x5 = jnp.pad(x5, ((0, 0), (0, 0), (0, 0), (0, 0), (0, S_PAD - S)))
    x4 = x5.reshape(G, PAIRS, C_IN, LANES)

    # Stack the 3 vertical taps into one (96, 64) weight matrix: row k*32+i = W[i,:,k].
    w3 = jnp.transpose(weights, (2, 0, 1)).reshape(KH * C_OUT, C_IN)

    # Static multiplicative masks over the flattened lane axis (built host-side).
    lane = np.arange(LANES)
    s_in = lane % S_PAD                                         # spatial idx (49 = pad slot)
    m0 = ((s_in >= W) & (s_in < S)).astype(np.float32)          # h-1 tap valid (h >= 1)
    m2 = (s_in < S - W).astype(np.float32)                      # h+1 tap valid (h <= 5)
    msel = (((s_in % W) < sh) & (s_in < S)).astype(np.float32)  # W-roll wrap branch
    masks = jnp.asarray(np.stack([m0, m2, msel], axis=0))       # (3, LANES)

    out_flat = pl.pallas_call(
        functools.partial(_conv_roll_kernel, sh=sh),
        out_shape=jax.ShapeDtypeStruct((G, C_OUT, LANES), x.dtype),
        grid_spec=pltpu.PrefetchScalarGridSpec(
            num_scalar_prefetch=0,
            grid=(G,),
            in_specs=[
                pl.BlockSpec((1, PAIRS, C_IN, LANES), lambda i: (i, 0, 0, 0)),
                pl.BlockSpec((KH * C_OUT, C_IN), lambda i: (0, 0)),
                pl.BlockSpec((3, LANES), lambda i: (0, 0)),
            ],
            out_specs=pl.BlockSpec((1, C_OUT, LANES), lambda i: (i, 0, 0)),
        ),
        compiler_params=pltpu.CompilerParams(
            dimension_semantics=("parallel",),
            vmem_limit_bytes=32 * 1024 * 1024,
        ),
    )(x4, w3, masks)

    # Undo the layout plumbing: (G, 32, BM*S_PAD) -> (128, 32, 7, 7).
    out = out_flat.reshape(G, C_OUT, BM, S_PAD)[..., :S]
    out = jnp.transpose(out, (0, 2, 1, 3))
    return out.reshape(M, C_OUT, H, W)


def reference(x, weights, shift_direction=1):
    """Pure-JAX reference mirroring the PyTorch forward."""
    t2 = x.reshape(M, PAIRS, C_IN, H, W).sum(axis=1)                    # (128,64,7,7)
    xp = jnp.pad(t2, ((0, 0), (0, 0), (1, 1), (0, 0)))                  # pad H by 1
    t4 = jnp.stack([xp[:, :, k:k + H, :] for k in range(KH)], axis=2)   # (128,64,3,7,7)
    t5 = jnp.einsum('mjknl,ijk->minl', t4, weights)                     # (128,32,7,7)
    return jnp.roll(t5, shift_direction, axis=3)


if __name__ == "__main__":
    key = jax.random.PRNGKey(0)
    kx, kw = jax.random.split(key)
    # The forward hard-codes reshapes to (128, 2, 64, 7, 7); the input must be
    # 128x128x7x7.  Integer-valued data makes the check exact regardless of the
    # MXU's f32 matmul pass count.
    x = jnp.round(2.0 * jax.random.normal(kx, (M, PAIRS * C_IN, H, W), dtype=jnp.float32))
    weights = jnp.round(2.0 * jax.random.normal(kw, (C_OUT, C_IN, KH), dtype=jnp.float32))

    for shift in (1, -1):   # PyTorch randomizes shift_direction = +/-1 at __init__
        y = jax.block_until_ready(forward(x, weights, shift_direction=shift))
        y_ref = reference(x, weights, shift_direction=shift)
        assert y.shape == (M, C_OUT, H, W)
        assert jnp.allclose(y, y_ref, atol=1e-3, rtol=1e-3), \
            f"mismatch vs reference (shift={shift})"

    print("KERNEL_OK")
</pallas_src>

<mosaic_0001>
module attributes {stable_mosaic.version = 11 : i64} {
  func.func @_conv_roll_kernel(%arg0: i32, %arg1: memref<1x2x64x3200xf32, #tpu.memory_space<vmem>>, %arg2: memref<96x64xf32, #tpu.memory_space<vmem>>, %arg3: memref<3x3200xf32, #tpu.memory_space<vmem>>, %arg4: memref<1x32x3200xf32, #tpu.memory_space<vmem>>) attributes {dimension_semantics = [#tpu.dimension_semantics<parallel>], iteration_bounds = array<i64: 2>, scalar_prefetch = 0 : i64, scratch_operands = 0 : i64, tpu.core_type = #tpu.core_type<tc>, window_params = [{transform_indices = @transform_0, window_bounds = array<i64: 1, 2, 64, 3200>}, {pipeline_mode = #tpu.pipeline_mode<synchronous>, transform_indices = @transform_1, window_bounds = array<i64: 96, 64>}, {pipeline_mode = #tpu.pipeline_mode<synchronous>, transform_indices = @transform_2, window_bounds = array<i64: 3, 3200>}, {transform_indices = @transform_3, window_bounds = array<i64: 1, 32, 3200>}]} {
    %c0 = arith.constant 0 : index
    %c0_0 = arith.constant 0 : index
    %c0_1 = arith.constant 0 : index
    %c0_2 = arith.constant 0 : index
    %0 = vector.load %arg1[%c0, %c0_0, %c0_1, %c0_2] : memref<1x2x64x3200xf32, #tpu.memory_space<vmem>>, vector<1x1x64x3200xf32>
    %1 = vector.shape_cast %0 : vector<1x1x64x3200xf32> to vector<64x3200xf32>
    %c0_3 = arith.constant 0 : index
    %c1 = arith.constant 1 : index
    %c0_4 = arith.constant 0 : index
    %c0_5 = arith.constant 0 : index
    %2 = vector.load %arg1[%c0_3, %c1, %c0_4, %c0_5] : memref<1x2x64x3200xf32, #tpu.memory_space<vmem>>, vector<1x1x64x3200xf32>
    %3 = vector.shape_cast %2 : vector<1x1x64x3200xf32> to vector<64x3200xf32>
    %4 = arith.addf %1, %3 : vector<64x3200xf32>
    %c0_6 = arith.constant 0 : index
    %c0_7 = arith.constant 0 : index
    %5 = vector.load %arg2[%c0_6, %c0_7] : memref<96x64xf32, #tpu.memory_space<vmem>>, vector<96x64xf32>
    %cst = arith.constant dense<0.000000e+00> : vector<96x3200xf32>
    %6 = tpu.matmul %5, %4, %cst {dimension_numbers = #tpu.dot_dimension_numbers<[1], [0], [0], [1], [0, 0, 1, 1], [], []>} : vector<96x64xf32>, vector<64x3200xf32>, vector<96x3200xf32> -> vector<96x3200xf32>
    %7 = vector.extract_strided_slice %6 {offsets = [0, 0], sizes = [32, 3200], strides = [1, 1]} : vector<96x3200xf32> to vector<32x3200xf32>
    %8 = vector.extract_strided_slice %6 {offsets = [32, 0], sizes = [32, 3200], strides = [1, 1]} : vector<96x3200xf32> to vector<32x3200xf32>
    %9 = vector.extract_strided_slice %6 {offsets = [64, 0], sizes = [32, 3200], strides = [1, 1]} : vector<96x3200xf32> to vector<32x3200xf32>
    %c0_8 = arith.constant 0 : index
    %c0_9 = arith.constant 0 : index
    %10 = vector.load %arg3[%c0_8, %c0_9] : memref<3x3200xf32, #tpu.memory_space<vmem>>, vector<1x3200xf32>
    %c1_10 = arith.constant 1 : index
    %c0_11 = arith.constant 0 : index
    %11 = vector.load %arg3[%c1_10, %c0_11] : memref<3x3200xf32, #tpu.memory_space<vmem>>, vector<1x3200xf32>
    %c2 = arith.constant 2 : index
    %c0_12 = arith.constant 0 : index
    %12 = vector.load %arg3[%c2, %c0_12] : memref<3x3200xf32, #tpu.memory_space<vmem>>, vector<1x3200xf32>
    %c7_i32 = arith.constant 7 : i32
    %13 = tpu.dynamic_rotate %7 by %c7_i32 dim 1 : vector<32x3200xf32>, i32 -> vector<32x3200xf32>
    %14 = vector.broadcast %10 : vector<1x3200xf32> to vector<32x3200xf32>
    %15 = arith.mulf %14, %13 : vector<32x3200xf32>
    %16 = arith.addf %15, %8 : vector<32x3200xf32>
    %c3193_i32 = arith.constant 3193 : i32
    %17 = tpu.dynamic_rotate %9 by %c3193_i32 dim 1 : vector<32x3200xf32>, i32 -> vector<32x3200xf32>
    %18 = vector.broadcast %11 : vector<1x3200xf32> to vector<32x3200xf32>
    %19 = arith.mulf %18, %17 : vector<32x3200xf32>
    %20 = arith.addf %16, %19 : vector<32x3200xf32>
    %c1_i32 = arith.constant 1 : i32
    %21 = tpu.dynamic_rotate %20 by %c1_i32 dim 1 : vector<32x3200xf32>, i32 -> vector<32x3200xf32>
    %c3194_i32 = arith.constant 3194 : i32
    %22 = tpu.dynamic_rotate %20 by %c3194_i32 dim 1 : vector<32x3200xf32>, i32 -> vector<32x3200xf32>
    %23 = arith.subf %22, %21 : vector<32x3200xf32>
    %24 = vector.broadcast %12 : vector<1x3200xf32> to vector<32x3200xf32>
    %25 = arith.mulf %24, %23 : vector<32x3200xf32>
    %26 = arith.addf %21, %25 : vector<32x3200xf32>
    %c0_13 = arith.constant 0 : index
    %c0_14 = arith.constant 0 : index
    %c0_15 = arith.constant 0 : index
    %27 = vector.load %arg4[%c0_13, %c0_14, %c0_15] : memref<1x32x3200xf32, #tpu.memory_space<vmem>>, vector<1x32x3200xf32>
    %28 = vector.shape_cast %27 : vector<1x32x3200xf32> to vector<32x3200xf32>
    %29 = vector.shape_cast %26 : vector<32x3200xf32> to vector<1x32x3200xf32>
    tpu.vector_store %arg4[%c0_13, %c0_14, %c0_15], %29 {strides = array<i32>} : memref<1x32x3200xf32, #tpu.memory_space<vmem>>, vector<1x32x3200xf32>,
    return
  }
  func.func @transform_0(%arg0: i32) -> (i32, i32, i32, i32) {
    %c0_i32 = arith.constant 0 : i32
    %c0_i32_0 = arith.constant 0 : i32
    %c0_i32_1 = arith.constant 0 : i32
    %c0_i32_2 = arith.constant 0 : i32
    return %arg0, %c0_i32, %c0_i32_0, %c0_i32_1 : i32, i32, i32, i32
  }
  func.func @transform_1(%arg0: i32) -> (i32, i32) {
    %c0_i32 = arith.constant 0 : i32
    %c0_i32_0 = arith.constant 0 : i32
    %c0_i32_1 = arith.constant 0 : i32
    return %c0_i32, %c0_i32_0 : i32, i32
  }
  func.func @transform_2(%arg0: i32) -> (i32, i32) {
    %c0_i32 = arith.constant 0 : i32
    %c0_i32_0 = arith.constant 0 : i32
    %c0_i32_1 = arith.constant 0 : i32
    return %c0_i32, %c0_i32_0 : i32, i32
  }
  func.func @transform_3(%arg0: i32) -> (i32, i32, i32) {
    %c0_i32 = arith.constant 0 : i32
    %c0_i32_0 = arith.constant 0 : i32
    %c0_i32_1 = arith.constant 0 : i32
    return %arg0, %c0_i32, %c0_i32_0 : i32, i32, i32
  }
}

</mosaic_0001>

<bundles_post_ra>
// kernel: forward.1
= control target key start
LH: loop header
LB: loop body
LE: loop exit
PB: predicated region body
PF: predicated region fallthrough
CT: control target
= control target key end

     0   :  { %s5779_s12 = smov 0   ;;  %s11020_s0 = inlined_call_operand.vmem [shape: f32[2,2,64,3200], index: 0, kind: input, shape index: {}]   ;;  %s11021_s1 = inlined_call_operand.vmem [shape: f32[96,64], index: 1, kind: input, shape index: {}]   ;;  %s11022_s2 = inlined_call_operand.vmem [shape: f32[3,3200], index: 2, kind: input, shape index: {}]   ;;  %s11023_s3 = inlined_call_operand.vmem [shape: f32[2,32,3200], index: 3, kind: output, shape index: {}]  }
   0x1 LB: > { %s5061_s13 = sadd.s32 4294967295, %s5752_s12   ;;  %p5065_p0 = scmp.ge.s32.totalorder %s5752_s12, 1  ;;  %s5752_s12 = sphi %s5779_s12, %s13_s12  }
   0x2   : > { %p137_p1 = scmp.lt.s32.totalorder %s5752_s12, 3 }
   0x4   : > { %p138_p2 = pnand %p5065_p0, %p137_p1 }
   0x6   : > { %141 = sbr.rel (%p138_p2) target bundleno = 1184 (0x4a0), region = 32 }
   0xd   : > { %p161_p3 = scmp.lt.s32.totalorder %s5061_s13, 1  ;;  %v5754_v0 = vmov 0.0   ;;  %vm784_vm0 = vcmask 523264   ;;  %s5755_s15 = smov 7  }
   0xe   : > { %885 = vmatprep.mubr.f32.mxu0 %v5754_v0  ;;  %1022 = vmatprep.mubr.f32.mxu1 %v5754_v0  ;;  %s5756_s19 = smov 121   ;;  %s5757_s18 = smov 1  }
   0xf   : > { %s12136_s13 = smov (!%p161_p3, %s5061_s13), 1 }
  0x10   : > { %s5707_s14 = smul.u32 3200, %s12136_s13 }
  0x11   : > { %s5708_s26 = smul.u32 800, %s12136_s13 }
  0x12   : > { %s5795_s17 = scalar_lea.vmem %s11020_s0, %s5707_s14 }
  0x13   : > { %v172_v1 = vld [vmem:[%s5795_s17 + $0x8] sm:$0xff]  ;;  %v197_v2 = vld [vmem:[%s5795_s17 + $0xd0] sm:$0xff]  ;;  %v174_v6 = vld [vmem:[%s5795_s17 + $0x18] sm:$0xff]  ;;  %s8493_s28 = scalar_lea.vmem %s11023_s3, %s5708_s26 }
  0x14   : > { %v5069_v3 = vld [vmem:[%s5795_s17 + $0x648] sm:$0xff]  ;;  %v5094_v4 = vld [vmem:[%s5795_s17 + $0x710] sm:$0xff]  ;;  %v199_v7 = vld [vmem:[%s5795_s17 + $0xe0] sm:$0xff] }
  0x15   : > { %v573_v5 = vadd.f32 %v5069_v3, %v172_v1  ;;  %v598_v8 = vadd.f32 %v5094_v4, %v197_v2  ;;  %v5071_v9 = vld [vmem:[%s5795_s17 + $0x658] sm:$0xff]  ;;  %v5096_v10 = vld [vmem:[%s5795_s17 + $0x720] sm:$0xff]  ;;  %v196_v14 = vld [vmem:[%s5795_s17 + $0xc8] sm:$0xff] }
  0x16   : > { %v171_v11 = vld [vmem:[%s5795_s17] sm:$0xff]  ;;  %v575_v12 = vadd.f32 %v5071_v9, %v174_v6  ;;  %v600_v13 = vadd.f32 %v5096_v10, %v199_v7  ;;  %v5093_v16 = vld [vmem:[%s5795_s17 + $0x708] sm:$0xff]  ;;  %v173_v20 = vld [vmem:[%s5795_s17 + $0x10] sm:$0xff] }
  0x17   : > { %v5068_v15 = vld [vmem:[%s5795_s17 + $0x640] sm:$0xff]  ;;  %v5491_v17 = vpack.c.bf16 %v598_v8, %v573_v5  ;;  %v597_v19 = vadd.f32 %v5093_v16, %v196_v14  ;;  %v198_v21 = vld [vmem:[%s5795_s17 + $0xd8] sm:$0xff]  ;;  %v5070_v22 = vld [vmem:[%s5795_s17 + $0x650] sm:$0xff] }
  0x18   : > { %v572_v18 = vadd.f32 %v5068_v15, %v171_v11  ;;  %v5507_v23 = vpack.c.bf16 %v600_v13, %v575_v12  ;;  %v5095_v24 = vld [vmem:[%s5795_s17 + $0x718] sm:$0xff]  ;;  %v574_v25 = vadd.f32 %v5070_v22, %v173_v20  ;;  %v247_v27 = vld [vmem:[%s5795_s17 + $0x260] sm:$0xff]  ;;  %v224_v32 = vld [vmem:[%s5795_s17 + $0x1a8] sm:$0xff] }
  0x19   : > { %v222_v26 = vld [vmem:[%s5795_s17 + $0x198] sm:$0xff]  ;;  %5492 = vmatprep.subr.bf16.mxu0 %v5491_v17  ;;  %v599_v29 = vadd.f32 %v5095_v24, %v198_v21  ;;  %v5144_v31 = vld [vmem:[%s5795_s17 + $0x8a0] sm:$0xff]  ;;  %v249_v35 = vld [vmem:[%s5795_s17 + $0x270] sm:$0xff] }
  0x1a   : > { %v5493_v28 = vpack.c.bf16 %v597_v19, %v572_v18  ;;  %v5119_v30 = vld [vmem:[%s5795_s17 + $0x7d8] sm:$0xff]  ;;  %5508 = vmatprep.subr.bf16.mxu1 %v5507_v23  ;;  %v648_v34 = vadd.f32 %v5144_v31, %v247_v27  ;;  %v5121_v36 = vld [vmem:[%s5795_s17 + $0x7e8] sm:$0xff]  ;;  %v5146_v37 = vld [vmem:[%s5795_s17 + $0x8b0] sm:$0xff] }
  0x1b   : > { %v623_v33 = vadd.f32 %v5119_v30, %v222_v26  ;;  %v5509_v38 = vpack.c.bf16 %v599_v29, %v574_v25  ;;  %v625_v39 = vadd.f32 %v5121_v36, %v224_v32  ;;  %v650_v40 = vadd.f32 %v5146_v37, %v249_v35  ;;  %v221_v41 = vld [vmem:[%s5795_s17 + $0x190] sm:$0xff]  ;;  %v246_v42 = vld [vmem:[%s5795_s17 + $0x258] sm:$0xff]  ;;  %v223_v47 = vld [vmem:[%s5795_s17 + $0x1a0] sm:$0xff] }
  0x1c   : > { %5494 = vmatpush1.bf16.msra.mxu0 %v5493_v28  ;;  %v5118_v43 = vld [vmem:[%s5795_s17 + $0x7d0] sm:$0xff]  ;;  %v5143_v45 = vld [vmem:[%s5795_s17 + $0x898] sm:$0xff]  ;;  %v248_v48 = vld [vmem:[%s5795_s17 + $0x268] sm:$0xff] }
  0x1d   : > { %v5495_v44 = vpack.c.bf16 %v648_v34, %v623_v33  ;;  %v622_v46 = vadd.f32 %v5118_v43, %v221_v41  ;;  %5510 = vmatpush1.bf16.msra.mxu1 %v5509_v38  ;;  %v5511_v49 = vpack.c.bf16 %v650_v40, %v625_v39  ;;  %v647_v50 = vadd.f32 %v5143_v45, %v246_v42  ;;  %v5120_v51 = vld [vmem:[%s5795_s17 + $0x7e0] sm:$0xff]  ;;  %v5145_v52 = vld [vmem:[%s5795_s17 + $0x8a8] sm:$0xff]  ;;  %v297_v56 = vld [vmem:[%s5795_s17 + $0x3f0] sm:$0xff] }
  0x1e   : > { %v272_v53 = vld [vmem:[%s5795_s17 + $0x328] sm:$0xff]  ;;  %v624_v54 = vadd.f32 %v5120_v51, %v223_v47  ;;  %v649_v55 = vadd.f32 %v5145_v52, %v248_v48  ;;  %v5194_v58 = vld [vmem:[%s5795_s17 + $0xa30] sm:$0xff]  ;;  %v274_v62 = vld [vmem:[%s5795_s17 + $0x338] sm:$0xff] }
  0x1f   : > { %5496 = vmatprep.subr.bf16.mxu0 %v5495_v44  ;;  %v5169_v57 = vld [vmem:[%s5795_s17 + $0x968] sm:$0xff]  ;;  %5512 = vmatprep.subr.bf16.mxu1 %v5511_v49  ;;  %v5497_v59 = vpack.c.bf16 %v647_v50, %v622_v46  ;;  %v698_v61 = vadd.f32 %v5194_v58, %v297_v56  ;;  %v299_v63 = vld [vmem:[%s5795_s17 + $0x400] sm:$0xff]  ;;  %v5171_v1 = vld [vmem:[%s5795_s17 + $0x978] sm:$0xff] }
  0x20   : > { %v673_v60 = vadd.f32 %v5169_v57, %v272_v53  ;;  %v5513_v2 = vpack.c.bf16 %v649_v55, %v624_v54  ;;  %v5196_v3 = vld [vmem:[%s5795_s17 + $0xa40] sm:$0xff]  ;;  %v675_v4 = vadd.f32 %v5171_v1, %v274_v62  ;;  %v296_v6 = vld [vmem:[%s5795_s17 + $0x3e8] sm:$0xff]  ;;  %v273_v11 = vld [vmem:[%s5795_s17 + $0x330] sm:$0xff] }
  0x21   : > { %v271_v5 = vld [vmem:[%s5795_s17 + $0x320] sm:$0xff]  ;;  %5498 = vmatpush1.bf16.msra.mxu0 %v5497_v59  ;;  %v700_v8 = vadd.f32 %v5196_v3, %v299_v63  ;;  %v5193_v10 = vld [vmem:[%s5795_s17 + $0xa28] sm:$0xff]  ;;  %v298_v14 = vld [vmem:[%s5795_s17 + $0x3f8] sm:$0xff] }
  0x22   : > { %v5499_v7 = vpack.c.bf16 %v698_v61, %v673_v60  ;;  %v5168_v9 = vld [vmem:[%s5795_s17 + $0x960] sm:$0xff]  ;;  %5514 = vmatpush1.bf16.msra.mxu1 %v5513_v2  ;;  %v697_v13 = vadd.f32 %v5193_v10, %v296_v6  ;;  %v5170_v15 = vld [vmem:[%s5795_s17 + $0x970] sm:$0xff]  ;;  %v5195_v16 = vld [vmem:[%s5795_s17 + $0xa38] sm:$0xff] }
  0x23   : > { %v672_v12 = vadd.f32 %v5168_v9, %v271_v5  ;;  %v5515_v17 = vpack.c.bf16 %v700_v8, %v675_v4  ;;  %v674_v18 = vadd.f32 %v5170_v15, %v273_v11  ;;  %v699_v19 = vadd.f32 %v5195_v16, %v298_v14  ;;  %v322_v20 = vld [vmem:[%s5795_s17 + $0x4b8] sm:$0xff]  ;;  %v347_v21 = vld [vmem:[%s5795_s17 + $0x580] sm:$0xff]  ;;  %v324_v26 = vld [vmem:[%s5795_s17 + $0x4c8] sm:$0xff] }
  0x24   : > { %5500 = vmatprep.subr.bf16.mxu0 %v5499_v7  ;;  %v5219_v22 = vld [vmem:[%s5795_s17 + $0xaf8] sm:$0xff]  ;;  %v5244_v24 = vld [vmem:[%s5795_s17 + $0xbc0] sm:$0xff]  ;;  %v349_v27 = vld [vmem:[%s5795_s17 + $0x590] sm:$0xff] }
  0x25   : > { %v5501_v23 = vpack.c.bf16 %v697_v13, %v672_v12  ;;  %v723_v25 = vadd.f32 %v5219_v22, %v322_v20  ;;  %5516 = vmatprep.subr.bf16.mxu1 %v5515_v17  ;;  %v5517_v28 = vpack.c.bf16 %v699_v19, %v674_v18  ;;  %v748_v29 = vadd.f32 %v5244_v24, %v347_v21  ;;  %v5221_v30 = vld [vmem:[%s5795_s17 + $0xb08] sm:$0xff]  ;;  %v5246_v31 = vld [vmem:[%s5795_s17 + $0xbd0] sm:$0xff]  ;;  %v346_v35 = vld [vmem:[%s5795_s17 + $0x578] sm:$0xff] }
  0x26   : > { %v321_v32 = vld [vmem:[%s5795_s17 + $0x4b0] sm:$0xff]  ;;  %v725_v33 = vadd.f32 %v5221_v30, %v324_v26  ;;  %v750_v34 = vadd.f32 %v5246_v31, %v349_v27  ;;  %v5243_v37 = vld [vmem:[%s5795_s17 + $0xbb8] sm:$0xff]  ;;  %v323_v41 = vld [vmem:[%s5795_s17 + $0x4c0] sm:$0xff] }
  0x27   : > { %5502 = vmatpush1.bf16.msra.mxu0 %v5501_v23  ;;  %v5218_v36 = vld [vmem:[%s5795_s17 + $0xaf0] sm:$0xff]  ;;  %5518 = vmatpush1.bf16.msra.mxu1 %v5517_v28  ;;  %v5503_v38 = vpack.c.bf16 %v748_v29, %v723_v25  ;;  %v747_v40 = vadd.f32 %v5243_v37, %v346_v35  ;;  %v348_v42 = vld [vmem:[%s5795_s17 + $0x588] sm:$0xff]  ;;  %v5220_v43 = vld [vmem:[%s5795_s17 + $0xb00] sm:$0xff] }
  0x28   : > { %v722_v39 = vadd.f32 %v5218_v36, %v321_v32  ;;  %v5519_v44 = vpack.c.bf16 %v750_v34, %v725_v33  ;;  %v5245_v45 = vld [vmem:[%s5795_s17 + $0xbc8] sm:$0xff]  ;;  %v724_v46 = vadd.f32 %v5220_v43, %v323_v41  ;;  %v201_v48 = vld [vmem:[%s5795_s17 + $0xf0] sm:$0xff]  ;;  %v5866_v51 = vld [vmem:[%s11021_s1] sm:$0xff] }
  0x29   : > { %v176_v47 = vld [vmem:[%s5795_s17 + $0x28] sm:$0xff]  ;;  %5504 = vmatprep.subr.bf16.mxu0 %v5503_v38  ;;  %v749_v50 = vadd.f32 %v5245_v45, %v348_v42  ;;  %v5098_v53 = vld [vmem:[%s5795_s17 + $0x730] sm:$0xff]  ;;  %v175_v54 = vld [vmem:[%s5795_s17 + $0x20] sm:$0xff] }
  0x2a   : > { %v5505_v49 = vpack.c.bf16 %v747_v40, %v722_v39  ;;  %v5073_v52 = vld [vmem:[%s5795_s17 + $0x668] sm:$0xff]  ;;  %5520 = vmatprep.subr.bf16.mxu1 %v5519_v44  ;;  %v602_v56 = vadd.f32 %v5098_v53, %v201_v48  ;;  %v5072_v58 = vld [vmem:[%s5795_s17 + $0x660] sm:$0xff]  ;;  %v178_v63 = vld [vmem:[%s5795_s17 + $0x38] sm:$0xff] }
  0x2b   : > { %v577_v55 = vadd.f32 %v5073_v52, %v176_v47  ;;  %v200_v57 = vld [vmem:[%s5795_s17 + $0xe8] sm:$0xff]  ;;  %v5521_v60 = vpack.c.bf16 %v749_v50, %v724_v46  ;;  %v576_v61 = vadd.f32 %v5072_v58, %v175_v54  ;;  %v203_v1 = vld [vmem:[%s5795_s17 + $0x100] sm:$0xff]  ;;  %v5075_v2 = vld [vmem:[%s5795_s17 + $0x678] sm:$0xff] }
  0x2c   : > { %v5097_v59 = vld [vmem:[%s5795_s17 + $0x728] sm:$0xff]  ;;  %5506 = vmatpush1.bf16.msra.mxu0 %v5505_v49  ;;  %v5100_v4 = vld [vmem:[%s5795_s17 + $0x740] sm:$0xff]  ;;  %v579_v5 = vadd.f32 %v5075_v2, %v178_v63  ;;  %v177_v6 = vld [vmem:[%s5795_s17 + $0x30] sm:$0xff] }
  0x2d   : > { %v601_v62 = vadd.f32 %v5097_v59, %v200_v57  ;;  %v5523_v3 = vpack.c.bf16 %v602_v56, %v577_v55  ;;  %v202_v7 = vld [vmem:[%s5795_s17 + $0xf8] sm:$0xff]  ;;  %5522 = vmatpush1.bf16.msra.mxu1 %v5521_v60  ;;  %v5883_v8 = vld [vmem:[%s11021_s1 + $0x8] sm:$0xff]  ;;  %v604_v10 = vadd.f32 %v5100_v4, %v203_v1  ;;  %v5074_v11 = vld [vmem:[%s5795_s17 + $0x670] sm:$0xff] }
  0x2e   : > { %v5099_v12 = vld [vmem:[%s5795_s17 + $0x738] sm:$0xff]  ;;  %v578_v14 = vadd.f32 %v5074_v11, %v177_v6  ;;  %v251_v16 = vld [vmem:[%s5795_s17 + $0x280] sm:$0xff]  ;;  %v225_v22 = vld [vmem:[%s5795_s17 + $0x1b0] sm:$0xff] }
  0x2f   : > { %v5525_v9 = vpack.c.bf16 %v601_v62, %v576_v61  ;;  %v226_v13 = vld [vmem:[%s5795_s17 + $0x1b8] sm:$0xff]  ;;  %5268 = vmatmul.mubr.msk.f32.vlgmr.msra.gmra.mrb[0].mxu0 %vm784_vm0, %v5866_v51  ;;  %5524 = vmatprep.subr.bf16.mxu0 %v5523_v3  ;;  %v603_v15 = vadd.f32 %v5099_v12, %v202_v7  ;;  %v5148_v18 = vld [vmem:[%s5795_s17 + $0x8c0] sm:$0xff]  ;;  %v5539_v19 = vpack.c.bf16 %v604_v10, %v579_v5  ;;  %v5122_v24 = vld [vmem:[%s5795_s17 + $0x7f0] sm:$0xff] }
  0x30   : > { %v5123_v17 = vld [vmem:[%s5795_s17 + $0x7f8] sm:$0xff]  ;;  %891 = vmatprep.mubr.f32.mxu0 %v5754_v0  ;;  %v652_v21 = vadd.f32 %v5148_v18, %v251_v16  ;;  %5280 = vmatmul.mubr.msk.f32.vlgmr.msra.gmra.mrb[0].mxu1 %vm784_vm0, %v5866_v51  ;;  %v626_v27 = vadd.f32 %v5122_v24, %v225_v22  ;;  %v228_v28 = vld [vmem:[%s5795_s17 + $0x1c8] sm:$0xff]  ;;  %v253_v29 = vld [vmem:[%s5795_s17 + $0x290] sm:$0xff] }
  0x31   : > { %5526 = vmatpush1.bf16.msra.mxu0 %v5525_v9  ;;  %v627_v20 = vadd.f32 %v5123_v17, %v226_v13  ;;  %v250_v23 = vld [vmem:[%s5795_s17 + $0x278] sm:$0xff]  ;;  %v5541_v25 = vpack.c.bf16 %v603_v15, %v578_v14  ;;  %1028 = vmatprep.mubr.f32.mxu1 %v5754_v0  ;;  %v5906_v30 = vld [vmem:[%s11021_s1 + $0x10] sm:$0xff]  ;;  %v5125_v33 = vld [vmem:[%s5795_s17 + $0x808] sm:$0xff] }
  0x32   : > { %v5147_v26 = vld [vmem:[%s5795_s17 + $0x8b8] sm:$0xff]  ;;  %5540 = vmatprep.subr.bf16.mxu1 %v5539_v19  ;;  %v5150_v34 = vld [vmem:[%s5795_s17 + $0x8d0] sm:$0xff]  ;;  %v227_v35 = vld [vmem:[%s5795_s17 + $0x1c0] sm:$0xff]  ;;  %v629_v36 = vadd.f32 %v5125_v33, %v228_v28 }
  0x33   : > { %v5527_v31 = vpack.c.bf16 %v652_v21, %v627_v20  ;;  %v651_v32 = vadd.f32 %v5147_v26, %v250_v23  ;;  %5269 = vmatmul.mubr.msk.f32.gmra.mrb[2].mxu0 %vm784_vm0, %v5883_v8  ;;  %5542 = vmatpush1.bf16.msra.mxu1 %v5541_v25  ;;  %v654_v37 = vadd.f32 %v5150_v34, %v253_v29  ;;  %v252_v38 = vld [vmem:[%s5795_s17 + $0x288] sm:$0xff]  ;;  %v5124_v39 = vld [vmem:[%s5795_s17 + $0x800] sm:$0xff]  ;;  %v301_v45 = vld [vmem:[%s5795_s17 + $0x410] sm:$0xff] }
  0x34   : > { %v5149_v40 = vld [vmem:[%s5795_s17 + $0x8c8] sm:$0xff]  ;;  %897 = vmatprep.mubr.f32.mxu0 %v5754_v0  ;;  %v628_v42 = vadd.f32 %v5124_v39, %v227_v35  ;;  %5281 = vmatmul.mubr.msk.f32.gmra.mrb[2].mxu1 %vm784_vm0, %v5883_v8  ;;  %v5198_v48 = vld [vmem:[%s5795_s17 + $0xa50] sm:$0xff]  ;;  %v275_v50 = vld [vmem:[%s5795_s17 + $0x340] sm:$0xff] }
  0x35   : > { %5528 = vmatprep.subr.bf16.mxu0 %v5527_v31  ;;  %v5529_v41 = vpack.c.bf16 %v651_v32, %v626_v27  ;;  %v653_v43 = vadd.f32 %v5149_v40, %v252_v38  ;;  %v276_v44 = vld [vmem:[%s5795_s17 + $0x348] sm:$0xff]  ;;  %v5543_v47 = vpack.c.bf16 %v654_v37, %v629_v36  ;;  %1034 = vmatprep.mubr.f32.mxu1 %v5754_v0  ;;  %v5929_v53 = vld [vmem:[%s11021_s1 + $0x18] sm:$0xff]  ;;  %v5172_v56 = vld [vmem:[%s5795_s17 + $0x980] sm:$0xff] }
  0x36   : > { %v5173_v46 = vld [vmem:[%s5795_s17 + $0x988] sm:$0xff]  ;;  %v702_v55 = vadd.f32 %v5198_v48, %v301_v45  ;;  %v278_v58 = vld [vmem:[%s5795_s17 + $0x358] sm:$0xff]  ;;  %v676_v59 = vadd.f32 %v5172_v56, %v275_v50  ;;  %v303_v61 = vld [vmem:[%s5795_s17 + $0x420] sm:$0xff] }
  0x37   : > { %v677_v49 = vadd.f32 %v5173_v46, %v276_v44  ;;  %v300_v52 = vld [vmem:[%s5795_s17 + $0x408] sm:$0xff]  ;;  %5530 = vmatpush1.bf16.msra.mxu0 %v5529_v41  ;;  %v5545_v54 = vpack.c.bf16 %v653_v43, %v628_v42  ;;  %5544 = vmatprep.subr.bf16.mxu1 %v5543_v47  ;;  %v5175_v62 = vld [vmem:[%s5795_s17 + $0x998] sm:$0xff]  ;;  %v5200_v63 = vld [vmem:[%s5795_s17 + $0xa60] sm:$0xff] }
  0x38   : > { %v5197_v57 = vld [vmem:[%s5795_s17 + $0xa48] sm:$0xff]  ;;  %5270 = vmatmul.mubr.msk.f32.gmra.mrb[4].mxu0 %vm784_vm0, %v5906_v30  ;;  %v679_v2 = vadd.f32 %v5175_v62, %v278_v58  ;;  %v704_v3 = vadd.f32 %v5200_v63, %v303_v61  ;;  %v277_v4 = vld [vmem:[%s5795_s17 + $0x350] sm:$0xff]  ;;  %v302_v5 = vld [vmem:[%s5795_s17 + $0x418] sm:$0xff]  ;;  %5282 = vmatmul.mubr.msk.f32.gmra.mrb[4].mxu1 %vm784_vm0, %v5906_v30 }
  0x39   : > { %v701_v60 = vadd.f32 %v5197_v57, %v300_v52  ;;  %903 = vmatprep.mubr.f32.mxu0 %v5754_v0  ;;  %5546 = vmatpush1.bf16.msra.mxu1 %v5545_v54  ;;  %v5531_v1 = vpack.c.bf16 %v702_v55, %v677_v49  ;;  %v5174_v6 = vld [vmem:[%s5795_s17 + $0x990] sm:$0xff]  ;;  %v5199_v9 = vld [vmem:[%s5795_s17 + $0xa58] sm:$0xff]  ;;  %v351_v12 = vld [vmem:[%s5795_s17 + $0x5a0] sm:$0xff] }
  0x3a   : > { %v678_v10 = vadd.f32 %v5174_v6, %v277_v4  ;;  %v326_v11 = vld [vmem:[%s5795_s17 + $0x4d8] sm:$0xff]  ;;  %1040 = vmatprep.mubr.f32.mxu1 %v5754_v0  ;;  %v5952_v13 = vld [vmem:[%s11021_s1 + $0x20] sm:$0xff]  ;;  %v5547_v14 = vpack.c.bf16 %v704_v3, %v679_v2  ;;  %v703_v15 = vadd.f32 %v5199_v9, %v302_v5  ;;  %v325_v18 = vld [vmem:[%s5795_s17 + $0x4d0] sm:$0xff] }
  0x3b   : > { %v5533_v7 = vpack.c.bf16 %v701_v60, %v676_v59  ;;  %5532 = vmatprep.subr.bf16.mxu0 %v5531_v1  ;;  %v5223_v16 = vld [vmem:[%s5795_s17 + $0xb18] sm:$0xff]  ;;  %v5248_v17 = vld [vmem:[%s5795_s17 + $0xbe0] sm:$0xff]  ;;  %v5222_v22 = vld [vmem:[%s5795_s17 + $0xb10] sm:$0xff] }
  0x3c   : > { %5271 = vmatmul.mubr.msk.f32.gmra.mrb[6].mxu0 %vm784_vm0, %v5929_v53  ;;  %v727_v19 = vadd.f32 %v5223_v16, %v326_v11  ;;  %v752_v20 = vadd.f32 %v5248_v17, %v351_v12  ;;  %v350_v21 = vld [vmem:[%s5795_s17 + $0x598] sm:$0xff]  ;;  %v5549_v24 = vpack.c.bf16 %v703_v15, %v678_v10  ;;  %v726_v25 = vadd.f32 %v5222_v22, %v325_v18  ;;  %v328_v27 = vld [vmem:[%s5795_s17 + $0x4e8] sm:$0xff]  ;;  %v353_v28 = vld [vmem:[%s5795_s17 + $0x5b0] sm:$0xff] }
  0x3d   : > { %v5247_v23 = vld [vmem:[%s5795_s17 + $0xbd8] sm:$0xff]  ;;  %909 = vmatprep.mubr.f32.mxu0 %v5754_v0  ;;  %5534 = vmatpush1.bf16.msra.mxu0 %v5533_v7  ;;  %v5225_v29 = vld [vmem:[%s5795_s17 + $0xb28] sm:$0xff]  ;;  %v5250_v32 = vld [vmem:[%s5795_s17 + $0xbf0] sm:$0xff] }
  0x3e   : > { %v751_v26 = vadd.f32 %v5247_v23, %v350_v21  ;;  %5283 = vmatmul.mubr.msk.f32.gmra.mrb[6].mxu1 %vm784_vm0, %v5929_v53  ;;  %5548 = vmatprep.subr.bf16.mxu1 %v5547_v14  ;;  %v5535_v31 = vpack.c.bf16 %v752_v20, %v727_v19  ;;  %v729_v33 = vadd.f32 %v5225_v29, %v328_v27  ;;  %v327_v34 = vld [vmem:[%s5795_s17 + $0x4e0] sm:$0xff]  ;;  %v352_v35 = vld [vmem:[%s5795_s17 + $0x5a8] sm:$0xff]  ;;  %v205_v43 = vld [vmem:[%s5795_s17 + $0x110] sm:$0xff] }
  0x3f   : > { %1046 = vmatprep.mubr.f32.mxu1 %v5754_v0  ;;  %5550 = vmatpush1.bf16.msra.mxu1 %v5549_v24  ;;  %v754_v37 = vadd.f32 %v5250_v32, %v353_v28  ;;  %v5224_v38 = vld [vmem:[%s5795_s17 + $0xb20] sm:$0xff]  ;;  %v5249_v39 = vld [vmem:[%s5795_s17 + $0xbe8] sm:$0xff]  ;;  %v5102_v45 = vld [vmem:[%s5795_s17 + $0x750] sm:$0xff] }
  0x40   : > { %v5537_v36 = vpack.c.bf16 %v751_v26, %v726_v25  ;;  %v180_v40 = vld [vmem:[%s5795_s17 + $0x48] sm:$0xff]  ;;  %5272 = vmatmul.mubr.msk.f32.gmra.mrb[8].mxu0 %vm784_vm0, %v5952_v13  ;;  %5536 = vmatprep.subr.bf16.mxu0 %v5535_v31  ;;  %v728_v41 = vadd.f32 %v5224_v38, %v327_v34  ;;  %v753_v42 = vadd.f32 %v5249_v39, %v352_v35  ;;  %v182_v52 = vld [vmem:[%s5795_s17 + $0x58] sm:$0xff]  ;;  %v207_v54 = vld [vmem:[%s5795_s17 + $0x120] sm:$0xff] }
  0x41   : > { %v5077_v44 = vld [vmem:[%s5795_s17 + $0x688] sm:$0xff]  ;;  %915 = vmatprep.mubr.f32.mxu0 %v5754_v0  ;;  %v5551_v47 = vpack.c.bf16 %v754_v37, %v729_v33  ;;  %v606_v49 = vadd.f32 %v5102_v45, %v205_v43  ;;  %v5079_v56 = vld [vmem:[%s5795_s17 + $0x698] sm:$0xff]  ;;  %v5104_v57 = vld [vmem:[%s5795_s17 + $0x760] sm:$0xff] }
  0x42   : > { %v5984_v46 = vld [vmem:[%s11021_s1 + $0x28] sm:$0xff]  ;;  %5538 = vmatpush1.bf16.msra.mxu0 %v5537_v36  ;;  %v581_v48 = vadd.f32 %v5077_v44, %v180_v40  ;;  %5284 = vmatmul.mubr.msk.f32.gmra.mrb[8].mxu1 %vm784_vm0, %v5952_v13  ;;  %v5553_v50 = vpack.c.bf16 %v753_v42, %v728_v41  ;;  %v583_v58 = vadd.f32 %v5079_v56, %v182_v52  ;;  %v5999_v60 = vld [vmem:[%s11021_s1 + $0x30] sm:$0xff]  ;;  %v6010_v62 = vld [vmem:[%s11021_s1 + $0x38] sm:$0xff] }
  0x43   : > { %1052 = vmatprep.mubr.f32.mxu1 %v5754_v0  ;;  %5552 = vmatprep.subr.bf16.mxu1 %v5551_v47  ;;  %v608_v59 = vadd.f32 %v5104_v57, %v207_v54  ;;  %v6021_v63 = vld [vmem:[%s11021_s1 + $0x40] sm:$0xff]  ;;  %v6032_v1 = vld [vmem:[%s11021_s1 + $0x48] sm:$0xff]  ;;  %v6042_v2 = vld [vmem:[%s11021_s1 + $0x50] sm:$0xff] }
  0x44   : > { %v5555_v55 = vpack.c.bf16 %v606_v49, %v581_v48  ;;  %5273 = vmatmul.mubr.msk.f32.gmra.mrb[10].mxu0 %vm784_vm0, %v5984_v46  ;;  %5554 = vmatpush1.bf16.msra.mxu1 %v5553_v50  ;;  %v179_v3 = vld [vmem:[%s5795_s17 + $0x40] sm:$0xff]  ;;  %v204_v4 = vld [vmem:[%s5795_s17 + $0x108] sm:$0xff]  ;;  %v181_v7 = vld [vmem:[%s5795_s17 + $0x50] sm:$0xff] }
  0x45   : > { %921 = vmatprep.mubr.f32.mxu0 %v5754_v0  ;;  %v5571_v61 = vpack.c.bf16 %v608_v59, %v583_v58  ;;  %v5076_v5 = vld [vmem:[%s5795_s17 + $0x680] sm:$0xff]  ;;  %v5101_v6 = vld [vmem:[%s5795_s17 + $0x748] sm:$0xff]  ;;  %v206_v9 = vld [vmem:[%s5795_s17 + $0x118] sm:$0xff] }
  0x46   : > { %5556 = vmatprep.subr.bf16.mxu0 %v5555_v55  ;;  %5285 = vmatmul.mubr.msk.f32.gmra.mrb[10].mxu1 %vm784_vm0, %v5984_v46  ;;  %v5078_v10 = vld [vmem:[%s5795_s17 + $0x690] sm:$0xff]  ;;  %v5103_v11 = vld [vmem:[%s5795_s17 + $0x758] sm:$0xff]  ;;  %v255_v15 = vld [vmem:[%s5795_s17 + $0x2a0] sm:$0xff]  ;;  %v580_v23 = vadd.f32 %v5076_v5, %v179_v3  ;;  %v605_v24 = vadd.f32 %v5101_v6, %v204_v4 }
  0x47   : > { %1058 = vmatprep.mubr.f32.mxu1 %v5754_v0  ;;  %5572 = vmatprep.subr.bf16.mxu1 %v5571_v61  ;;  %v230_v12 = vld [vmem:[%s5795_s17 + $0x1d8] sm:$0xff]  ;;  %v5152_v17 = vld [vmem:[%s5795_s17 + $0x8e0] sm:$0xff]  ;;  %v229_v18 = vld [vmem:[%s5795_s17 + $0x1d0] sm:$0xff]  ;;  %v582_v36 = vadd.f32 %v5078_v10, %v181_v7  ;;  %v607_v37 = vadd.f32 %v5103_v11, %v206_v9 }
  0x48   : > { %5274 = vmatmul.mubr.msk.f32.gmra.mrb[12].mxu0 %vm784_vm0, %v5999_v60  ;;  %v6060_v14 = vld [vmem:[%s11021_s1 + $0x58] sm:$0xff]  ;;  %v5126_v20 = vld [vmem:[%s5795_s17 + $0x810] sm:$0xff]  ;;  %v232_v22 = vld [vmem:[%s5795_s17 + $0x1e8] sm:$0xff]  ;;  %v656_v29 = vadd.f32 %v5152_v17, %v255_v15  ;;  %v5557_v49 = vpack.c.bf16 %v605_v24, %v580_v23 }
  0x49   : > { %927 = vmatprep.mubr.f32.mxu0 %v5754_v0  ;;  %v5127_v16 = vld [vmem:[%s5795_s17 + $0x818] sm:$0xff]  ;;  %v257_v25 = vld [vmem:[%s5795_s17 + $0x2b0] sm:$0xff]  ;;  %v5129_v26 = vld [vmem:[%s5795_s17 + $0x828] sm:$0xff]  ;;  %v6099_v50 = vadd.f32 %v5126_v20, %v229_v18  ;;  %v5573_v7 = vpack.c.bf16 %v607_v37, %v582_v36 }
  0x4a   : > { %5286 = vmatmul.mubr.msk.f32.gmra.mrb[12].mxu1 %vm784_vm0, %v5999_v60  ;;  %v254_v19 = vld [vmem:[%s5795_s17 + $0x298] sm:$0xff]  ;;  %v5154_v27 = vld [vmem:[%s5795_s17 + $0x8f0] sm:$0xff]  ;;  %v631_v28 = vadd.f32 %v5127_v16, %v230_v12  ;;  %v231_v31 = vld [vmem:[%s5795_s17 + $0x1e0] sm:$0xff]  ;;  %v6089_v41 = vadd.f32 %v5129_v26, %v232_v22 }
  0x4b   : > { %1064 = vmatprep.mubr.f32.mxu1 %v5754_v0  ;;  %v5151_v21 = vld [vmem:[%s5795_s17 + $0x8d8] sm:$0xff]  ;;  %v256_v32 = vld [vmem:[%s5795_s17 + $0x2a8] sm:$0xff]  ;;  %v5128_v33 = vld [vmem:[%s5795_s17 + $0x820] sm:$0xff]  ;;  %v6091_v42 = vadd.f32 %v5154_v27, %v257_v25 }
  0x4c   : > { %5275 = vmatmul.mubr.msk.f32.gmra.mrb[14].mxu0 %vm784_vm0, %v6010_v62  ;;  %v5153_v34 = vld [vmem:[%s5795_s17 + $0x8e8] sm:$0xff]  ;;  %v305_v38 = vld [vmem:[%s5795_s17 + $0x430] sm:$0xff]  ;;  %v279_v43 = vld [vmem:[%s5795_s17 + $0x360] sm:$0xff]  ;;  %v655_v52 = vadd.f32 %v5151_v21, %v254_v19  ;;  %v5559_v57 = vpack.c.bf16 %v656_v29, %v631_v28  ;;  %v632_v9 = vadd.f32 %v5128_v33, %v231_v31 }
  0x4d   : > { %933 = vmatprep.mubr.f32.mxu0 %v5754_v0  ;;  %v280_v35 = vld [vmem:[%s5795_s17 + $0x368] sm:$0xff]  ;;  %v5202_v40 = vld [vmem:[%s5795_s17 + $0xa70] sm:$0xff]  ;;  %v5176_v45 = vld [vmem:[%s5795_s17 + $0x9a0] sm:$0xff]  ;;  %v657_v10 = vadd.f32 %v5153_v34, %v256_v32  ;;  %v5575_v16 = vpack.c.bf16 %v6091_v42, %v6089_v41 }
  0x4e   : > { %5287 = vmatmul.mubr.msk.f32.gmra.mrb[14].mxu1 %vm784_vm0, %v6010_v62  ;;  %v5177_v39 = vld [vmem:[%s5795_s17 + $0x9a8] sm:$0xff]  ;;  %v282_v48 = vld [vmem:[%s5795_s17 + $0x378] sm:$0xff]  ;;  %v307_v54 = vld [vmem:[%s5795_s17 + $0x440] sm:$0xff]  ;;  %v6108_v59 = vadd.f32 %v5202_v40, %v305_v38  ;;  %v5561_v24 = vpack.c.bf16 %v655_v52, %v6099_v50  ;;  %v680_v25 = vadd.f32 %v5176_v45, %v279_v43 }
  0x4f   : > { %1070 = vmatprep.mubr.f32.mxu1 %v5754_v0  ;;  %v304_v44 = vld [vmem:[%s5795_s17 + $0x428] sm:$0xff]  ;;  %v5179_v55 = vld [vmem:[%s5795_s17 + $0x9b8] sm:$0xff]  ;;  %v5204_v56 = vld [vmem:[%s5795_s17 + $0xa80] sm:$0xff]  ;;  %v6106_v58 = vadd.f32 %v5177_v39, %v280_v35  ;;  %v5577_v37 = vpack.c.bf16 %v657_v10, %v632_v9 }
  0x50   : > { %5276 = vmatmul.mubr.msk.f32.gmra.mrb[16].mxu0 %vm784_vm0, %v6021_v63  ;;  %v5201_v47 = vld [vmem:[%s5795_s17 + $0xa68] sm:$0xff]  ;;  %v281_v61 = vld [vmem:[%s5795_s17 + $0x370] sm:$0xff]  ;;  %v306_v3 = vld [vmem:[%s5795_s17 + $0x438] sm:$0xff]  ;;  %v683_v17 = vadd.f32 %v5179_v55, %v282_v48  ;;  %v708_v18 = vadd.f32 %v5204_v56, %v307_v54 }
  0x51   : > { %939 = vmatprep.mubr.f32.mxu0 %v5754_v0  ;;  %v5178_v4 = vld [vmem:[%s5795_s17 + $0x9b0] sm:$0xff]  ;;  %v5203_v5 = vld [vmem:[%s5795_s17 + $0xa78] sm:$0xff]  ;;  %v355_v11 = vld [vmem:[%s5795_s17 + $0x5c0] sm:$0xff]  ;;  %v705_v26 = vadd.f32 %v5201_v47, %v304_v44  ;;  %v5563_v31 = vpack.c.bf16 %v6108_v59, %v6106_v58 }
  0x52   : > { %5288 = vmatmul.mubr.msk.f32.gmra.mrb[16].mxu1 %vm784_vm0, %v6021_v63  ;;  %v330_v6 = vld [vmem:[%s5795_s17 + $0x4f8] sm:$0xff]  ;;  %v5252_v15 = vld [vmem:[%s5795_s17 + $0xc00] sm:$0xff]  ;;  %v329_v19 = vld [vmem:[%s5795_s17 + $0x4f0] sm:$0xff]  ;;  %v682_v38 = vadd.f32 %v5178_v4, %v281_v61  ;;  %v707_v39 = vadd.f32 %v5203_v5, %v306_v3  ;;  %v5579_v43 = vpack.c.bf16 %v708_v18, %v683_v17 }
  0x53   : > { %1076 = vmatprep.mubr.f32.mxu1 %v5754_v0  ;;  %v5227_v12 = vld [vmem:[%s5795_s17 + $0xb38] sm:$0xff]  ;;  %v5226_v21 = vld [vmem:[%s5795_s17 + $0xb30] sm:$0xff]  ;;  %v332_v23 = vld [vmem:[%s5795_s17 + $0x508] sm:$0xff]  ;;  %v756_v33 = vadd.f32 %v5252_v15, %v355_v11  ;;  %v5565_v50 = vpack.c.bf16 %v705_v26, %v680_v25 }
  0x54   : > { %5277 = vmatmul.mubr.msk.f32.gmra.mrb[18].mxu0 %vm784_vm0, %v6032_v1  ;;  %v354_v20 = vld [vmem:[%s5795_s17 + $0x5b8] sm:$0xff]  ;;  %v357_v27 = vld [vmem:[%s5795_s17 + $0x5d0] sm:$0xff]  ;;  %v5229_v28 = vld [vmem:[%s5795_s17 + $0xb48] sm:$0xff]  ;;  %v731_v32 = vadd.f32 %v5227_v12, %v330_v6  ;;  %v730_v52 = vadd.f32 %v5226_v21, %v329_v19  ;;  %v5581_v3 = vpack.c.bf16 %v707_v39, %v682_v38 }
  0x55   : > { %945 = vmatprep.mubr.f32.mxu0 %v5754_v0  ;;  %v5251_v22 = vld [vmem:[%s5795_s17 + $0xbf8] sm:$0xff]  ;;  %v5254_v29 = vld [vmem:[%s5795_s17 + $0xc10] sm:$0xff]  ;;  %v331_v34 = vld [vmem:[%s5795_s17 + $0x500] sm:$0xff]  ;;  %v733_v44 = vadd.f32 %v5229_v28, %v332_v23 }
  0x56   : > { %5289 = vmatmul.mubr.msk.f32.gmra.mrb[18].mxu1 %vm784_vm0, %v6032_v1  ;;  %v356_v35 = vld [vmem:[%s5795_s17 + $0x5c8] sm:$0xff]  ;;  %v209_v40 = vld [vmem:[%s5795_s17 + $0x130] sm:$0xff]  ;;  %v758_v45 = vadd.f32 %v5254_v29, %v357_v27  ;;  %v5228_v47 = vld [vmem:[%s5795_s17 + $0xb40] sm:$0xff]  ;;  %v755_v54 = vadd.f32 %v5251_v22, %v354_v20  ;;  %v5567_v58 = vpack.c.bf16 %v756_v33, %v731_v32 }
  0x57   : > { %1082 = vmatprep.mubr.f32.mxu1 %v5754_v0  ;;  %v184_v36 = vld [vmem:[%s5795_s17 + $0x68] sm:$0xff]  ;;  %v5106_v42 = vld [vmem:[%s5795_s17 + $0x770] sm:$0xff]  ;;  %v211_v55 = vld [vmem:[%s5795_s17 + $0x140] sm:$0xff]  ;;  %v732_v4 = vadd.f32 %v5228_v47, %v331_v34 }
  0x58   : > { %5278 = vmatmul.mubr.msk.f32.gmra.mrb[20].mxu0 %vm784_vm0, %v6042_v2  ;;  %v5081_v41 = vld [vmem:[%s5795_s17 + $0x6a8] sm:$0xff]  ;;  %v5083_v56 = vld [vmem:[%s5795_s17 + $0x6b8] sm:$0xff]  ;;  %v610_v61 = vadd.f32 %v5106_v42, %v209_v40  ;;  %v5583_v6 = vpack.c.bf16 %v758_v45, %v733_v44  ;;  %v5569_v10 = vpack.c.bf16 %v755_v54, %v730_v52  ;;  %v5080_v18 = vld [vmem:[%s5795_s17 + $0x6a0] sm:$0xff] }
  0x59   : > { %951 = vmatprep.mubr.f32.mxu0 %v5754_v0  ;;  %v5253_v48 = vld [vmem:[%s5795_s17 + $0xc08] sm:$0xff]  ;;  %v585_v59 = vadd.f32 %v5081_v41, %v184_v36  ;;  %v185_v20 = vld [vmem:[%s5795_s17 + $0x70] sm:$0xff]  ;;  %v210_v21 = vld [vmem:[%s5795_s17 + $0x138] sm:$0xff] }
  0x5a   : > { %5290 = vmatmul.mubr.msk.f32.gmra.mrb[20].mxu1 %vm784_vm0, %v6042_v2  ;;  %v757_v5 = vadd.f32 %v5253_v48, %v356_v35  ;;  %v208_v17 = vld [vmem:[%s5795_s17 + $0x128] sm:$0xff]  ;;  %v5082_v22 = vld [vmem:[%s5795_s17 + $0x6b0] sm:$0xff]  ;;  %v5107_v23 = vld [vmem:[%s5795_s17 + $0x778] sm:$0xff] }
  0x5b   : > { %1088 = vmatprep.mubr.f32.mxu1 %v5754_v0  ;;  %v5587_v11 = vpack.c.bf16 %v610_v61, %v585_v59  ;;  %v5105_v19 = vld [vmem:[%s5795_s17 + $0x768] sm:$0xff]  ;;  %v259_v25 = vld [vmem:[%s5795_s17 + $0x2c0] sm:$0xff]  ;;  %v5131_v26 = vld [vmem:[%s5795_s17 + $0x838] sm:$0xff]  ;;  %v586_v47 = vadd.f32 %v5082_v22, %v185_v20  ;;  %v611_v48 = vadd.f32 %v5107_v23, %v210_v21 }
  0x5c   : > { %5279 = vmatmul.mubr.msk.f32.gmra.mrb[22].mxu0 %vm784_vm0, %v6060_v14  ;;  %v5585_v12 = vpack.c.bf16 %v757_v5, %v732_v4  ;;  %v5156_v27 = vld [vmem:[%s5795_s17 + $0x900] sm:$0xff]  ;;  %v233_v28 = vld [vmem:[%s5795_s17 + $0x1f0] sm:$0xff]  ;;  %v258_v29 = vld [vmem:[%s5795_s17 + $0x2b8] sm:$0xff]  ;;  %v609_v35 = vadd.f32 %v5105_v19, %v208_v17 }
  0x5d   : > { %1159 = vmatprep.mubr.f32.mxu0 %v5754_v0  ;;  %v5155_v32 = vld [vmem:[%s5795_s17 + $0x8f8] sm:$0xff]  ;;  %v236_v33 = vld [vmem:[%s5795_s17 + $0x208] sm:$0xff]  ;;  %v261_v36 = vld [vmem:[%s5795_s17 + $0x2d0] sm:$0xff]  ;;  %v660_v40 = vadd.f32 %v5156_v27, %v259_v25  ;;  %v5605_v19 = vpack.c.bf16 %v611_v48, %v586_v47 }
  0x5e   : > { %5291 = vmatmul.mubr.msk.f32.gmra.mrb[22].mxu1 %vm784_vm0, %v6060_v14  ;;  %v5158_v38 = vld [vmem:[%s5795_s17 + $0x910] sm:$0xff]  ;;  %v235_v41 = vld [vmem:[%s5795_s17 + $0x200] sm:$0xff]  ;;  %v260_v42 = vld [vmem:[%s5795_s17 + $0x2c8] sm:$0xff]  ;;  %v659_v5 = vadd.f32 %v5155_v32, %v258_v29 }
  0x5f   : > { %1296 = vmatprep.mubr.f32.mxu1 %v5754_v0  ;;  %v5157_v44 = vld [vmem:[%s5795_s17 + $0x908] sm:$0xff]  ;;  %v5206_v52 = vld [vmem:[%s5795_s17 + $0xa90] sm:$0xff]  ;;  %v286_v61 = vld [vmem:[%s5795_s17 + $0x398] sm:$0xff] }
  0x60   : > { %5292 = vmatmul.mubr.msk.f32.vlgmr.msra.gmra.mrb[24].mxu0 %vm784_vm0, %v5866_v51  ;;  %v284_v45 = vld [vmem:[%s5795_s17 + $0x388] sm:$0xff]  ;;  %v5182_v17 = vld [vmem:[%s5795_s17 + $0x9d0] sm:$0xff]  ;;  %v661_v21 = vadd.f32 %v5157_v44, %v260_v42  ;;  %v359_v22 = vld [vmem:[%s5795_s17 + $0x5e0] sm:$0xff] }
  0x61   : > { %1165 = vmatprep.mubr.f32.mxu0 %v5754_v0  ;;  %5558 = vmatpush1.bf16.msra.mxu0 %v5557_v49  ;;  %v186_v49 = vld [vmem:[%s5795_s17 + $0x78] sm:$0xff]  ;;  %v5205_v59 = vld [vmem:[%s5795_s17 + $0xa88] sm:$0xff]  ;;  %v333_v29 = vld [vmem:[%s5795_s17 + $0x510] sm:$0xff] }
  0x62   : > { %5304 = vmatmul.mubr.msk.f32.vlgmr.msra.gmra.mrb[24].mxu1 %vm784_vm0, %v5866_v51  ;;  %5560 = vmatprep.subr.bf16.mxu0 %v5559_v57  ;;  %v5108_v57 = vld [vmem:[%s5795_s17 + $0x780] sm:$0xff]  ;;  %v5231_v23 = vld [vmem:[%s5795_s17 + $0xb58] sm:$0xff]  ;;  %v5230_v42 = vld [vmem:[%s5795_s17 + $0xb50] sm:$0xff] }
  0x63   : > { %1302 = vmatprep.mubr.f32.mxu1 %v5754_v0  ;;  %5574 = vmatpush1.bf16.msra.mxu1 %v5573_v7  ;;  %v587_v7 = vadd.f32 %v5083_v56, %v186_v49  ;;  %v612_v9 = vadd.f32 %v5108_v57, %v211_v55  ;;  %v309_v49 = vld [vmem:[%s5795_s17 + $0x450] sm:$0xff]  ;;  %v662_v55 = vadd.f32 %v5158_v38, %v261_v36  ;;  %v283_v56 = vld [vmem:[%s5795_s17 + $0x380] sm:$0xff]  ;;  %v308_v57 = vld [vmem:[%s5795_s17 + $0x448] sm:$0xff] }
  0x64   : > { %5293 = vmatmul.mubr.msk.f32.gmra.mrb[26].mxu0 %vm784_vm0, %v5883_v8  ;;  %5576 = vmatprep.subr.bf16.mxu1 %v5575_v16  ;;  %v183_v16 = vld [vmem:[%s5795_s17 + $0x60] sm:$0xff]  ;;  %v5233_v36 = vld [vmem:[%s5795_s17 + $0xb68] sm:$0xff] }
  0x65   : > { %1171 = vmatprep.mubr.f32.mxu0 %v5754_v0  ;;  %5562 = vmatpush1.bf16.msra.mxu0 %v5561_v24  ;;  %v5603_v15 = vpack.c.bf16 %v612_v9, %v587_v7  ;;  %v234_v24 = vld [vmem:[%s5795_s17 + $0x1f8] sm:$0xff]  ;;  %v584_v34 = vadd.f32 %v5080_v18, %v183_v16  ;;  %v5208_v9 = vld [vmem:[%s5795_s17 + $0xaa0] sm:$0xff] }
  0x66   : > { %5305 = vmatmul.mubr.msk.f32.gmra.mrb[26].mxu1 %vm784_vm0, %v5883_v8  ;;  %5564 = vmatprep.subr.bf16.mxu0 %v5563_v31  ;;  %v5130_v31 = vld [vmem:[%s5795_s17 + $0x830] sm:$0xff]  ;;  %v635_v39 = vadd.f32 %v5131_v26, %v234_v24  ;;  %v5183_v7 = vld [vmem:[%s5795_s17 + $0x9d8] sm:$0xff]  ;;  %v5256_v24 = vld [vmem:[%s5795_s17 + $0xc20] sm:$0xff] }
  0x67   : > { %1308 = vmatprep.mubr.f32.mxu1 %v5754_v0  ;;  %5578 = vmatpush1.bf16.msra.mxu1 %v5577_v37  ;;  %v5133_v37 = vld [vmem:[%s5795_s17 + $0x848] sm:$0xff]  ;;  %v634_v4 = vadd.f32 %v5130_v31, %v233_v28  ;;  %v310_v16 = vld [vmem:[%s5795_s17 + $0x458] sm:$0xff]  ;;  %v687_v26 = vadd.f32 %v5183_v7, %v286_v61  ;;  %v335_v48 = vld [vmem:[%s5795_s17 + $0x520] sm:$0xff] }
  0x68   : > { %5294 = vmatmul.mubr.msk.f32.gmra.mrb[28].mxu0 %vm784_vm0, %v5906_v30  ;;  %5580 = vmatprep.subr.bf16.mxu1 %v5579_v43  ;;  %v5132_v43 = vld [vmem:[%s5795_s17 + $0x840] sm:$0xff]  ;;  %v637_v54 = vadd.f32 %v5133_v37, %v236_v33  ;;  %v334_v18 = vld [vmem:[%s5795_s17 + $0x518] sm:$0xff]  ;;  %v336_v31 = vld [vmem:[%s5795_s17 + $0x528] sm:$0xff] }
  0x69   : > { %1177 = vmatprep.mubr.f32.mxu0 %v5754_v0  ;;  %5566 = vmatpush1.bf16.msra.mxu0 %v5565_v50  ;;  %v5181_v50 = vld [vmem:[%s5795_s17 + $0x9c8] sm:$0xff]  ;;  %v636_v20 = vadd.f32 %v5132_v43, %v235_v41  ;;  %v5207_v28 = vld [vmem:[%s5795_s17 + $0xa98] sm:$0xff]  ;;  %v5593_v32 = vpack.c.bf16 %v659_v5, %v634_v4  ;;  %v5258_v37 = vld [vmem:[%s5795_s17 + $0xc30] sm:$0xff] }
  0x6a   : > { %5306 = vmatmul.mubr.msk.f32.gmra.mrb[28].mxu1 %vm784_vm0, %v5906_v30  ;;  %5568 = vmatprep.subr.bf16.mxu0 %v5567_v58  ;;  %v5180_v58 = vld [vmem:[%s5795_s17 + $0x9c0] sm:$0xff]  ;;  %v5607_v25 = vpack.c.bf16 %v662_v55, %v637_v54  ;;  %v358_v41 = vld [vmem:[%s5795_s17 + $0x5d8] sm:$0xff]  ;;  %v711_v47 = vadd.f32 %v5207_v28, %v310_v16  ;;  %v5257_v55 = vld [vmem:[%s5795_s17 + $0xc28] sm:$0xff] }
  0x6b   : > { %1314 = vmatprep.mubr.f32.mxu1 %v5754_v0  ;;  %5582 = vmatpush1.bf16.msra.mxu1 %v5581_v3  ;;  %v5589_v3 = vpack.c.bf16 %v609_v35, %v584_v34  ;;  %v684_v33 = vadd.f32 %v5180_v58, %v283_v56  ;;  %v709_v34 = vadd.f32 %v5205_v59, %v308_v57  ;;  %v361_v35 = vld [vmem:[%s5795_s17 + $0x5f0] sm:$0xff]  ;;  %v5255_v43 = vld [vmem:[%s5795_s17 + $0xc18] sm:$0xff]  ;;  %v5232_v54 = vld [vmem:[%s5795_s17 + $0xb60] sm:$0xff] }
  0x6c   : > { %5295 = vmatmul.mubr.msk.f32.gmra.mrb[30].mxu0 %vm784_vm0, %v5929_v53  ;;  %5584 = vmatprep.subr.bf16.mxu1 %v5583_v6  ;;  %v311_v6 = vld [vmem:[%s5795_s17 + $0x460] sm:$0xff]  ;;  %v5609_v44 = vpack.c.bf16 %v661_v21, %v636_v20  ;;  %v734_v57 = vadd.f32 %v5230_v42, %v333_v29  ;;  %v759_v58 = vadd.f32 %v5255_v43, %v358_v41  ;;  %v213_v7 = vld [vmem:[%s5795_s17 + $0x150] sm:$0xff]  ;;  %v5109_v21 = vld [vmem:[%s5795_s17 + $0x788] sm:$0xff] }
  0x6d   : > { %1183 = vmatprep.mubr.f32.mxu0 %v5754_v0  ;;  %5570 = vmatpush1.bf16.msra.mxu0 %v5569_v10  ;;  %v5591_v10 = vpack.c.bf16 %v660_v40, %v635_v39  ;;  %v712_v27 = vadd.f32 %v5208_v9, %v311_v6  ;;  %v735_v39 = vadd.f32 %v5231_v23, %v334_v18  ;;  %v5085_v9 = vld [vmem:[%s5795_s17 + $0x6c8] sm:$0xff]  ;;  %v215_v16 = vld [vmem:[%s5795_s17 + $0x160] sm:$0xff]  ;;  %v5111_v28 = vld [vmem:[%s5795_s17 + $0x798] sm:$0xff] }
  0x6e   : > { %5307 = vmatmul.mubr.msk.f32.gmra.mrb[30].mxu1 %vm784_vm0, %v5929_v53  ;;  %5588 = vmatprep.subr.bf16.mxu0 %v5587_v11  ;;  %v685_v11 = vadd.f32 %v5181_v50, %v284_v45  ;;  %v760_v40 = vadd.f32 %v5256_v24, %v359_v22  ;;  %v762_v50 = vadd.f32 %v5258_v37, %v361_v35  ;;  %v5112_v18 = vld [vmem:[%s5795_s17 + $0x7a0] sm:$0xff]  ;;  %v238_v22 = vld [vmem:[%s5795_s17 + $0x218] sm:$0xff]  ;;  %v237_v29 = vld [vmem:[%s5795_s17 + $0x210] sm:$0xff] }
  0x6f   : > { %1320 = vmatprep.mubr.f32.mxu1 %v5754_v0  ;;  %5586 = vmatpush1.bf16.msra.mxu1 %v5585_v12  ;;  %v710_v12 = vadd.f32 %v5206_v52, %v309_v49  ;;  %v737_v49 = vadd.f32 %v5233_v36, %v336_v31  ;;  %v360_v52 = vld [vmem:[%s5795_s17 + $0x5e8] sm:$0xff]  ;;  %v5597_v56 = vpack.c.bf16 %v709_v34, %v684_v33  ;;  %v263_v23 = vld [vmem:[%s5795_s17 + $0x2e0] sm:$0xff]  ;;  %v5135_v24 = vld [vmem:[%s5795_s17 + $0x858] sm:$0xff] }
  0x70   : > { %5296 = vmatmul.mubr.msk.f32.gmra.mrb[32].mxu0 %vm784_vm0, %v5952_v13  ;;  %5604 = vmatprep.subr.bf16.mxu1 %v5603_v15  ;;  %v285_v15 = vld [vmem:[%s5795_s17 + $0x390] sm:$0xff]  ;;  %v5599_v59 = vpack.c.bf16 %v760_v40, %v735_v39  ;;  %v761_v4 = vadd.f32 %v5257_v55, %v360_v52  ;;  %v616_v20 = vadd.f32 %v5112_v18, %v215_v16  ;;  %v262_v31 = vld [vmem:[%s5795_s17 + $0x2d8] sm:$0xff]  ;;  %v240_v33 = vld [vmem:[%s5795_s17 + $0x228] sm:$0xff] }
  0x71   : > { %1189 = vmatprep.mubr.f32.mxu0 %v5754_v0  ;;  %v5595_v38 = vpack.c.bf16 %v710_v12, %v685_v11  ;;  %v686_v45 = vadd.f32 %v5182_v17, %v285_v15  ;;  %v5615_v5 = vpack.c.bf16 %v762_v50, %v737_v49  ;;  %v190_v15 = vld [vmem:[%s5795_s17 + $0x98] sm:$0xff]  ;;  %v265_v34 = vld [vmem:[%s5795_s17 + $0x2f0] sm:$0xff]  ;;  %v5137_v35 = vld [vmem:[%s5795_s17 + $0x868] sm:$0xff] }
  0x72   : > { %5308 = vmatmul.mubr.msk.f32.gmra.mrb[32].mxu1 %vm784_vm0, %v5952_v13  ;;  %v5087_v17 = vld [vmem:[%s5795_s17 + $0x6d8] sm:$0xff]  ;;  %v5162_v40 = vld [vmem:[%s5795_s17 + $0x930] sm:$0xff]  ;;  %v239_v41 = vld [vmem:[%s5795_s17 + $0x220] sm:$0xff]  ;;  %v641_v52 = vadd.f32 %v5137_v35, %v240_v33 }
  0x73   : > { %1326 = vmatprep.mubr.f32.mxu1 %v5754_v0  ;;  %v5613_v61 = vpack.c.bf16 %v711_v47, %v686_v45  ;;  %v264_v42 = vld [vmem:[%s5795_s17 + $0x2e8] sm:$0xff]  ;;  %v5136_v43 = vld [vmem:[%s5795_s17 + $0x860] sm:$0xff]  ;;  %v5210_v50 = vld [vmem:[%s5795_s17 + $0xab0] sm:$0xff] }
  0x74   : > { %5297 = vmatmul.mubr.msk.f32.gmra.mrb[34].mxu0 %vm784_vm0, %v5984_v46  ;;  %v288_v45 = vld [vmem:[%s5795_s17 + $0x3a8] sm:$0xff]  ;;  %v290_v55 = vld [vmem:[%s5795_s17 + $0x3b8] sm:$0xff]  ;;  %v5234_v33 = vld [vmem:[%s5795_s17 + $0xb70] sm:$0xff] }
  0x75   : > { %1195 = vmatprep.mubr.f32.mxu0 %v5754_v0  ;;  %v5185_v49 = vld [vmem:[%s5795_s17 + $0x9e8] sm:$0xff]  ;;  %v314_v18 = vld [vmem:[%s5795_s17 + $0x478] sm:$0xff] }
  0x76   : > { %5309 = vmatmul.mubr.msk.f32.gmra.mrb[34].mxu1 %vm784_vm0, %v5984_v46 }
  0x77   : > { %1332 = vmatprep.mubr.f32.mxu1 %v5754_v0 }
  0x78   : > { %5298 = vmatmul.mubr.msk.f32.gmra.mrb[36].mxu0 %vm784_vm0, %v5999_v60 }
  0x79   : > { %1201 = vmatprep.mubr.f32.mxu0 %v5754_v0 }
  0x7a   : > { %5310 = vmatmul.mubr.msk.f32.gmra.mrb[36].mxu1 %vm784_vm0, %v5999_v60 }
  0x7b   : > { %1338 = vmatprep.mubr.f32.mxu1 %v5754_v0 }
  0x7c   : > { %5299 = vmatmul.mubr.msk.f32.gmra.mrb[38].mxu0 %vm784_vm0, %v6010_v62 }
  0x7d   : > { %1207 = vmatprep.mubr.f32.mxu0 %v5754_v0 }
  0x7e   : > { %5311 = vmatmul.mubr.msk.f32.gmra.mrb[38].mxu1 %vm784_vm0, %v6010_v62 }
  0x7f   : > { %1344 = vmatprep.mubr.f32.mxu1 %v5754_v0 }
  0x80   : > { %5300 = vmatmul.mubr.msk.f32.gmra.mrb[40].mxu0 %vm784_vm0, %v6021_v63 }
  0x81   : > { %1213 = vmatprep.mubr.f32.mxu0 %v5754_v0 }
  0x82   : > { %5312 = vmatmul.mubr.msk.f32.gmra.mrb[40].mxu1 %vm784_vm0, %v6021_v63 }
  0x83   : > { %1350 = vmatprep.mubr.f32.mxu1 %v5754_v0 }
  0x84   : > { %5301 = vmatmul.mubr.msk.f32.gmra.mrb[42].mxu0 %vm784_vm0, %v6032_v1 }
  0x85   : > { %1219 = vmatprep.mubr.f32.mxu0 %v5754_v0 }
  0x86   : > { %5313 = vmatmul.mubr.msk.f32.gmra.mrb[42].mxu1 %vm784_vm0, %v6032_v1 }
  0x87   : > { %1356 = vmatprep.mubr.f32.mxu1 %v5754_v0 }
  0x88   : > { %5302 = vmatmul.mubr.msk.f32.gmra.mrb[44].mxu0 %vm784_vm0, %v6042_v2 }
  0x89   : > { %1225 = vmatprep.mubr.f32.mxu0 %v5754_v0 }
  0x8a   : > { %5314 = vmatmul.mubr.msk.f32.gmra.mrb[44].mxu1 %vm784_vm0, %v6042_v2 }
  0x8b   : > { %1362 = vmatprep.mubr.f32.mxu1 %v5754_v0 }
  0x8c   : > { %5303 = vmatmul.mubr.msk.f32.gmra.mrb[46].mxu0 %vm784_vm0, %v6060_v14 }
  0x8d   : > { %1433 = vmatprep.mubr.f32.mxu0 %v5754_v0 }
  0x8e   : > { %5315 = vmatmul.mubr.msk.f32.gmra.mrb[46].mxu1 %vm784_vm0, %v6060_v14 }
  0x8f   : > { %1570 = vmatprep.mubr.f32.mxu1 %v5754_v0 }
  0x90   : > { %5316 = vmatmul.mubr.msk.f32.vlgmr.msra.gmra.mrb[48].mxu0 %vm784_vm0, %v5866_v51 }
  0x91   : > { %1439 = vmatprep.mubr.f32.mxu0 %v5754_v0  ;;  %5590 = vmatpush1.bf16.msra.mxu0 %v5589_v3  ;;  %v736_v3 = vadd.f32 %v5232_v54, %v335_v48  ;;  %v666_v54 = vadd.f32 %v5162_v40, %v265_v34  ;;  %v5259_v34 = vld [vmem:[%s5795_s17 + $0xc38] sm:$0xff]  ;;  %v365_v40 = vld [vmem:[%s5795_s17 + $0x610] sm:$0xff] }
  0x92   : > { %5328 = vmatmul.mubr.msk.f32.vlgmr.msra.gmra.mrb[48].mxu1 %vm784_vm0, %v5866_v51  ;;  %5592 = vmatprep.subr.bf16.mxu0 %v5591_v10  ;;  %v5611_v51 = vpack.c.bf16 %v712_v27, %v687_v26  ;;  %v5110_v10 = vld [vmem:[%s5795_s17 + $0x790] sm:$0xff]  ;;  %v214_v26 = vld [vmem:[%s5795_s17 + $0x158] sm:$0xff] }
  0x93   : > { %1576 = vmatprep.mubr.f32.mxu1 %v5754_v0  ;;  %5606 = vmatpush1.bf16.msra.mxu1 %v5605_v19  ;;  %v5617_v6 = vpack.c.bf16 %v761_v4, %v736_v3  ;;  %v614_v12 = vadd.f32 %v5110_v10, %v213_v7  ;;  %v591_v19 = vadd.f32 %v5087_v17, %v190_v15  ;;  %v5086_v27 = vld [vmem:[%s5795_s17 + $0x6d0] sm:$0xff]  ;;  %v5187_v3 = vld [vmem:[%s5795_s17 + $0x9f8] sm:$0xff]  ;;  %v5212_v4 = vld [vmem:[%s5795_s17 + $0xac0] sm:$0xff] }
  0x94   : > { %5317 = vmatmul.mubr.msk.f32.gmra.mrb[50].mxu0 %vm784_vm0, %v5883_v8  ;;  %5608 = vmatprep.subr.bf16.mxu1 %v5607_v25  ;;  %v5160_v25 = vld [vmem:[%s5795_s17 + $0x920] sm:$0xff]  ;;  %v615_v48 = vadd.f32 %v5111_v28, %v214_v26  ;;  %v312_v7 = vld [vmem:[%s5795_s17 + $0x468] sm:$0xff]  ;;  %v5639_v15 = vpack.c.bf16 %v666_v54, %v641_v52  ;;  %v691_v16 = vadd.f32 %v5187_v3, %v290_v55  ;;  %v337_v28 = vld [vmem:[%s5795_s17 + $0x530] sm:$0xff] }
  0x95   : > { %1445 = vmatprep.mubr.f32.mxu0 %v5754_v0  ;;  %5594 = vmatpush1.bf16.msra.mxu0 %v5593_v32  ;;  %v5159_v32 = vld [vmem:[%s5795_s17 + $0x918] sm:$0xff]  ;;  %v664_v39 = vadd.f32 %v5160_v25, %v263_v23  ;;  %v5209_v10 = vld [vmem:[%s5795_s17 + $0xaa8] sm:$0xff]  ;;  %v5260_v26 = vld [vmem:[%s5795_s17 + $0xc40] sm:$0xff] }
  0x96   : > { %5329 = vmatmul.mubr.msk.f32.gmra.mrb[50].mxu1 %vm784_vm0, %v5883_v8  ;;  %5596 = vmatprep.subr.bf16.mxu0 %v5595_v38  ;;  %v5601_v8 = vpack.c.bf16 %v759_v58, %v734_v57  ;;  %v639_v38 = vadd.f32 %v5135_v24, %v238_v22  ;;  %v338_v22 = vld [vmem:[%s5795_s17 + $0x538] sm:$0xff] }
  0x97   : > { %1582 = vmatprep.mubr.f32.mxu1 %v5754_v0  ;;  %5610 = vmatpush1.bf16.msra.mxu1 %v5609_v44  ;;  %v5161_v44 = vld [vmem:[%s5795_s17 + $0x928] sm:$0xff]  ;;  %v5235_v23 = vld [vmem:[%s5795_s17 + $0xb78] sm:$0xff] }
  0x98   : > { %5318 = vmatmul.mubr.msk.f32.gmra.mrb[52].mxu0 %vm784_vm0, %v5906_v30  ;;  %5612 = vmatprep.subr.bf16.mxu1 %v5611_v51  ;;  %v313_v51 = vld [vmem:[%s5795_s17 + $0x470] sm:$0xff]  ;;  %v5623_v57 = vpack.c.bf16 %v664_v39, %v639_v38  ;;  %v340_v39 = vld [vmem:[%s5795_s17 + $0x548] sm:$0xff]  ;;  %v6488_v3 = vld [vmem:[%s11021_s1 + $0x38] sm:$0xff] }
  0x99   : > { %1451 = vmatprep.mubr.f32.mxu0 %v5754_v0  ;;  %5598 = vmatpush1.bf16.msra.mxu0 %v5597_v56 }
  0x9a   : > { %5330 = vmatmul.mubr.msk.f32.gmra.mrb[52].mxu1 %vm784_vm0, %v5906_v30  ;;  %5600 = vmatprep.subr.bf16.mxu0 %v5599_v59  ;;  %v188_v30 = vld [vmem:[%s5795_s17 + $0x88] sm:$0xff]  ;;  %v663_v59 = vadd.f32 %v5159_v32, %v262_v31 }
  0x9b   : > { %1588 = vmatprep.mubr.f32.mxu1 %v5754_v0  ;;  %5614 = vmatpush1.bf16.msra.mxu1 %v5613_v61  ;;  %v589_v11 = vadd.f32 %v5085_v9, %v188_v30  ;;  %v315_v61 = vld [vmem:[%s5795_s17 + $0x480] sm:$0xff]  ;;  %v714_v30 = vadd.f32 %v5210_v50, %v313_v51  ;;  %v6412_v31 = vld [vmem:[%s11021_s1 + $0x8] sm:$0xff] }
  0x9c   : > { %5319 = vmatmul.mubr.msk.f32.gmra.mrb[54].mxu0 %vm784_vm0, %v5929_v53  ;;  %5616 = vmatprep.subr.bf16.mxu1 %v5615_v5  ;;  %v640_v5 = vadd.f32 %v5136_v43, %v239_v41  ;;  %v5184_v9 = vld [vmem:[%s5795_s17 + $0x9e0] sm:$0xff]  ;;  %v716_v17 = vadd.f32 %v5212_v4, %v315_v61  ;;  %v5237_v41 = vld [vmem:[%s5795_s17 + $0xb88] sm:$0xff]  ;;  %v5262_v43 = vld [vmem:[%s5795_s17 + $0xc50] sm:$0xff] }
  0x9d   : > { %1457 = vmatprep.mubr.f32.mxu0 %v5754_v0  ;;  %5602 = vmatpush1.bf16.msra.mxu0 %v5601_v8  ;;  %v665_v8 = vadd.f32 %v5161_v44, %v264_v42  ;;  %v741_v44 = vadd.f32 %v5237_v41, %v340_v39  ;;  %v766_v51 = vadd.f32 %v5262_v43, %v365_v40  ;;  %v5261_v50 = vld [vmem:[%s5795_s17 + $0xc48] sm:$0xff]  ;;  %v6477_v61 = vld [vmem:[%s11021_s1 + $0x30] sm:$0xff]  ;;  %v6499_v4 = vld [vmem:[%s11021_s1 + $0x40] sm:$0xff] }
  0x9e   : > { %5331 = vmatmul.mubr.msk.f32.gmra.mrb[54].mxu1 %vm784_vm0, %v5929_v53  ;;  %v5619_v53 = vpack.c.bf16 %v614_v12, %v589_v11  ;;  %v289_v12 = vld [vmem:[%s5795_s17 + $0x3b0] sm:$0xff]  ;;  %v219_v43 = vld [vmem:[%s5795_s17 + $0x180] sm:$0xff] }
  0x9f   : > { %1594 = vmatprep.mubr.f32.mxu1 %v5754_v0  ;;  %5618 = vmatpush1.bf16.msra.mxu1 %v5617_v6  ;;  %v689_v6 = vadd.f32 %v5185_v49, %v288_v45  ;;  %v339_v45 = vld [vmem:[%s5795_s17 + $0x540] sm:$0xff]  ;;  %v5647_v55 = vpack.c.bf16 %v766_v51, %v741_v44  ;;  %v5091_v44 = vld [vmem:[%s5795_s17 + $0x6f8] sm:$0xff] }
  0xa0   : > { %5320 = vmatmul.mubr.msk.f32.gmra.mrb[56].mxu0 %vm784_vm0, %v5952_v13  ;;  %5620 = vmatprep.subr.bf16.mxu0 %v5619_v53  ;;  %v6392_v53 = vld [vmem:[%s11021_s1] sm:$0xff] }
  0xa1   : > { %1463 = vmatprep.mubr.f32.mxu0 %v5754_v0  ;;  %v5236_v49 = vld [vmem:[%s5795_s17 + $0xb80] sm:$0xff] }
  0xa2   : > { %5332 = vmatmul.mubr.msk.f32.gmra.mrb[56].mxu1 %vm784_vm0, %v5952_v13  ;;  %v5635_v13 = vpack.c.bf16 %v616_v20, %v591_v19  ;;  %v5186_v19 = vld [vmem:[%s5795_s17 + $0x9f0] sm:$0xff]  ;;  %v5211_v20 = vld [vmem:[%s5795_s17 + $0xab8] sm:$0xff]  ;;  %v740_v54 = vadd.f32 %v5236_v49, %v339_v45  ;;  %v5116_v49 = vld [vmem:[%s5795_s17 + $0x7c0] sm:$0xff] }
  0xa3   : > { %1600 = vmatprep.mubr.f32.mxu1 %v5754_v0  ;;  %v690_v24 = vadd.f32 %v5186_v19, %v289_v12  ;;  %v715_v25 = vadd.f32 %v5211_v20, %v314_v18  ;;  %v6653_v45 = vld [vmem:[%s11021_s1 + $0x58] sm:$0xff] }
  0xa4   : > { %5321 = vmatmul.mubr.msk.f32.gmra.mrb[58].mxu0 %vm784_vm0, %v5984_v46  ;;  %5636 = vmatprep.subr.bf16.mxu1 %v5635_v13 }
  0xa5   : > { %1469 = vmatprep.mubr.f32.mxu0 %v5754_v0  ;;  %v5645_v42 = vpack.c.bf16 %v715_v25, %v690_v24  ;;  %v192_v24 = vld [vmem:[%s5795_s17 + $0xa8] sm:$0xff]  ;;  %v217_v25 = vld [vmem:[%s5795_s17 + $0x170] sm:$0xff] }
  0xa6   : > { %5333 = vmatmul.mubr.msk.f32.gmra.mrb[58].mxu1 %vm784_vm0, %v5984_v46  ;;  %v187_v46 = vld [vmem:[%s5795_s17 + $0x80] sm:$0xff] }
  0xa7   : > { %1606 = vmatprep.mubr.f32.mxu1 %v5754_v0 }
  0xa8   : > { %5322 = vmatmul.mubr.msk.f32.gmra.mrb[60].mxu0 %vm784_vm0, %v5999_v60 }
  0xa9   : > { %1475 = vmatprep.mubr.f32.mxu0 %v5754_v0 }
  0xaa   : > { %5334 = vmatmul.mubr.msk.f32.gmra.mrb[60].mxu1 %vm784_vm0, %v5999_v60  ;;  %v212_v60 = vld [vmem:[%s5795_s17 + $0x148] sm:$0xff] }
  0xab   : > { %1612 = vmatprep.mubr.f32.mxu1 %v5754_v0  ;;  %v613_v37 = vadd.f32 %v5109_v21, %v212_v60  ;;  %v713_v60 = vadd.f32 %v5209_v10, %v312_v7  ;;  %v5627_v21 = vpack.c.bf16 %v714_v30, %v689_v6 }
  0xac   : > { %5323 = vmatmul.mubr.msk.f32.gmra.mrb[62].mxu0 %vm784_vm0, %v6010_v62 }
  0xad   : > { %1481 = vmatprep.mubr.f32.mxu0 %v5754_v0 }
  0xae   : > { %5335 = vmatmul.mubr.msk.f32.gmra.mrb[62].mxu1 %vm784_vm0, %v6010_v62  ;;  %v5084_v62 = vld [vmem:[%s5795_s17 + $0x6c0] sm:$0xff] }
  0xaf   : > { %1618 = vmatprep.mubr.f32.mxu1 %v5754_v0  ;;  %v588_v36 = vadd.f32 %v5084_v62, %v187_v46  ;;  %v5641_v62 = vpack.c.bf16 %v665_v8, %v640_v5  ;;  %v6510_v5 = vld [vmem:[%s11021_s1 + $0x48] sm:$0xff]  ;;  %v6521_v8 = vld [vmem:[%s11021_s1 + $0x50] sm:$0xff] }
  0xb0   : > { %5324 = vmatmul.mubr.msk.f32.gmra.mrb[64].mxu0 %vm784_vm0, %v6021_v63 }
  0xb1   : > { %1487 = vmatprep.mubr.f32.mxu0 %v5754_v0  ;;  %v5621_v56 = vpack.c.bf16 %v613_v37, %v588_v36  ;;  %v738_v36 = vadd.f32 %v5234_v33, %v337_v28  ;;  %v5114_v28 = vld [vmem:[%s5795_s17 + $0x7b0] sm:$0xff] }
  0xb2   : > { %5336 = vmatmul.mubr.msk.f32.gmra.mrb[64].mxu1 %vm784_vm0, %v6021_v63  ;;  %v189_v63 = vld [vmem:[%s5795_s17 + $0x90] sm:$0xff] }
  0xb3   : > { %1624 = vmatprep.mubr.f32.mxu1 %v5754_v0  ;;  %v590_v47 = vadd.f32 %v5086_v27, %v189_v63  ;;  %v363_v63 = vld [vmem:[%s5795_s17 + $0x600] sm:$0xff]  ;;  %v739_v27 = vadd.f32 %v5235_v23, %v338_v22 }
  0xb4   : > { %5325 = vmatmul.mubr.msk.f32.gmra.mrb[66].mxu0 %vm784_vm0, %v6032_v1  ;;  %v764_v32 = vadd.f32 %v5260_v26, %v363_v63  ;;  %v5089_v26 = vld [vmem:[%s5795_s17 + $0x6e8] sm:$0xff] }
  0xb5   : > { %1493 = vmatprep.mubr.f32.mxu0 %v5754_v0  ;;  %v5637_v11 = vpack.c.bf16 %v615_v48, %v590_v47  ;;  %v364_v47 = vld [vmem:[%s5795_s17 + $0x608] sm:$0xff]  ;;  %v6431_v48 = vld [vmem:[%s11021_s1 + $0x10] sm:$0xff] }
  0xb6   : > { %5337 = vmatmul.mubr.msk.f32.gmra.mrb[66].mxu1 %vm784_vm0, %v6032_v1  ;;  %v5134_v1 = vld [vmem:[%s5795_s17 + $0x850] sm:$0xff]  ;;  %v5631_v38 = vpack.c.bf16 %v764_v32, %v739_v27  ;;  %v216_v32 = vld [vmem:[%s5795_s17 + $0x168] sm:$0xff] }
  0xb7   : > { %1630 = vmatprep.mubr.f32.mxu1 %v5754_v0  ;;  %v638_v58 = vadd.f32 %v5134_v1, %v237_v29  ;;  %v362_v29 = vld [vmem:[%s5795_s17 + $0x5f8] sm:$0xff]  ;;  %v5643_v1 = vpack.c.bf16 %v716_v17, %v691_v16 }
  0xb8   : > { %5326 = vmatmul.mubr.msk.f32.gmra.mrb[68].mxu0 %vm784_vm0, %v6042_v2  ;;  %v763_v37 = vadd.f32 %v5259_v34, %v362_v29  ;;  %v593_v29 = vadd.f32 %v5089_v26, %v192_v24  ;;  %v618_v34 = vadd.f32 %v5114_v28, %v217_v25  ;;  %v241_v25 = vld [vmem:[%s5795_s17 + $0x230] sm:$0xff]  ;;  %v266_v26 = vld [vmem:[%s5795_s17 + $0x2f8] sm:$0xff] }
  0xb9   : > { %1499 = vmatprep.mubr.f32.mxu0 %v5754_v0  ;;  %v5625_v13 = vpack.c.bf16 %v663_v59, %v638_v58  ;;  %v6455_v58 = vld [vmem:[%s11021_s1 + $0x20] sm:$0xff]  ;;  %v6466_v59 = vld [vmem:[%s11021_s1 + $0x28] sm:$0xff] }
  0xba   : > { %5338 = vmatmul.mubr.msk.f32.gmra.mrb[68].mxu1 %vm784_vm0, %v6042_v2  ;;  %v287_v2 = vld [vmem:[%s5795_s17 + $0x3a0] sm:$0xff]  ;;  %v5633_v52 = vpack.c.bf16 %v763_v37, %v738_v36  ;;  %v5113_v36 = vld [vmem:[%s5795_s17 + $0x7a8] sm:$0xff]  ;;  %v5651_v41 = vpack.c.bf16 %v618_v34, %v593_v29  ;;  %v5138_v29 = vld [vmem:[%s5795_s17 + $0x870] sm:$0xff] }
  0xbb   : > { %1636 = vmatprep.mubr.f32.mxu1 %v5754_v0  ;;  %v688_v46 = vadd.f32 %v5184_v9, %v287_v2  ;;  %v765_v2 = vadd.f32 %v5261_v50, %v364_v47  ;;  %v617_v39 = vadd.f32 %v5113_v36, %v216_v32  ;;  %v642_v34 = vadd.f32 %v5138_v29, %v241_v25  ;;  %v291_v29 = vld [vmem:[%s5795_s17 + $0x3c0] sm:$0xff] }
  0xbc   : > { %5327 = vmatmul.mubr.msk.f32.gmra.mrb[70].mxu0 %vm784_vm0, %v6060_v14 }
  0xbd   : > { %1707 = vmatprep.mubr.f32.mxu0 %v5754_v0  ;;  %v5629_v35 = vpack.c.bf16 %v713_v60, %v688_v46 }
  0xbe   : > { %5339 = vmatmul.mubr.msk.f32.gmra.mrb[70].mxu1 %vm784_vm0, %v6060_v14 }
  0xbf   : > { %1844 = vmatprep.mubr.f32.mxu1 %v5754_v0 }
  0xc0   : > { %5340 = vmatmul.mubr.msk.f32.vlgmr.msra.gmra.mrb[72].mxu0 %vm784_vm0, %v6392_v53 }
  0xc1   : > { %1713 = vmatprep.mubr.f32.mxu0 %v5754_v0  ;;  %5622 = vmatpush1.bf16.msra.mxu0 %v5621_v56  ;;  %v5649_v56 = vpack.c.bf16 %v765_v2, %v740_v54  ;;  %v218_v54 = vld [vmem:[%s5795_s17 + $0x178] sm:$0xff] }
  0xc2   : > { %5352 = vmatmul.mubr.msk.f32.vlgmr.msra.gmra.mrb[72].mxu1 %vm784_vm0, %v6392_v53  ;;  %5624 = vmatprep.subr.bf16.mxu0 %v5623_v57  ;;  %v6444_v57 = vld [vmem:[%s11021_s1 + $0x18] sm:$0xff] }
  0xc3   : > { %1850 = vmatprep.mubr.f32.mxu1 %v5754_v0  ;;  %5638 = vmatpush1.bf16.msra.mxu1 %v5637_v11 }
  0xc4   : > { %5341 = vmatmul.mubr.msk.f32.gmra.mrb[74].mxu0 %vm784_vm0, %v6412_v31  ;;  %5640 = vmatprep.subr.bf16.mxu1 %v5639_v15 }
  0xc5   : > { %1719 = vmatprep.mubr.f32.mxu0 %v5754_v0  ;;  %5626 = vmatpush1.bf16.msra.mxu0 %v5625_v13 }
  0xc6   : > { %5353 = vmatmul.mubr.msk.f32.gmra.mrb[74].mxu1 %vm784_vm0, %v6412_v31  ;;  %5628 = vmatprep.subr.bf16.mxu0 %v5627_v21 }
  0xc7   : > { %1856 = vmatprep.mubr.f32.mxu1 %v5754_v0  ;;  %5642 = vmatpush1.bf16.msra.mxu1 %v5641_v62 }
  0xc8   : > { %5342 = vmatmul.mubr.msk.f32.gmra.mrb[76].mxu0 %vm784_vm0, %v6431_v48  ;;  %5644 = vmatprep.subr.bf16.mxu1 %v5643_v1  ;;  %v191_v1 = vld [vmem:[%s5795_s17 + $0xa0] sm:$0xff] }
  0xc9   : > { %1725 = vmatprep.mubr.f32.mxu0 %v5754_v0  ;;  %5630 = vmatpush1.bf16.msra.mxu0 %v5629_v35  ;;  %v5088_v35 = vld [vmem:[%s5795_s17 + $0x6e0] sm:$0xff] }
  0xca   : > { %5354 = vmatmul.mubr.msk.f32.gmra.mrb[76].mxu1 %vm784_vm0, %v6431_v48  ;;  %5632 = vmatprep.subr.bf16.mxu0 %v5631_v38  ;;  %v592_v38 = vadd.f32 %v5088_v35, %v191_v1  ;;  %v5163_v1 = vld [vmem:[%s5795_s17 + $0x938] sm:$0xff] }
  0xcb   : > { %1862 = vmatprep.mubr.f32.mxu1 %v5754_v0  ;;  %5646 = vmatpush1.bf16.msra.mxu1 %v5645_v42  ;;  %v194_v42 = vld [vmem:[%s5795_s17 + $0xb8] sm:$0xff]  ;;  %v667_v35 = vadd.f32 %v5163_v1, %v266_v26  ;;  %v5214_v26 = vld [vmem:[%s5795_s17 + $0xad0] sm:$0xff]  ;;  %v316_v1 = vld [vmem:[%s5795_s17 + $0x488] sm:$0xff] }
  0xcc   : > { %5343 = vmatmul.mubr.msk.f32.gmra.mrb[78].mxu0 %vm784_vm0, %v6444_v57  ;;  %5648 = vmatprep.subr.bf16.mxu1 %v5647_v55  ;;  %v5653_v51 = vpack.c.bf16 %v617_v39, %v592_v38  ;;  %v595_v50 = vadd.f32 %v5091_v44, %v194_v42  ;;  %v620_v55 = vadd.f32 %v5116_v49, %v219_v43  ;;  %v244_v43 = vld [vmem:[%s5795_s17 + $0x248] sm:$0xff]  ;;  %v269_v44 = vld [vmem:[%s5795_s17 + $0x310] sm:$0xff] }
  0xcd   : > { %1731 = vmatprep.mubr.f32.mxu0 %v5754_v0  ;;  %5634 = vmatpush1.bf16.msra.mxu0 %v5633_v52  ;;  %v193_v52 = vld [vmem:[%s5795_s17 + $0xb0] sm:$0xff] }
  0xce   : > { %5355 = vmatmul.mubr.msk.f32.gmra.mrb[78].mxu1 %vm784_vm0, %v6444_v57  ;;  %5652 = vmatprep.subr.bf16.mxu0 %v5651_v41  ;;  %v5657_v41 = vpack.c.bf16 %v667_v35, %v642_v34  ;;  %v5188_v34 = vld [vmem:[%s5795_s17 + $0xa00] sm:$0xff]  ;;  %v5213_v35 = vld [vmem:[%s5795_s17 + $0xac8] sm:$0xff] }
  0xcf   : > { %1868 = vmatprep.mubr.f32.mxu1 %v5754_v0  ;;  %5650 = vmatpush1.bf16.msra.mxu1 %v5649_v56  ;;  %v5090_v56 = vld [vmem:[%s5795_s17 + $0x6f0] sm:$0xff] }
  0xd0   : > { %5344 = vmatmul.mubr.msk.f32.gmra.mrb[80].mxu0 %vm784_vm0, %v6455_v58 }
  0xd1   : > { %1737 = vmatprep.mubr.f32.mxu0 %v5754_v0 }
  0xd2   : > { %5356 = vmatmul.mubr.msk.f32.gmra.mrb[80].mxu1 %vm784_vm0, %v6455_v58 }
  0xd3   : > { %1874 = vmatprep.mubr.f32.mxu1 %v5754_v0 }
  0xd4   : > { %5345 = vmatmul.mubr.msk.f32.gmra.mrb[82].mxu0 %vm784_vm0, %v6466_v59 }
  0xd5   : > { %1743 = vmatprep.mubr.f32.mxu0 %v5754_v0 }
  0xd6   : > { %5357 = vmatmul.mubr.msk.f32.gmra.mrb[82].mxu1 %vm784_vm0, %v6466_v59 }
  0xd7   : > { %1880 = vmatprep.mubr.f32.mxu1 %v5754_v0 }
  0xd8   : > { %5346 = vmatmul.mubr.msk.f32.gmra.mrb[84].mxu0 %vm784_vm0, %v6477_v61 }
  0xd9   : > { %1749 = vmatprep.mubr.f32.mxu0 %v5754_v0 }
  0xda   : > { %5358 = vmatmul.mubr.msk.f32.gmra.mrb[84].mxu1 %vm784_vm0, %v6477_v61 }
  0xdb   : > { %1886 = vmatprep.mubr.f32.mxu1 %v5754_v0 }
  0xdc   : > { %5347 = vmatmul.mubr.msk.f32.gmra.mrb[86].mxu0 %vm784_vm0, %v6488_v3 }
  0xdd   : > { %1755 = vmatprep.mubr.f32.mxu0 %v5754_v0 }
  0xde   : > { %5359 = vmatmul.mubr.msk.f32.gmra.mrb[86].mxu1 %vm784_vm0, %v6488_v3 }
  0xdf   : > { %1892 = vmatprep.mubr.f32.mxu1 %v5754_v0 }
  0xe0   : > { %5348 = vmatmul.mubr.msk.f32.gmra.mrb[88].mxu0 %vm784_vm0, %v6499_v4 }
  0xe1   : > { %1761 = vmatprep.mubr.f32.mxu0 %v5754_v0 }
  0xe2   : > { %5360 = vmatmul.mubr.msk.f32.gmra.mrb[88].mxu1 %vm784_vm0, %v6499_v4 }
  0xe3   : > { %1898 = vmatprep.mubr.f32.mxu1 %v5754_v0 }
  0xe4   : > { %5349 = vmatmul.mubr.msk.f32.gmra.mrb[90].mxu0 %vm784_vm0, %v6510_v5 }
  0xe5   : > { %1767 = vmatprep.mubr.f32.mxu0 %v5754_v0 }
  0xe6   : > { %5361 = vmatmul.mubr.msk.f32.gmra.mrb[90].mxu1 %vm784_vm0, %v6510_v5 }
  0xe7   : > { %1904 = vmatprep.mubr.f32.mxu1 %v5754_v0 }
  0xe8   : > { %5350 = vmatmul.mubr.msk.f32.gmra.mrb[92].mxu0 %vm784_vm0, %v6521_v8 }
  0xe9   : > { %1773 = vmatprep.mubr.f32.mxu0 %v5754_v0 }
  0xea   : > { %5362 = vmatmul.mubr.msk.f32.gmra.mrb[92].mxu1 %vm784_vm0, %v6521_v8 }
  0xeb   : > { %1910 = vmatprep.mubr.f32.mxu1 %v5754_v0 }
  0xec   : > { %5351 = vmatmul.mubr.msk.f32.gmra.mrb[94].mxu0 %vm784_vm0, %v6060_v14 }
  0xed   : > { %1981 = vmatprep.mubr.f32.mxu0 %v5754_v0 }
  0xee   : > { %5363 = vmatmul.mubr.msk.f32.gmra.mrb[94].mxu1 %vm784_vm0, %v6060_v14 }
  0xef   : > { %2118 = vmatprep.mubr.f32.mxu1 %v5754_v0 }
  0xf0   : > { %5364 = vmatmul.mubr.msk.f32.vlgmr.msra.gmra.mrb[96].mxu0 %vm784_vm0, %v6392_v53 }
  0xf1   : > { %1987 = vmatprep.mubr.f32.mxu0 %v5754_v0  ;;  %5654 = vmatpush1.bf16.msra.mxu0 %v5653_v51  ;;  %v5141_v51 = vld [vmem:[%s5795_s17 + $0x888] sm:$0xff] }
  0xf2   : > { %5376 = vmatmul.mubr.msk.f32.vlgmr.msra.gmra.mrb[96].mxu1 %vm784_vm0, %v6392_v53 }
  0xf3   : > { %2124 = vmatprep.mubr.f32.mxu1 %v5754_v0 }
  0xf4   : > { %5365 = vmatmul.mubr.msk.f32.gmra.mrb[98].mxu0 %vm784_vm0, %v6412_v31 }
  0xf5   : > { %1993 = vmatprep.mubr.f32.mxu0 %v5754_v0 }
  0xf6   : > { %5377 = vmatmul.mubr.msk.f32.gmra.mrb[98].mxu1 %vm784_vm0, %v6412_v31 }
  0xf7   : > { %2130 = vmatprep.mubr.f32.mxu1 %v5754_v0 }
  0xf8   : > { %5366 = vmatmul.mubr.msk.f32.gmra.mrb[100].mxu0 %vm784_vm0, %v6431_v48 }
  0xf9   : > { %1999 = vmatprep.mubr.f32.mxu0 %v5754_v0 }
  0xfa   : > { %5378 = vmatmul.mubr.msk.f32.gmra.mrb[100].mxu1 %vm784_vm0, %v6431_v48 }
  0xfb   : > { %2136 = vmatprep.mubr.f32.mxu1 %v5754_v0 }
  0xfc   : > { %5367 = vmatmul.mubr.msk.f32.gmra.mrb[102].mxu0 %vm784_vm0, %v6444_v57 }
  0xfd   : > { %2005 = vmatprep.mubr.f32.mxu0 %v5754_v0 }
  0xfe   : > { %5379 = vmatmul.mubr.msk.f32.gmra.mrb[102].mxu1 %vm784_vm0, %v6444_v57 }
  0xff   : > { %2142 = vmatprep.mubr.f32.mxu1 %v5754_v0 }
 0x100   : > { %5368 = vmatmul.mubr.msk.f32.gmra.mrb[104].mxu0 %vm784_vm0, %v6455_v58 }
 0x101   : > { %2011 = vmatprep.mubr.f32.mxu0 %v5754_v0 }
 0x102   : > { %5380 = vmatmul.mubr.msk.f32.gmra.mrb[104].mxu1 %vm784_vm0, %v6455_v58  ;;  %v887_v14 = vpop.f32.mrb[0].mxu0 }
 0x103   : > { %2148 = vmatprep.mubr.f32.mxu1 %v5754_v0  ;;  %2613 = vrot.lane.b32.xlu0 %v887_v14, %s5755_s15  ;;  %v889_v6 = vpop.f32.mrb[1].mxu0  ;;  %v1024_v30 = vpop.f32.mrb[0].mxu1  ;;  %v5115_v14 = vld [vmem:[%s5795_s17 + $0x7b8] sm:$0xff] }
 0x104   : > { %5369 = vmatmul.mubr.msk.f32.gmra.mrb[106].mxu0 %vm784_vm0, %v6466_v59  ;;  %v1026_v7 = vpop.f32.mrb[1].mxu1 }
 0x105   : > { %2017 = vmatprep.mubr.f32.mxu0 %v5754_v0 }
 0x106   : > { %5381 = vmatmul.mubr.msk.f32.gmra.mrb[106].mxu1 %vm784_vm0, %v6466_v59  ;;  %v893_v9 = vpop.f32.mrb[2].mxu0 }
 0x107   : > { %2154 = vmatprep.mubr.f32.mxu1 %v5754_v0  ;;  %2629 = vrot.lane.b32.xlu0 %v1024_v30, %s5755_s15  ;;  %v895_v10 = vpop.f32.mrb[3].mxu0  ;;  %v1030_v11 = vpop.f32.mrb[2].mxu1  ;;  %v594_v30 = vadd.f32 %v5090_v56, %v193_v52  ;;  %v243_v52 = vld [vmem:[%s5795_s17 + $0x240] sm:$0xff] }
 0x108   : > { %5370 = vmatmul.mubr.msk.f32.gmra.mrb[108].mxu0 %vm784_vm0, %v6477_v61  ;;  %2631 = vrot.lane.b32.xlu1 %v1030_v11, %s5755_s15  ;;  %v1032_v12 = vpop.f32.mrb[3].mxu1 }
 0x109   : > { %2023 = vmatprep.mubr.f32.mxu0 %v5754_v0 }
 0x10a   : > { %5382 = vmatmul.mubr.msk.f32.gmra.mrb[108].mxu1 %vm784_vm0, %v6477_v61 }
 0x10b   : > { %v899_v15 = vpop.f32.mrb[4].mxu0  ;;  %2160 = vmatprep.mubr.f32.mxu1 %v5754_v0  ;;  %2621 = vrot.lane.b32.xlu0 %v889_v6, %s5755_s15  ;;  %v1036_v17 = vpop.f32.mrb[4].mxu1 }
 0x10c   : > { %v901_v16 = vpop.f32.mrb[5].mxu0  ;;  %5371 = vmatmul.mubr.msk.f32.gmra.mrb[110].mxu0 %vm784_vm0, %v6488_v3  ;;  %2623 = vrot.lane.b32.xlu1 %v895_v10, %s5755_s15  ;;  %v6585_v18 = vpop.f32.mrb[5].mxu1  ;;  %v5667_v10 = vpack.c.bf16 %v620_v55, %v595_v50  ;;  %v5166_v50 = vld [vmem:[%s5795_s17 + $0x950] sm:$0xff] }
 0x10d   : > { %2029 = vmatprep.mubr.f32.mxu0 %v5754_v0  ;;  %v670_v56 = vadd.f32 %v5166_v50, %v269_v44 }
 0x10e   : > { %5383 = vmatmul.mubr.msk.f32.gmra.mrb[110].mxu1 %vm784_vm0, %v6488_v3  ;;  %5668 = vmatprep.subr.bf16.mxu1 %v5667_v10 }
 0x10f   : > { %v905_v19 = vpop.f32.mrb[6].mxu0  ;;  %2166 = vmatprep.mubr.f32.mxu1 %v5754_v0  ;;  %2637 = vrot.lane.b32.xlu0 %v1026_v7, %s5755_s15  ;;  %v619_v7 = vadd.f32 %v5115_v14, %v218_v54  ;;  %v268_v54 = vld [vmem:[%s5795_s17 + $0x308] sm:$0xff]  ;;  %v5140_v14 = vld [vmem:[%s5795_s17 + $0x880] sm:$0xff] }
 0x110   : > { %v6591_v20 = vpop.f32.mrb[7].mxu0  ;;  %5372 = vmatmul.mubr.msk.f32.gmra.mrb[112].mxu0 %vm784_vm0, %v6499_v4  ;;  %2639 = vrot.lane.b32.xlu1 %v1032_v12, %s5755_s15  ;;  %v644_v10 = vadd.f32 %v5140_v14, %v243_v52  ;;  %v319_v52 = vld [vmem:[%s5795_s17 + $0x4a0] sm:$0xff] }
 0x111   : > { %v1042_v13 = vpop.f32.mrb[6].mxu1  ;;  %2035 = vmatprep.mubr.f32.mxu0 %v5754_v0  ;;  %v5669_v12 = vpack.c.bf16 %v619_v7, %v594_v30  ;;  %v5165_v30 = vld [vmem:[%s5795_s17 + $0x948] sm:$0xff] }
 0x112   : > { %v6597_v46 = vpop.f32.mrb[7].mxu1  ;;  %5384 = vmatmul.mubr.msk.f32.gmra.mrb[112].mxu1 %vm784_vm0, %v6499_v4 }
 0x113   : > { %v6601_v60 = vpop.f32.mrb[8].mxu0  ;;  %2172 = vmatprep.mubr.f32.mxu1 %v5754_v0  ;;  %2615 = vrot.lane.b32.xlu0 %v893_v9, %s5755_s15 }
 0x114   : > { %11311 = vst [vmem:[#allocation2_spill] sm:$0xff] %v6601_v60  ;;  %v6605_v62 = vpop.f32.mrb[9].mxu0  ;;  %5373 = vmatmul.mubr.msk.f32.gmra.mrb[114].mxu0 %vm784_vm0, %v6510_v5  ;;  %2617 = vrot.lane.b32.xlu1 %v899_v15, %s5755_s15 }
 0x115   : > { %v6609_v21 = vpop.f32.mrb[8].mxu1  ;;  %2041 = vmatprep.mubr.f32.mxu0 %v5754_v0  ;;  %5670 = vmatpush1.bf16.msra.mxu1 %v5669_v12  ;;  %v669_v12 = vadd.f32 %v5165_v30, %v268_v54  ;;  %v5191_v54 = vld [vmem:[%s5795_s17 + $0xa18] sm:$0xff]  ;;  %v293_v30 = vld [vmem:[%s5795_s17 + $0x3d0] sm:$0xff] }
 0x116   : > { %v6613_v22 = vpop.f32.mrb[9].mxu1  ;;  %5385 = vmatmul.mubr.msk.f32.gmra.mrb[114].mxu1 %vm784_vm0, %v6510_v5 }
 0x117   : > { %11312 = vst [vmem:[#allocation3_spill] sm:$0xff] %v6613_v22  ;;  %v6617_v63 = vpop.f32.mrb[10].mxu0  ;;  %2178 = vmatprep.mubr.f32.mxu1 %v5754_v0  ;;  %2633 = vrot.lane.b32.xlu0 %v1036_v17, %s5755_s15  ;;  %v267_v17 = vld [vmem:[%s5795_s17 + $0x300] sm:$0xff]  ;;  %v5673_v25 = vpack.c.bf16 %v669_v12, %v644_v10  ;;  %v318_v10 = vld [vmem:[%s5795_s17 + $0x498] sm:$0xff] }
 0x118   : > { %11313 = vst [vmem:[#allocation4_spill] sm:$0xff] %v6617_v63  ;;  %v6621_v23 = vpop.f32.mrb[11].mxu0  ;;  %5374 = vmatmul.mubr.msk.f32.gmra.mrb[116].mxu0 %vm784_vm0, %v6521_v8  ;;  %2619 = vrot.lane.b32.xlu1 %v905_v19, %s5755_s15  ;;  %v220_v63 = vld [vmem:[%s5795_s17 + $0x188] sm:$0xff] }
 0x119   : > { %v6628_v27 = vpop.f32.mrb[10].mxu1  ;;  %2047 = vmatprep.mubr.f32.mxu0 %v5754_v0 }
 0x11a   : > { %v6635_v33 = vpop.f32.mrb[11].mxu1  ;;  %5386 = vmatmul.mubr.msk.f32.gmra.mrb[116].mxu1 %vm784_vm0, %v6521_v8 }
 0x11b   : > { %11314 = vst [vmem:[#allocation5_spill] sm:$0xff] %v6635_v33  ;;  %v6641_v37 = vpop.f32.mrb[12].mxu0  ;;  %2184 = vmatprep.mubr.f32.mxu1 %v5754_v0  ;;  %2625 = vrot.lane.b32.xlu0 %v901_v16, %s5755_s15  ;;  %v242_v16 = vld [vmem:[%s5795_s17 + $0x238] sm:$0xff] }
 0x11c   : > { %11315 = vst [vmem:[#allocation6_spill] sm:$0xff] %v6641_v37  ;;  %v6645_v40 = vpop.f32.mrb[13].mxu0  ;;  %5375 = vmatmul.mubr.msk.f32.gmra.mrb[118].mxu0 %vm784_vm0, %v6653_v45  ;;  %2635 = vrot.lane.b32.xlu1 %v1042_v13, %s5755_s15  ;;  %v5164_v13 = vld [vmem:[%s5795_s17 + $0x940] sm:$0xff] }
 0x11d   : > { %v6657_v47 = vpop.f32.mrb[12].mxu1  ;;  %2255 = vmatprep.mubr.f32.mxu0 %v5754_v0 }
 0x11e   : > { %v6664_v2 = vpop.f32.mrb[13].mxu1  ;;  %5387 = vmatmul.mubr.msk.f32.gmra.mrb[118].mxu1 %vm784_vm0, %v6653_v45 }
 0x11f   : > { %11316 = vst [vmem:[#allocation7_spill] sm:$0xff] %v6664_v2  ;;  %v6668_v6 = vpop.f32.mrb[14].mxu0  ;;  %2641 = vrot.lane.b32.xlu0 %v6585_v18, %s5755_s15  ;;  %2392 = vmatprep.mubr.f32.mxu1 %v5754_v0  ;;  %v5139_v18 = vld [vmem:[%s5795_s17 + $0x878] sm:$0xff] }
 0x120   : > { %11317 = vst [vmem:[#allocation8_spill] sm:$0xff] %v6668_v6  ;;  %v6674_v9 = vpop.f32.mrb[15].mxu0  ;;  %2627 = vrot.lane.b32.xlu1 %v6591_v20, %s5755_s15  ;;  %v643_v24 = vadd.f32 %v5139_v18, %v242_v16  ;;  %v668_v20 = vadd.f32 %v5164_v13, %v267_v17  ;;  %v292_v18 = vld [vmem:[%s5795_s17 + $0x3c8] sm:$0xff] }
 0x121   : > { %11318 = vst [vmem:[#allocation9_spill] sm:$0xff] %v6674_v9  ;;  %v6677_v11 = vpop.f32.mrb[14].mxu1  ;;  %v5189_v13 = vld [vmem:[%s5795_s17 + $0xa08] sm:$0xff] }
 0x122   : > { %11319 = vst [vmem:[#allocation10_spill] sm:$0xff] %v6677_v11  ;;  %v6681_v15 = vpop.f32.mrb[15].mxu1  ;;  %v5655_v38 = vpack.c.bf16 %v668_v20, %v643_v24  ;;  %v693_v20 = vadd.f32 %v5189_v13, %v292_v18  ;;  %v5215_v18 = vld [vmem:[%s5795_s17 + $0xad8] sm:$0xff] }
 0x123   : > { %11320 = vst [vmem:[#allocation11_spill] sm:$0xff] %v6681_v15  ;;  %v935_v19 = vpop.f32.mrb[16].mxu0 }
 0x124   : > { %3245 = vrot.lane.b32.xlu0 %v935_v19, %s5756_s19  ;;  %v937_v28 = vpop.f32.mrb[17].mxu0  ;;  %2643 = vrot.lane.b32.xlu1 %v6597_v46, %s5755_s15  ;;  %v645_v46 = vadd.f32 %v5141_v51, %v244_v43  ;;  %v317_v19 = vld [vmem:[%s5795_s17 + $0x490] sm:$0xff] }
 0x125   : > { %v1072_v32 = vpop.f32.mrb[16].mxu1  ;;  %5656 = vmatprep.subr.bf16.mxu0 %v5655_v38 }
 0x126   : > { %v1074_v36 = vpop.f32.mrb[17].mxu1  ;;  %5658 = vmatpush1.bf16.msra.mxu0 %v5657_v41  ;;  %v5671_v17 = vpack.c.bf16 %v670_v56, %v645_v46  ;;  %v717_v41 = vadd.f32 %v5213_v35, %v316_v1  ;;  %v294_v46 = vld [vmem:[%s5795_s17 + $0x3d8] sm:$0xff] }
 0x127   : > { %v941_v39 = vpop.f32.mrb[18].mxu0  ;;  %v695_v14 = vadd.f32 %v5191_v54, %v294_v46 }
 0x128   : > { %3261 = vrot.lane.b32.xlu0 %v1072_v32, %s5756_s19  ;;  %v943_v42 = vpop.f32.mrb[19].mxu0  ;;  %3247 = vrot.lane.b32.xlu1 %v941_v39, %s5756_s19  ;;  %v692_v39 = vadd.f32 %v5188_v34, %v291_v29 }
 0x129   : > { %v1078_v49 = vpop.f32.mrb[18].mxu1  ;;  %5672 = vmatprep.subr.bf16.mxu1 %v5671_v17 }
 0x12a   : > { %v1080_v55 = vpop.f32.mrb[19].mxu1  ;;  %5674 = vmatpush1.bf16.msra.mxu1 %v5673_v25  ;;  %v719_v25 = vadd.f32 %v5215_v18, %v318_v10  ;;  %v344_v18 = vld [vmem:[%s5795_s17 + $0x568] sm:$0xff] }
 0x12b   : > { %v947_v7 = vpop.f32.mrb[20].mxu0 }
 0x12c   : > { %3253 = vrot.lane.b32.xlu0 %v937_v28, %s5756_s19  ;;  %v949_v16 = vpop.f32.mrb[21].mxu0  ;;  %3263 = vrot.lane.b32.xlu1 %v1078_v49, %s5756_s19  ;;  %v718_v28 = vadd.f32 %v5214_v26, %v317_v19  ;;  %v5661_v49 = vpack.c.bf16 %v717_v41, %v692_v39  ;;  %v367_v39 = vld [vmem:[%s5795_s17 + $0x620] sm:$0xff]  ;;  %v5239_v41 = vld [vmem:[%s5795_s17 + $0xb98] sm:$0xff] }
 0x12d   : > { %v1084_v24 = vpop.f32.mrb[20].mxu1 }
 0x12e   : > { %v6712_v32 = vpop.f32.mrb[21].mxu1  ;;  %v5659_v44 = vpack.c.bf16 %v718_v28, %v693_v20 }
 0x12f   : > { %v953_v38 = vpop.f32.mrb[22].mxu0 }
 0x130   : > { %3269 = vrot.lane.b32.xlu0 %v1074_v36, %s5756_s19  ;;  %v6717_v43 = vpop.f32.mrb[23].mxu0  ;;  %3255 = vrot.lane.b32.xlu1 %v943_v42, %s5756_s19  ;;  %v5216_v36 = vld [vmem:[%s5795_s17 + $0xae0] sm:$0xff]  ;;  %v5190_v42 = vld [vmem:[%s5795_s17 + $0xa10] sm:$0xff] }
 0x131   : > { %v1090_v51 = vpop.f32.mrb[22].mxu1  ;;  %5660 = vmatprep.subr.bf16.mxu0 %v5659_v44  ;;  %v720_v17 = vadd.f32 %v5216_v36, %v319_v52  ;;  %v694_v13 = vadd.f32 %v5190_v42, %v293_v30  ;;  %v366_v52 = vld [vmem:[%s5795_s17 + $0x618] sm:$0xff]  ;;  %v5238_v36 = vld [vmem:[%s5795_s17 + $0xb90] sm:$0xff] }
 0x132   : > { %v6720_v50 = vpop.f32.mrb[23].mxu1  ;;  %5662 = vmatpush1.bf16.msra.mxu0 %v5661_v49  ;;  %v5264_v49 = vld [vmem:[%s5795_s17 + $0xc60] sm:$0xff] }
 0x133   : > { %v6725_v56 = vpop.f32.mrb[24].mxu0  ;;  %v5675_v20 = vpack.c.bf16 %v720_v17, %v695_v14  ;;  %v5263_v14 = vld [vmem:[%s5795_s17 + $0xc58] sm:$0xff] }
 0x134   : > { %3249 = vrot.lane.b32.xlu0 %v947_v7, %s5756_s19  ;;  %v6731_v12 = vpop.f32.mrb[25].mxu0  ;;  %3271 = vrot.lane.b32.xlu1 %v1080_v55, %s5756_s19  ;;  %v5677_v7 = vpack.c.bf16 %v719_v25, %v694_v13  ;;  %v767_v17 = vadd.f32 %v5263_v14, %v366_v52  ;;  %v369_v13 = vld [vmem:[%s5795_s17 + $0x630] sm:$0xff]  ;;  %v5241_v25 = vld [vmem:[%s5795_s17 + $0xba8] sm:$0xff] }
 0x135   : > { %v6735_v19 = vpop.f32.mrb[24].mxu1  ;;  %5676 = vmatprep.subr.bf16.mxu1 %v5675_v20  ;;  %v5240_v52 = vld [vmem:[%s5795_s17 + $0xba0] sm:$0xff] }
 0x136   : > { %v6738_v26 = vpop.f32.mrb[25].mxu1  ;;  %5678 = vmatpush1.bf16.msra.mxu1 %v5677_v7 }
 0x137   : > { %v6740_v29 = vpop.f32.mrb[26].mxu0 }
 0x138   : > { %3265 = vrot.lane.b32.xlu0 %v1084_v24, %s5756_s19  ;;  %v6743_v1 = vpop.f32.mrb[27].mxu0  ;;  %3251 = vrot.lane.b32.xlu1 %v953_v38, %s5756_s19  ;;  %v342_v24 = vld [vmem:[%s5795_s17 + $0x558] sm:$0xff]  ;;  %v341_v38 = vld [vmem:[%s5795_s17 + $0x550] sm:$0xff] }
 0x139   : > { %v6745_v28 = vpop.f32.mrb[26].mxu1  ;;  %v743_v46 = vadd.f32 %v5239_v41, %v342_v24  ;;  %v742_v10 = vadd.f32 %v5238_v36, %v341_v38  ;;  %v5266_v24 = vld [vmem:[%s5795_s17 + $0xc70] sm:$0xff]  ;;  %v343_v41 = vld [vmem:[%s5795_s17 + $0x560] sm:$0xff]  ;;  %v5265_v36 = vld [vmem:[%s5795_s17 + $0xc68] sm:$0xff] }
 0x13a   : > { %v6748_v55 = vpop.f32.mrb[27].mxu1 }
 0x13b   : > { %v6750_v34 = vpop.f32.mrb[28].mxu0  ;;  %v5665_v7 = vpack.c.bf16 %v767_v17, %v742_v10 }
 0x13c   : > { %3257 = vrot.lane.b32.xlu0 %v949_v16, %s5756_s19  ;;  %v6753_v35 = vpop.f32.mrb[29].mxu0  ;;  %3267 = vrot.lane.b32.xlu1 %v1090_v51, %s5756_s19  ;;  %v768_v16 = vadd.f32 %v5264_v49, %v367_v39  ;;  %v745_v39 = vadd.f32 %v5241_v25, %v344_v18  ;;  %v368_v49 = vld [vmem:[%s5795_s17 + $0x628] sm:$0xff] }
 0x13d   : > { %v6758_v44 = vpop.f32.mrb[28].mxu1  ;;  %v769_v14 = vadd.f32 %v5265_v36, %v368_v49 }
 0x13e   : > { %v6764_v54 = vpop.f32.mrb[29].mxu1  ;;  %v5663_v51 = vpack.c.bf16 %v768_v16, %v743_v46  ;;  %v744_v16 = vadd.f32 %v5240_v52, %v343_v41 }
 0x13f   : > { %v6768_v30 = vpop.f32.mrb[30].mxu0 }
 0x140   : > { %3273 = vrot.lane.b32.xlu0 %v6712_v32, %s5756_s19  ;;  %v6772_v42 = vpop.f32.mrb[31].mxu0  ;;  %3259 = vrot.lane.b32.xlu1 %v6717_v43, %s5756_s19  ;;  %v770_v32 = vadd.f32 %v5266_v24, %v369_v13  ;;  %v5681_v43 = vpack.c.bf16 %v769_v14, %v744_v16 }
 0x141   : > { %v6777_v20 = vpop.f32.mrb[30].mxu1  ;;  %5664 = vmatprep.subr.bf16.mxu0 %v5663_v51 }
 0x142   : > { %v6784_v38 = vpop.f32.mrb[31].mxu1  ;;  %5666 = vmatpush1.bf16.msra.mxu0 %v5665_v7  ;;  %v5679_v17 = vpack.c.bf16 %v770_v32, %v745_v39 }
 0x143   : > { %v6788_v46 = vpop.f32.mrb[32].mxu0 }
 0x144   : > { %11321 = vst [vmem:[#allocation12_spill] sm:$0xff] %v6788_v46  ;;  %2645 = vrot.lane.b32.xlu0 %v6725_v56, %s5755_s15  ;;  %v6792_v10 = vpop.f32.mrb[33].mxu0  ;;  %3275 = vrot.lane.b32.xlu1 %v6720_v50, %s5756_s19  ;;  %v5267_v46 = vld [vmem:[%s5795_s17 + $0xc78] sm:$0xff] }
 0x145   : > { %11322 = vst [vmem:[#allocation13_spill] sm:$0xff] %v6792_v10  ;;  %v6794_v18 = vpop.f32.mrb[32].mxu1  ;;  %5680 = vmatprep.subr.bf16.mxu1 %v5679_v17  ;;  %5388 = vmatmul.mubr.msk.f32.vlgmr.msra.gmra.mrb[120].mxu0 %vm784_vm0, %v6392_v53 }
 0x146   : > { %11323 = vst [vmem:[#allocation14_spill] sm:$0xff] %v6794_v18  ;;  %v6798_v51 = vpop.f32.mrb[33].mxu1  ;;  %5682 = vmatpush1.bf16.msra.mxu1 %v5681_v43  ;;  %2261 = vmatprep.mubr.f32.mxu0 %v5754_v0 }
 0x147   : > { %11324 = vst [vmem:[#allocation15_spill] sm:$0xff] %v6798_v51  ;;  %v6800_v13 = vpop.f32.mrb[34].mxu0 }
 0x148   : > { %11325 = vst [vmem:[#allocation16_spill] sm:$0xff] %v6800_v13  ;;  %2661 = vrot.lane.b32.xlu0 %v6735_v19, %s5755_s15  ;;  %v6806_v56 = vpop.f32.mrb[35].mxu0  ;;  %2647 = vrot.lane.b32.xlu1 %v6740_v29, %s5755_s15 }
 0x149   : > { %11326 = vst [vmem:[#allocation17_spill] sm:$0xff] %v6806_v56  ;;  %v6809_v25 = vpop.f32.mrb[34].mxu1  ;;  %5400 = vmatmul.mubr.msk.f32.vlgmr.msra.gmra.mrb[120].mxu1 %vm784_vm0, %v6392_v53  ;;  %5389 = vmatmul.mubr.msk.f32.gmra.mrb[122].mxu0 %vm784_vm0, %v6412_v31 }
 0x14a   : > { %11327 = vst [vmem:[#allocation18_spill] sm:$0xff] %v6809_v25  ;;  %v6813_v50 = vpop.f32.mrb[35].mxu1  ;;  %2398 = vmatprep.mubr.f32.mxu1 %v5754_v0  ;;  %2267 = vmatprep.mubr.f32.mxu0 %v5754_v0 }
 0x14b   : > { %11328 = vst [vmem:[#allocation19_spill] sm:$0xff] %v6813_v50  ;;  %v6817_v7 = vpop.f32.mrb[36].mxu0 }
 0x14c   : > { %11329 = vst [vmem:[#allocation20_spill] sm:$0xff] %v6817_v7  ;;  %2653 = vrot.lane.b32.xlu0 %v6731_v12, %s5755_s15  ;;  %v6824_v19 = vpop.f32.mrb[37].mxu0  ;;  %2663 = vrot.lane.b32.xlu1 %v6745_v28, %s5755_s15 }
 0x14d   : > { %11330 = vst [vmem:[#allocation21_spill] sm:$0xff] %v6824_v19  ;;  %v6827_v29 = vpop.f32.mrb[36].mxu1  ;;  %5401 = vmatmul.mubr.msk.f32.gmra.mrb[122].mxu1 %vm784_vm0, %v6412_v31  ;;  %5390 = vmatmul.mubr.msk.f32.gmra.mrb[124].mxu0 %vm784_vm0, %v6431_v48  ;;  %v5217_v19 = vld [vmem:[%s5795_s17 + $0xae8] sm:$0xff] }
 0x14e   : > { %11331 = vst [vmem:[#allocation22_spill] sm:$0xff] %v6827_v29  ;;  %v6831_v24 = vpop.f32.mrb[37].mxu1  ;;  %2404 = vmatprep.mubr.f32.mxu1 %v5754_v0  ;;  %2273 = vmatprep.mubr.f32.mxu0 %v5754_v0  ;;  %v5192_v29 = vld [vmem:[%s5795_s17 + $0xa20] sm:$0xff] }
 0x14f   : > { %11332 = vst [vmem:[#allocation23_spill] sm:$0xff] %v6831_v24  ;;  %v6835_v39 = vpop.f32.mrb[38].mxu0 }
 0x150   : > { %11333 = vst [vmem:[#allocation24_spill] sm:$0xff] %v6835_v39  ;;  %2669 = vrot.lane.b32.xlu0 %v6738_v26, %s5755_s15  ;;  %v6842_v12 = vpop.f32.mrb[39].mxu0  ;;  %2655 = vrot.lane.b32.xlu1 %v6743_v1, %s5755_s15 }
 0x151   : > { %11334 = vst [vmem:[#allocation25_spill] sm:$0xff] %v6842_v12  ;;  %v6845_v28 = vpop.f32.mrb[38].mxu1  ;;  %5402 = vmatmul.mubr.msk.f32.gmra.mrb[124].mxu1 %vm784_vm0, %v6431_v48  ;;  %5391 = vmatmul.mubr.msk.f32.gmra.mrb[126].mxu0 %vm784_vm0, %v6444_v57  ;;  %v320_v12 = vld [vmem:[%s5795_s17 + $0x4a8] sm:$0xff] }
 0x152   : > { %11335 = vst [vmem:[#allocation26_spill] sm:$0xff] %v6845_v28  ;;  %v6849_v31 = vpop.f32.mrb[39].mxu1  ;;  %2410 = vmatprep.mubr.f32.mxu1 %v5754_v0  ;;  %2279 = vmatprep.mubr.f32.mxu0 %v5754_v0  ;;  %v721_v2 = vadd.f32 %v5217_v19, %v320_v12 }
 0x153   : > { %11336 = vst [vmem:[#allocation27_spill] sm:$0xff] %v6849_v31  ;;  %v1209_v41 = vpop.f32.mrb[40].mxu0  ;;  %v5117_v31 = vld [vmem:[%s5795_s17 + $0x7c8] sm:$0xff] }
 0x154   : > { %2649 = vrot.lane.b32.xlu0 %v6750_v34, %s5755_s15  ;;  %v1211_v26 = vpop.f32.mrb[41].mxu0  ;;  %2671 = vrot.lane.b32.xlu1 %v6748_v55, %s5755_s15 }
 0x155   : > { %v1346_v49 = vpop.f32.mrb[40].mxu1  ;;  %5403 = vmatmul.mubr.msk.f32.gmra.mrb[126].mxu1 %vm784_vm0, %v6444_v57  ;;  %5392 = vmatmul.mubr.msk.f32.gmra.mrb[128].mxu0 %vm784_vm0, %v6455_v58 }
 0x156   : > { %v6861_v1 = vpop.f32.mrb[41].mxu1  ;;  %2416 = vmatprep.mubr.f32.mxu1 %v5754_v0  ;;  %2285 = vmatprep.mubr.f32.mxu0 %v5754_v0 }
 0x157   : > { %v1215_v48 = vpop.f32.mrb[42].mxu0 }
 0x158   : > { %2665 = vrot.lane.b32.xlu0 %v6758_v44, %s5755_s15  ;;  %v1217_v34 = vpop.f32.mrb[43].mxu0  ;;  %2651 = vrot.lane.b32.xlu1 %v6768_v30, %s5755_s15 }
 0x159   : > { %v1352_v32 = vpop.f32.mrb[42].mxu1  ;;  %5404 = vmatmul.mubr.msk.f32.gmra.mrb[128].mxu1 %vm784_vm0, %v6455_v58  ;;  %5393 = vmatmul.mubr.msk.f32.gmra.mrb[130].mxu0 %vm784_vm0, %v6466_v59 }
 0x15a   : > { %v6873_v55 = vpop.f32.mrb[43].mxu1  ;;  %2422 = vmatprep.mubr.f32.mxu1 %v5754_v0  ;;  %2291 = vmatprep.mubr.f32.mxu0 %v5754_v0 }
 0x15b   : > { %v1221_v57 = vpop.f32.mrb[44].mxu0 }
 0x15c   : > { %2657 = vrot.lane.b32.xlu0 %v6753_v35, %s5755_s15  ;;  %v6882_v44 = vpop.f32.mrb[45].mxu0  ;;  %2667 = vrot.lane.b32.xlu1 %v6777_v20, %s5755_s15 }
 0x15d   : > { %v6885_v52 = vpop.f32.mrb[44].mxu1  ;;  %5405 = vmatmul.mubr.msk.f32.gmra.mrb[130].mxu1 %vm784_vm0, %v6466_v59  ;;  %5394 = vmatmul.mubr.msk.f32.gmra.mrb[132].mxu0 %vm784_vm0, %v6477_v61 }
 0x15e   : > { %v6889_v30 = vpop.f32.mrb[45].mxu1  ;;  %2428 = vmatprep.mubr.f32.mxu1 %v5754_v0  ;;  %2297 = vmatprep.mubr.f32.mxu0 %v5754_v0 }
 0x15f   : > { %v6893_v58 = vpop.f32.mrb[46].mxu0 }
 0x160   : > { %2673 = vrot.lane.b32.xlu0 %v6764_v54, %s5755_s15  ;;  %v6900_v35 = vpop.f32.mrb[47].mxu0  ;;  %2659 = vrot.lane.b32.xlu1 %v6772_v42, %s5755_s15 }
 0x161   : > { %v6903_v20 = vpop.f32.mrb[46].mxu1  ;;  %5406 = vmatmul.mubr.msk.f32.gmra.mrb[132].mxu1 %vm784_vm0, %v6477_v61  ;;  %5395 = vmatmul.mubr.msk.f32.gmra.mrb[134].mxu0 %vm784_vm0, %v6488_v3 }
 0x162   : > { %v6907_v59 = vpop.f32.mrb[47].mxu1  ;;  %2434 = vmatprep.mubr.f32.mxu1 %v5754_v0  ;;  %2303 = vmatprep.mubr.f32.mxu0 %v5754_v0 }
 0x163   : > { %v6911_v36 = vpop.f32.mrb[48].mxu0 }
 0x164   : > { %3277 = vrot.lane.b32.xlu0 %v1209_v41, %s5756_s19  ;;  %v6917_v54 = vpop.f32.mrb[49].mxu0  ;;  %2675 = vrot.lane.b32.xlu1 %v6784_v38, %s5755_s15 }
 0x165   : > { %v6920_v16 = vpop.f32.mrb[48].mxu1  ;;  %5407 = vmatmul.mubr.msk.f32.gmra.mrb[134].mxu1 %vm784_vm0, %v6488_v3  ;;  %5396 = vmatmul.mubr.msk.f32.gmra.mrb[136].mxu0 %vm784_vm0, %v6499_v4 }
 0x166   : > { %v6924_v42 = vpop.f32.mrb[49].mxu1  ;;  %2440 = vmatprep.mubr.f32.mxu1 %v5754_v0  ;;  %2309 = vmatprep.mubr.f32.mxu0 %v5754_v0 }
 0x167   : > { %v6928_v14 = vpop.f32.mrb[50].mxu0 }
 0x168   : > { %3293 = vrot.lane.b32.xlu0 %v1346_v49, %s5756_s19  ;;  %v6934_v17 = vpop.f32.mrb[51].mxu0  ;;  %3279 = vrot.lane.b32.xlu1 %v1215_v48, %s5756_s19 }
 0x169   : > { %v6937_v43 = vpop.f32.mrb[50].mxu1  ;;  %5408 = vmatmul.mubr.msk.f32.gmra.mrb[136].mxu1 %vm784_vm0, %v6499_v4  ;;  %5397 = vmatmul.mubr.msk.f32.gmra.mrb[138].mxu0 %vm784_vm0, %v6510_v5 }
 0x16a   : > { %v6940_v38 = vpop.f32.mrb[51].mxu1  ;;  %2446 = vmatprep.mubr.f32.mxu1 %v5754_v0  ;;  %2315 = vmatprep.mubr.f32.mxu0 %v5754_v0 }
 0x16b   : > { %v6944_v3 = vpop.f32.mrb[52].mxu0 }
 0x16c   : > { %3285 = vrot.lane.b32.xlu0 %v1211_v26, %s5756_s19  ;;  %v6950_v41 = vpop.f32.mrb[53].mxu0  ;;  %3295 = vrot.lane.b32.xlu1 %v1352_v32, %s5756_s19 }
 0x16d   : > { %v6953_v49 = vpop.f32.mrb[52].mxu1  ;;  %5409 = vmatmul.mubr.msk.f32.gmra.mrb[138].mxu1 %vm784_vm0, %v6510_v5  ;;  %5398 = vmatmul.mubr.msk.f32.gmra.mrb[140].mxu0 %vm784_vm0, %v6521_v8 }
 0x16e   : > { %v6956_v48 = vpop.f32.mrb[53].mxu1  ;;  %2452 = vmatprep.mubr.f32.mxu1 %v5754_v0  ;;  %2321 = vmatprep.mubr.f32.mxu0 %v5754_v0 }
 0x16f   : > { %v6960_v4 = vpop.f32.mrb[54].mxu0 }
 0x170   : > { %3301 = vrot.lane.b32.xlu0 %v6861_v1, %s5756_s19  ;;  %v6967_v26 = vpop.f32.mrb[55].mxu0  ;;  %3287 = vrot.lane.b32.xlu1 %v1217_v34, %s5756_s19 }
 0x171   : > { %v6970_v32 = vpop.f32.mrb[54].mxu1  ;;  %5410 = vmatmul.mubr.msk.f32.gmra.mrb[140].mxu1 %vm784_vm0, %v6521_v8  ;;  %5399 = vmatmul.mubr.msk.f32.gmra.mrb[142].mxu0 %vm784_vm0, %v6653_v45 }
 0x172   : > { %v6973_v6 = vpop.f32.mrb[55].mxu1  ;;  %2458 = vmatprep.mubr.f32.mxu1 %v5754_v0  ;;  %5473 = vmatprep.mubr.msk.f32.mxu0 %vm784_vm0, %v6392_v53 }
 0x173   : > { %v6977_v5 = vpop.f32.mrb[56].mxu0 }
 0x174   : > { %11337 = vst [vmem:[#allocation28_spill] sm:$0xff] %v6977_v5  ;;  %3281 = vrot.lane.b32.xlu0 %v1221_v57, %s5756_s19  ;;  %v6983_v1 = vpop.f32.mrb[57].mxu0  ;;  %3303 = vrot.lane.b32.xlu1 %v6873_v55, %s5756_s19  ;;  %v195_v57 = vld [vmem:[%s5795_s17 + $0xc0] sm:$0xff] }
 0x175   : > { %11338 = vst [vmem:[#allocation29_spill] sm:$0xff] %v6983_v1  ;;  %v6987_v34 = vpop.f32.mrb[56].mxu1  ;;  %v6991_v8 = vpop.permute.xlu0 %2613  ;;  %5411 = vmatmul.mubr.msk.f32.gmra.mrb[142].mxu1 %vm784_vm0, %v6653_v45  ;;  %v5092_v55 = vld [vmem:[%s5795_s17 + $0x700] sm:$0xff] }
 0x176   : > { %11339 = vst [vmem:[#allocation30_spill] sm:$0xff] %v6987_v34  ;;  %11340 = vst [vmem:[#allocation31_spill] sm:$0xff] %v6991_v8  ;;  %v6993_v37 = vpop.f32.mrb[57].mxu1  ;;  %5482 = vmatprep.mubr.msk.f32.mxu1 %vm784_vm0, %v6477_v61  ;;  %v621_v61 = vadd.f32 %v5117_v31, %v220_v63 }
 0x177   : > { %11341 = vst [vmem:[#allocation32_spill] sm:$0xff] %v6993_v37  ;;  %v6997_v0 = vpop.f32.mrb[58].mxu0  ;;  %v596_v37 = vadd.f32 %v5092_v55, %v195_v57 }
 0x178   : > { %11342 = vst [vmem:[#allocation33_spill] sm:$0xff] %v6997_v0  ;;  %3297 = vrot.lane.b32.xlu0 %v6885_v52, %s5756_s19  ;;  %v7003_v53 = vpop.f32.mrb[59].mxu0  ;;  %3283 = vrot.lane.b32.xlu1 %v6893_v58, %s5756_s19 }
 0x179   : > { %11343 = vst [vmem:[#allocation34_spill] sm:$0xff] %v7003_v53  ;;  %v7008_v60 = vpop.f32.mrb[58].mxu1  ;;  %v7013_v24 = vpop.permute.xlu0 %2629 }
 0x17a   : > { %11344 = vst [vmem:[#allocation35_spill] sm:$0xff] %v7008_v60  ;;  %v7015_v34 = vpop.f32.mrb[59].mxu1  ;;  %v7019_v52 = vpop.permute.xlu1 %2631  ;;  %v5683_v60 = vpack.c.bf16 %v621_v61, %v596_v37  ;;  %v245_v61 = vld [vmem:[%s5795_s17 + $0x250] sm:$0xff] }
 0x17b   : > { %11345 = vst [vmem:[#allocation36_spill] sm:$0xff] %v7015_v34  ;;  %v7017_v0 = vpop.f32.mrb[60].mxu0  ;;  %v5142_v34 = vld [vmem:[%s5795_s17 + $0x890] sm:$0xff] }
 0x17c   : > { %11346 = vst [vmem:[#allocation37_spill] sm:$0xff] %v7017_v0  ;;  %3289 = vrot.lane.b32.xlu0 %v6882_v44, %s5756_s19  ;;  %v7023_v53 = vpop.f32.mrb[61].mxu0  ;;  %3299 = vrot.lane.b32.xlu1 %v6903_v20, %s5756_s19 }
 0x17d   : > { %11347 = vst [vmem:[#allocation38_spill] sm:$0xff] %v7023_v53  ;;  %v7025_v1 = vpop.f32.mrb[60].mxu1  ;;  %v7029_v58 = vpop.permute.xlu0 %2621  ;;  %5684 = vmatprep.subr.bf16.mxu0 %v5683_v60  ;;  %5699 = vmatprep.subr.bf16.mxu1 %v5683_v60  ;;  %v646_v53 = vadd.f32 %v5142_v34, %v245_v61 }
 0x17e   : > { %11348 = vst [vmem:[#allocation39_spill] sm:$0xff] %v7025_v1  ;;  %v7031_v63 = vpop.f32.mrb[61].mxu1  ;;  %5686 = vmatpush3.bf16.msra.mxu0 %v5683_v60  ;;  %v7035_v44 = vpop.permute.xlu1 %2623  ;;  %5703 = vmatpush3.bf16.msra.mxu1 %v5683_v60 }
 0x17f   : > { %11349 = vst [vmem:[#allocation40_spill] sm:$0xff] %v7031_v63  ;;  %v7033_v31 = vpop.f32.mrb[62].mxu0  ;;  %v270_v63 = vld [vmem:[%s5795_s17 + $0x318] sm:$0xff] }
 0x180   : > { %11350 = vst [vmem:[#allocation41_spill] sm:$0xff] %v7033_v31  ;;  %3305 = vrot.lane.b32.xlu0 %v6889_v30, %s5756_s19  ;;  %v7039_v37 = vpop.f32.mrb[63].mxu0  ;;  %3291 = vrot.lane.b32.xlu1 %v6900_v35, %s5756_s19  ;;  %v5167_v31 = vld [vmem:[%s5795_s17 + $0x958] sm:$0xff] }
 0x181   : > { %11351 = vst [vmem:[#allocation42_spill] sm:$0xff] %v7039_v37  ;;  %v7041_v20 = vpop.f32.mrb[62].mxu1  ;;  %v7045_v57 = vpop.permute.xlu0 %2637 }
 0x182   : > { %11352 = vst [vmem:[#allocation43_spill] sm:$0xff] %v7041_v20  ;;  %11353 = vst [vmem:[#allocation44_spill] sm:$0xff] %v7045_v57  ;;  %v7047_v55 = vpop.f32.mrb[63].mxu1  ;;  %v7055_v30 = vpop.permute.xlu1 %2639  ;;  %v671_v20 = vadd.f32 %v5167_v31, %v270_v63 }
 0x183   : > { %11354 = vst [vmem:[#allocation45_spill] sm:$0xff] %v7047_v55  ;;  %v7052_v1 = vpop.f32.mrb[64].mxu0  ;;  %11355 = vst [vmem:[#allocation46_spill] sm:$0xff] %v7055_v30 }
 0x184   : > { %2677 = vrot.lane.b32.xlu0 %v6911_v36, %s5755_s15  ;;  %v7059_v60 = vpop.f32.mrb[65].mxu0  ;;  %3307 = vrot.lane.b32.xlu1 %v6907_v59, %s5756_s19  ;;  %v5687_v0 = vpack.c.bf16 %v671_v20, %v646_v53 }
 0x185   : > { %v7061_v35 = vpop.f32.mrb[64].mxu1  ;;  %v7065_v55 = vpop.permute.xlu0 %2615 }
 0x186   : > { %11356 = vst [vmem:[#allocation47_spill] sm:$0xff] %v7065_v55  ;;  %v7067_v37 = vpop.f32.mrb[65].mxu1  ;;  %v7071_v34 = vpop.permute.xlu1 %2617  ;;  %5688 = vmatprep.subr.bf16.mxu0 %v5687_v0  ;;  %5700 = vmatprep.subr.bf16.mxu1 %v5687_v0 }
 0x187   : > { %v7069_v5 = vpop.f32.mrb[66].mxu0  ;;  %11357 = vst [vmem:[#allocation48_spill] sm:$0xff] %v7071_v34  ;;  %5690 = vmatpush3.bf16.msra.mxu0 %v5687_v0  ;;  %5704 = vmatpush3.bf16.msra.mxu1 %v5687_v0 }
 0x188   : > { %2693 = vrot.lane.b32.xlu0 %v6920_v16, %s5755_s15  ;;  %v7075_v36 = vpop.f32.mrb[67].mxu0  ;;  %2679 = vrot.lane.b32.xlu1 %v6928_v14, %s5755_s15 }
 0x189   : > { %v7077_v63 = vpop.f32.mrb[66].mxu1  ;;  %v7081_v59 = vpop.permute.xlu0 %2633 }
 0x18a   : > { %v7083_v53 = vpop.f32.mrb[67].mxu1  ;;  %v7087_v16 = vpop.permute.xlu1 %2619 }
 0x18b   : > { %v7085_v31 = vpop.f32.mrb[68].mxu0  ;;  %11358 = vst [vmem:[#allocation49_spill] sm:$0xff] %v7087_v16 }
 0x18c   : > { %2685 = vrot.lane.b32.xlu0 %v6917_v54, %s5755_s15  ;;  %v7091_v20 = vpop.f32.mrb[69].mxu0  ;;  %2695 = vrot.lane.b32.xlu1 %v6937_v43, %s5755_s15  ;;  %v295_v54 = vld [vmem:[%s5795_s17 + $0x3e0] sm:$0xff] }
 0x18d   : > { %v7093_v61 = vpop.f32.mrb[68].mxu1  ;;  %v7097_v14 = vpop.permute.xlu0 %2625  ;;  %v696_v43 = vadd.f32 %v5192_v29, %v295_v54 }
 0x18e   : > { %v7099_v50 = vpop.f32.mrb[69].mxu1  ;;  %v7103_v51 = vpop.permute.xlu1 %2635 }
 0x18f   : > { %v7101_v0 = vpop.f32.mrb[70].mxu0  ;;  %v5691_v18 = vpack.c.bf16 %v721_v2, %v696_v43 }
 0x190   : > { %2701 = vrot.lane.b32.xlu0 %v6924_v42, %s5755_s15  ;;  %v7107_v28 = vpop.f32.mrb[71].mxu0  ;;  %2687 = vrot.lane.b32.xlu1 %v6934_v17, %s5755_s15 }
 0x191   : > { %v7112_v39 = vpop.f32.mrb[70].mxu1  ;;  %v7117_v7 = vpop.permute.xlu0 %2641  ;;  %5692 = vmatprep.subr.bf16.mxu0 %v5691_v18  ;;  %5701 = vmatprep.subr.bf16.mxu1 %v5691_v18 }
 0x192   : > { %11359 = vst [vmem:[#allocation50_spill] sm:$0xff] %v7117_v7  ;;  %v7119_v15 = vpop.f32.mrb[71].mxu1  ;;  %v7123_v42 = vpop.permute.xlu1 %2627  ;;  %5694 = vmatpush3.bf16.msra.mxu0 %v5691_v18  ;;  %5705 = vmatpush3.bf16.msra.mxu1 %v5691_v18  ;;  %v370_v18 = vld [vmem:[%s5795_s17 + $0x638] sm:$0xff]  ;;  %v5242_v7 = vld [vmem:[%s5795_s17 + $0xbb0] sm:$0xff] }
 0x193   : > { %v7121_v25 = vpop.f32.mrb[72].mxu0 }
 0x194   : > { %2681 = vrot.lane.b32.xlu0 %v6944_v3, %s5755_s15  ;;  %v7127_v56 = vpop.f32.mrb[73].mxu0  ;;  %2703 = vrot.lane.b32.xlu1 %v6940_v38, %s5755_s15 }
 0x195   : > { %v7129_v13 = vpop.f32.mrb[72].mxu1 }
 0x196   : > { %v7133_v29 = vpop.permute.xlu0 %3245  ;;  %v7135_v17 = vpop.f32.mrb[73].mxu1 }
 0x197   : > { %11360 = vst [vmem:[#allocation51_spill] sm:$0xff] %v7133_v29  ;;  %v7137_v19 = vpop.f32.mrb[74].mxu0  ;;  %v7139_v12 = vpop.permute.xlu1 %2643 }
 0x198   : > { %11361 = vst [vmem:[#allocation52_spill] sm:$0xff] %v7139_v12  ;;  %2697 = vrot.lane.b32.xlu0 %v6953_v49, %s5755_s15  ;;  %v7143_v2 = vpop.f32.mrb[75].mxu0  ;;  %2683 = vrot.lane.b32.xlu1 %v6960_v4, %s5755_s15  ;;  %v345_v12 = vld [vmem:[%s5795_s17 + $0x570] sm:$0xff]  ;;  %s5758_s17 = smov 122  }
 0x199   : > { %v7145_v38 = vpop.f32.mrb[74].mxu1  ;;  %v746_v4 = vadd.f32 %v5242_v7, %v345_v12 }
 0x19a   : > { %v7149_v3 = vpop.permute.xlu0 %3261  ;;  %v7151_v54 = vpop.f32.mrb[75].mxu1 }
 0x19b   : > { %v7153_v43 = vpop.f32.mrb[76].mxu0  ;;  %v7155_v29 = vpop.permute.xlu1 %3247 }
 0x19c   : > { %11362 = vst [vmem:[#allocation53_spill] sm:$0xff] %v7155_v29  ;;  %2689 = vrot.lane.b32.xlu0 %v6950_v41, %s5755_s15  ;;  %v7159_v49 = vpop.f32.mrb[77].mxu0  ;;  %2699 = vrot.lane.b32.xlu1 %v6970_v32, %s5755_s15  ;;  %v771_v29 = vadd.f32 %v5267_v46, %v370_v18 }
 0x19d   : > { %v7164_v10 = vpop.f32.mrb[76].mxu1 }
 0x19e   : > { %v7169_v33 = vpop.permute.xlu0 %3253  ;;  %v7171_v22 = vpop.f32.mrb[77].mxu1  ;;  %v5695_v11 = vpack.c.bf16 %v771_v29, %v746_v4  ;;  %v5734_v4 = vld [vmem:[%s11021_s1 + $0x8] sm:$0xff] }
 0x19f   : > { %11363 = vst [vmem:[#allocation54_spill] sm:$0xff] %v7169_v33  ;;  %v7173_v30 = vpop.f32.mrb[78].mxu0  ;;  %v7175_v41 = vpop.permute.xlu1 %3263 }
 0x1a0   : > { %2705 = vrot.lane.b32.xlu0 %v6956_v48, %s5755_s15  ;;  %v7179_v57 = vpop.f32.mrb[79].mxu0  ;;  %2691 = vrot.lane.b32.xlu1 %v6967_v26, %s5755_s15 }
 0x1a1   : > { %v7181_v9 = vpop.f32.mrb[78].mxu1  ;;  %5696 = vmatprep.subr.bf16.mxu0 %v5695_v11  ;;  %5702 = vmatprep.subr.bf16.mxu1 %v5695_v11 }
 0x1a2   : > { %v7185_v7 = vpop.permute.xlu0 %3269  ;;  %v7187_v32 = vpop.f32.mrb[79].mxu1  ;;  %5698 = vmatpush3.bf16.msra.mxu0 %v5695_v11  ;;  %5706 = vmatpush3.bf16.msra.mxu1 %v5695_v11  ;;  %v5735_v11 = vld [vmem:[%s11021_s1 + $0x10] sm:$0xff] }
 0x1a3   : > { %v7189_v46 = vpop.f32.mrb[80].mxu0  ;;  %v7191_v12 = vpop.permute.xlu1 %3255 }
 0x1a4   : > { %11364 = vst [vmem:[#allocation55_spill] sm:$0xff] %v7189_v46  ;;  %11365 = vst [vmem:[#allocation56_spill] sm:$0xff] %v7191_v12  ;;  %3309 = vrot.lane.b32.xlu0 %v7052_v1, %s5756_s19  ;;  %v7195_v48 = vpop.f32.mrb[81].mxu0  ;;  %2707 = vrot.lane.b32.xlu1 %v6973_v6, %s5755_s15  ;;  %v5736_v6 = vld [vmem:[%s11021_s1 + $0x38] sm:$0xff] }
 0x1a5   : > { %11366 = vst [vmem:[#allocation57_spill] sm:$0xff] %v7195_v48  ;;  %v7197_v29 = vpop.f32.mrb[80].mxu1  ;;  %5474 = vmatmul.mubr.msk.f32.vlgmr.msra.gmra.mrb[144].mxu0 %vm784_vm0, %v5734_v4  ;;  %5483 = vmatmul.mubr.msk.f32.vlgmr.msra.gmra.mrb[144].mxu1 %vm784_vm0, %v5736_v6 }
 0x1a6   : > { %11367 = vst [vmem:[#allocation58_spill] sm:$0xff] %v7197_v29  ;;  %v7201_v26 = vpop.permute.xlu0 %3249  ;;  %v7203_v18 = vpop.f32.mrb[81].mxu1  ;;  %5476 = vmatprep.mubr.msk.f32.mxu0 %vm784_vm0, %v5735_v11 }
 0x1a7   : > { %11368 = vst [vmem:[#allocation59_spill] sm:$0xff] %v7201_v26  ;;  %11369 = vst [vmem:[#allocation60_spill] sm:$0xff] %v7203_v18  ;;  %v7209_v46 = vpop.f32.mrb[82].mxu0  ;;  %v7219_v1 = vpop.permute.xlu1 %3271  ;;  %v5737_v26 = vld [vmem:[%s11021_s1 + $0x40] sm:$0xff] }
 0x1a8   : > { %11370 = vst [vmem:[#allocation61_spill] sm:$0xff] %v7209_v46  ;;  %3325 = vrot.lane.b32.xlu0 %v7061_v35, %s5756_s19  ;;  %v7223_v4 = vpop.f32.mrb[83].mxu0  ;;  %5485 = vmatprep.mubr.msk.f32.mxu1 %vm784_vm0, %v5737_v26  ;;  %v5738_v35 = vld [vmem:[%s11021_s1 + $0x18] sm:$0xff]  ;;  %v5739_v26 = vld [vmem:[%s11021_s1 + $0x48] sm:$0xff] }
 0x1a9   : > { %11371 = vst [vmem:[#allocation62_spill] sm:$0xff] %v7223_v4  ;;  %v7229_v11 = vpop.f32.mrb[82].mxu1  ;;  %3311 = vrot.lane.b32.xlu1 %v7069_v5, %s5756_s19  ;;  %5477 = vmatmul.mubr.msk.f32.gmra.mrb[146].mxu0 %vm784_vm0, %v5738_v35  ;;  %v5740_v5 = vld [vmem:[%s11021_s1 + $0x20] sm:$0xff] }
 0x1aa   : > { %11372 = vst [vmem:[#allocation63_spill] sm:$0xff] %v7229_v11  ;;  %v7233_v18 = vpop.permute.xlu0 %3265  ;;  %v7235_v6 = vpop.f32.mrb[83].mxu1  ;;  %5486 = vmatmul.mubr.msk.f32.gmra.mrb[146].mxu1 %vm784_vm0, %v5739_v26  ;;  %5479 = vmatprep.mubr.msk.f32.mxu0 %vm784_vm0, %v5740_v5 }
 0x1ab   : > { %11373 = vst [vmem:[#allocation64_spill] sm:$0xff] %v7235_v6  ;;  %v7241_v4 = vpop.f32.mrb[84].mxu0  ;;  %v7251_v6 = vpop.permute.xlu1 %3251 }
 0x1ac   : > { %11374 = vst [vmem:[#allocation65_spill] sm:$0xff] %v7241_v4  ;;  %11375 = vst [vmem:[#allocation66_spill] sm:$0xff] %v7251_v6  ;;  %3317 = vrot.lane.b32.xlu0 %v7059_v60, %s5756_s19  ;;  %v7255_v35 = vpop.f32.mrb[85].mxu0  ;;  %v5741_v4 = vld [vmem:[%s11021_s1 + $0x50] sm:$0xff]  ;;  %v5742_v60 = vld [vmem:[%s11021_s1 + $0x28] sm:$0xff] }
 0x1ad   : > { %11376 = vst [vmem:[#allocation67_spill] sm:$0xff] %v7255_v35  ;;  %5488 = vmatprep.mubr.msk.f32.mxu1 %vm784_vm0, %v5741_v4  ;;  %v7261_v26 = vpop.f32.mrb[84].mxu1  ;;  %3327 = vrot.lane.b32.xlu1 %v7077_v63, %s5756_s19 }
 0x1ae   : > { %11377 = vst [vmem:[#allocation68_spill] sm:$0xff] %v7261_v26  ;;  %v7265_v11 = vpop.permute.xlu0 %3257  ;;  %v7267_v5 = vpop.f32.mrb[85].mxu1  ;;  %5480 = vmatmul.mubr.msk.f32.gmra.mrb[148].mxu0 %vm784_vm0, %v5742_v60  ;;  %5489 = vmatmul.mubr.msk.f32.gmra.mrb[148].mxu1 %vm784_vm0, %v6653_v45 }
 0x1af   : > { %11378 = vst [vmem:[#allocation69_spill] sm:$0xff] %v7265_v11  ;;  %11379 = vst [vmem:[#allocation70_spill] sm:$0xff] %v7267_v5  ;;  %v7273_v6 = vpop.f32.mrb[86].mxu0  ;;  %v7277_v4 = vpop.permute.xlu1 %3267 }
 0x1b0   : > { %11380 = vst [vmem:[#allocation71_spill] sm:$0xff] %v7273_v6  ;;  %3333 = vrot.lane.b32.xlu0 %v7067_v37, %s5756_s19  ;;  %v7281_v63 = vpop.f32.mrb[87].mxu0 }
 0x1b1   : > { %11381 = vst [vmem:[#allocation72_spill] sm:$0xff] %v7281_v63  ;;  %v7283_v26 = vpop.f32.mrb[86].mxu1  ;;  %3319 = vrot.lane.b32.xlu1 %v7075_v36, %s5756_s19 }
 0x1b2   : > { %11382 = vst [vmem:[#allocation73_spill] sm:$0xff] %v7283_v26  ;;  %v7287_v5 = vpop.permute.xlu0 %3273  ;;  %v7289_v60 = vpop.f32.mrb[87].mxu1 }
 0x1b3   : > { %11383 = vst [vmem:[#allocation74_spill] sm:$0xff] %v7289_v60  ;;  %v7291_v6 = vpop.f32.mrb[88].mxu0  ;;  %v7293_v35 = vpop.permute.xlu1 %3259 }
 0x1b4   : > { %11384 = vst [vmem:[#allocation75_spill] sm:$0xff] %v7293_v35  ;;  %3313 = vrot.lane.b32.xlu0 %v7085_v31, %s5756_s19  ;;  %v7297_v45 = vpop.f32.mrb[89].mxu0 }
 0x1b5   : > { %v7299_v37 = vpop.f32.mrb[88].mxu1  ;;  %3335 = vrot.lane.b32.xlu1 %v7083_v53, %s5756_s19 }
 0x1b6   : > { %v7303_v26 = vpop.permute.xlu0 %2645  ;;  %v7305_v36 = vpop.f32.mrb[89].mxu1 }
 0x1b7   : > { %11385 = vst [vmem:[#allocation76_spill] sm:$0xff] %v7303_v26  ;;  %11386 = vst [vmem:[#allocation77_spill] sm:$0xff] %v7305_v36  ;;  %v7307_v63 = vpop.f32.mrb[90].mxu0  ;;  %v7309_v60 = vpop.permute.xlu1 %3275 }
 0x1b8   : > { %3329 = vrot.lane.b32.xlu0 %v7093_v61, %s5756_s19  ;;  %v7313_v29 = vpop.f32.mrb[91].mxu0 }
 0x1b9   : > { %11387 = vst [vmem:[#allocation78_spill] sm:$0xff] %v7313_v29  ;;  %v7315_v31 = vpop.f32.mrb[90].mxu1  ;;  %3315 = vrot.lane.b32.xlu1 %v7101_v0, %s5756_s19 }
 0x1ba   : > { %v7319_v46 = vpop.permute.xlu0 %2661  ;;  %v7321_v53 = vpop.f32.mrb[91].mxu1 }
 0x1bb   : > { %11388 = vst [vmem:[#allocation79_spill] sm:$0xff] %v7319_v46  ;;  %11389 = vst [vmem:[#allocation80_spill] sm:$0xff] %v7321_v53  ;;  %v7323_v48 = vpop.f32.mrb[92].mxu0  ;;  %v7325_v26 = vpop.permute.xlu1 %2647 }
 0x1bc   : > { %11390 = vst [vmem:[#allocation81_spill] sm:$0xff] %v7325_v26  ;;  %3321 = vrot.lane.b32.xlu0 %v7091_v20, %s5756_s19  ;;  %v7329_v36 = vpop.f32.mrb[93].mxu0 }
 0x1bd   : > { %11391 = vst [vmem:[#allocation82_spill] sm:$0xff] %v7329_v36  ;;  %v7331_v61 = vpop.f32.mrb[92].mxu1  ;;  %3331 = vrot.lane.b32.xlu1 %v7112_v39, %s5756_s19 }
 0x1be   : > { %v7335_v29 = vpop.permute.xlu0 %2653  ;;  %v7337_v0 = vpop.f32.mrb[93].mxu1 }
 0x1bf   : > { %11392 = vst [vmem:[#allocation83_spill] sm:$0xff] %v7335_v29  ;;  %11393 = vst [vmem:[#allocation84_spill] sm:$0xff] %v7337_v0  ;;  %v7339_v46 = vpop.f32.mrb[94].mxu0  ;;  %v7341_v53 = vpop.permute.xlu1 %2663 }
 0x1c0   : > { %11394 = vst [vmem:[#allocation85_spill] sm:$0xff] %v7341_v53  ;;  %3337 = vrot.lane.b32.xlu0 %v7099_v50, %s5756_s19  ;;  %v7345_v26 = vpop.f32.mrb[95].mxu0 }
 0x1c1   : > { %11395 = vst [vmem:[#allocation86_spill] sm:$0xff] %v7345_v26  ;;  %v7347_v20 = vpop.f32.mrb[94].mxu1  ;;  %3323 = vrot.lane.b32.xlu1 %v7107_v28, %s5756_s19 }
 0x1c2   : > { %v7351_v36 = vpop.permute.xlu0 %2669  ;;  %v7353_v39 = vpop.f32.mrb[95].mxu1 }
 0x1c3   : > { %11396 = vst [vmem:[#allocation87_spill] sm:$0xff] %v7351_v36  ;;  %11397 = vst [vmem:[#allocation88_spill] sm:$0xff] %v7353_v39  ;;  %v7355_v29 = vpop.f32.mrb[96].mxu0  ;;  %v7357_v0 = vpop.permute.xlu1 %2655 }
 0x1c4   : > { %11398 = vst [vmem:[#allocation89_spill] sm:$0xff] %v7357_v0  ;;  %2709 = vrot.lane.b32.xlu0 %v7121_v25, %s5755_s15  ;;  %v7361_v53 = vpop.f32.mrb[97].mxu0 }
 0x1c5   : > { %11399 = vst [vmem:[#allocation90_spill] sm:$0xff] %v7361_v53  ;;  %v7363_v50 = vpop.f32.mrb[96].mxu1  ;;  %3339 = vrot.lane.b32.xlu1 %v7119_v15, %s5756_s19 }
 0x1c6   : > { %v7367_v26 = vpop.permute.xlu0 %2649  ;;  %v7369_v28 = vpop.f32.mrb[97].mxu1 }
 0x1c7   : > { %11400 = vst [vmem:[#allocation91_spill] sm:$0xff] %v7367_v26  ;;  %11401 = vst [vmem:[#allocation92_spill] sm:$0xff] %v7369_v28  ;;  %v7371_v36 = vpop.f32.mrb[98].mxu0  ;;  %v7373_v39 = vpop.permute.xlu1 %2671  ;;  %v2813_v28 = vlaneseq }
 0x1c8   : > { %11402 = vst [vmem:[#allocation93_spill] sm:$0xff] %v7371_v36  ;;  %11403 = vst [vmem:[#allocation94_spill] sm:$0xff] %v7373_v39  ;;  %2725 = vrot.lane.b32.xlu0 %v7129_v13, %s5755_s15  ;;  %v7377_v0 = vpop.f32.mrb[99].mxu0 }
 0x1c9   : > { %11404 = vst [vmem:[#allocation95_spill] sm:$0xff] %v7377_v0  ;;  %v7379_v25 = vpop.f32.mrb[98].mxu1  ;;  %2711 = vrot.lane.b32.xlu1 %v7137_v19, %s5755_s15 }
 0x1ca   : > { %v7383_v53 = vpop.permute.xlu0 %2665  ;;  %v7385_v15 = vpop.f32.mrb[99].mxu1 }
 0x1cb   : > { %11405 = vst [vmem:[#allocation96_spill] sm:$0xff] %v7383_v53  ;;  %11406 = vst [vmem:[#allocation97_spill] sm:$0xff] %v7385_v15  ;;  %v7387_v26 = vpop.f32.mrb[100].mxu0  ;;  %v7389_v36 = vpop.permute.xlu1 %2651 }
 0x1cc   : > { %11407 = vst [vmem:[#allocation98_spill] sm:$0xff] %v7387_v26  ;;  %11408 = vst [vmem:[#allocation99_spill] sm:$0xff] %v7389_v36  ;;  %2717 = vrot.lane.b32.xlu0 %v7127_v56, %s5755_s15  ;;  %v7393_v13 = vpop.f32.mrb[101].mxu0  ;;  %v7405_v26 = vshrl.u32 %v2813_v28, 7 }
 0x1cd   : > { %11409 = vst [vmem:[#allocation100_spill] sm:$0xff] %v7393_v13  ;;  %v7395_v39 = vpop.f32.mrb[100].mxu1  ;;  %2727 = vrot.lane.b32.xlu1 %v7145_v38, %s5755_s15  ;;  %v7415_v13 = vand.u32 127, %v2813_v28  ;;  %v7443_v28 = vld [vmem:[%s11022_s2 + $0x1] ss:$4 sm:$0xff] }
 0x1ce   : > { %v7399_v19 = vpop.permute.xlu0 %2657  ;;  %v7401_v53 = vpop.f32.mrb[101].mxu1  ;;  %11413 = vst [vmem:[#allocation104_spill] sm:$0xff] %v7405_v26  ;;  %11422 = vst [vmem:[#allocation113_spill] sm:$0xff] %v7443_v28 }
 0x1cf   : > { %11410 = vst [vmem:[#allocation101_spill] sm:$0xff] %v7399_v19  ;;  %11411 = vst [vmem:[#allocation102_spill] sm:$0xff] %v7401_v53  ;;  %v7403_v15 = vpop.f32.mrb[102].mxu0  ;;  %v7407_v0 = vpop.permute.xlu1 %2667  ;;  %v7424_v53 = vsub.s32 1, %v7405_v26  ;;  %vm2815_vm1 = vcmp.lt.s32.totalorder %v7415_v13, 7  ;;  %vm3445_vm2 = vcmp.lt.s32.totalorder %v7415_v13, 121 }
 0x1d0   : > { %11412 = vst [vmem:[#allocation103_spill] sm:$0xff] %v7403_v15  ;;  %11414 = vst [vmem:[#allocation105_spill] sm:$0xff] %v7407_v0  ;;  %2733 = vrot.lane.b32.xlu0 %v7135_v17, %s5755_s15  ;;  %v7411_v56 = vpop.f32.mrb[103].mxu0  ;;  %v7433_v17 = vld [vmem:[%s11022_s2] ss:$4 sm:$0xff]  ;;  %vm4075_vm3 = vcmp.lt.s32.totalorder %v7415_v13, 1 }
 0x1d1   : > { %11415 = vst [vmem:[#allocation106_spill] sm:$0xff] %v7411_v56  ;;  %v7413_v36 = vpop.f32.mrb[102].mxu1  ;;  %2719 = vrot.lane.b32.xlu1 %v7143_v2, %s5755_s15  ;;  %11419 = vst [vmem:[#allocation110_spill] sm:$0xff] %v7424_v53  ;;  %vm4376_vm4 = vcmp.lt.s32.totalorder %v7415_v13, 122 }
 0x1d2   : > { %11416 = vst [vmem:[#allocation107_spill] sm:$0xff] %v7413_v36  ;;  %v7419_v38 = vpop.permute.xlu0 %2673  ;;  %v7421_v19 = vpop.f32.mrb[103].mxu1  ;;  %11421 = vst [vmem:[#allocation112_spill] sm:$0xff] %v7433_v17 }
 0x1d3   : > { %11417 = vst [vmem:[#allocation108_spill] sm:$0xff] %v7419_v38  ;;  %11418 = vst [vmem:[#allocation109_spill] sm:$0xff] %v7421_v19  ;;  %v7426_v0 = vpop.permute.xlu1 %2659  ;;  %v7450_v38 = vsub.s32 2, %v7405_v26  ;;  %v7463_v19 = vrot.slane %v7443_v28, %v7424_v53 }
 0x1d4   : > { %11420 = vst [vmem:[#allocation111_spill] sm:$0xff] %v7426_v0  ;;  %2713 = vrot.lane.b32.xlu0 %v7153_v43, %s5755_s15  ;;  %v7447_v43 = vrot.slane %v7433_v17, %v7424_v53 }
 0x1d5   : > { %2735 = vrot.lane.b32.xlu1 %v7151_v54, %s5755_s15  ;;  %11423 = vst [vmem:[#allocation114_spill] sm:$0xff] %v7450_v38  ;;  %v2908_v54 = vsel %vm2815_vm1, %v6991_v8, %v7029_v58 }
 0x1d6   : > { %v7438_v2 = vpop.permute.xlu0 %3277  ;;  %v3046_v8 = vmul.f32 %v7447_v43, %v2908_v54 }
 0x1d7   : > { %v7453_v0 = vpop.permute.xlu1 %2675 }
 0x1d8   : > { %11424 = vst [vmem:[#allocation115_spill] sm:$0xff] %v7453_v0  ;;  %2729 = vrot.lane.b32.xlu0 %v7164_v10, %s5755_s15  ;;  %v3534_v0 = vsel %vm3445_vm2, %v7169_v33, %v7149_v3  ;;  %v7475_v10 = vrot.slane %v7433_v17, %v7450_v38  ;;  %v7489_v33 = vrot.slane %v7443_v28, %v7450_v38 }
 0x1d9   : > { %2715 = vrot.lane.b32.xlu1 %v7173_v30, %s5755_s15  ;;  %v2904_v30 = vsel %vm2815_vm1, %v7029_v58, %v7013_v24  ;;  %v3676_v53 = vmul.f32 %v7463_v19, %v3534_v0  ;;  %v3530_v58 = vsel %vm3445_vm2, %v7149_v3, %v7185_v7  ;;  %v3146_v38 = vadd.f32 %v3046_v8, %v6605_v62 }
 0x1da   : > { %v7467_v56 = vpop.permute.xlu0 %3293  ;;  %v3047_v0 = vmul.f32 %v7475_v10, %v2904_v30  ;;  %v3677_v15 = vmul.f32 %v7489_v33, %v3530_v58  ;;  %v2905_v62 = vsel %vm2815_vm1, %v7035_v44, %v7019_v52 }
 0x1db   : > { %11425 = vst [vmem:[#allocation116_spill] sm:$0xff] %v7467_v56  ;;  %v7478_v36 = vpop.permute.xlu1 %3279 }
 0x1dc   : > { %2721 = vrot.lane.b32.xlu0 %v7159_v49, %s5755_s15  ;;  %v2909_v49 = vsel %vm2815_vm1, %v7065_v55, %v7035_v44 }
 0x1dd   : > { %2731 = vrot.lane.b32.xlu1 %v7181_v9, %s5755_s15  ;;  %v3535_v9 = vsel %vm3445_vm2, %v7191_v12, %v7175_v41  ;;  %v3071_v55 = vmul.f32 %v7447_v43, %v2909_v49 }
 0x1de   : > { %v7493_v54 = vpop.permute.xlu0 %3285  ;;  %v3701_v8 = vmul.f32 %v7463_v19, %v3535_v9  ;;  %v7542_v9 = vpop.f32.mrb[104].mxu0 }
 0x1df   : > { %11426 = vst [vmem:[#allocation117_spill] sm:$0xff] %v7493_v54  ;;  %v7505_v56 = vpop.permute.xlu1 %3295  ;;  %v3776_v54 = vadd.f32 %v3676_v53, %v3146_v38  ;;  %v3072_v53 = vmul.f32 %v7475_v10, %v2905_v62  ;;  %v3171_v38 = vadd.f32 %v3071_v55, %v6621_v23  ;;  %11428 = vst [vmem:[#allocation119_spill] sm:$0xff] %v7542_v9  ;;  %v7548_v55 = vpop.f32.mrb[105].mxu0  ;;  %v11459_v9 = vld [vmem:[#allocation77_spill] sm:$0xff] }
 0x1e0   : > { %2737 = vrot.lane.b32.xlu0 %v7171_v22, %s5755_s15  ;;  %v3147_v22 = vadd.f32 %v3047_v0, %v6609_v21  ;;  %v2910_v23 = vsel %vm2815_vm1, %v7071_v34, %v7097_v14  ;;  %11429 = vst [vmem:[#allocation120_spill] sm:$0xff] %v7548_v55  ;;  %v3536_v62 = vsel %vm3445_vm2, %v7265_v11, %v7233_v18 }
 0x1e1   : > { %2723 = vrot.lane.b32.xlu1 %v7179_v57, %s5755_s15  ;;  %v3531_v57 = vsel %vm3445_vm2, %v7175_v41, %v7219_v1  ;;  %v3801_v44 = vadd.f32 %v3701_v8, %v3171_v38  ;;  %v3172_v41 = vadd.f32 %v3072_v53, %v6628_v27  ;;  %v7564_v27 = vpop.f32.mrb[106].mxu0  ;;  %v2906_v53 = vsel %vm2815_vm1, %v7097_v14, %v7081_v59 }
 0x1e2   : > { %v7517_v3 = vpop.permute.xlu0 %3301  ;;  %v3777_v49 = vadd.f32 %v3677_v15, %v3147_v22  ;;  %v3702_v58 = vmul.f32 %v7489_v33, %v3531_v57  ;;  %v7554_v15 = vpop.f32.mrb[104].mxu1  ;;  %v3096_v22 = vmul.f32 %v7447_v43, %v2910_v23  ;;  %11431 = vst [vmem:[#allocation122_spill] sm:$0xff] %v7564_v27  ;;  %v3726_v11 = vmul.f32 %v7463_v19, %v3536_v62 }
 0x1e3   : > { %11427 = vst [vmem:[#allocation118_spill] sm:$0xff] %v7517_v3  ;;  %v7525_v30 = vpop.permute.xlu1 %3287  ;;  %11430 = vst [vmem:[#allocation121_spill] sm:$0xff] %v7554_v15  ;;  %v7570_v38 = vpop.f32.mrb[107].mxu0  ;;  %v3532_v14 = vsel %vm3445_vm2, %v7233_v18, %v7287_v5 }
 0x1e4   : > { %3883 = vrot.lane.b32.xlu0 %v3776_v54, %s5757_s18  ;;  %v3802_v8 = vadd.f32 %v3702_v58, %v3172_v41  ;;  %11432 = vst [vmem:[#allocation123_spill] sm:$0xff] %v7570_v38  ;;  %v7572_v34 = vpop.f32.mrb[105].mxu1  ;;  %v3097_v41 = vmul.f32 %v7475_v10, %v2906_v53  ;;  %v3196_v62 = vadd.f32 %v3096_v22, %v6645_v40 }
 0x1e5   : > { %2739 = vrot.lane.b32.xlu1 %v7187_v32, %s5755_s15  ;;  %11433 = vst [vmem:[#allocation124_spill] sm:$0xff] %v7572_v34  ;;  %v7578_v23 = vpop.f32.mrb[106].mxu1  ;;  %v7593_v34 = vpop.f32.mrb[108].mxu0  ;;  %v3727_v40 = vmul.f32 %v7489_v33, %v3532_v14 }
 0x1e6   : > { %v7536_v21 = vpop.permute.xlu0 %3281  ;;  %11434 = vst [vmem:[#allocation125_spill] sm:$0xff] %v7578_v23  ;;  %11435 = vst [vmem:[#allocation126_spill] sm:$0xff] %v7593_v34  ;;  %v7599_v23 = vpop.f32.mrb[109].mxu0  ;;  %v3826_v53 = vadd.f32 %v3726_v11, %v3196_v62 }
 0x1e7   : > { %v7539_v0 = vpop.permute.xlu1 %3303  ;;  %11436 = vst [vmem:[#allocation127_spill] sm:$0xff] %v7599_v23  ;;  %v7601_v38 = vpop.f32.mrb[107].mxu1  ;;  %v3197_v23 = vadd.f32 %v3097_v41, %v6657_v47  ;;  %v11442_v47 = vld [vmem:[#allocation9_spill] sm:$0xff] }
 0x1e8   : > { %3891 = vrot.lane.b32.xlu0 %v3777_v49, %s5757_s18  ;;  %11437 = vst [vmem:[#allocation128_spill] sm:$0xff] %v7601_v38  ;;  %v7619_v11 = vpop.f32.mrb[110].mxu0 }
 0x1e9   : > { %3885 = vrot.lane.b32.xlu1 %v3801_v44, %s5757_s18  ;;  %11439 = vst [vmem:[#allocation130_spill] sm:$0xff] %v7619_v11 }
 0x1ea   : > { %v7552_v32 = vpop.permute.xlu0 %3297 }
 0x1eb   : > { %v7561_v57 = vpop.permute.xlu1 %3283 }
 0x1ec   : > { %4184 = vrot.lane.b32.xlu0 %v3776_v54, %s5758_s17  ;;  %v2911_v54 = vsel %vm2815_vm1, %v7087_v16, %v7123_v42  ;;  %v3537_v16 = vsel %vm3445_vm2, %v7293_v35, %v7277_v4  ;;  %v2907_v35 = vsel %vm2815_vm1, %v7123_v42, %v7103_v51 }
 0x1ed   : > { %3893 = vrot.lane.b32.xlu1 %v3802_v8, %s5757_s18  ;;  %v3121_v18 = vmul.f32 %v7447_v43, %v2911_v54  ;;  %v3751_v38 = vmul.f32 %v7463_v19, %v3537_v16  ;;  %v3533_v43 = vsel %vm3445_vm2, %v7277_v4, %v7309_v60  ;;  %v3122_v42 = vmul.f32 %v7475_v10, %v2907_v35  ;;  %v11446_v10 = vld [vmem:[#allocation10_spill] sm:$0xff] }
 0x1ee   : > { %v7576_v58 = vpop.permute.xlu0 %3289  ;;  %v3827_v16 = vadd.f32 %v3727_v40, %v3197_v23 }
 0x1ef   : > { %v7590_v12 = vpop.permute.xlu1 %3299  ;;  %v3221_v14 = vadd.f32 %v3121_v18, %v11442_v47  ;;  %v3222_v23 = vadd.f32 %v3122_v42, %v11446_v10 }
 0x1f0   : > { %4192 = vrot.lane.b32.xlu0 %v3777_v49, %s5758_s17  ;;  %v7608_v49 = vpop.f32.mrb[108].mxu1 }
 0x1f1   : > { %4186 = vrot.lane.b32.xlu1 %v3801_v44, %s5758_s17  ;;  %11438 = vst [vmem:[#allocation129_spill] sm:$0xff] %v7608_v49  ;;  %v7625_v44 = vpop.f32.mrb[111].mxu0  ;;  %v7627_v54 = vpop.f32.mrb[109].mxu1  ;;  %v3851_v62 = vadd.f32 %v3751_v38, %v3221_v14  ;;  %v3752_v49 = vmul.f32 %v7489_v33, %v3533_v43 }
 0x1f2   : > { %v7606_v22 = vpop.permute.xlu0 %3305  ;;  %11440 = vst [vmem:[#allocation131_spill] sm:$0xff] %v7625_v44  ;;  %11441 = vst [vmem:[#allocation132_spill] sm:$0xff] %v7627_v54  ;;  %v7634_v41 = vpop.f32.mrb[110].mxu1 }
 0x1f3   : > { %v7616_v34 = vpop.permute.xlu1 %3291  ;;  %11444 = vst [vmem:[#allocation133_spill] sm:$0xff] %v7634_v41  ;;  %v7640_v4 = vpop.f32.mrb[112].mxu0  ;;  %v3852_v38 = vadd.f32 %v3752_v49, %v3222_v23 }
 0x1f4   : > { %3887 = vrot.lane.b32.xlu0 %v3826_v53, %s5757_s18  ;;  %v7642_v54 = vpop.f32.mrb[113].mxu0  ;;  %v7644_v35 = vpop.f32.mrb[111].mxu1 }
 0x1f5   : > { %4194 = vrot.lane.b32.xlu1 %v3802_v8, %s5758_s17  ;;  %11445 = vst [vmem:[#allocation134_spill] sm:$0xff] %v7644_v35  ;;  %v7650_v18 = vpop.f32.mrb[112].mxu1  ;;  %v7655_v40 = vpop.f32.mrb[114].mxu0 }
 0x1f6   : > { %v7632_v19 = vpop.permute.xlu0 %2677  ;;  %v7657_v43 = vpop.f32.mrb[115].mxu0 }
 0x1f7   : > { %11443 = vst [vmem:[#allocation9_spill] sm:$0xff] %v7632_v19  ;;  %v7637_v11 = vpop.permute.xlu1 %3307  ;;  %v7659_v47 = vpop.f32.mrb[113].mxu1 }
 0x1f8   : > { %3895 = vrot.lane.b32.xlu0 %v3827_v16, %s5757_s18  ;;  %v7667_v10 = vpop.f32.mrb[114].mxu1 }
 0x1f9   : > { %3889 = vrot.lane.b32.xlu1 %v3851_v62, %s5757_s18  ;;  %v7669_v49 = vpop.f32.mrb[115].mxu1 }
 0x1fa   : > { %v7648_v8 = vpop.permute.xlu0 %2693 }
 0x1fb   : > { %11447 = vst [vmem:[#allocation10_spill] sm:$0xff] %v7648_v8  ;;  %v7652_v33 = vpop.permute.xlu1 %2679 }
 0x1fc   : > { %11448 = vst [vmem:[#allocation135_spill] sm:$0xff] %v7652_v33  ;;  %4188 = vrot.lane.b32.xlu0 %v3826_v53, %s5758_s17  ;;  %v11480_v33 = vld [vmem:[#allocation88_spill] sm:$0xff] }
 0x1fd   : > { %3897 = vrot.lane.b32.xlu1 %v3852_v38, %s5757_s18 }
 0x1fe   : > { %v7662_v42 = vpop.permute.xlu0 %2685 }
 0x1ff   : > { %11449 = vst [vmem:[#allocation136_spill] sm:$0xff] %v7662_v42  ;;  %v7664_v14 = vpop.permute.xlu1 %2695 }
 0x200   : > { %11450 = vst [vmem:[#allocation137_spill] sm:$0xff] %v7664_v14  ;;  %4196 = vrot.lane.b32.xlu0 %v3827_v16, %s5758_s17  ;;  %v7685_v16 = vpop.f32.mrb[116].mxu0 }
 0x201   : > { %4190 = vrot.lane.b32.xlu1 %v3851_v62, %s5758_s17  ;;  %v7687_v44 = vpop.f32.mrb[117].mxu0 }
 0x202   : > { %v7672_v53 = vpop.permute.xlu0 %2701 }
 0x203   : > { %11451 = vst [vmem:[#allocation138_spill] sm:$0xff] %v7672_v53  ;;  %v7674_v23 = vpop.permute.xlu1 %2687  ;;  %v11460_v53 = vld [vmem:[#allocation78_spill] sm:$0xff] }
 0x204   : > { %11452 = vst [vmem:[#allocation139_spill] sm:$0xff] %v7674_v23  ;;  %3341 = vrot.lane.b32.xlu0 %v7291_v6, %s5756_s19  ;;  %v7697_v6 = vpop.f32.mrb[116].mxu1  ;;  %v11474_v23 = vld [vmem:[#allocation84_spill] sm:$0xff] }
 0x205   : > { %4198 = vrot.lane.b32.xlu1 %v3852_v38, %s5758_s17  ;;  %v7699_v38 = vpop.f32.mrb[118].mxu0  ;;  %v7701_v27 = vpop.f32.mrb[117].mxu1 }
 0x206   : > { %v7679_v35 = vpop.permute.xlu0 %2681  ;;  %v7707_v55 = vpop.f32.mrb[119].mxu0 }
 0x207   : > { %11453 = vst [vmem:[#allocation140_spill] sm:$0xff] %v7679_v35  ;;  %v7681_v41 = vpop.permute.xlu1 %2703 }
 0x208   : > { %11454 = vst [vmem:[#allocation141_spill] sm:$0xff] %v7681_v41  ;;  %3357 = vrot.lane.b32.xlu0 %v7299_v37, %s5756_s19  ;;  %v7713_v41 = vpop.f32.mrb[118].mxu1 }
 0x209   : > { %3343 = vrot.lane.b32.xlu1 %v7307_v63, %s5756_s19 }
 0x20a   : > { %v7691_v62 = vpop.permute.xlu0 %2697 }
 0x20b   : > { %11455 = vst [vmem:[#allocation142_spill] sm:$0xff] %v7691_v62  ;;  %v7693_v15 = vpop.permute.xlu1 %2683 }
 0x20c   : > { %11456 = vst [vmem:[#allocation143_spill] sm:$0xff] %v7693_v15  ;;  %3349 = vrot.lane.b32.xlu0 %v7297_v45, %s5756_s19  ;;  %v7715_v45 = vpop.f32.mrb[119].mxu1 }
 0x20d   : > { %3359 = vrot.lane.b32.xlu1 %v7315_v31, %s5756_s19  ;;  %v11463_v31 = vld [vmem:[#allocation80_spill] sm:$0xff] }
 0x20e   : > { %v7705_v37 = vpop.permute.xlu0 %2689 }
 0x20f   : > { %11457 = vst [vmem:[#allocation144_spill] sm:$0xff] %v7705_v37  ;;  %v7709_v63 = vpop.permute.xlu1 %2699 }
 0x210   : > { %11458 = vst [vmem:[#allocation145_spill] sm:$0xff] %v7709_v63  ;;  %3365 = vrot.lane.b32.xlu0 %v11459_v9, %s5756_s19 }
 0x211   : > { %3351 = vrot.lane.b32.xlu1 %v11460_v53, %s5756_s19 }
 0x212   : > { %v7719_v62 = vpop.permute.xlu0 %2705 }
 0x213   : > { %11461 = vst [vmem:[#allocation77_spill] sm:$0xff] %v7719_v62  ;;  %v7721_v15 = vpop.permute.xlu1 %2691 }
 0x214   : > { %11462 = vst [vmem:[#allocation78_spill] sm:$0xff] %v7721_v15  ;;  %3345 = vrot.lane.b32.xlu0 %v7323_v48, %s5756_s19 }
 0x215   : > { %3367 = vrot.lane.b32.xlu1 %v11463_v31, %s5756_s19  ;;  %v11469_v31 = vld [vmem:[#allocation82_spill] sm:$0xff] }
 0x216   : > { %v7727_v63 = vpop.permute.xlu0 %3309 }
 0x217   : > { %11464 = vst [vmem:[#allocation80_spill] sm:$0xff] %v7727_v63  ;;  %v7729_v9 = vpop.permute.xlu1 %2707 }
 0x218   : > { %11465 = vst [vmem:[#allocation146_spill] sm:$0xff] %v7729_v9  ;;  %3361 = vrot.lane.b32.xlu0 %v7331_v61, %s5756_s19  ;;  %v7737_v62 = vpop.f32.mrb[120].mxu0 }
 0x219   : > { %3347 = vrot.lane.b32.xlu1 %v7339_v46, %s5756_s19  ;;  %v7739_v15 = vpop.f32.mrb[121].mxu0 }
 0x21a   : > { %v7735_v53 = vpop.permute.xlu0 %3325  ;;  %11467 = vst [vmem:[#allocation148_spill] sm:$0xff] %v7739_v15 }
 0x21b   : > { %11466 = vst [vmem:[#allocation147_spill] sm:$0xff] %v7735_v53  ;;  %v7741_v48 = vpop.permute.xlu1 %3311 }
 0x21c   : > { %11468 = vst [vmem:[#allocation149_spill] sm:$0xff] %v7741_v48  ;;  %3353 = vrot.lane.b32.xlu0 %v11469_v31, %s5756_s19  ;;  %v7745_v37 = vpop.f32.mrb[120].mxu1  ;;  %v7751_v9 = vpop.f32.mrb[122].mxu0  ;;  %v11476_v31 = vld [vmem:[#allocation86_spill] sm:$0xff] }
 0x21d   : > { %3363 = vrot.lane.b32.xlu1 %v7347_v20, %s5756_s19  ;;  %v7753_v46 = vpop.f32.mrb[123].mxu0  ;;  %v7755_v35 = vpop.f32.mrb[121].mxu1 }
 0x21e   : > { %v7749_v61 = vpop.permute.xlu0 %3317  ;;  %11471 = vst [vmem:[#allocation150_spill] sm:$0xff] %v7753_v46  ;;  %11472 = vst [vmem:[#allocation151_spill] sm:$0xff] %v7755_v35  ;;  %v11526_v46 = vld [vmem:[#allocation81_spill] sm:$0xff]  ;;  %v11528_v35 = vld [vmem:[#allocation12_spill] sm:$0xff] }
 0x21f   : > { %11470 = vst [vmem:[#allocation82_spill] sm:$0xff] %v7749_v61  ;;  %v7757_v14 = vpop.permute.xlu1 %3327  ;;  %v11485_v61 = vld [vmem:[#allocation93_spill] sm:$0xff] }
 0x220   : > { %11473 = vst [vmem:[#allocation152_spill] sm:$0xff] %v7757_v14  ;;  %3369 = vrot.lane.b32.xlu0 %v11474_v23, %s5756_s19  ;;  %v7761_v8 = vpop.f32.mrb[122].mxu1 }
 0x221   : > { %11475 = vst [vmem:[#allocation84_spill] sm:$0xff] %v7761_v8  ;;  %3355 = vrot.lane.b32.xlu1 %v11476_v31, %s5756_s19  ;;  %v7767_v20 = vpop.f32.mrb[123].mxu1  ;;  %v7781_v31 = vpop.f32.mrb[124].mxu0 }
 0x222   : > { %v7765_v53 = vpop.permute.xlu0 %3333  ;;  %11478 = vst [vmem:[#allocation153_spill] sm:$0xff] %v7767_v20  ;;  %11483 = vst [vmem:[#allocation156_spill] sm:$0xff] %v7781_v31 }
 0x223   : > { %11477 = vst [vmem:[#allocation86_spill] sm:$0xff] %v7765_v53  ;;  %v7769_v42 = vpop.permute.xlu1 %3319  ;;  %v7783_v53 = vpop.f32.mrb[125].mxu0 }
 0x224   : > { %11479 = vst [vmem:[#allocation154_spill] sm:$0xff] %v7769_v42  ;;  %2741 = vrot.lane.b32.xlu0 %v7355_v29, %s5755_s15  ;;  %11484 = vst [vmem:[#allocation157_spill] sm:$0xff] %v7783_v53  ;;  %v7790_v29 = vsub.s32 3, %v7405_v26 }
 0x225   : > { %3371 = vrot.lane.b32.xlu1 %v11480_v33, %s5756_s19 }
 0x226   : > { %v7775_v14 = vpop.permute.xlu0 %3313  ;;  %11487 = vst [vmem:[#allocation158_spill] sm:$0xff] %v7790_v29  ;;  %v7810_v53 = vrot.slane %v7433_v17, %v7790_v29 }
 0x227   : > { %11481 = vst [vmem:[#allocation88_spill] sm:$0xff] %v7775_v14  ;;  %v7777_v23 = vpop.permute.xlu1 %3335  ;;  %v11489_v14 = vld [vmem:[#allocation90_spill] sm:$0xff] }
 0x228   : > { %11482 = vst [vmem:[#allocation155_spill] sm:$0xff] %v7777_v23  ;;  %2757 = vrot.lane.b32.xlu0 %v7363_v50, %s5755_s15  ;;  %v7796_v23 = vpop.f32.mrb[124].mxu1  ;;  %v7798_v50 = vpop.f32.mrb[126].mxu0 }
 0x229   : > { %2743 = vrot.lane.b32.xlu1 %v11485_v61, %s5755_s15  ;;  %11490 = vst [vmem:[#allocation90_spill] sm:$0xff] %v7796_v23  ;;  %11491 = vst [vmem:[#allocation160_spill] sm:$0xff] %v7798_v50  ;;  %v7800_v19 = vpop.f32.mrb[125].mxu1  ;;  %v11498_v50 = vld [vmem:[#allocation44_spill] sm:$0xff] }
 0x22a   : > { %v7787_v42 = vpop.permute.xlu0 %3329  ;;  %11492 = vst [vmem:[#allocation161_spill] sm:$0xff] %v7800_v19  ;;  %v7816_v48 = vpop.f32.mrb[126].mxu1 }
 0x22b   : > { %11486 = vst [vmem:[#allocation93_spill] sm:$0xff] %v7787_v42  ;;  %v7792_v33 = vpop.permute.xlu1 %3315  ;;  %v7806_v42 = vpop.f32.mrb[127].mxu0 }
 0x22c   : > { %11488 = vst [vmem:[#allocation159_spill] sm:$0xff] %v7792_v33  ;;  %2749 = vrot.lane.b32.xlu0 %v11489_v14, %s5755_s15  ;;  %11494 = vst [vmem:[#allocation163_spill] sm:$0xff] %v7806_v42  ;;  %v11496_v14 = vld [vmem:[#allocation92_spill] sm:$0xff]  ;;  %v7822_v19 = vpop.f32.mrb[127].mxu1  ;;  %v11500_v42 = vld [vmem:[#allocation95_spill] sm:$0xff]  ;;  %v7943_v15 = vpop.f32.mrb[128].mxu0 }
 0x22d   : > { %2759 = vrot.lane.b32.xlu1 %v7379_v25, %s5755_s15  ;;  %11497 = vst [vmem:[#allocation92_spill] sm:$0xff] %v7816_v48  ;;  %v2900_v25 = vsel %vm2815_vm1, %v7013_v24, %v11498_v50  ;;  %11499 = vst [vmem:[#allocation44_spill] sm:$0xff] %v7822_v19  ;;  %v11503_v24 = vld [vmem:[#allocation98_spill] sm:$0xff]  ;;  %v11504_v19 = vld [vmem:[#allocation97_spill] sm:$0xff] }
 0x22e   : > { %v7804_v61 = vpop.permute.xlu0 %3321  ;;  %v3048_v48 = vmul.f32 %v7810_v53, %v2900_v25  ;;  %11531 = vst [vmem:[#allocation81_spill] sm:$0xff] %v7943_v15  ;;  %v11534_v15 = vld [vmem:[#allocation106_spill] sm:$0xff] }
 0x22f   : > { %11493 = vst [vmem:[#allocation162_spill] sm:$0xff] %v7804_v61  ;;  %v7812_v33 = vpop.permute.xlu1 %3331  ;;  %v7826_v61 = vrot.slane %v7443_v28, %v7790_v29 }
 0x230   : > { %11495 = vst [vmem:[#allocation164_spill] sm:$0xff] %v7812_v33  ;;  %2765 = vrot.lane.b32.xlu0 %v11496_v14, %s5755_s15  ;;  %v3526_v14 = vsel %vm3445_vm2, %v7185_v7, %v7438_v2  ;;  %v11507_v7 = vld [vmem:[#allocation3_spill] sm:$0xff] }
 0x231   : > { %2751 = vrot.lane.b32.xlu1 %v11500_v42, %s5755_s15  ;;  %v3678_v29 = vmul.f32 %v7826_v61, %v3526_v14  ;;  %v3148_v31 = vadd.f32 %v3048_v48, %v11507_v7  ;;  %v3527_v14 = vsel %vm3445_vm2, %v7219_v1, %v7478_v36  ;;  %v11514_v1 = vld [vmem:[#allocation107_spill] sm:$0xff] }
 0x232   : > { %v7830_v33 = vpop.permute.xlu0 %3337  ;;  %v3703_v48 = vmul.f32 %v7826_v61, %v3527_v14 }
 0x233   : > { %11501 = vst [vmem:[#allocation95_spill] sm:$0xff] %v7830_v33  ;;  %v7837_v23 = vpop.permute.xlu1 %3323  ;;  %v11506_v33 = vld [vmem:[#allocation46_spill] sm:$0xff] }
 0x234   : > { %11502 = vst [vmem:[#allocation165_spill] sm:$0xff] %v7837_v23  ;;  %2745 = vrot.lane.b32.xlu0 %v11503_v24, %s5755_s15  ;;  %v2901_v20 = vsel %vm2815_vm1, %v7019_v52, %v11506_v33  ;;  %v3778_v24 = vadd.f32 %v3678_v29, %v3148_v31  ;;  %v7865_v52 = vsub.s32 4, %v7405_v26  ;;  %v7881_v29 = vsub.s32 5, %v7405_v26 }
 0x235   : > { %2767 = vrot.lane.b32.xlu1 %v11504_v19, %s5755_s15  ;;  %v3073_v19 = vmul.f32 %v7810_v53, %v2901_v20 }
 0x236   : > { %v7844_v42 = vpop.permute.xlu0 %2709  ;;  %11511 = vst [vmem:[#allocation3_spill] sm:$0xff] %v7865_v52  ;;  %v7878_v31 = vrot.slane %v7433_v17, %v7865_v52  ;;  %11516 = vst [vmem:[#allocation107_spill] sm:$0xff] %v7881_v29 }
 0x237   : > { %11505 = vst [vmem:[#allocation98_spill] sm:$0xff] %v7844_v42  ;;  %v7851_v25 = vpop.permute.xlu1 %3339  ;;  %v11509_v42 = vld [vmem:[#allocation103_spill] sm:$0xff] }
 0x238   : > { %11508 = vst [vmem:[#allocation97_spill] sm:$0xff] %v7851_v25  ;;  %2761 = vrot.lane.b32.xlu0 %v7395_v39, %s5755_s15  ;;  %v11513_v39 = vld [vmem:[#allocation5_spill] sm:$0xff] }
 0x239   : > { %2747 = vrot.lane.b32.xlu1 %v11509_v42, %s5755_s15  ;;  %v3173_v25 = vadd.f32 %v3073_v19, %v11513_v39  ;;  %v7892_v39 = vrot.slane %v7443_v28, %v7865_v52 }
 0x23a   : > { %v7862_v23 = vpop.permute.xlu0 %2725 }
 0x23b   : > { %11510 = vst [vmem:[#allocation46_spill] sm:$0xff] %v7862_v23  ;;  %v7868_v7 = vpop.permute.xlu1 %2711  ;;  %v3803_v42 = vadd.f32 %v3703_v48, %v3173_v25  ;;  %v11518_v23 = vld [vmem:[#allocation76_spill] sm:$0xff]  ;;  %v7904_v48 = vrot.slane %v7433_v17, %v7881_v29 }
 0x23c   : > { %11512 = vst [vmem:[#allocation103_spill] sm:$0xff] %v7868_v7  ;;  %3899 = vrot.lane.b32.xlu0 %v3778_v24, %s5757_s18  ;;  %v2896_v19 = vsel %vm2815_vm1, %v11498_v50, %v11518_v23  ;;  %v11520_v7 = vld [vmem:[#allocation117_spill] sm:$0xff]  ;;  %v7907_v50 = vsub.s32 6, %v7405_v26 }
 0x23d   : > { %2763 = vrot.lane.b32.xlu1 %v11514_v1, %s5755_s15  ;;  %v3522_v25 = vsel %vm3445_vm2, %v7438_v2, %v11520_v7  ;;  %v7919_v2 = vrot.slane %v7443_v28, %v7881_v29  ;;  %v11537_v26 = vld [vmem:[#allocation89_spill] sm:$0xff] }
 0x23e   : > { %v7874_v20 = vpop.permute.xlu0 %2717  ;;  %11521 = vst [vmem:[#allocation117_spill] sm:$0xff] %v7907_v50  ;;  %v7936_v29 = vrot.slane %v7433_v17, %v7907_v50 }
 0x23f   : > { %11515 = vst [vmem:[#allocation5_spill] sm:$0xff] %v7874_v20  ;;  %v7883_v14 = vpop.permute.xlu1 %2727  ;;  %v11523_v20 = vld [vmem:[#allocation100_spill] sm:$0xff] }
 0x240   : > { %11517 = vst [vmem:[#allocation166_spill] sm:$0xff] %v7883_v14  ;;  %4200 = vrot.lane.b32.xlu0 %v3778_v24, %s5758_s17  ;;  %v3049_v24 = vmul.f32 %v7878_v31, %v2896_v19  ;;  %v3679_v19 = vmul.f32 %v7892_v39, %v3522_v25 }
 0x241   : > { %3901 = vrot.lane.b32.xlu1 %v3803_v42, %s5757_s18 }
 0x242   : > { %v7895_v1 = vpop.permute.xlu0 %2733  ;;  %v3149_v8 = vadd.f32 %v3049_v24, %v11528_v35  ;;  %v3523_v35 = vsel %vm3445_vm2, %v7478_v36, %v7525_v30  ;;  %v7953_v24 = vpop.f32.mrb[129].mxu0  ;;  %v2893_v36 = vsel %vm2815_vm1, %v11526_v46, %v11537_v26 }
 0x243   : > { %11519 = vst [vmem:[#allocation76_spill] sm:$0xff] %v7895_v1  ;;  %v7909_v14 = vpop.permute.xlu1 %2719  ;;  %v11524_v1 = vld [vmem:[#allocation83_spill] sm:$0xff] }
 0x244   : > { %11522 = vst [vmem:[#allocation167_spill] sm:$0xff] %v7909_v14  ;;  %2753 = vrot.lane.b32.xlu0 %v11523_v20, %s5755_s15  ;;  %v2892_v52 = vsel %vm2815_vm1, %v11518_v23, %v11524_v1  ;;  %v2897_v20 = vsel %vm2815_vm1, %v11506_v33, %v11526_v46  ;;  %v11527_v14 = vld [vmem:[#allocation116_spill] sm:$0xff]  ;;  %v11532_v33 = vld [vmem:[#allocation79_spill] sm:$0xff]  ;;  %v3779_v17 = vadd.f32 %v3679_v19, %v3149_v8 }
 0x245   : > { %4202 = vrot.lane.b32.xlu1 %v3803_v42, %s5758_s17  ;;  %v3518_v23 = vsel %vm3445_vm2, %v11520_v7, %v11527_v14  ;;  %v3050_v42 = vmul.f32 %v7904_v48, %v2892_v52  ;;  %v2888_v7 = vsel %vm2815_vm1, %v11524_v1, %v11532_v33  ;;  %11533 = vst [vmem:[#allocation116_spill] sm:$0xff] %v7953_v24  ;;  %v7965_v33 = vpop.f32.mrb[128].mxu1 }
 0x246   : > { %v7923_v63 = vpop.permute.xlu0 %2713  ;;  %v3074_v52 = vmul.f32 %v7878_v31, %v2897_v20  ;;  %v3514_v8 = vsel %vm3445_vm2, %v11527_v14, %v7517_v3  ;;  %v3051_v19 = vmul.f32 %v7936_v29, %v2888_v7  ;;  %v11538_v20 = vld [vmem:[#allocation13_spill] sm:$0xff]  ;;  %v3519_v46 = vsel %vm3445_vm2, %v7525_v30, %v7505_v56  ;;  %v7989_v14 = vpop.f32.mrb[129].mxu1  ;;  %v11543_v7 = vld [vmem:[#allocation16_spill] sm:$0xff] }
 0x247   : > { %11525 = vst [vmem:[#allocation100_spill] sm:$0xff] %v7923_v63  ;;  %v7939_v25 = vpop.permute.xlu1 %2735  ;;  %v11530_v63 = vld [vmem:[#allocation102_spill] sm:$0xff]  ;;  %11542 = vst [vmem:[#allocation168_spill] sm:$0xff] %v7989_v14  ;;  %v11546_v3 = vld [vmem:[#allocation85_spill] sm:$0xff]  ;;  %v3705_v14 = vmul.f32 %v7919_v2, %v3519_v46 }
 0x248   : > { %11529 = vst [vmem:[#allocation83_spill] sm:$0xff] %v7939_v25  ;;  %2769 = vrot.lane.b32.xlu0 %v11530_v63, %s5755_s15  ;;  %v3680_v25 = vmul.f32 %v7919_v2, %v3518_v23  ;;  %v7959_v63 = vrot.slane %v7443_v28, %v7907_v50  ;;  %11536 = vst [vmem:[#allocation102_spill] sm:$0xff] %v7965_v33  ;;  %v3150_v23 = vadd.f32 %v3050_v42, %v11538_v20  ;;  %v7981_v33 = vpop.f32.mrb[130].mxu0 }
 0x249   : > { %2755 = vrot.lane.b32.xlu1 %v11534_v15, %s5755_s15  ;;  %v3704_v15 = vmul.f32 %v7892_v39, %v3523_v35  ;;  %11540 = vst [vmem:[#allocation89_spill] sm:$0xff] %v7981_v33  ;;  %v3174_v50 = vadd.f32 %v3074_v52, %v11543_v7  ;;  %v3075_v42 = vmul.f32 %v7904_v48, %v2893_v36 }
 0x24a   : > { %v7963_v1 = vpop.permute.xlu0 %2729  ;;  %v3780_v35 = vadd.f32 %v3680_v25, %v3150_v23  ;;  %v3681_v20 = vmul.f32 %v7959_v63, %v3514_v8  ;;  %v2889_v30 = vsel %vm2815_vm1, %v11537_v26, %v11546_v3  ;;  %v8007_v25 = vpop.f32.mrb[130].mxu1 }
 0x24b   : > { %11535 = vst [vmem:[#allocation12_spill] sm:$0xff] %v7963_v1  ;;  %v7978_v24 = vpop.permute.xlu1 %2715  ;;  %v7987_v1 = vpop.f32.mrb[131].mxu0  ;;  %v3804_v52 = vadd.f32 %v3704_v15, %v3174_v50  ;;  %11549 = vst [vmem:[#allocation85_spill] sm:$0xff] %v8007_v25  ;;  %v3076_v26 = vmul.f32 %v7936_v29, %v2889_v30  ;;  %v11558_v30 = vld [vmem:[#allocation50_spill] sm:$0xff] }
 0x24c   : > { %11539 = vst [vmem:[#allocation106_spill] sm:$0xff] %v7978_v24  ;;  %3907 = vrot.lane.b32.xlu0 %v3779_v17, %s5757_s18  ;;  %11541 = vst [vmem:[#allocation13_spill] sm:$0xff] %v7987_v1  ;;  %v11544_v24 = vld [vmem:[#allocation109_spill] sm:$0xff]  ;;  %v11547_v1 = vld [vmem:[#allocation14_spill] sm:$0xff]  ;;  %v8013_v36 = vpop.f32.mrb[132].mxu0  ;;  %v8015_v8 = vpop.f32.mrb[131].mxu1 }
 0x24d   : > { %2771 = vrot.lane.b32.xlu1 %v11544_v24, %s5755_s15  ;;  %v3151_v28 = vadd.f32 %v3051_v19, %v11547_v1  ;;  %v3515_v24 = vsel %vm3445_vm2, %v7505_v56, %v7539_v0  ;;  %11550 = vst [vmem:[#allocation14_spill] sm:$0xff] %v8013_v36  ;;  %11551 = vst [vmem:[#allocation169_spill] sm:$0xff] %v8015_v8  ;;  %v11552_v1 = vld [vmem:[#allocation17_spill] sm:$0xff]  ;;  %v8024_v15 = vpop.f32.mrb[133].mxu0  ;;  %v8031_v8 = vpop.f32.mrb[132].mxu1 }
 0x24e   : > { %v7996_v33 = vpop.permute.xlu0 %2721  ;;  %v3175_v19 = vadd.f32 %v3075_v42, %v11552_v1  ;;  %11555 = vst [vmem:[#allocation171_spill] sm:$0xff] %v8024_v15  ;;  %v3706_v25 = vmul.f32 %v7959_v63, %v3515_v24  ;;  %11557 = vst [vmem:[#allocation173_spill] sm:$0xff] %v8031_v8  ;;  %v8037_v42 = vpop.f32.mrb[134].mxu0  ;;  %v11561_v1 = vld [vmem:[#allocation18_spill] sm:$0xff]  ;;  %v3528_v8 = vsel %vm3445_vm2, %v7287_v5, %v7536_v21 }
 0x24f   : > { %11545 = vst [vmem:[#allocation16_spill] sm:$0xff] %v7996_v33  ;;  %v8004_v7 = vpop.permute.xlu1 %2731  ;;  %v8019_v50 = vadd.f32 %v3681_v20, %v3151_v28  ;;  %v2902_v28 = vsel %vm2815_vm1, %v7081_v59, %v11558_v30  ;;  %11559 = vst [vmem:[#allocation50_spill] sm:$0xff] %v8037_v42  ;;  %v8039_v20 = vpop.f32.mrb[133].mxu1  ;;  %v11580_v33 = vld [vmem:[#allocation20_spill] sm:$0xff] }
 0x250   : > { %11548 = vst [vmem:[#allocation109_spill] sm:$0xff] %v8004_v7  ;;  %3915 = vrot.lane.b32.xlu0 %v3780_v35, %s5757_s18  ;;  %v3805_v46 = vadd.f32 %v3705_v14, %v3175_v19  ;;  %11560 = vst [vmem:[#allocation174_spill] sm:$0xff] %v8039_v20  ;;  %v3176_v14 = vadd.f32 %v3076_v26, %v11561_v1  ;;  %v8045_v19 = vpop.f32.mrb[135].mxu0  ;;  %v3098_v15 = vmul.f32 %v7810_v53, %v2902_v28  ;;  %v8057_v26 = vpop.f32.mrb[134].mxu1 }
 0x251   : > { %11553 = vst [vmem:[#allocation17_spill] sm:$0xff] %v8019_v50  ;;  %3909 = vrot.lane.b32.xlu1 %v3804_v52, %s5757_s18  ;;  %11563 = vst [vmem:[#allocation175_spill] sm:$0xff] %v8045_v19  ;;  %v8059_v1 = vpop.f32.mrb[136].mxu0  ;;  %v8061_v20 = vpop.f32.mrb[135].mxu1  ;;  %v3728_v19 = vmul.f32 %v7826_v61, %v3528_v8  ;;  %v11571_v8 = vld [vmem:[#allocation91_spill] sm:$0xff] }
 0x252   : > { %v8022_v23 = vpop.permute.xlu0 %2737  ;;  %v8052_v59 = vadd.f32 %v3706_v25, %v3176_v14  ;;  %11566 = vst [vmem:[#allocation178_spill] sm:$0xff] %v8057_v26  ;;  %11567 = vst [vmem:[#allocation179_spill] sm:$0xff] %v8061_v20  ;;  %v8068_v28 = vpop.f32.mrb[137].mxu0  ;;  %v11568_v25 = vld [vmem:[#allocation52_spill] sm:$0xff]  ;;  %v11569_v14 = vld [vmem:[#allocation7_spill] sm:$0xff] }
 0x253   : > { %11554 = vst [vmem:[#allocation170_spill] sm:$0xff] %v8022_v23  ;;  %v8027_v56 = vpop.permute.xlu1 %2723  ;;  %v3198_v26 = vadd.f32 %v3098_v15, %v11569_v14  ;;  %v8078_v20 = vpop.f32.mrb[136].mxu1  ;;  %v3529_v23 = vsel %vm3445_vm2, %v7309_v60, %v7561_v57 }
 0x254   : > { %11556 = vst [vmem:[#allocation172_spill] sm:$0xff] %v8027_v56  ;;  %3923 = vrot.lane.b32.xlu0 %v8019_v50, %s5757_s18  ;;  %11564 = vst [vmem:[#allocation176_spill] sm:$0xff] %v8052_v59  ;;  %v3753_v7 = vmul.f32 %v7826_v61, %v3529_v23  ;;  %v11579_v23 = vld [vmem:[#allocation99_spill] sm:$0xff] }
 0x255   : > { %3917 = vrot.lane.b32.xlu1 %v3805_v46, %s5757_s18  ;;  %v3828_v14 = vadd.f32 %v3728_v19, %v3198_v26 }
 0x256   : > { %v8043_v24 = vpop.permute.xlu0 %3883 }
 0x257   : > { %11562 = vst [vmem:[#allocation18_spill] sm:$0xff] %v8043_v24  ;;  %v8054_v42 = vpop.permute.xlu1 %2739 }
 0x258   : > { %11565 = vst [vmem:[#allocation177_spill] sm:$0xff] %v8054_v42  ;;  %4208 = vrot.lane.b32.xlu0 %v3779_v17, %s5758_s17  ;;  %v2903_v17 = vsel %vm2815_vm1, %v7103_v51, %v11568_v25  ;;  %v2898_v42 = vsel %vm2815_vm1, %v11558_v30, %v11571_v8  ;;  %v8090_v51 = vpop.f32.mrb[137].mxu1  ;;  %v3524_v30 = vsel %vm3445_vm2, %v7536_v21, %v7576_v58 }
 0x259   : > { %3925 = vrot.lane.b32.xlu1 %v8052_v59, %s5757_s18  ;;  %v8088_v59 = vpop.f32.mrb[138].mxu0  ;;  %11572 = vst [vmem:[#allocation7_spill] sm:$0xff] %v8090_v51  ;;  %v3123_v15 = vmul.f32 %v7810_v53, %v2903_v17  ;;  %v3099_v60 = vmul.f32 %v7878_v31, %v2898_v42  ;;  %v8107_v53 = vpop.f32.mrb[138].mxu1  ;;  %v11577_v17 = vld [vmem:[#allocation11_spill] sm:$0xff]  ;;  %v3729_v21 = vmul.f32 %v7892_v39, %v3524_v30 }
 0x25a   : > { %v8066_v5 = vpop.permute.xlu0 %3891  ;;  %v8096_v50 = vpop.f32.mrb[139].mxu0  ;;  %v2899_v42 = vsel %vm2815_vm1, %v11568_v25, %v11579_v23  ;;  %v3525_v25 = vsel %vm3445_vm2, %v7561_v57, %v7616_v34 }
 0x25b   : > { %v8075_v36 = vpop.permute.xlu1 %3885  ;;  %11574 = vst [vmem:[#allocation180_spill] sm:$0xff] %v8096_v50  ;;  %v8113_v26 = vpop.f32.mrb[139].mxu1 }
 0x25c   : > { %11570 = vst [vmem:[#allocation52_spill] sm:$0xff] %v8075_v36  ;;  %4216 = vrot.lane.b32.xlu0 %v3780_v35, %s5758_s17 }
 0x25d   : > { %4210 = vrot.lane.b32.xlu1 %v3804_v52, %s5758_s17  ;;  %v11575_v52 = vld [vmem:[#allocation101_spill] sm:$0xff] }
 0x25e   : > { %v8094_v35 = vpop.permute.xlu0 %4184  ;;  %v2894_v19 = vsel %vm2815_vm1, %v11571_v8, %v11575_v52  ;;  %11576 = vst [vmem:[#allocation101_spill] sm:$0xff] %v8113_v26  ;;  %v3520_v8 = vsel %vm3445_vm2, %v7576_v58, %v7552_v32  ;;  %v3199_v26 = vadd.f32 %v3099_v60, %v11580_v33  ;;  %v3124_v58 = vmul.f32 %v7878_v31, %v2899_v42  ;;  %v11585_v31 = vld [vmem:[#allocation21_spill] sm:$0xff]  ;;  %v8160_v42 = vpop.f32.mrb[140].mxu0 }
 0x25f   : > { %11573 = vst [vmem:[#allocation91_spill] sm:$0xff] %v8094_v35  ;;  %v8104_v56 = vpop.permute.xlu1 %3893  ;;  %v3223_v35 = vadd.f32 %v3123_v15, %v11577_v17  ;;  %v3100_v15 = vmul.f32 %v7904_v48, %v2894_v19  ;;  %v3730_v33 = vmul.f32 %v7919_v2, %v3520_v8  ;;  %v8166_v8 = vpop.f32.mrb[141].mxu0 }
 0x260   : > { %3903 = vrot.lane.b32.xlu0 %v3828_v14, %s5757_s18  ;;  %v3829_v60 = vadd.f32 %v3729_v21, %v3199_v26  ;;  %v3754_v26 = vmul.f32 %v7892_v39, %v3525_v25  ;;  %11588 = vst [vmem:[#allocation21_spill] sm:$0xff] %v8166_v8 }
 0x261   : > { %4218 = vrot.lane.b32.xlu1 %v3805_v46, %s5758_s17  ;;  %v3853_v17 = vadd.f32 %v3753_v7, %v3223_v35  ;;  %v11582_v46 = vld [vmem:[#allocation96_spill] sm:$0xff]  ;;  %v3200_v19 = vadd.f32 %v3100_v15, %v11585_v31  ;;  %v11591_v31 = vld [vmem:[#allocation105_spill] sm:$0xff] }
 0x262   : > { %v8118_v61 = vpop.permute.xlu0 %4192  ;;  %v2890_v50 = vsel %vm2815_vm1, %v11575_v52, %v11582_v46  ;;  %v3516_v52 = vsel %vm3445_vm2, %v7552_v32, %v7606_v22  ;;  %v11589_v32 = vld [vmem:[#allocation24_spill] sm:$0xff] }
 0x263   : > { %11578 = vst [vmem:[#allocation11_spill] sm:$0xff] %v8118_v61  ;;  %v8130_v30 = vpop.permute.xlu1 %4186  ;;  %v3101_v57 = vmul.f32 %v7936_v29, %v2890_v50  ;;  %v8170_v15 = vadd.f32 %v3730_v33, %v3200_v19  ;;  %v3731_v39 = vmul.f32 %v7959_v63, %v3516_v52  ;;  %v8192_v33 = vpop.f32.mrb[142].mxu0 }
 0x264   : > { %11581 = vst [vmem:[#allocation99_spill] sm:$0xff] %v8130_v30  ;;  %4204 = vrot.lane.b32.xlu0 %v3828_v14, %s5758_s17  ;;  %v11584_v14 = vld [vmem:[#allocation111_spill] sm:$0xff]  ;;  %v3224_v30 = vadd.f32 %v3124_v58, %v11589_v32  ;;  %v8203_v19 = vpop.f32.mrb[143].mxu0 }
 0x265   : > { %3905 = vrot.lane.b32.xlu1 %v3853_v17, %s5757_s18  ;;  %v2895_v35 = vsel %vm2815_vm1, %v11579_v23, %v11584_v14  ;;  %11587 = vst [vmem:[#allocation111_spill] sm:$0xff] %v8160_v42  ;;  %v3521_v23 = vsel %vm3445_vm2, %v7616_v34, %v7590_v12  ;;  %11590 = vst [vmem:[#allocation24_spill] sm:$0xff] %v8170_v15  ;;  %v2891_v42 = vsel %vm2815_vm1, %v11584_v14, %v11591_v31  ;;  %v11592_v34 = vld [vmem:[#allocation22_spill] sm:$0xff] }
 0x266   : > { %v8144_v7 = vpop.permute.xlu0 %3887  ;;  %v3125_v50 = vmul.f32 %v7904_v48, %v2895_v35  ;;  %v3201_v51 = vadd.f32 %v3101_v57, %v11592_v34  ;;  %v3755_v8 = vmul.f32 %v7919_v2, %v3521_v23  ;;  %v3854_v58 = vadd.f32 %v3754_v26, %v3224_v30  ;;  %v8186_v48 = vpop.f32.mrb[140].mxu1  ;;  %v11594_v2 = vld [vmem:[#allocation25_spill] sm:$0xff] }
 0x267   : > { %11583 = vst [vmem:[#allocation20_spill] sm:$0xff] %v8144_v7  ;;  %v8157_v21 = vpop.permute.xlu1 %4194  ;;  %v8194_v14 = vpop.f32.mrb[141].mxu1  ;;  %v3126_v35 = vmul.f32 %v7936_v29, %v2891_v42 }
 0x268   : > { %11586 = vst [vmem:[#allocation96_spill] sm:$0xff] %v8157_v21  ;;  %3911 = vrot.lane.b32.xlu0 %v3829_v60, %s5757_s18  ;;  %v3225_v30 = vadd.f32 %v3125_v50, %v11594_v2  ;;  %v8198_v52 = vadd.f32 %v3731_v39, %v3201_v51  ;;  %v8212_v29 = vpop.f32.mrb[142].mxu1  ;;  %v11599_v51 = vld [vmem:[#allocation26_spill] sm:$0xff] }
 0x269   : > { %4206 = vrot.lane.b32.xlu1 %v3853_v17, %s5758_s17  ;;  %v3517_v17 = vsel %vm3445_vm2, %v7590_v12, %v7637_v11  ;;  %v8214_v42 = vpop.f32.mrb[143].mxu1  ;;  %v3226_v50 = vadd.f32 %v3126_v35, %v11599_v51 }
 0x26a   : > { %v8174_v25 = vpop.permute.xlu0 %3895  ;;  %11595 = vst [vmem:[#allocation22_spill] sm:$0xff] %v8198_v52  ;;  %v8205_v26 = vadd.f32 %v3755_v8, %v3225_v30  ;;  %v3756_v12 = vmul.f32 %v7959_v63, %v3517_v17  ;;  %11598 = vst [vmem:[#allocation182_spill] sm:$0xff] %v8214_v42 }
 0x26b   : > { %v8182_v32 = vpop.permute.xlu1 %3889 }
 0x26c   : > { %11593 = vst [vmem:[#allocation105_spill] sm:$0xff] %v8182_v32  ;;  %3919 = vrot.lane.b32.xlu0 %v8170_v15, %s5757_s18  ;;  %11597 = vst [vmem:[#allocation181_spill] sm:$0xff] %v8205_v26  ;;  %v8221_v8 = vadd.f32 %v3756_v12, %v3226_v50 }
 0x26d   : > { %3913 = vrot.lane.b32.xlu1 %v3854_v58, %s5757_s18 }
 0x26e   : > { %v8201_v57 = vpop.permute.xlu0 %4188  ;;  %11601 = vst [vmem:[#allocation183_spill] sm:$0xff] %v8221_v8 }
 0x26f   : > { %11596 = vst [vmem:[#allocation25_spill] sm:$0xff] %v8201_v57  ;;  %v8208_v23 = vpop.permute.xlu1 %3897 }
 0x270   : > { %3927 = vrot.lane.b32.xlu0 %v8198_v52, %s5757_s18 }
 0x271   : > { %3921 = vrot.lane.b32.xlu1 %v8205_v26, %s5757_s18  ;;  %v11643_v26 = vld [vmem:[#allocation79_spill] sm:$0xff] }
 0x272   : > { %v8219_v39 = vpop.permute.xlu0 %4196 }
 0x273   : > { %11600 = vst [vmem:[#allocation26_spill] sm:$0xff] %v8219_v39  ;;  %v8223_v34 = vpop.permute.xlu1 %4190 }
 0x274   : > { %11602 = vst [vmem:[#allocation184_spill] sm:$0xff] %v8223_v34  ;;  %4212 = vrot.lane.b32.xlu0 %v3829_v60, %s5758_s17 }
 0x275   : > { %3929 = vrot.lane.b32.xlu1 %v8221_v8, %s5757_s18 }
 0x276   : > { %v8228_v63 = vpop.permute.xlu0 %3341 }
 0x277   : > { %11603 = vst [vmem:[#allocation185_spill] sm:$0xff] %v8228_v63  ;;  %v8230_v17 = vpop.permute.xlu1 %4198  ;;  %v11683_v63 = vld [vmem:[#allocation139_spill] sm:$0xff] }
 0x278   : > { %11604 = vst [vmem:[#allocation186_spill] sm:$0xff] %v8230_v17  ;;  %3373 = vrot.lane.b32.xlu0 %v7640_v4, %s5756_s19  ;;  %v8234_v35 = vpop.f32.mrb[144].mxu0  ;;  %v8253_v50 = vpop.f32.mrb[144].mxu1 }
 0x279   : > { %11605 = vst [vmem:[#allocation187_spill] sm:$0xff] %v8234_v35  ;;  %4214 = vrot.lane.b32.xlu1 %v3854_v58, %s5758_s17  ;;  %v8239_v30 = vpop.f32.mrb[145].mxu0  ;;  %11611 = vst [vmem:[#allocation193_spill] sm:$0xff] %v8253_v50  ;;  %v8259_v34 = vpop.f32.mrb[145].mxu1  ;;  %v11677_v35 = vld [vmem:[#allocation10_spill] sm:$0xff] }
 0x27a   : > { %v8237_v2 = vpop.permute.xlu0 %3357  ;;  %11613 = vst [vmem:[#allocation195_spill] sm:$0xff] %v8259_v34 }
 0x27b   : > { %11606 = vst [vmem:[#allocation188_spill] sm:$0xff] %v8237_v2  ;;  %v8241_v12 = vpop.permute.xlu1 %3343 }
 0x27c   : > { %11607 = vst [vmem:[#allocation189_spill] sm:$0xff] %v8241_v12  ;;  %3389 = vrot.lane.b32.xlu0 %v7650_v18, %s5756_s19  ;;  %v8245_v60 = vpop.f32.mrb[146].mxu0 }
 0x27d   : > { %11608 = vst [vmem:[#allocation190_spill] sm:$0xff] %v8245_v60  ;;  %3375 = vrot.lane.b32.xlu1 %v7655_v40, %s5756_s19  ;;  %v8251_v4 = vpop.f32.mrb[147].mxu0  ;;  %v8261_v57 = vpop.f32.mrb[146].mxu1 }
 0x27e   : > { %v8249_v51 = vpop.permute.xlu0 %3349  ;;  %11610 = vst [vmem:[#allocation192_spill] sm:$0xff] %v8251_v4  ;;  %11614 = vst [vmem:[#allocation196_spill] sm:$0xff] %v8261_v57  ;;  %v8267_v40 = vpop.f32.mrb[147].mxu1  ;;  %v11670_v57 = vld [vmem:[#allocation157_spill] sm:$0xff]  ;;  %v11678_v4 = vld [vmem:[#allocation154_spill] sm:$0xff] }
 0x27f   : > { %11609 = vst [vmem:[#allocation191_spill] sm:$0xff] %v8249_v51  ;;  %v8255_v58 = vpop.permute.xlu1 %3359  ;;  %11616 = vst [vmem:[#allocation198_spill] sm:$0xff] %v8267_v40  ;;  %v11674_v51 = vld [vmem:[#allocation147_spill] sm:$0xff]  ;;  %v11676_v40 = vld [vmem:[#allocation161_spill] sm:$0xff] }
 0x280   : > { %11612 = vst [vmem:[#allocation194_spill] sm:$0xff] %v8255_v58  ;;  %3381 = vrot.lane.b32.xlu0 %v7642_v54, %s5756_s19 }
 0x281   : > { %3391 = vrot.lane.b32.xlu1 %v7667_v10, %s5756_s19  ;;  %v8277_v50 = vpop.f32.mrb[148].mxu1 }
 0x282   : > { %v8265_v18 = vpop.permute.xlu0 %3365  ;;  %11619 = vst [vmem:[#allocation201_spill] sm:$0xff] %v8277_v50  ;;  %v8283_v10 = vpop.f32.mrb[149].mxu1  ;;  %v11667_v50 = vld [vmem:[#allocation82_spill] sm:$0xff] }
 0x283   : > { %11615 = vst [vmem:[#allocation197_spill] sm:$0xff] %v8265_v18  ;;  %v8269_v8 = vpop.permute.xlu1 %3351  ;;  %11621 = vst [vmem:[#allocation203_spill] sm:$0xff] %v8283_v10 }
 0x284   : > { %11617 = vst [vmem:[#allocation199_spill] sm:$0xff] %v8269_v8  ;;  %3397 = vrot.lane.b32.xlu0 %v7659_v47, %s5756_s19 }
 0x285   : > { %3383 = vrot.lane.b32.xlu1 %v7657_v43, %s5756_s19 }
 0x286   : > { %v8275_v54 = vpop.permute.xlu0 %3345 }
 0x287   : > { %11618 = vst [vmem:[#allocation200_spill] sm:$0xff] %v8275_v54  ;;  %v8279_v34 = vpop.permute.xlu1 %3367 }
 0x288   : > { %11620 = vst [vmem:[#allocation202_spill] sm:$0xff] %v8279_v34  ;;  %3377 = vrot.lane.b32.xlu0 %v7685_v16, %s5756_s19  ;;  %v11664_v34 = vld [vmem:[#allocation19_spill] sm:$0xff] }
 0x289   : > { %3399 = vrot.lane.b32.xlu1 %v7669_v49, %s5756_s19 }
 0x28a   : > { %v8287_v52 = vpop.permute.xlu0 %3361 }
 0x28b   : > { %11622 = vst [vmem:[#allocation204_spill] sm:$0xff] %v8287_v52  ;;  %v8289_v47 = vpop.permute.xlu1 %3347 }
 0x28c   : > { %11623 = vst [vmem:[#allocation205_spill] sm:$0xff] %v8289_v47  ;;  %3393 = vrot.lane.b32.xlu0 %v7697_v6, %s5756_s19 }
 0x28d   : > { %3379 = vrot.lane.b32.xlu1 %v7699_v38, %s5756_s19 }
 0x28e   : > { %v8295_v43 = vpop.permute.xlu0 %3353 }
 0x28f   : > { %11624 = vst [vmem:[#allocation206_spill] sm:$0xff] %v8295_v43  ;;  %v8297_v15 = vpop.permute.xlu1 %3363 }
 0x290   : > { %11625 = vst [vmem:[#allocation207_spill] sm:$0xff] %v8297_v15  ;;  %3385 = vrot.lane.b32.xlu0 %v7687_v44, %s5756_s19  ;;  %v11642_v15 = vld [vmem:[#allocation87_spill] sm:$0xff] }
 0x291   : > { %3395 = vrot.lane.b32.xlu1 %v7713_v41, %s5756_s19 }
 0x292   : > { %v8303_v49 = vpop.permute.xlu0 %3369 }
 0x293   : > { %11626 = vst [vmem:[#allocation208_spill] sm:$0xff] %v8303_v49  ;;  %v8305_v16 = vpop.permute.xlu1 %3355  ;;  %v11648_v49 = vld [vmem:[#allocation118_spill] sm:$0xff] }
 0x294   : > { %11627 = vst [vmem:[#allocation209_spill] sm:$0xff] %v8305_v16  ;;  %3401 = vrot.lane.b32.xlu0 %v7701_v27, %s5756_s19  ;;  %v11633_v27 = vld [vmem:[#allocation104_spill] sm:$0xff] }
 0x295   : > { %3387 = vrot.lane.b32.xlu1 %v7707_v55, %s5756_s19 }
 0x296   : > { %v8311_v6 = vpop.permute.xlu0 %2741 }
 0x297   : > { %11628 = vst [vmem:[#allocation210_spill] sm:$0xff] %v8311_v6  ;;  %v8313_v38 = vpop.permute.xlu1 %3371  ;;  %v8330_v6 = vsub.s32 7, %v11633_v27 }
 0x298   : > { %11629 = vst [vmem:[#allocation211_spill] sm:$0xff] %v8313_v38  ;;  %2773 = vrot.lane.b32.xlu0 %v7737_v62, %s5755_s15  ;;  %v11636_v62 = vld [vmem:[#allocation148_spill] sm:$0xff] }
 0x299   : > { %3403 = vrot.lane.b32.xlu1 %v7715_v45, %s5756_s19  ;;  %11634 = vst [vmem:[#allocation104_spill] sm:$0xff] %v8330_v6  ;;  %v11637_v45 = vld [vmem:[#allocation84_spill] sm:$0xff] }
 0x29a   : > { %v8319_v44 = vpop.permute.xlu0 %2757 }
 0x29b   : > { %11630 = vst [vmem:[#allocation212_spill] sm:$0xff] %v8319_v44  ;;  %v8321_v41 = vpop.permute.xlu1 %2743 }
 0x29c   : > { %11631 = vst [vmem:[#allocation213_spill] sm:$0xff] %v8321_v41  ;;  %2789 = vrot.lane.b32.xlu0 %v7745_v37, %s5755_s15  ;;  %v11639_v37 = vld [vmem:[#allocation112_spill] sm:$0xff] }
 0x29d   : > { %2775 = vrot.lane.b32.xlu1 %v7751_v9, %s5755_s15  ;;  %v8342_v41 = vrot.slane %v11639_v37, %v8330_v6  ;;  %v11647_v37 = vld [vmem:[#allocation80_spill] sm:$0xff] }
 0x29e   : > { %v8327_v55 = vpop.permute.xlu0 %2749 }
 0x29f   : > { %11632 = vst [vmem:[#allocation214_spill] sm:$0xff] %v8327_v55  ;;  %v8332_v38 = vpop.permute.xlu1 %2759  ;;  %v11641_v55 = vld [vmem:[#allocation151_spill] sm:$0xff] }
 0x2a0   : > { %11635 = vst [vmem:[#allocation215_spill] sm:$0xff] %v8332_v38  ;;  %2781 = vrot.lane.b32.xlu0 %v11636_v62, %s5755_s15  ;;  %v2884_v38 = vsel %vm2815_vm1, %v11643_v26, %v11642_v15  ;;  %v11644_v62 = vld [vmem:[#allocation113_spill] sm:$0xff]  ;;  %v11650_v26 = vld [vmem:[#allocation156_spill] sm:$0xff] }
 0x2a1   : > { %2791 = vrot.lane.b32.xlu1 %v11637_v45, %s5755_s15  ;;  %v8354_v16 = vrot.slane %v11644_v62, %v8330_v6  ;;  %v11645_v45 = vld [vmem:[#allocation150_spill] sm:$0xff]  ;;  %v11651_v6 = vld [vmem:[#allocation153_spill] sm:$0xff] }
 0x2a2   : > { %v8338_v44 = vpop.permute.xlu0 %2765 }
 0x2a3   : > { %11638 = vst [vmem:[#allocation148_spill] sm:$0xff] %v8338_v44  ;;  %v8344_v9 = vpop.permute.xlu1 %2751 }
 0x2a4   : > { %11640 = vst [vmem:[#allocation84_spill] sm:$0xff] %v8344_v9  ;;  %2797 = vrot.lane.b32.xlu0 %v11641_v55, %s5755_s15  ;;  %v3510_v9 = vsel %vm3445_vm2, %v11648_v49, %v11647_v37  ;;  %v3052_v55 = vmul.f32 %v8342_v41, %v2884_v38  ;;  %v11654_v49 = vld [vmem:[#allocation15_spill] sm:$0xff] }
 0x2a5   : > { %2783 = vrot.lane.b32.xlu1 %v11645_v45, %s5755_s15  ;;  %v3682_v62 = vmul.f32 %v8354_v16, %v3510_v9  ;;  %v8386_v9 = vld [vmem:[%s11022_s2 + $0x20] ss:$4 sm:$0xff] }
 0x2a6   : > { %v8358_v44 = vpop.permute.xlu0 %2745  ;;  %v3152_v43 = vadd.f32 %v3052_v55, %v11654_v49  ;;  %v11660_v49 = vld [vmem:[#allocation160_spill] sm:$0xff] }
 0x2a7   : > { %11646 = vst [vmem:[#allocation112_spill] sm:$0xff] %v8358_v44  ;;  %v8365_v47 = vpop.permute.xlu1 %2767  ;;  %v11653_v44 = vld [vmem:[#allocation94_spill] sm:$0xff] }
 0x2a8   : > { %11649 = vst [vmem:[#allocation151_spill] sm:$0xff] %v8365_v47  ;;  %2777 = vrot.lane.b32.xlu0 %v11650_v26, %s5755_s15  ;;  %v2885_v52 = vsel %vm2815_vm1, %v11546_v3, %v11653_v44  ;;  %v11656_v47 = vld [vmem:[#allocation90_spill] sm:$0xff]  ;;  %v8396_v55 = vadd.f32 %v3682_v62, %v3152_v43  ;;  %v11663_v62 = vld [vmem:[#allocation9_spill] sm:$0xff] }
 0x2a9   : > { %2799 = vrot.lane.b32.xlu1 %v11651_v6, %s5755_s15  ;;  %v11657_v6 = vld [vmem:[#allocation149_spill] sm:$0xff]  ;;  %v3077_v3 = vmul.f32 %v8342_v41, %v2885_v52 }
 0x2aa   : > { %v8372_v45 = vpop.permute.xlu0 %2761  ;;  %v3511_v26 = vsel %vm3445_vm2, %v7539_v0, %v11657_v6  ;;  %11659 = vst [vmem:[#allocation150_spill] sm:$0xff] %v8396_v55  ;;  %v8410_v0 = vld [vmem:[%s11022_s2 + $0x2] ss:$4 sm:$0xff] }
 0x2ab   : > { %11652 = vst [vmem:[#allocation87_spill] sm:$0xff] %v8372_v45  ;;  %v8379_v38 = vpop.permute.xlu1 %2747  ;;  %v8393_v45 = vsub.s32 0, %v11633_v27  ;;  %v3707_v43 = vmul.f32 %v8354_v16, %v3511_v26  ;;  %v3177_v54 = vadd.f32 %v3077_v3, %v11664_v34  ;;  %v11665_v26 = vld [vmem:[#allocation92_spill] sm:$0xff]  ;;  %v4164_v34 = vsel %vm4075_vm3, %v8043_v24, %v8066_v5  ;;  %v11671_v24 = vld [vmem:[#allocation135_spill] sm:$0xff] }
 0x2ac   : > { %11655 = vst [vmem:[#allocation79_spill] sm:$0xff] %v8379_v38  ;;  %2793 = vrot.lane.b32.xlu0 %v11656_v47, %s5755_s15  ;;  %v8405_v38 = vld [vmem:[%s11022_s2 + $0x21] ss:$4 sm:$0xff]  ;;  %v2881_v12 = vsel %vm2815_vm1, %v11653_v44, %v11671_v24 }
 0x2ad   : > { %11658 = vst [vmem:[#allocation113_spill] sm:$0xff] %v8393_v45  ;;  %2779 = vrot.lane.b32.xlu1 %v11660_v49, %s5755_s15  ;;  %11661 = vst [vmem:[#allocation80_spill] sm:$0xff] %v8405_v38  ;;  %v8415_v52 = vrot.slane %v8386_v9, %v8393_v45  ;;  %v2880_v49 = vsel %vm2815_vm1, %v11642_v15, %v11663_v62  ;;  %v8430_v58 = vrot.slane %v8405_v38, %v8393_v45  ;;  %v11668_v45 = vld [vmem:[#allocation110_spill] sm:$0xff] }
 0x2ae   : > { %v8400_v47 = vpop.permute.xlu0 %3899  ;;  %v3506_v15 = vsel %vm3445_vm2, %v11647_v37, %v11667_v50  ;;  %v8456_v8 = vrot.slane %v8386_v9, %v11668_v45  ;;  %v8458_v10 = vadd.f32 %v3707_v43, %v3177_v54  ;;  %v8474_v54 = vrot.slane %v8405_v38, %v11668_v45 }
 0x2af   : > { %v8418_v27 = vpop.permute.xlu1 %2763  ;;  %v3683_v43 = vmul.f32 %v8430_v58, %v3506_v15  ;;  %v11675_v15 = vld [vmem:[#allocation28_spill] sm:$0xff] }
 0x2b0   : > { %11662 = vst [vmem:[#allocation118_spill] sm:$0xff] %v8418_v27  ;;  %3931 = vrot.lane.b32.xlu0 %v8396_v55, %s5757_s18  ;;  %v11666_v27 = vld [vmem:[#allocation114_spill] sm:$0xff]  ;;  %11669 = vst [vmem:[#allocation156_spill] sm:$0xff] %v8458_v10 }
 0x2b1   : > { %2795 = vrot.lane.b32.xlu1 %v11665_v26, %s5755_s15  ;;  %v8436_v18 = vrot.slane %v8410_v0, %v11666_v27  ;;  %v3053_v26 = vmul.f32 %v8415_v52, %v2880_v49  ;;  %v8484_v44 = vrot.slane %v8386_v9, %v11666_v27 }
 0x2b2   : > { %v8438_v55 = vpop.permute.xlu0 %4200 }
 0x2b3   : > { %v4461_v3 = vsel %vm4376_vm4, %v8118_v61, %v8438_v55  ;;  %v8460_v2 = vpop.permute.xlu1 %3901  ;;  %v11672_v61 = vld [vmem:[#allocation136_spill] sm:$0xff] }
 0x2b4   : > { %v4479_v37 = vsub.f32 %v4461_v3, %v4164_v34  ;;  %2785 = vrot.lane.b32.xlu0 %v11670_v57, %s5755_s15  ;;  %v2876_v49 = vsel %vm2815_vm1, %v11663_v62, %v11672_v61  ;;  %v3502_v62 = vsel %vm3445_vm2, %v11667_v50, %v11674_v51  ;;  %v2872_v50 = vsel %vm2815_vm1, %v11672_v61, %v11677_v35 }
 0x2b5   : > { %3933 = vrot.lane.b32.xlu1 %v8458_v10, %s5757_s18  ;;  %v3078_v10 = vmul.f32 %v8415_v52, %v2881_v12  ;;  %v4165_v12 = vsel %vm4075_vm3, %v8075_v36, %v8104_v56  ;;  %v8523_v61 = vrot.slane %v8405_v38, %v11666_v27  ;;  %v11682_v36 = vld [vmem:[#allocation108_spill] sm:$0xff] }
 0x2b6   : > { %v4708_v3 = vmul.f32 %v8436_v18, %v4479_v37  ;;  %v8480_v57 = vpop.permute.xlu0 %2753  ;;  %v3153_v37 = vadd.f32 %v3053_v26, %v11675_v15  ;;  %v3507_v26 = vsel %vm3445_vm2, %v11657_v6, %v11678_v4  ;;  %v11688_v38 = vld [vmem:[#allocation152_spill] sm:$0xff] }
 0x2b7   : > { %11673 = vst [vmem:[#allocation153_spill] sm:$0xff] %v8480_v57  ;;  %v3054_v57 = vmul.f32 %v8456_v8, %v2876_v49  ;;  %v8498_v60 = vpop.permute.xlu1 %4202 }
 0x2b8   : > { %v4808_v45 = vadd.f32 %v4708_v3, %v4164_v34  ;;  %2801 = vrot.lane.b32.xlu0 %v11676_v40, %s5755_s15  ;;  %v4462_v40 = vsel %vm4376_vm4, %v8157_v21, %v8498_v60  ;;  %v3684_v34 = vmul.f32 %v8474_v54, %v3502_v62  ;;  %v8519_v49 = vadd.f32 %v3683_v43, %v3153_v37  ;;  %v11680_v3 = vld [vmem:[#allocation163_spill] sm:$0xff]  ;;  %v11684_v62 = vld [vmem:[#allocation86_spill] sm:$0xff] }
 0x2b9   : > { %v4504_v6 = vsub.f32 %v4462_v40, %v4165_v12  ;;  %2787 = vrot.lane.b32.xlu1 %v11680_v3, %s5755_s15  ;;  %v2886_v21 = vsel %vm2815_vm1, %v11582_v46, %v11682_v36  ;;  %v2877_v43 = vsel %vm2815_vm1, %v11671_v24, %v11683_v63  ;;  %v3055_v37 = vmul.f32 %v8484_v44, %v2872_v50  ;;  %v11685_v40 = vld [vmem:[#allocation29_spill] sm:$0xff] }
 0x2ba   : > { %11679 = vst [vmem:[#allocation94_spill] sm:$0xff] %v8519_v49  ;;  %4908 = vst [vmem:[%s8493_s28 + $0x10] sm:$0xff] %v4808_v45  ;;  %v8528_v15 = vpop.permute.xlu0 %2769  ;;  %v3498_v45 = vsel %vm3445_vm2, %v11674_v51, %v11684_v62  ;;  %v3154_v3 = vadd.f32 %v3054_v57, %v11685_v40  ;;  %v11687_v46 = vld [vmem:[#allocation33_spill] sm:$0xff]  ;;  %v3503_v51 = vsel %vm3445_vm2, %v11678_v4, %v11688_v38  ;;  %v11690_v40 = vld [vmem:[#allocation44_spill] sm:$0xff] }
 0x2bb   : > { %11681 = vst [vmem:[#allocation15_spill] sm:$0xff] %v8528_v15  ;;  %v3708_v15 = vmul.f32 %v8430_v58, %v3507_v26  ;;  %v4733_v27 = vmul.f32 %v8436_v18, %v4504_v6  ;;  %v8546_v42 = vpop.permute.xlu1 %2755  ;;  %v3178_v24 = vadd.f32 %v3078_v10, %v11687_v46  ;;  %v3079_v50 = vmul.f32 %v8456_v8, %v2877_v43  ;;  %v11692_v10 = vld [vmem:[#allocation137_spill] sm:$0xff]  ;;  %v11693_v4 = vld [vmem:[#allocation88_spill] sm:$0xff]  ;;  %v11694_v43 = vld [vmem:[#allocation30_spill] sm:$0xff] }
 0x2bc   : > { %11686 = vst [vmem:[#allocation90_spill] sm:$0xff] %v8546_v42  ;;  %3939 = vrot.lane.b32.xlu0 %v8519_v49, %s5757_s18  ;;  %v8556_v57 = vadd.f32 %v3684_v34, %v3154_v3  ;;  %v3685_v26 = vmul.f32 %v8523_v61, %v3498_v45  ;;  %v3102_v49 = vmul.f32 %v8342_v41, %v2886_v21 }
 0x2bd   : > { %v4833_v6 = vadd.f32 %v4733_v27, %v4165_v12  ;;  %2803 = vrot.lane.b32.xlu1 %v11690_v40, %s5755_s15  ;;  %v2873_v46 = vsel %vm2815_vm1, %v11683_v63, %v11692_v10  ;;  %v3512_v34 = vsel %vm3445_vm2, %v7606_v22, %v11693_v4  ;;  %v3155_v45 = vadd.f32 %v3055_v37, %v11694_v43  ;;  %v11695_v27 = vld [vmem:[#allocation140_spill] sm:$0xff]  ;;  %v11698_v63 = vld [vmem:[#allocation115_spill] sm:$0xff] }
 0x2be   : > { %11689 = vst [vmem:[#allocation149_spill] sm:$0xff] %v8556_v57  ;;  %v8561_v42 = vpop.permute.xlu0 %3907  ;;  %v2882_v12 = vsel %vm2815_vm1, %v11682_v36, %v11695_v27  ;;  %v3709_v3 = vmul.f32 %v8474_v54, %v3503_v51  ;;  %v8578_v21 = vadd.f32 %v3708_v15, %v3178_v24  ;;  %v2887_v22 = vsel %vm2815_vm1, %v11591_v31, %v11698_v63  ;;  %v11699_v37 = vld [vmem:[#allocation155_spill] sm:$0xff]  ;;  %v11700_v15 = vld [vmem:[#allocation34_spill] sm:$0xff] }
 0x2bf   : > { %11691 = vst [vmem:[#allocation160_spill] sm:$0xff] %v8561_v42  ;;  %4933 = vst [vmem:[%s8493_s28 + $0xd8] sm:$0xff] %v4833_v6  ;;  %v8581_v40 = vpop.permute.xlu1 %2771  ;;  %v3499_v36 = vsel %vm3445_vm2, %v11688_v38, %v11699_v37  ;;  %v3080_v51 = vmul.f32 %v8484_v44, %v2873_v46  ;;  %v3179_v24 = vadd.f32 %v3079_v50, %v11700_v15  ;;  %v11704_v37 = vld [vmem:[#allocation23_spill] sm:$0xff] }
 0x2c0   : > { %11696 = vst [vmem:[#allocation9_spill] sm:$0xff] %v8578_v21  ;;  %11697 = vst [vmem:[#allocation19_spill] sm:$0xff] %v8581_v40  ;;  %3947 = vrot.lane.b32.xlu0 %v8556_v57, %s5757_s18  ;;  %v8595_v6 = vadd.f32 %v3685_v26, %v3155_v45  ;;  %v3732_v43 = vmul.f32 %v8354_v16, %v3512_v34  ;;  %v3103_v31 = vmul.f32 %v8415_v52, %v2882_v12  ;;  %v11703_v40 = vld [vmem:[#allocation162_spill] sm:$0xff]  ;;  %v11707_v45 = vld [vmem:[#allocation144_spill] sm:$0xff] }
 0x2c1   : > { %3941 = vrot.lane.b32.xlu1 %v8578_v21, %s5757_s18  ;;  %v3508_v38 = vsel %vm3445_vm2, %v11693_v4, %v11703_v40  ;;  %v3202_v46 = vadd.f32 %v3102_v49, %v11704_v37  ;;  %v8608_v10 = vadd.f32 %v3709_v3, %v3179_v24  ;;  %v3710_v50 = vmul.f32 %v8523_v61, %v3499_v36  ;;  %v11708_v15 = vld [vmem:[#allocation159_spill] sm:$0xff]  ;;  %v11714_v21 = vld [vmem:[#allocation93_spill] sm:$0xff] }
 0x2c2   : > { %11701 = vst [vmem:[#allocation92_spill] sm:$0xff] %v8595_v6  ;;  %v8600_v57 = vpop.permute.xlu0 %3915  ;;  %v3127_v34 = vmul.f32 %v8342_v41, %v2887_v22  ;;  %v2878_v12 = vsel %vm2815_vm1, %v11695_v27, %v11707_v45  ;;  %v3513_v49 = vsel %vm3445_vm2, %v7637_v11, %v11708_v15  ;;  %v11709_v4 = vld [vmem:[#allocation35_spill] sm:$0xff]  ;;  %v3733_v41 = vmul.f32 %v8430_v58, %v3508_v38  ;;  %v11713_v22 = vld [vmem:[#allocation37_spill] sm:$0xff] }
 0x2c3   : > { %11702 = vst [vmem:[#allocation82_spill] sm:$0xff] %v8600_v57  ;;  %11705 = vst [vmem:[#allocation157_spill] sm:$0xff] %v8608_v10  ;;  %v8611_v26 = vpop.permute.xlu1 %3909  ;;  %v3180_v3 = vadd.f32 %v3080_v51, %v11709_v4  ;;  %v11710_v37 = vld [vmem:[#allocation143_spill] sm:$0xff]  ;;  %v8629_v24 = vadd.f32 %v3732_v43, %v3202_v46  ;;  %v3504_v11 = vsel %vm3445_vm2, %v11703_v40, %v11714_v21  ;;  %v11715_v51 = vld [vmem:[#allocation142_spill] sm:$0xff] }
 0x2c4   : > { %11706 = vst [vmem:[#allocation135_spill] sm:$0xff] %v8611_v26  ;;  %3955 = vrot.lane.b32.xlu0 %v8595_v6, %s5757_s18  ;;  %v2883_v36 = vsel %vm2815_vm1, %v11698_v63, %v11710_v37  ;;  %v3203_v6 = vadd.f32 %v3103_v31, %v11713_v22  ;;  %v2874_v63 = vsel %vm2815_vm1, %v11707_v45, %v11715_v51  ;;  %v11718_v31 = vld [vmem:[#allocation27_spill] sm:$0xff] }
 0x2c5   : > { %11711 = vst [vmem:[#allocation136_spill] sm:$0xff] %v8629_v24  ;;  %3949 = vrot.lane.b32.xlu1 %v8608_v10, %s5757_s18  ;;  %v3104_v43 = vmul.f32 %v8456_v8, %v2878_v12  ;;  %v8646_v38 = vadd.f32 %v3710_v50, %v3180_v3  ;;  %v3757_v46 = vmul.f32 %v8354_v16, %v3513_v49  ;;  %v11719_v10 = vld [vmem:[#allocation165_spill] sm:$0xff] }
 0x2c6   : > { %v8634_v27 = vpop.permute.xlu0 %3923  ;;  %v3227_v22 = vadd.f32 %v3127_v34, %v11718_v31  ;;  %v3128_v40 = vmul.f32 %v8415_v52, %v2883_v36  ;;  %v3509_v45 = vsel %vm3445_vm2, %v11708_v15, %v11719_v10  ;;  %v3734_v16 = vmul.f32 %v8474_v54, %v3504_v11  ;;  %v11722_v34 = vld [vmem:[#allocation158_spill] sm:$0xff]  ;;  %v11723_v15 = vld [vmem:[#allocation95_spill] sm:$0xff] }
 0x2c7   : > { %11712 = vst [vmem:[#allocation147_spill] sm:$0xff] %v8634_v27  ;;  %11716 = vst [vmem:[#allocation28_spill] sm:$0xff] %v8646_v38  ;;  %v8649_v4 = vpop.permute.xlu1 %3917  ;;  %v11720_v27 = vld [vmem:[#allocation78_spill] sm:$0xff]  ;;  %v8664_v12 = vadd.f32 %v3733_v41, %v3203_v6  ;;  %v8670_v52 = vrot.slane %v8410_v0, %v11722_v34  ;;  %v3105_v3 = vmul.f32 %v8484_v44, %v2874_v63 }
 0x2c8   : > { %11717 = vst [vmem:[#allocation161_spill] sm:$0xff] %v8649_v4  ;;  %3935 = vrot.lane.b32.xlu0 %v8629_v24, %s5757_s18  ;;  %v2879_v50 = vsel %vm2815_vm1, %v11710_v37, %v11720_v27  ;;  %v3500_v36 = vsel %vm3445_vm2, %v11714_v21, %v11723_v15  ;;  %v4160_v6 = vsel %vm4075_vm3, %v8066_v5, %v8400_v47  ;;  %v11724_v41 = vld [vmem:[#allocation38_spill] sm:$0xff]  ;;  %v11727_v21 = vld [vmem:[#allocation41_spill] sm:$0xff] }
 0x2c9   : > { %11721 = vst [vmem:[#allocation10_spill] sm:$0xff] %v8664_v12  ;;  %3957 = vrot.lane.b32.xlu1 %v8646_v38, %s5757_s18  ;;  %v3204_v11 = vadd.f32 %v3104_v43, %v11724_v41  ;;  %v8685_v31 = vadd.f32 %v3757_v46, %v3227_v22  ;;  %v3758_v63 = vmul.f32 %v8430_v58, %v3509_v45  ;;  %v11728_v24 = vld [vmem:[#allocation145_spill] sm:$0xff]  ;;  %v11729_v43 = vld [vmem:[#allocation164_spill] sm:$0xff] }
 0x2ca   : > { %v4209_v49 = vpop.permute.xlu0 %4208  ;;  %v3228_v57 = vadd.f32 %v3128_v40, %v11727_v21  ;;  %v2875_v5 = vsel %vm2815_vm1, %v11720_v27, %v11728_v24  ;;  %v3505_v58 = vsel %vm3445_vm2, %v11719_v10, %v11729_v43  ;;  %v3735_v22 = vmul.f32 %v8523_v61, %v3500_v36  ;;  %v11731_v40 = vld [vmem:[#allocation3_spill] sm:$0xff]  ;;  %v11736_v21 = vld [vmem:[#allocation97_spill] sm:$0xff] }
 0x2cb   : > { %v4457_v37 = vsel %vm4376_vm4, %v8438_v55, %v4209_v49  ;;  %11725 = vst [vmem:[#allocation154_spill] sm:$0xff] %v8685_v31  ;;  %v8688_v4 = vpop.permute.xlu1 %3925  ;;  %v3129_v55 = vmul.f32 %v8456_v8, %v2879_v50  ;;  %v8702_v46 = vadd.f32 %v3734_v16, %v3204_v11  ;;  %v11734_v8 = vld [vmem:[#allocation39_spill] sm:$0xff]  ;;  %v4156_v10 = vsel %vm4075_vm3, %v8400_v47, %v8561_v42 }
 0x2cc   : > { %v4480_v38 = vsub.f32 %v4457_v37, %v4160_v6  ;;  %11726 = vst [vmem:[#allocation163_spill] sm:$0xff] %v8688_v4  ;;  %3943 = vrot.lane.b32.xlu0 %v8664_v12, %s5757_s18  ;;  %v8710_v37 = vrot.slane %v8410_v0, %v11731_v40  ;;  %v3205_v50 = vadd.f32 %v3105_v3, %v11734_v8  ;;  %v11779_v4 = vld [vmem:[#allocation103_spill] sm:$0xff] }
 0x2cd   : > { %11730 = vst [vmem:[#allocation108_spill] sm:$0xff] %v8702_v46  ;;  %3937 = vrot.lane.b32.xlu1 %v8685_v31, %s5757_s18  ;;  %v3759_v16 = vmul.f32 %v8474_v54, %v3505_v58  ;;  %v8723_v36 = vadd.f32 %v3758_v63, %v3228_v57  ;;  %v3130_v3 = vmul.f32 %v8484_v44, %v2875_v5  ;;  %v11788_v31 = vld [vmem:[#allocation201_spill] sm:$0xff] }
 0x2ce   : > { %v4709_v45 = vmul.f32 %v8670_v52, %v4480_v38  ;;  %11732 = vst [vmem:[#allocation139_spill] sm:$0xff] %v8710_v37  ;;  %v8712_v27 = vpop.permute.xlu0 %4216  ;;  %v3501_v47 = vsel %vm3445_vm2, %v11729_v43, %v11736_v21  ;;  %v4161_v54 = vsel %vm4075_vm3, %v8104_v56, %v8460_v2  ;;  %v8740_v63 = vadd.f32 %v3735_v22, %v3205_v50  ;;  %v11742_v50 = vld [vmem:[#allocation43_spill] sm:$0xff] }
 0x2cf   : > { %11733 = vst [vmem:[#allocation86_spill] sm:$0xff] %v8712_v27  ;;  %v4453_v38 = vsel %vm4376_vm4, %v4209_v49, %v8712_v27  ;;  %11735 = vst [vmem:[#allocation29_spill] sm:$0xff] %v8723_v36  ;;  %v4211_v11 = vpop.permute.xlu1 %4210  ;;  %v11737_v49 = vld [vmem:[#allocation42_spill] sm:$0xff]  ;;  %v3760_v56 = vmul.f32 %v8523_v61, %v3501_v47  ;;  %v4157_v22 = vsel %vm4075_vm3, %v8460_v2, %v8611_v26 }
 0x2d0   : > { %v4809_v0 = vadd.f32 %v4709_v45, %v4160_v6  ;;  %v4481_v41 = vsub.f32 %v4453_v38, %v4156_v10  ;;  %3951 = vrot.lane.b32.xlu0 %v8702_v46, %s5757_s18  ;;  %v4458_v57 = vsel %vm4376_vm4, %v8498_v60, %v4211_v11  ;;  %v3229_v6 = vadd.f32 %v3129_v55, %v11737_v49 }
 0x2d1   : > { %11738 = vst [vmem:[#allocation33_spill] sm:$0xff] %v8740_v63  ;;  %v4505_v5 = vsub.f32 %v4458_v57, %v4161_v54  ;;  %3945 = vrot.lane.b32.xlu1 %v8723_v36, %s5757_s18  ;;  %v3230_v61 = vadd.f32 %v3130_v3, %v11742_v50  ;;  %v11782_v36 = vld [vmem:[#allocation117_spill] sm:$0xff] }
 0x2d2   : > { %4909 = vst [vmem:[%s8493_s28 + $0x18] sm:$0xff] %v4809_v0  ;;  %v4710_v44 = vmul.f32 %v8710_v37, %v4481_v41  ;;  %v8746_v43 = vpop.permute.xlu0 %3903  ;;  %v8748_v58 = vadd.f32 %v3759_v16, %v3229_v6  ;;  %v4166_v0 = vsel %vm4075_vm3, %v8144_v7, %v8174_v25  ;;  %v11776_v7 = vld [vmem:[#allocation189_spill] sm:$0xff] }
 0x2d3   : > { %11739 = vst [vmem:[#allocation152_spill] sm:$0xff] %v8746_v43  ;;  %v4734_v55 = vmul.f32 %v8670_v52, %v4505_v5  ;;  %v8752_v45 = vpop.permute.xlu1 %4218  ;;  %v8774_v41 = vadd.f32 %v3760_v56, %v3230_v61  ;;  %v11751_v61 = vld [vmem:[#allocation180_spill] sm:$0xff] }
 0x2d4   : > { %11740 = vst [vmem:[#allocation44_spill] sm:$0xff] %v8748_v58  ;;  %v4810_v60 = vadd.f32 %v4710_v44, %v4156_v10  ;;  %11741 = vst [vmem:[#allocation88_spill] sm:$0xff] %v8752_v45  ;;  %3959 = vrot.lane.b32.xlu0 %v8740_v63, %s5757_s18  ;;  %v4454_v8 = vsel %vm4376_vm4, %v4211_v11, %v8752_v45 }
 0x2d5   : > { %v4834_v10 = vadd.f32 %v4734_v55, %v4161_v54  ;;  %v4506_v38 = vsub.f32 %v4454_v8, %v4157_v22  ;;  %3953 = vrot.lane.b32.xlu1 %v8748_v58, %s5757_s18  ;;  %11743 = vst [vmem:[#allocation30_spill] sm:$0xff] %v8774_v41 }
 0x2d6   : > { %4910 = vst [vmem:[%s8493_s28 + $0x20] sm:$0xff] %v4810_v60  ;;  %v4205_v16 = vpop.permute.xlu0 %4204 }
 0x2d7   : > { %v4463_v2 = vsel %vm4376_vm4, %v8219_v39, %v4205_v16  ;;  %4934 = vst [vmem:[%s8493_s28 + $0xe0] sm:$0xff] %v4834_v10  ;;  %v4735_v11 = vmul.f32 %v8710_v37, %v4506_v38  ;;  %v8778_v47 = vpop.permute.xlu1 %3905  ;;  %v11777_v39 = vld [vmem:[#allocation155_spill] sm:$0xff]  ;;  %v11794_v37 = vld [vmem:[#allocation194_spill] sm:$0xff] }
 0x2d8   : > { %v4529_v3 = vsub.f32 %v4463_v2, %v4166_v0  ;;  %11744 = vst [vmem:[#allocation140_spill] sm:$0xff] %v8778_v47  ;;  %3405 = vrot.lane.b32.xlu0 %v8059_v1, %s5756_s19  ;;  %v4167_v1 = vsel %vm4075_vm3, %v8182_v32, %v8208_v23 }
 0x2d9   : > { %v4835_v54 = vadd.f32 %v4735_v11, %v4157_v22  ;;  %3961 = vrot.lane.b32.xlu1 %v8774_v41, %s5757_s18  ;;  %v11755_v11 = vld [vmem:[#allocation101_spill] sm:$0xff] }
 0x2da   : > { %v4758_v57 = vmul.f32 %v8436_v18, %v4529_v3  ;;  %v8785_v49 = vpop.permute.xlu0 %3911 }
 0x2db   : > { %11745 = vst [vmem:[#allocation115_spill] sm:$0xff] %v8785_v49  ;;  %4935 = vst [vmem:[%s8493_s28 + $0xe8] sm:$0xff] %v4835_v54  ;;  %v4207_v44 = vpop.permute.xlu1 %4206  ;;  %v11790_v49 = vld [vmem:[#allocation197_spill] sm:$0xff] }
 0x2dc   : > { %v4858_v6 = vadd.f32 %v4758_v57, %v4166_v0  ;;  %3421 = vrot.lane.b32.xlu0 %v8078_v20, %s5756_s19  ;;  %v4464_v5 = vsel %vm4376_vm4, %v8230_v17, %v4207_v44  ;;  %v11754_v0 = vld [vmem:[#allocation111_spill] sm:$0xff] }
 0x2dd   : > { %v4554_v56 = vsub.f32 %v4464_v5, %v4167_v1  ;;  %3407 = vrot.lane.b32.xlu1 %v8088_v59, %s5756_s19  ;;  %v11750_v59 = vld [vmem:[#allocation7_spill] sm:$0xff]  ;;  %v8852_v5 = vpop.f32.mrb[148].mxu0 }
 0x2de   : > { %4958 = vst [vmem:[%s8493_s28 + $0x1a0] sm:$0xff] %v4858_v6  ;;  %v8800_v60 = vpop.permute.xlu0 %3919  ;;  %11757 = vst [vmem:[#allocation37_spill] sm:$0xff] %v8852_v5 }
 0x2df   : > { %11746 = vst [vmem:[#allocation34_spill] sm:$0xff] %v8800_v60  ;;  %v4783_v55 = vmul.f32 %v8436_v18, %v4554_v56  ;;  %v8803_v22 = vpop.permute.xlu1 %3913  ;;  %v8854_v56 = vpop.f32.mrb[149].mxu0  ;;  %v11783_v60 = vld [vmem:[#allocation203_spill] sm:$0xff] }
 0x2e0   : > { %11747 = vst [vmem:[#allocation162_spill] sm:$0xff] %v8803_v22  ;;  %3413 = vrot.lane.b32.xlu0 %v8068_v28, %s5756_s19  ;;  %v4162_v28 = vsel %vm4075_vm3, %v8174_v25, %v8746_v43  ;;  %v4163_v25 = vsel %vm4075_vm3, %v8208_v23, %v8778_v47  ;;  %11758 = vst [vmem:[#allocation93_spill] sm:$0xff] %v8854_v56  ;;  %v11759_v23 = vld [vmem:[#allocation21_spill] sm:$0xff]  ;;  %v11802_v47 = vld [vmem:[#allocation202_spill] sm:$0xff] }
 0x2e1   : > { %v4883_v20 = vadd.f32 %v4783_v55, %v4167_v1  ;;  %3423 = vrot.lane.b32.xlu1 %v8107_v53, %s5756_s19  ;;  %v11806_v22 = vld [vmem:[#allocation40_spill] sm:$0xff] }
 0x2e2   : > { %v8809_v8 = vpop.permute.xlu0 %3927 }
 0x2e3   : > { %11748 = vst [vmem:[#allocation23_spill] sm:$0xff] %v8809_v8  ;;  %4983 = vst [vmem:[%s8493_s28 + $0x268] sm:$0xff] %v4883_v20  ;;  %v8812_v50 = vpop.permute.xlu1 %3921  ;;  %v11773_v8 = vld [vmem:[#allocation191_spill] sm:$0xff] }
 0x2e4   : > { %11749 = vst [vmem:[#allocation144_spill] sm:$0xff] %v8812_v50  ;;  %3429 = vrot.lane.b32.xlu0 %v11750_v59, %s5756_s19  ;;  %v8876_v59 = vrot.slane %v8386_v9, %v11722_v34  ;;  %v11780_v50 = vld [vmem:[#allocation188_spill] sm:$0xff] }
 0x2e5   : > { %3415 = vrot.lane.b32.xlu1 %v11751_v61, %s5756_s19 }
 0x2e6   : > { %v8818_v18 = vpop.permute.xlu0 %4212 }
 0x2e7   : > { %11752 = vst [vmem:[#allocation159_spill] sm:$0xff] %v8818_v18  ;;  %v4459_v53 = vsel %vm4376_vm4, %v4205_v16, %v8818_v18  ;;  %v8827_v38 = vpop.permute.xlu1 %3929  ;;  %v11789_v18 = vld [vmem:[#allocation167_spill] sm:$0xff] }
 0x2e8   : > { %v4530_v10 = vsub.f32 %v4459_v53, %v4162_v28  ;;  %11753 = vst [vmem:[#allocation35_spill] sm:$0xff] %v8827_v38  ;;  %3409 = vrot.lane.b32.xlu0 %v11754_v0, %s5756_s19  ;;  %v11763_v0 = vld [vmem:[#allocation185_spill] sm:$0xff]  ;;  %v2861_v43 = vsel %vm2815_vm1, %v11779_v4, %v11789_v18 }
 0x2e9   : > { %3431 = vrot.lane.b32.xlu1 %v11755_v11, %s5756_s19  ;;  %v11772_v38 = vld [vmem:[#allocation137_spill] sm:$0xff] }
 0x2ea   : > { %v4759_v2 = vmul.f32 %v8670_v52, %v4530_v10  ;;  %v8834_v3 = vpop.permute.xlu0 %3373 }
 0x2eb   : > { %v8836_v57 = vpop.permute.xlu1 %4214 }
 0x2ec   : > { %v4859_v54 = vadd.f32 %v4759_v2, %v4162_v28  ;;  %11756 = vst [vmem:[#allocation143_spill] sm:$0xff] %v8836_v57  ;;  %3425 = vrot.lane.b32.xlu0 %v8186_v48, %s5756_s19  ;;  %v4460_v16 = vsel %vm4376_vm4, %v4207_v44, %v8836_v57  ;;  %v3494_v2 = vsel %vm3445_vm2, %v11684_v62, %v11763_v0  ;;  %v11798_v57 = vld [vmem:[#allocation200_spill] sm:$0xff] }
 0x2ed   : > { %v4555_v6 = vsub.f32 %v4460_v16, %v4163_v25  ;;  %3411 = vrot.lane.b32.xlu1 %v8192_v33, %s5756_s19 }
 0x2ee   : > { %4959 = vst [vmem:[%s8493_s28 + $0x1a8] sm:$0xff] %v4859_v54  ;;  %v8850_v1 = vpop.permute.xlu0 %3389 }
 0x2ef   : > { %v4784_v48 = vmul.f32 %v8670_v52, %v4555_v6  ;;  %v8857_v55 = vpop.permute.xlu1 %3375  ;;  %v11766_v6 = vld [vmem:[#allocation32_spill] sm:$0xff] }
 0x2f0   : > { %3417 = vrot.lane.b32.xlu0 %v11759_v23, %s5756_s19  ;;  %v8911_v23 = vrot.slane %v8386_v9, %v11731_v40 }
 0x2f1   : > { %v4884_v20 = vadd.f32 %v4784_v48, %v4163_v25  ;;  %3427 = vrot.lane.b32.xlu1 %v8212_v29, %s5756_s19  ;;  %v11760_v29 = vld [vmem:[#allocation138_spill] sm:$0xff]  ;;  %v11765_v25 = vld [vmem:[#allocation187_spill] sm:$0xff] }
 0x2f2   : > { %v8863_v44 = vpop.permute.xlu0 %3381  ;;  %v2868_v28 = vsel %vm2815_vm1, %v11677_v35, %v11760_v29  ;;  %v11764_v35 = vld [vmem:[#allocation192_spill] sm:$0xff] }
 0x2f3   : > { %4984 = vst [vmem:[%s8493_s28 + $0x270] sm:$0xff] %v4884_v20  ;;  %v8866_v33 = vpop.permute.xlu1 %3391  ;;  %v11767_v20 = vld [vmem:[#allocation198_spill] sm:$0xff] }
 0x2f4   : > { %3433 = vrot.lane.b32.xlu0 %v8194_v14, %s5756_s19  ;;  %v11761_v14 = vld [vmem:[#allocation80_spill] sm:$0xff] }
 0x2f5   : > { %3419 = vrot.lane.b32.xlu1 %v8203_v19, %s5756_s19  ;;  %v8888_v53 = vrot.slane %v11761_v14, %v11722_v34  ;;  %v11762_v19 = vld [vmem:[#allocation182_spill] sm:$0xff] }
 0x2f6   : > { %v8872_v52 = vpop.permute.xlu0 %3397 }
 0x2f7   : > { %v8878_v61 = vpop.permute.xlu1 %3383  ;;  %v3686_v54 = vmul.f32 %v8888_v53, %v3494_v2 }
 0x2f8   : > { %2805 = vrot.lane.b32.xlu0 %v8239_v30, %s5755_s15  ;;  %v3056_v30 = vmul.f32 %v8876_v59, %v2868_v28  ;;  %v11768_v28 = vld [vmem:[#allocation98_spill] sm:$0xff] }
 0x2f9   : > { %3435 = vrot.lane.b32.xlu1 %v11762_v19, %s5756_s19  ;;  %v2864_v19 = vsel %vm2815_vm1, %v11760_v29, %v11768_v28  ;;  %v3490_v29 = vsel %vm3445_vm2, %v11763_v0, %v11773_v8  ;;  %v3495_v0 = vsel %vm3445_vm2, %v11777_v39, %v11776_v7  ;;  %v3486_v39 = vsel %vm3445_vm2, %v11773_v8, %v11780_v50 }
 0x2fa   : > { %v8892_v10 = vpop.permute.xlu0 %3377  ;;  %v3156_v48 = vadd.f32 %v3056_v30, %v11766_v6  ;;  %v11770_v30 = vld [vmem:[#allocation190_spill] sm:$0xff]  ;;  %v11771_v6 = vld [vmem:[#allocation141_spill] sm:$0xff]  ;;  %v3711_v45 = vmul.f32 %v8888_v53, %v3495_v0  ;;  %v11786_v0 = vld [vmem:[#allocation36_spill] sm:$0xff] }
 0x2fb   : > { %v8899_v11 = vpop.permute.xlu1 %3399 }
 0x2fc   : > { %2809 = vrot.lane.b32.xlu0 %v11764_v35, %s5755_s15  ;;  %v8921_v2 = vadd.f32 %v3686_v54, %v3156_v48  ;;  %v8925_v35 = vrot.slane %v11761_v14, %v11731_v40  ;;  %v3057_v54 = vmul.f32 %v8911_v23, %v2864_v19  ;;  %v11774_v48 = vld [vmem:[#allocation107_spill] sm:$0xff] }
 0x2fd   : > { %2807 = vrot.lane.b32.xlu1 %v11765_v25, %s5755_s15  ;;  %v8942_v32 = vrot.slane %v8386_v9, %v11774_v48  ;;  %v8959_v41 = vrot.slane %v11761_v14, %v11774_v48 }
 0x2fe   : > { %v8906_v16 = vpop.permute.xlu0 %3393  ;;  %11769 = vst [vmem:[#allocation142_spill] sm:$0xff] %v8921_v2  ;;  %v3687_v63 = vmul.f32 %v8925_v35, %v3490_v29  ;;  %v8977_v29 = vrot.slane %v8386_v9, %v11782_v36 }
 0x2ff   : > { %v8913_v62 = vpop.permute.xlu1 %3379 }
 0x300   : > { %3437 = vrot.lane.b32.xlu0 %v11767_v20, %s5756_s19  ;;  %v2869_v20 = vsel %vm2815_vm1, %v11772_v38, %v11771_v6 }
 0x301   : > { %2811 = vrot.lane.b32.xlu1 %v11770_v30, %s5755_s15  ;;  %v11775_v30 = vld [vmem:[#allocation5_spill] sm:$0xff]  ;;  %v3081_v19 = vmul.f32 %v8876_v59, %v2869_v20  ;;  %v11781_v20 = vld [vmem:[#allocation55_spill] sm:$0xff] }
 0x302   : > { %v8929_v25 = vpop.permute.xlu0 %3385  ;;  %v2860_v38 = vsel %vm2815_vm1, %v11768_v28, %v11775_v30  ;;  %v2865_v28 = vsel %vm2815_vm1, %v11771_v6, %v11779_v4  ;;  %v3157_v46 = vadd.f32 %v3057_v54, %v11781_v20  ;;  %v11784_v6 = vld [vmem:[#allocation46_spill] sm:$0xff]  ;;  %v8991_v54 = vrot.slane %v11761_v14, %v11782_v36  ;;  %v11785_v20 = vld [vmem:[#allocation199_spill] sm:$0xff] }
 0x303   : > { %v8944_v17 = vpop.permute.xlu1 %3395  ;;  %v2856_v8 = vsel %vm2815_vm1, %v11775_v30, %v11784_v6  ;;  %v3181_v12 = vadd.f32 %v3081_v19, %v11786_v0  ;;  %v3082_v27 = vmul.f32 %v8911_v23, %v2865_v28  ;;  %v11791_v28 = vld [vmem:[#allocation57_spill] sm:$0xff] }
 0x304   : > { %3963 = vrot.lane.b32.xlu0 %v8921_v2, %s5757_s18  ;;  %v11778_v2 = vld [vmem:[#allocation196_spill] sm:$0xff]  ;;  %v9000_v42 = vadd.f32 %v3687_v63, %v3157_v46  ;;  %v3059_v19 = vmul.f32 %v8977_v29, %v2856_v8  ;;  %v11793_v0 = vld [vmem:[#allocation77_spill] sm:$0xff] }
 0x305   : > { %3439 = vrot.lane.b32.xlu1 %v11778_v2, %s5756_s19  ;;  %v3058_v2 = vmul.f32 %v8942_v32, %v2860_v38  ;;  %v3491_v38 = vsel %vm3445_vm2, %v11776_v7, %v11785_v20  ;;  %v3482_v7 = vsel %vm3445_vm2, %v11780_v50, %v11790_v49  ;;  %v9016_v63 = vadd.f32 %v3711_v45, %v3181_v12 }
 0x306   : > { %v8964_v58 = vpop.permute.xlu0 %3401  ;;  %11787 = vst [vmem:[#allocation27_spill] sm:$0xff] %v9000_v42  ;;  %v2870_v4 = vsel %vm2815_vm1, %v11715_v51, %v11793_v0  ;;  %v3487_v50 = vsel %vm3445_vm2, %v11785_v20, %v11794_v37  ;;  %v3083_v45 = vmul.f32 %v8942_v32, %v2861_v43  ;;  %v11799_v20 = vld [vmem:[#allocation58_spill] sm:$0xff] }
 0x307   : > { %v8981_v26 = vpop.permute.xlu1 %3387  ;;  %v3158_v46 = vadd.f32 %v3058_v2, %v11791_v28  ;;  %11792 = vst [vmem:[#allocation165_spill] sm:$0xff] %v9016_v63  ;;  %v11795_v2 = vld [vmem:[#allocation61_spill] sm:$0xff]  ;;  %v3106_v43 = vmul.f32 %v8876_v59, %v2870_v4  ;;  %v11803_v4 = vld [vmem:[#allocation62_spill] sm:$0xff] }
 0x308   : > { %3441 = vrot.lane.b32.xlu0 %v11783_v60, %s5756_s19  ;;  %v3688_v60 = vmul.f32 %v8959_v41, %v3486_v39  ;;  %v3182_v12 = vadd.f32 %v3082_v27, %v11795_v2  ;;  %v3496_v27 = vsel %vm3445_vm2, %v11723_v15, %v11798_v57  ;;  %v3483_v15 = vsel %vm3445_vm2, %v11794_v37, %v11802_v47 }
 0x309   : > { %3443 = vrot.lane.b32.xlu1 %v11788_v31, %s5756_s19  ;;  %v3712_v31 = vmul.f32 %v8925_v35, %v3491_v38  ;;  %v3689_v38 = vmul.f32 %v8991_v54, %v3482_v7  ;;  %v3713_v7 = vmul.f32 %v8959_v41, %v3487_v50  ;;  %v3206_v37 = vadd.f32 %v3106_v43, %v11806_v22 }
 0x30a   : > { %v9004_v30 = vpop.permute.xlu0 %2773  ;;  %v9033_v8 = vadd.f32 %v3688_v60, %v3158_v46  ;;  %v3159_v60 = vadd.f32 %v3059_v19, %v11799_v20 }
 0x30b   : > { %v9019_v39 = vpop.permute.xlu1 %3403  ;;  %v9051_v46 = vadd.f32 %v3712_v31, %v3182_v12  ;;  %v3183_v31 = vadd.f32 %v3083_v45, %v11803_v4  ;;  %v3736_v12 = vmul.f32 %v8888_v53, %v3496_v27  ;;  %v3714_v45 = vmul.f32 %v8991_v54, %v3483_v15  ;;  %v11808_v27 = vld [vmem:[#allocation16_spill] sm:$0xff]  ;;  %v11809_v4 = vld [vmem:[#allocation63_spill] sm:$0xff] }
 0x30c   : > { %3971 = vrot.lane.b32.xlu0 %v9000_v42, %s5757_s18  ;;  %11796 = vst [vmem:[#allocation78_spill] sm:$0xff] %v9033_v8  ;;  %v11797_v42 = vld [vmem:[#allocation166_spill] sm:$0xff]  ;;  %v9067_v50 = vadd.f32 %v3689_v38, %v3159_v60  ;;  %v11813_v15 = vld [vmem:[#allocation204_spill] sm:$0xff] }
 0x30d   : > { %3965 = vrot.lane.b32.xlu1 %v9016_v63, %s5757_s18  ;;  %v2857_v51 = vsel %vm2815_vm1, %v11789_v18, %v11797_v42  ;;  %11800 = vst [vmem:[#allocation95_spill] sm:$0xff] %v9051_v46  ;;  %v11801_v63 = vld [vmem:[#allocation100_spill] sm:$0xff]  ;;  %v9080_v5 = vadd.f32 %v3713_v7, %v3183_v31  ;;  %v11812_v7 = vld [vmem:[#allocation146_spill] sm:$0xff] }
 0x30e   : > { %v9038_v28 = vpop.permute.xlu0 %2789  ;;  %v2866_v18 = vsel %vm2815_vm1, %v11793_v0, %v11801_v63  ;;  %v3084_v19 = vmul.f32 %v8977_v29, %v2857_v51  ;;  %11804 = vst [vmem:[#allocation38_spill] sm:$0xff] %v9067_v50  ;;  %v2862_v60 = vsel %vm2815_vm1, %v11801_v63, %v11808_v27 }
 0x30f   : > { %v9053_v2 = vpop.permute.xlu1 %2775  ;;  %v3107_v51 = vmul.f32 %v8911_v23, %v2866_v18  ;;  %11807 = vst [vmem:[#allocation41_spill] sm:$0xff] %v9080_v5  ;;  %v2871_v18 = vsel %vm2815_vm1, %v11728_v24, %v11812_v7 }
 0x310   : > { %3979 = vrot.lane.b32.xlu0 %v9033_v8, %s5757_s18  ;;  %v11805_v8 = vld [vmem:[#allocation206_spill] sm:$0xff] }
 0x311   : > { %3973 = vrot.lane.b32.xlu1 %v9051_v46, %s5757_s18  ;;  %v3492_v0 = vsel %vm3445_vm2, %v11798_v57, %v11805_v8  ;;  %v3184_v57 = vadd.f32 %v3084_v19, %v11809_v4  ;;  %v9092_v46 = vadd.f32 %v3736_v12, %v3206_v37  ;;  %v3488_v63 = vsel %vm3445_vm2, %v11805_v8, %v11813_v15  ;;  %v11814_v19 = vld [vmem:[#allocation65_spill] sm:$0xff]  ;;  %v11816_v4 = vld [vmem:[#allocation12_spill] sm:$0xff] }
 0x312   : > { %v9072_v20 = vpop.permute.xlu0 %2781  ;;  %v3737_v22 = vmul.f32 %v8925_v35, %v3492_v0  ;;  %v3207_v31 = vadd.f32 %v3107_v51, %v11814_v19  ;;  %v3108_v12 = vmul.f32 %v8942_v32, %v2862_v60  ;;  %v2858_v24 = vsel %vm2815_vm1, %v11808_v27, %v11816_v4  ;;  %v11819_v19 = vld [vmem:[#allocation106_spill] sm:$0xff] }
 0x313   : > { %v9083_v38 = vpop.permute.xlu1 %2791  ;;  %11810 = vst [vmem:[#allocation145_spill] sm:$0xff] %v9092_v46  ;;  %v9109_v0 = vadd.f32 %v3714_v45, %v3184_v57  ;;  %v3131_v51 = vmul.f32 %v8876_v59, %v2871_v18  ;;  %v3738_v45 = vmul.f32 %v8959_v41, %v3488_v63  ;;  %v2867_v27 = vsel %vm2815_vm1, %v11812_v7, %v11819_v19  ;;  %v11821_v18 = vld [vmem:[#allocation67_spill] sm:$0xff] }
 0x314   : > { %3987 = vrot.lane.b32.xlu0 %v9067_v50, %s5757_s18  ;;  %v11817_v50 = vld [vmem:[#allocation205_spill] sm:$0xff]  ;;  %v9125_v60 = vadd.f32 %v3737_v22, %v3207_v31  ;;  %v3109_v59 = vmul.f32 %v8977_v29, %v2858_v24  ;;  %v3208_v22 = vadd.f32 %v3108_v12, %v11821_v18 }
 0x315   : > { %3981 = vrot.lane.b32.xlu1 %v9080_v5, %s5757_s18  ;;  %11815 = vst [vmem:[#allocation39_spill] sm:$0xff] %v9109_v0  ;;  %v3497_v8 = vsel %vm3445_vm2, %v11736_v21, %v11817_v50  ;;  %v11820_v5 = vld [vmem:[#allocation208_spill] sm:$0xff] }
 0x316   : > { %v9097_v43 = vpop.permute.xlu0 %2797  ;;  %11818 = vst [vmem:[#allocation97_spill] sm:$0xff] %v9125_v60  ;;  %v3484_v21 = vsel %vm3445_vm2, %v11813_v15, %v11820_v5  ;;  %v3761_v63 = vmul.f32 %v8888_v53, %v3497_v8  ;;  %v3132_v15 = vmul.f32 %v8911_v23, %v2867_v27  ;;  %v11826_v53 = vld [vmem:[#allocation181_spill] sm:$0xff]  ;;  %v11827_v8 = vld [vmem:[#allocation172_spill] sm:$0xff]  ;;  %v11831_v27 = vld [vmem:[#allocation71_spill] sm:$0xff] }
 0x317   : > { %11811 = vst [vmem:[#allocation164_spill] sm:$0xff] %v9097_v43  ;;  %v9111_v37 = vpop.permute.xlu1 %2783  ;;  %v9152_v43 = vadd.f32 %v3738_v45, %v3208_v22  ;;  %v3739_v12 = vmul.f32 %v8991_v54, %v3484_v21  ;;  %v2863_v18 = vsel %vm2815_vm1, %v11819_v19, %v11827_v8 }
 0x318   : > { %3967 = vrot.lane.b32.xlu0 %v9092_v46, %s5757_s18  ;;  %v11824_v46 = vld [vmem:[#allocation45_spill] sm:$0xff]  ;;  %v3232_v21 = vadd.f32 %v3132_v15, %v11831_v27  ;;  %v3133_v19 = vmul.f32 %v8942_v32, %v2863_v18  ;;  %v11837_v32 = vld [vmem:[#allocation211_spill] sm:$0xff]  ;;  %v11844_v27 = vld [vmem:[#allocation104_spill] sm:$0xff] }
 0x319   : > { %3989 = vrot.lane.b32.xlu1 %v9109_v0, %s5757_s18  ;;  %v11823_v0 = vld [vmem:[#allocation209_spill] sm:$0xff]  ;;  %v3231_v56 = vadd.f32 %v3131_v51, %v11824_v46  ;;  %11825 = vst [vmem:[#allocation43_spill] sm:$0xff] %v9152_v43  ;;  %v11830_v51 = vld [vmem:[#allocation207_spill] sm:$0xff] }
 0x31a   : > { %v9129_v57 = vpop.permute.xlu0 %2777  ;;  %v3493_v7 = vsel %vm3445_vm2, %v11817_v50, %v11823_v0  ;;  %v3489_v45 = vsel %vm3445_vm2, %v11823_v0, %v11830_v51 }
 0x31b   : > { %v9142_v31 = vpop.permute.xlu1 %2799  ;;  %v3762_v23 = vmul.f32 %v8925_v35, %v3493_v7  ;;  %v11834_v35 = vld [vmem:[#allocation109_spill] sm:$0xff]  ;;  %v3485_v7 = vsel %vm3445_vm2, %v11830_v51, %v11837_v32 }
 0x31c   : > { %11822 = vst [vmem:[#allocation42_spill] sm:$0xff] %v9142_v31  ;;  %3975 = vrot.lane.b32.xlu0 %v9125_v60, %s5757_s18  ;;  %v11828_v60 = vld [vmem:[#allocation68_spill] sm:$0xff]  ;;  %v9164_v31 = vadd.f32 %v3761_v63, %v3231_v56  ;;  %v3764_v18 = vmul.f32 %v8991_v54, %v3485_v7  ;;  %v11846_v54 = vld [vmem:[#allocation17_spill] sm:$0xff] }
 0x31d   : > { %4222 = vrot.lane.b32.xlu1 %v11826_v53, %s5758_s17  ;;  %v3209_v50 = vadd.f32 %v3109_v59, %v11828_v60  ;;  %v2859_v60 = vsel %vm2815_vm1, %v11827_v8, %v11834_v35  ;;  %v3763_v59 = vmul.f32 %v8959_v41, %v3489_v45  ;;  %v9188_v63 = vadd.f32 %v3762_v23, %v3232_v21  ;;  %v11841_v23 = vld [vmem:[#allocation24_spill] sm:$0xff]  ;;  %v11842_v45 = vld [vmem:[#allocation73_spill] sm:$0xff] }
 0x31e   : > { %v9157_v24 = vpop.permute.xlu0 %2793  ;;  %11829 = vst [vmem:[#allocation7_spill] sm:$0xff] %v9164_v31  ;;  %v3134_v15 = vmul.f32 %v8977_v29, %v2859_v60  ;;  %v9218_v21 = vrot.slane %v8386_v9, %v11844_v27  ;;  %v9237_v9 = vrot.slane %v11761_v14, %v11844_v27 }
 0x31f   : > { %v9167_v46 = vpop.permute.xlu1 %2779  ;;  %v9177_v22 = vadd.f32 %v3739_v12, %v3209_v50  ;;  %11835 = vst [vmem:[#allocation101_spill] sm:$0xff] %v9188_v63  ;;  %v11838_v12 = vld [vmem:[#allocation72_spill] sm:$0xff] }
 0x320   : > { %3983 = vrot.lane.b32.xlu0 %v9152_v43, %s5757_s18  ;;  %v3233_v53 = vadd.f32 %v3133_v19, %v11838_v12  ;;  %v3234_v51 = vadd.f32 %v3134_v15, %v11842_v45  ;;  %v9233_v15 = vld [vmem:[%s11022_s2 + $0x40] ss:$4 sm:$0xff] }
 0x321   : > { %11832 = vst [vmem:[#allocation180_spill] sm:$0xff] %v9177_v22  ;;  %3969 = vrot.lane.b32.xlu1 %v9164_v31, %s5757_s18  ;;  %v11857_v43 = vld [vmem:[#allocation110_spill] sm:$0xff] }
 0x322   : > { %v9181_v56 = vpop.permute.xlu0 %3931  ;;  %v9204_v8 = vadd.f32 %v3763_v59, %v3233_v53  ;;  %v9220_v19 = vadd.f32 %v3764_v18, %v3234_v51  ;;  %v11847_v59 = vld [vmem:[#allocation76_spill] sm:$0xff]  ;;  %v3478_v53 = vsel %vm3445_vm2, %v11790_v49, %v8834_v3  ;;  %v11851_v51 = vld [vmem:[#allocation22_spill] sm:$0xff] }
 0x323   : > { %11833 = vst [vmem:[#allocation111_spill] sm:$0xff] %v9181_v56  ;;  %v9190_v0 = vpop.permute.xlu1 %2795  ;;  %v2852_v7 = vsel %vm2815_vm1, %v11784_v6, %v11847_v59  ;;  %v9250_v6 = vld [vmem:[%s11022_s2 + $0x41] ss:$4 sm:$0xff] }
 0x324   : > { %11836 = vst [vmem:[#allocation21_spill] sm:$0xff] %v9190_v0  ;;  %3991 = vrot.lane.b32.xlu0 %v9177_v22, %s5757_s18  ;;  %11839 = vst [vmem:[#allocation138_spill] sm:$0xff] %v9204_v8  ;;  %v3060_v18 = vmul.f32 %v9218_v21, %v2852_v7  ;;  %v3690_v7 = vmul.f32 %v9237_v9, %v3478_v53  ;;  %v11856_v22 = vld [vmem:[#allocation60_spill] sm:$0xff]  ;;  %v9286_v53 = vrot.slane %v9233_v15, %v11857_v43  ;;  %v11859_v31 = vld [vmem:[#allocation150_spill] sm:$0xff] }
 0x325   : > { %3977 = vrot.lane.b32.xlu1 %v9188_v63, %s5757_s18  ;;  %11845 = vst [vmem:[#allocation185_spill] sm:$0xff] %v9220_v19  ;;  %v11869_v0 = vld [vmem:[#allocation212_spill] sm:$0xff] }
 0x326   : > { %v9202_v41 = vpop.permute.xlu0 %2785 }
 0x327   : > { %v9207_v50 = vpop.permute.xlu1 %3933 }
 0x328   : > { %11840 = vst [vmem:[#allocation80_spill] sm:$0xff] %v9207_v50  ;;  %4220 = vrot.lane.b32.xlu0 %v11841_v23, %s5758_s17  ;;  %v11849_v23 = vld [vmem:[#allocation113_spill] sm:$0xff] }
 0x329   : > { %3985 = vrot.lane.b32.xlu1 %v9204_v8, %s5757_s18  ;;  %v9255_v14 = vrot.slane %v9233_v15, %v11849_v23  ;;  %v9272_v56 = vrot.slane %v9250_v6, %v11849_v23  ;;  %v3160_v8 = vadd.f32 %v3060_v18, %v11856_v22  ;;  %v3479_v22 = vsel %vm3445_vm2, %v11802_v47, %v8857_v55 }
 0x32a   : > { %v9214_v29 = vpop.permute.xlu0 %2801  ;;  %v3470_v47 = vsel %vm3445_vm2, %v8863_v44, %v8850_v1 }
 0x32b   : > { %11843 = vst [vmem:[#allocation182_spill] sm:$0xff] %v9214_v29  ;;  %v9222_v60 = vpop.permute.xlu1 %2787  ;;  %v9301_v18 = vadd.f32 %v3690_v7, %v3160_v8  ;;  %v11865_v8 = vld [vmem:[#allocation119_spill] sm:$0xff] }
 0x32c   : > { %4224 = vrot.lane.b32.xlu0 %v11846_v54, %s5758_s17  ;;  %v11852_v54 = vld [vmem:[#allocation210_spill] sm:$0xff] }
 0x32d   : > { %3993 = vrot.lane.b32.xlu1 %v9220_v19, %s5757_s18  ;;  %v2848_v49 = vsel %vm2815_vm1, %v11847_v59, %v11852_v54  ;;  %v11854_v19 = vld [vmem:[#allocation176_spill] sm:$0xff]  ;;  %v3474_v59 = vsel %vm3445_vm2, %v8834_v3, %v8863_v44  ;;  %11861 = vst [vmem:[#allocation98_spill] sm:$0xff] %v9301_v18 }
 0x32e   : > { %v9241_v12 = vpop.permute.xlu0 %3939 }
 0x32f   : > { %11848 = vst [vmem:[#allocation192_spill] sm:$0xff] %v9241_v12  ;;  %v9257_v45 = vpop.permute.xlu1 %2803  ;;  %v11853_v12 = vld [vmem:[#allocation83_spill] sm:$0xff] }
 0x330   : > { %11850 = vst [vmem:[#allocation187_spill] sm:$0xff] %v9257_v45  ;;  %4228 = vrot.lane.b32.xlu0 %v11851_v51, %s5758_s17  ;;  %v2853_v50 = vsel %vm2815_vm1, %v11797_v42, %v11853_v12  ;;  %v3061_v42 = vmul.f32 %v9255_v14, %v2848_v49  ;;  %v9305_v49 = vrot.slane %v9250_v6, %v11857_v43  ;;  %v11864_v45 = vld [vmem:[#allocation213_spill] sm:$0xff]  ;;  %v11866_v43 = vld [vmem:[#allocation114_spill] sm:$0xff] }
 0x331   : > { %4226 = vrot.lane.b32.xlu1 %v11854_v19, %s5758_s17  ;;  %v3085_v19 = vmul.f32 %v9218_v21, %v2853_v50  ;;  %v11862_v50 = vld [vmem:[#allocation183_spill] sm:$0xff] }
 0x332   : > { %v9276_v51 = vpop.permute.xlu0 %3947  ;;  %v3161_v7 = vadd.f32 %v3061_v42, %v11865_v8  ;;  %v3475_v42 = vsel %vm3445_vm2, %v8857_v55, %v8878_v61 }
 0x333   : > { %11855 = vst [vmem:[#allocation32_spill] sm:$0xff] %v9276_v51  ;;  %v9288_v63 = vpop.permute.xlu1 %3941  ;;  %v11860_v51 = vld [vmem:[#allocation214_spill] sm:$0xff] }
 0x334   : > { %11858 = vst [vmem:[#allocation198_spill] sm:$0xff] %v9288_v63  ;;  %4232 = vrot.lane.b32.xlu0 %v11859_v31, %s5758_s17  ;;  %v2844_v3 = vsel %vm2815_vm1, %v11852_v54, %v11860_v51  ;;  %v3691_v31 = vmul.f32 %v9272_v56, %v3474_v59  ;;  %v2849_v54 = vsel %vm2815_vm1, %v11853_v12, %v11864_v45  ;;  %v11868_v12 = vld [vmem:[#allocation64_spill] sm:$0xff] }
 0x335   : > { %4230 = vrot.lane.b32.xlu1 %v11862_v50, %s5758_s17  ;;  %v9323_v59 = vrot.slane %v9233_v15, %v11866_v43  ;;  %v3062_v50 = vmul.f32 %v9286_v53, %v2844_v3  ;;  %v3185_v27 = vadd.f32 %v3085_v19, %v11868_v12  ;;  %v2840_v44 = vsel %vm2815_vm1, %v11860_v51, %v11869_v0  ;;  %v11871_v19 = vld [vmem:[#allocation156_spill] sm:$0xff] }
 0x336   : > { %v9310_v63 = vpop.permute.xlu0 %3955  ;;  %v3086_v3 = vmul.f32 %v9255_v14, %v2849_v54  ;;  %v9342_v8 = vadd.f32 %v3691_v31, %v3161_v7  ;;  %v11873_v51 = vld [vmem:[#allocation84_spill] sm:$0xff]  ;;  %v3466_v31 = vsel %vm3445_vm2, %v8850_v1, %v8872_v52  ;;  %v3471_v1 = vsel %vm3445_vm2, %v8878_v61, %v8866_v33 }
 0x337   : > { %11863 = vst [vmem:[#allocation190_spill] sm:$0xff] %v9310_v63  ;;  %v3715_v63 = vmul.f32 %v9237_v9, %v3479_v22  ;;  %v9327_v29 = vpop.permute.xlu1 %3949  ;;  %v3692_v22 = vmul.f32 %v9305_v49, %v3470_v47  ;;  %v2845_v55 = vsel %vm2815_vm1, %v11864_v45, %v11873_v51  ;;  %v3063_v54 = vmul.f32 %v9323_v59, %v2840_v44  ;;  %v11874_v47 = vld [vmem:[#allocation120_spill] sm:$0xff] }
 0x338   : > { %11867 = vst [vmem:[#allocation141_spill] sm:$0xff] %v9327_v29  ;;  %3995 = vrot.lane.b32.xlu0 %v9301_v18, %s5757_s18  ;;  %11870 = vst [vmem:[#allocation137_spill] sm:$0xff] %v9342_v8  ;;  %v9346_v29 = vrot.slane %v9250_v6, %v11866_v43  ;;  %v3162_v7 = vadd.f32 %v3062_v50, %v11874_v47  ;;  %v11877_v50 = vld [vmem:[#allocation122_spill] sm:$0xff]  ;;  %v3480_v61 = vsel %vm3445_vm2, %v11820_v5, %v8892_v10 }
 0x339   : > { %4234 = vrot.lane.b32.xlu1 %v11871_v19, %s5758_s17  ;;  %v9362_v43 = vadd.f32 %v3715_v63, %v3185_v27  ;;  %v3716_v19 = vmul.f32 %v9272_v56, %v3475_v42  ;;  %v3186_v63 = vadd.f32 %v3086_v3, %v11877_v50  ;;  %v3087_v27 = vmul.f32 %v9286_v53, %v2845_v55 }
 0x33a   : > { %v9350_v12 = vpop.permute.xlu0 %3935  ;;  %v9379_v44 = vadd.f32 %v3692_v22, %v3162_v7  ;;  %v3693_v42 = vmul.f32 %v9346_v29, %v3466_v31  ;;  %v11881_v22 = vld [vmem:[#allocation121_spill] sm:$0xff]  ;;  %v3717_v31 = vmul.f32 %v9305_v49, %v3471_v1 }
 0x33b   : > { %11872 = vst [vmem:[#allocation191_spill] sm:$0xff] %v9350_v12  ;;  %v9365_v18 = vpop.permute.xlu1 %3957  ;;  %v11876_v12 = vld [vmem:[#allocation170_spill] sm:$0xff]  ;;  %v3163_v55 = vadd.f32 %v3063_v54, %v11881_v22  ;;  %v9397_v7 = vadd.f32 %v3716_v19, %v3186_v63  ;;  %v3467_v54 = vsel %vm3445_vm2, %v8866_v33, %v8899_v11  ;;  %v3740_v22 = vmul.f32 %v9237_v9, %v3480_v61 }
 0x33c   : > { %11875 = vst [vmem:[#allocation107_spill] sm:$0xff] %v9365_v18  ;;  %4003 = vrot.lane.b32.xlu0 %v9342_v8, %s5757_s18  ;;  %v2854_v45 = vsel %vm2815_vm1, %v11816_v4, %v11876_v12  ;;  %11878 = vst [vmem:[#allocation5_spill] sm:$0xff] %v9379_v44  ;;  %v11880_v18 = vld [vmem:[#allocation215_spill] sm:$0xff]  ;;  %v11884_v8 = vld [vmem:[#allocation112_spill] sm:$0xff] }
 0x33d   : > { %3997 = vrot.lane.b32.xlu1 %v9362_v43, %s5757_s18  ;;  %v2841_v4 = vsel %vm2815_vm1, %v11873_v51, %v11880_v18  ;;  %v3110_v3 = vmul.f32 %v9218_v21, %v2854_v45  ;;  %v2850_v5 = vsel %vm2815_vm1, %v11876_v12, %v11884_v8  ;;  %v11885_v45 = vld [vmem:[#allocation123_spill] sm:$0xff]  ;;  %v9417_v63 = vadd.f32 %v3693_v42, %v3163_v55  ;;  %v11889_v55 = vld [vmem:[#allocation153_spill] sm:$0xff] }
 0x33e   : > { %v9384_v47 = vpop.permute.xlu0 %3943  ;;  %v3088_v19 = vmul.f32 %v9323_v59, %v2841_v4  ;;  %v3187_v1 = vadd.f32 %v3087_v27, %v11885_v45  ;;  %v3476_v12 = vsel %vm3445_vm2, %v8892_v10, %v8929_v25  ;;  %v3111_v4 = vmul.f32 %v9255_v14, %v2850_v5  ;;  %v11891_v5 = vld [vmem:[#allocation79_spill] sm:$0xff] }
 0x33f   : > { %11879 = vst [vmem:[#allocation189_spill] sm:$0xff] %v9384_v47  ;;  %v9399_v50 = vpop.permute.xlu1 %3937  ;;  %v11883_v47 = vld [vmem:[#allocation177_spill] sm:$0xff]  ;;  %v3718_v27 = vmul.f32 %v9346_v29, %v3467_v54  ;;  %v2846_v10 = vsel %vm2815_vm1, %v11884_v8, %v11889_v55 }
 0x340   : > { %11882 = vst [vmem:[#allocation155_spill] sm:$0xff] %v9399_v50  ;;  %4011 = vrot.lane.b32.xlu0 %v9379_v44, %s5757_s18  ;;  %v2855_v51 = vsel %vm2815_vm1, %v11834_v35, %v11883_v47  ;;  %v11887_v50 = vld [vmem:[#allocation70_spill] sm:$0xff]  ;;  %v9430_v44 = vadd.f32 %v3717_v31, %v3187_v1  ;;  %v11890_v31 = vld [vmem:[#allocation125_spill] sm:$0xff]  ;;  %v2851_v54 = vsel %vm2815_vm1, %v11883_v47, %v11891_v5 }
 0x341   : > { %4005 = vrot.lane.b32.xlu1 %v9397_v7, %s5757_s18  ;;  %v3210_v33 = vadd.f32 %v3110_v3, %v11887_v50  ;;  %v3135_v61 = vmul.f32 %v9218_v21, %v2855_v51  ;;  %v3481_v3 = vsel %vm3445_vm2, %v11837_v32, %v8913_v62  ;;  %v3188_v50 = vadd.f32 %v3088_v19, %v11890_v31  ;;  %v11893_v51 = vld [vmem:[#allocation126_spill] sm:$0xff] }
 0x342   : > { %v9422_v35 = vpop.permute.xlu0 %3951  ;;  %v3741_v21 = vmul.f32 %v9272_v56, %v3476_v12  ;;  %v3472_v32 = vsel %vm3445_vm2, %v8929_v25, %v8906_v16  ;;  %v3211_v19 = vadd.f32 %v3111_v4, %v11893_v51  ;;  %v3112_v1 = vmul.f32 %v9286_v53, %v2846_v10 }
 0x343   : > { %11886 = vst [vmem:[#allocation196_spill] sm:$0xff] %v9422_v35  ;;  %v9433_v42 = vpop.permute.xlu1 %3945  ;;  %v9451_v45 = vadd.f32 %v3740_v22, %v3210_v33  ;;  %v9464_v31 = vadd.f32 %v3718_v27, %v3188_v50  ;;  %v3765_v47 = vmul.f32 %v9237_v9, %v3481_v3  ;;  %v3136_v12 = vmul.f32 %v9255_v14, %v2851_v54  ;;  %v11895_v33 = vld [vmem:[#allocation87_spill] sm:$0xff]  ;;  %v11896_v27 = vld [vmem:[#allocation74_spill] sm:$0xff] }
 0x344   : > { %11888 = vst [vmem:[#allocation103_spill] sm:$0xff] %v9433_v42  ;;  %4019 = vrot.lane.b32.xlu0 %v9417_v63, %s5757_s18  ;;  %v2842_v25 = vsel %vm2815_vm1, %v11889_v55, %v11895_v33  ;;  %v3477_v4 = vsel %vm3445_vm2, %v8913_v62, %v8981_v26  ;;  %v3235_v10 = vadd.f32 %v3135_v61, %v11896_v27  ;;  %v11897_v55 = vld [vmem:[#allocation90_spill] sm:$0xff] }
 0x345   : > { %4013 = vrot.lane.b32.xlu1 %v9430_v44, %s5757_s18  ;;  %v3742_v9 = vmul.f32 %v9305_v49, %v3472_v32  ;;  %v9482_v3 = vadd.f32 %v3741_v21, %v3211_v19  ;;  %v9488_v50 = vrot.slane %v9233_v15, %v11722_v34  ;;  %v2847_v54 = vsel %vm2815_vm1, %v11891_v5, %v11897_v55  ;;  %v11898_v21 = vld [vmem:[#allocation127_spill] sm:$0xff]  ;;  %v11902_v35 = vld [vmem:[#allocation118_spill] sm:$0xff] }
 0x346   : > { %v9456_v8 = vpop.permute.xlu0 %3959  ;;  %v3468_v62 = vsel %vm3445_vm2, %v8906_v16, %v8964_v58  ;;  %v3113_v61 = vmul.f32 %v9323_v59, %v2842_v25  ;;  %v3212_v32 = vadd.f32 %v3112_v1, %v11898_v21  ;;  %v9500_v51 = vadd.f32 %v3765_v47, %v3235_v10  ;;  %v11903_v10 = vld [vmem:[#allocation129_spill] sm:$0xff]  ;;  %v11904_v21 = vld [vmem:[#allocation151_spill] sm:$0xff] }
 0x347   : > { %11892 = vst [vmem:[#allocation188_spill] sm:$0xff] %v9456_v8  ;;  %v9467_v22 = vpop.permute.xlu1 %3953  ;;  %v3766_v19 = vmul.f32 %v9272_v56, %v3477_v4  ;;  %v11900_v8 = vld [vmem:[#allocation148_spill] sm:$0xff]  ;;  %v2843_v1 = vsel %vm2815_vm1, %v11897_v55, %v11902_v35  ;;  %v3473_v56 = vsel %vm3445_vm2, %v8981_v26, %v8944_v17  ;;  %v3137_v47 = vmul.f32 %v9286_v53, %v2847_v54 }
 0x348   : > { %11894 = vst [vmem:[#allocation55_spill] sm:$0xff] %v9467_v22  ;;  %3999 = vrot.lane.b32.xlu0 %v9451_v45, %s5757_s18  ;;  %v2836_v5 = vsel %vm2815_vm1, %v11869_v0, %v11900_v8  ;;  %v11901_v22 = vld [vmem:[#allocation130_spill] sm:$0xff]  ;;  %v9521_v25 = vadd.f32 %v3742_v9, %v3212_v32  ;;  %v3743_v4 = vmul.f32 %v9346_v29, %v3468_v62 }
 0x349   : > { %4021 = vrot.lane.b32.xlu1 %v9464_v31, %s5757_s18  ;;  %v3236_v16 = vadd.f32 %v3136_v12, %v11901_v22  ;;  %v9526_v0 = vrot.slane %v9250_v6, %v11722_v34  ;;  %v9532_v12 = vrot.slane %v9233_v15, %v11731_v40  ;;  %v3064_v53 = vmul.f32 %v9488_v50, %v2836_v5 }
 0x34a   : > { %v3406_v14 = vpop.permute.xlu0 %3405  ;;  %v3213_v9 = vadd.f32 %v3113_v61, %v11903_v10  ;;  %v3767_v55 = vmul.f32 %v9305_v49, %v3473_v56  ;;  %v2837_v32 = vsel %vm2815_vm1, %v11880_v18, %v11904_v21  ;;  %v2832_v49 = vsel %vm2815_vm1, %v11900_v8, %v9004_v30  ;;  %v11905_v61 = vld [vmem:[#allocation131_spill] sm:$0xff] }
 0x34b   : > { %v9503_v27 = vpop.permute.xlu1 %3961  ;;  %v3462_v26 = vsel %vm3445_vm2, %v8872_v52, %v3406_v14  ;;  %v9540_v54 = vadd.f32 %v3766_v19, %v3236_v16  ;;  %v3469_v52 = vsel %vm3445_vm2, %v8944_v17, %v9019_v39  ;;  %v3237_v19 = vadd.f32 %v3137_v47, %v11905_v61 }
 0x34c   : > { %11899 = vst [vmem:[#allocation203_spill] sm:$0xff] %v9503_v27  ;;  %4007 = vrot.lane.b32.xlu0 %v9482_v3, %s5757_s18  ;;  %v3138_v27 = vmul.f32 %v9323_v59, %v2843_v1  ;;  %v9558_v5 = vadd.f32 %v3743_v4, %v3213_v9  ;;  %v3694_v16 = vmul.f32 %v9526_v0, %v3462_v26  ;;  %v11906_v1 = vld [vmem:[#allocation124_spill] sm:$0xff] }
 0x34d   : > { %4001 = vrot.lane.b32.xlu1 %v9500_v51, %s5757_s18  ;;  %v9565_v18 = vrot.slane %v9250_v6, %v11731_v40  ;;  %v9569_v17 = vrot.slane %v9233_v15, %v11774_v48  ;;  %v3164_v56 = vadd.f32 %v3064_v53, %v11906_v1  ;;  %v9574_v47 = vadd.f32 %v3767_v55, %v3237_v19  ;;  %v11907_v53 = vld [vmem:[#allocation133_spill] sm:$0xff] }
 0x34e   : > { %v3422_v22 = vpop.permute.xlu0 %3421  ;;  %v3768_v4 = vmul.f32 %v9346_v29, %v3469_v52  ;;  %v3065_v26 = vmul.f32 %v9532_v12, %v2832_v49  ;;  %v3089_v9 = vmul.f32 %v9488_v50, %v2837_v32  ;;  %v2828_v61 = vsel %vm2815_vm1, %v9004_v30, %v9072_v20 }
 0x34f   : > { %v3408_v62 = vpop.permute.xlu1 %3407  ;;  %v3238_v55 = vadd.f32 %v3138_v27, %v11907_v53  ;;  %v9589_v29 = vadd.f32 %v3694_v16, %v3164_v56  ;;  %v9593_v52 = vrot.slane %v9250_v6, %v11774_v48  ;;  %v9606_v30 = vrot.slane %v9233_v15, %v11782_v36  ;;  %v11908_v16 = vld [vmem:[#allocation81_spill] sm:$0xff] }
 0x350   : > { %4015 = vrot.lane.b32.xlu0 %v9521_v25, %s5757_s18  ;;  %v3066_v1 = vmul.f32 %v9569_v17, %v2828_v61  ;;  %v2824_v34 = vsel %vm2815_vm1, %v9072_v20, %v9038_v28  ;;  %v2829_v20 = vsel %vm2815_vm1, %v9053_v2, %v9111_v37 }
 0x351   : > { %4009 = vrot.lane.b32.xlu1 %v9540_v54, %s5757_s18  ;;  %v9610_v19 = vadd.f32 %v3768_v4, %v3238_v55  ;;  %v3067_v55 = vmul.f32 %v9606_v30, %v2824_v34  ;;  %v11914_v34 = vld [vmem:[#allocation89_spill] sm:$0xff] }
 0x352   : > { %v3414_v59 = vpop.permute.xlu0 %3413 }
 0x353   : > { %v3458_v8 = vsel %vm3445_vm2, %v3406_v14, %v3414_v59  ;;  %v3424_v10 = vpop.permute.xlu1 %3423  ;;  %v3463_v14 = vsel %vm3445_vm2, %v8899_v11, %v3408_v62  ;;  %v2833_v11 = vsel %vm2815_vm1, %v11904_v21, %v9053_v2  ;;  %v3454_v27 = vsel %vm3445_vm2, %v3414_v59, %v3422_v22  ;;  %v11909_v21 = vld [vmem:[#allocation128_spill] sm:$0xff] }
 0x354   : > { %4023 = vrot.lane.b32.xlu0 %v9558_v5, %s5757_s18  ;;  %v3695_v49 = vmul.f32 %v9565_v18, %v3458_v8  ;;  %v3165_v8 = vadd.f32 %v3065_v26, %v11908_v16  ;;  %v3719_v56 = vmul.f32 %v9526_v0, %v3463_v14  ;;  %v3189_v40 = vadd.f32 %v3089_v9, %v11909_v21  ;;  %v11913_v21 = vld [vmem:[#allocation15_spill] sm:$0xff] }
 0x355   : > { %4017 = vrot.lane.b32.xlu1 %v9574_v47, %s5757_s18  ;;  %v3090_v4 = vmul.f32 %v9532_v12, %v2833_v11  ;;  %v3696_v26 = vmul.f32 %v9593_v52, %v3454_v27  ;;  %v9630_v14 = vrot.slane %v9250_v6, %v11782_v36  ;;  %v2838_v2 = vsel %vm2815_vm1, %v11895_v33, %v11913_v21 }
 0x356   : > { %v9598_v32 = vpop.permute.xlu0 %3429  ;;  %v9626_v61 = vadd.f32 %v3695_v49, %v3165_v8  ;;  %v11911_v49 = vld [vmem:[#allocation116_spill] sm:$0xff]  ;;  %v9643_v27 = vadd.f32 %v3719_v56, %v3189_v40  ;;  %v3091_v40 = vmul.f32 %v9569_v17, %v2829_v20  ;;  %v2825_v33 = vsel %vm2815_vm1, %v9111_v37, %v9083_v38  ;;  %v11916_v20 = vld [vmem:[#allocation102_spill] sm:$0xff] }
 0x357   : > { %v3416_v53 = vpop.permute.xlu1 %3415  ;;  %v3166_v11 = vadd.f32 %v3066_v1, %v11911_v49  ;;  %v3190_v42 = vadd.f32 %v3090_v4, %v11914_v34  ;;  %v3114_v4 = vmul.f32 %v9488_v50, %v2838_v2  ;;  %v11917_v34 = vld [vmem:[#allocation19_spill] sm:$0xff] }
 0x358   : > { %4027 = vrot.lane.b32.xlu0 %v9589_v29, %s5757_s18  ;;  %v3459_v59 = vsel %vm3445_vm2, %v3408_v62, %v3416_v53  ;;  %11910 = vst [vmem:[#allocation46_spill] sm:$0xff] %v9626_v61  ;;  %v3450_v62 = vsel %vm3445_vm2, %v3422_v22, %v9598_v32  ;;  %11912 = vst [vmem:[#allocation199_spill] sm:$0xff] %v9643_v27  ;;  %v3455_v22 = vsel %vm3445_vm2, %v3416_v53, %v3424_v10 }
 0x359   : > { %4025 = vrot.lane.b32.xlu1 %v9610_v19, %s5757_s18  ;;  %v3720_v16 = vmul.f32 %v9565_v18, %v3459_v59  ;;  %v9658_v1 = vadd.f32 %v3696_v26, %v3166_v11  ;;  %v3697_v56 = vmul.f32 %v9630_v14, %v3450_v62  ;;  %v3167_v26 = vadd.f32 %v3067_v55, %v11916_v20 }
 0x35a   : > { %v3410_v9 = vpop.permute.xlu0 %3409  ;;  %v3721_v49 = vmul.f32 %v9593_v52, %v3455_v22  ;;  %v2839_v37 = vsel %vm2815_vm1, %v11902_v35, %v11917_v34 }
 0x35b   : > { %v9646_v8 = vpop.permute.xlu1 %3431  ;;  %11915 = vst [vmem:[#allocation36_spill] sm:$0xff] %v9658_v1  ;;  %v3464_v53 = vsel %vm3445_vm2, %v8964_v58, %v3410_v9  ;;  %v9673_v62 = vadd.f32 %v3720_v16, %v3190_v42  ;;  %v2834_v58 = vsel %vm2815_vm1, %v11913_v21, %v9129_v57  ;;  %v3092_v42 = vmul.f32 %v9606_v30, %v2825_v33  ;;  %v11918_v16 = vld [vmem:[#allocation13_spill] sm:$0xff]  ;;  %v11920_v21 = vld [vmem:[#allocation132_spill] sm:$0xff] }
 0x35c   : > { %4035 = vrot.lane.b32.xlu0 %v9626_v61, %s5757_s18  ;;  %v3451_v55 = vsel %vm3445_vm2, %v3424_v10, %v9646_v8  ;;  %v3191_v2 = vadd.f32 %v3091_v40, %v11918_v16  ;;  %v9690_v22 = vadd.f32 %v3697_v56, %v3167_v26  ;;  %v3744_v20 = vmul.f32 %v9526_v0, %v3464_v53 }
 0x35d   : > { %4029 = vrot.lane.b32.xlu1 %v9643_v27, %s5757_s18  ;;  %v3214_v61 = vadd.f32 %v3114_v4, %v11920_v21  ;;  %v3115_v27 = vmul.f32 %v9532_v12, %v2834_v58  ;;  %v3722_v33 = vmul.f32 %v9630_v14, %v3451_v55  ;;  %v3139_v56 = vmul.f32 %v9488_v50, %v2839_v37  ;;  %v11921_v4 = vld [vmem:[#allocation85_spill] sm:$0xff] }
 0x35e   : > { %v3426_v59 = vpop.permute.xlu0 %3425  ;;  %11919 = vst [vmem:[#allocation201_spill] sm:$0xff] %v9690_v22  ;;  %v9699_v10 = vadd.f32 %v3721_v49, %v3191_v2  ;;  %v2830_v53 = vsel %vm2815_vm1, %v9129_v57, %v9202_v41  ;;  %v3192_v26 = vadd.f32 %v3092_v42, %v11921_v4  ;;  %v2835_v49 = vsel %vm2815_vm1, %v11917_v34, %v9167_v46 }
 0x35f   : > { %v3412_v11 = vpop.permute.xlu1 %3411  ;;  %v9717_v58 = vadd.f32 %v3744_v20, %v3214_v61  ;;  %v3116_v42 = vmul.f32 %v9569_v17, %v2830_v53  ;;  %v2826_v2 = vsel %vm2815_vm1, %v9202_v41, %v9157_v24  ;;  %v11924_v20 = vld [vmem:[#allocation134_spill] sm:$0xff]  ;;  %v11925_v53 = vld [vmem:[#allocation31_spill] sm:$0xff] }
 0x360   : > { %4043 = vrot.lane.b32.xlu0 %v9658_v1, %s5757_s18  ;;  %v9728_v16 = vadd.f32 %v3722_v33, %v3192_v26  ;;  %v3117_v4 = vmul.f32 %v9606_v30, %v2826_v2  ;;  %v11926_v26 = vld [vmem:[#allocation171_spill] sm:$0xff] }
 0x361   : > { %4037 = vrot.lane.b32.xlu1 %v9673_v62, %s5757_s18 }
 0x362   : > { %v3418_v35 = vpop.permute.xlu0 %3417  ;;  %11923 = vst [vmem:[#allocation167_spill] sm:$0xff] %v9728_v16 }
 0x363   : > { %v3460_v1 = vsel %vm3445_vm2, %v3410_v9, %v3418_v35  ;;  %v3428_v40 = vpop.permute.xlu1 %3427  ;;  %v3465_v9 = vsel %vm3445_vm2, %v9019_v39, %v3412_v11  ;;  %v3456_v57 = vsel %vm3445_vm2, %v3418_v35, %v3426_v59  ;;  %v11922_v39 = vld [vmem:[#allocation14_spill] sm:$0xff]  ;;  %v3239_v35 = vadd.f32 %v3139_v56, %v11924_v20 }
 0x364   : > { %4051 = vrot.lane.b32.xlu0 %v9690_v22, %s5757_s18  ;;  %v3745_v50 = vmul.f32 %v9565_v18, %v3460_v1  ;;  %v3215_v55 = vadd.f32 %v3115_v27, %v11922_v39  ;;  %v3769_v34 = vmul.f32 %v9526_v0, %v3465_v9  ;;  %v3140_v1 = vmul.f32 %v9532_v12, %v2835_v49  ;;  %v5743_v0 = vld [vmem:[%s11022_s2] ss:$4 sm:$0xff] }
 0x365   : > { %4045 = vrot.lane.b32.xlu1 %v9699_v10, %s5757_s18  ;;  %v3746_v21 = vmul.f32 %v9593_v52, %v3456_v57  ;;  %v9750_v12 = vrot.slane %v5743_v0, %v11849_v23  ;;  %v3216_v49 = vadd.f32 %v3116_v42, %v11926_v26 }
 0x366   : > { %v9722_v37 = vpop.permute.xlu0 %3433  ;;  %v9742_v33 = vadd.f32 %v3745_v50, %v3215_v55  ;;  %v9764_v50 = vadd.f32 %v3769_v34, %v3239_v35  ;;  %v11930_v35 = vld [vmem:[#allocation51_spill] sm:$0xff] }
 0x367   : > { %v3420_v61 = vpop.permute.xlu1 %3419  ;;  %v3452_v56 = vsel %vm3445_vm2, %v3426_v59, %v9722_v37  ;;  %v9775_v0 = vadd.f32 %v3746_v21, %v3216_v49 }
 0x368   : > { %4031 = vrot.lane.b32.xlu0 %v9717_v58, %s5757_s18  ;;  %v3461_v27 = vsel %vm3445_vm2, %v3412_v11, %v3420_v61  ;;  %v2831_v11 = vsel %vm2815_vm1, %v9167_v46, %v9222_v60  ;;  %v11927_v46 = vld [vmem:[#allocation50_spill] sm:$0xff]  ;;  %v3457_v59 = vsel %vm3445_vm2, %v3420_v61, %v3428_v40  ;;  %v3747_v42 = vmul.f32 %v9630_v14, %v3452_v56  ;;  %v11928_v61 = vld [vmem:[#allocation21_spill] sm:$0xff] }
 0x369   : > { %4053 = vrot.lane.b32.xlu1 %v9728_v16, %s5757_s18  ;;  %v3770_v57 = vmul.f32 %v9565_v18, %v3461_v27  ;;  %v3240_v55 = vadd.f32 %v3140_v1, %v11927_v46  ;;  %v3141_v20 = vmul.f32 %v9569_v17, %v2831_v11  ;;  %v5744_v1 = vld [vmem:[%s11022_s2 + $0x1] ss:$4 sm:$0xff]  ;;  %v2827_v17 = vsel %vm2815_vm1, %v9222_v60, %v11928_v61 }
 0x36a   : > { %v2806_v41 = vpop.permute.xlu0 %2805  ;;  %v9787_v2 = vrot.slane %v5744_v1, %v11849_v23  ;;  %v11929_v27 = vld [vmem:[#allocation54_spill] sm:$0xff]  ;;  %v11931_v11 = vld [vmem:[#allocation173_spill] sm:$0xff]  ;;  %v11932_v60 = vld [vmem:[#allocation47_spill] sm:$0xff]  ;;  %v3142_v1 = vmul.f32 %v9606_v30, %v2827_v17 }
 0x36b   : > { %v2912_v9 = vsel %vm2815_vm1, %v2806_v41, %v11925_v53  ;;  %v9767_v39 = vpop.permute.xlu1 %3435  ;;  %v3538_v21 = vsel %vm3445_vm2, %v11930_v35, %v11929_v27  ;;  %v3217_v56 = vadd.f32 %v3117_v4, %v11931_v11  ;;  %v3771_v53 = vmul.f32 %v9593_v52, %v3457_v59  ;;  %v11933_v27 = vld [vmem:[#allocation175_spill] sm:$0xff]  ;;  %v11935_v52 = vld [vmem:[#allocation2_spill] sm:$0xff]  ;;  %v11936_v16 = vld [vmem:[#allocation104_spill] sm:$0xff] }
 0x36c   : > { %4039 = vrot.lane.b32.xlu0 %v9742_v33, %s5757_s18  ;;  %v3045_v34 = vmul.f32 %v9750_v12, %v2912_v9  ;;  %v9799_v9 = vadd.f32 %v3770_v57, %v3240_v55  ;;  %v3453_v49 = vsel %vm3445_vm2, %v3428_v40, %v9767_v39  ;;  %v3241_v4 = vadd.f32 %v3141_v20, %v11933_v27  ;;  %v5430_v27 = vld [vmem:[%s11022_s2 + $0x61] ss:$4 sm:$0x1] }
 0x36d   : > { %4033 = vrot.lane.b32.xlu1 %v9764_v50, %s5757_s18  ;;  %v9811_v11 = vadd.f32 %v3747_v42, %v3217_v56  ;;  %v3675_v59 = vmul.f32 %v9787_v2, %v3538_v21  ;;  %v9819_v40 = vrot.slane %v9233_v15, %v11936_v16  ;;  %v3772_v30 = vmul.f32 %v9630_v14, %v3453_v49  ;;  %v5426_v15 = vld [vmem:[%s11022_s2 + $0x60] ss:$4 sm:$0x1] }
 0x36e   : > { %v9781_v18 = vpop.permute.xlu0 %2809  ;;  %v3145_v57 = vadd.f32 %v3045_v34, %v11935_v52  ;;  %v9821_v22 = vadd.f32 %v3771_v53, %v3241_v4  ;;  %v11937_v34 = vld [vmem:[#allocation164_spill] sm:$0xff]  ;;  %v11938_v21 = vld [vmem:[#allocation178_spill] sm:$0xff]  ;;  %v9839_v14 = vrot.slane %v9250_v6, %v11936_v16  ;;  %v9859_v52 = vrot.slane %v5426_v15, %v11849_v23 }
 0x36f   : > { %v2808_v26 = vpop.permute.xlu1 %2807  ;;  %11934 = vst [vmem:[#allocation197_spill] sm:$0xff] %v9811_v11  ;;  %v2820_v17 = vsel %vm2815_vm1, %v9038_v28, %v11937_v34  ;;  %v3242_v56 = vadd.f32 %v3142_v1, %v11938_v21  ;;  %v11944_v15 = vld [vmem:[#allocation42_spill] sm:$0xff] }
 0x370   : > { %4047 = vrot.lane.b32.xlu0 %v9775_v0, %s5757_s18  ;;  %v2913_v46 = vsel %vm2815_vm1, %v2808_v26, %v11932_v60  ;;  %v3775_v49 = vadd.f32 %v3675_v59, %v3145_v57  ;;  %v11940_v60 = vld [vmem:[#allocation56_spill] sm:$0xff]  ;;  %v3068_v1 = vmul.f32 %v9819_v40, %v2820_v17 }
 0x371   : > { %4041 = vrot.lane.b32.xlu1 %v9799_v9, %s5757_s18  ;;  %v3070_v20 = vmul.f32 %v9750_v12, %v2913_v46  ;;  %v11941_v46 = vld [vmem:[#allocation53_spill] sm:$0xff]  ;;  %v9856_v4 = vadd.f32 %v3772_v30, %v3242_v56  ;;  %v11943_v57 = vld [vmem:[#allocation4_spill] sm:$0xff] }
 0x372   : > { %v3438_v55 = vpop.permute.xlu0 %3437  ;;  %v3539_v28 = vsel %vm3445_vm2, %v11941_v46, %v11940_v60  ;;  %v2816_v60 = vsel %vm2815_vm1, %v11937_v34, %v2806_v41  ;;  %v11945_v56 = vld [vmem:[#allocation48_spill] sm:$0xff] }
 0x373   : > { %v9825_v42 = vpop.permute.xlu1 %2811  ;;  %v3446_v6 = vsel %vm3445_vm2, %v9598_v32, %v3438_v55  ;;  %11942 = vst [vmem:[#allocation77_spill] sm:$0xff] %v9856_v4  ;;  %v3170_v59 = vadd.f32 %v3070_v20, %v11943_v57  ;;  %v9868_v32 = vrot.slane %v5430_v27, %v11849_v23  ;;  %v2821_v20 = vsel %vm2815_vm1, %v9083_v38, %v11944_v15 }
 0x374   : > { %4055 = vrot.lane.b32.xlu0 %v9811_v11, %s5757_s18  ;;  %v3698_v30 = vmul.f32 %v9839_v14, %v3446_v6  ;;  %v2914_v41 = vsel %vm2815_vm1, %v9781_v18, %v11945_v56  ;;  %v3542_v34 = vsel %vm3445_vm2, %v3438_v55, %v11930_v35  ;;  %v3069_v6 = vmul.f32 %v9859_v52, %v2816_v60  ;;  %v11951_v60 = vld [vmem:[#allocation69_spill] sm:$0xff] }
 0x375   : > { %4049 = vrot.lane.b32.xlu1 %v9821_v22, %s5757_s18  ;;  %v3093_v11 = vmul.f32 %v9819_v40, %v2821_v20  ;;  %v3095_v56 = vmul.f32 %v9750_v12, %v2914_v41  ;;  %v3699_v16 = vmul.f32 %v9868_v32, %v3542_v34  ;;  %v11953_v41 = vld [vmem:[#allocation49_spill] sm:$0xff] }
 0x376   : > { %v9843_v53 = vpop.permute.xlu0 %3963  ;;  %v2915_v34 = vsel %vm2815_vm1, %v9825_v42, %v11953_v41 }
 0x377   : > { %11939 = vst [vmem:[#allocation57_spill] sm:$0xff] %v9843_v53  ;;  %v3440_v21 = vpop.permute.xlu1 %3439  ;;  %v3700_v53 = vmul.f32 %v9787_v2, %v3539_v28  ;;  %v11946_v28 = vld [vmem:[#allocation168_spill] sm:$0xff]  ;;  %v3120_v41 = vmul.f32 %v9750_v12, %v2915_v34 }
 0x378   : > { %3875 = vrot.lane.b32.xlu0 %v3775_v49, %s5757_s18  ;;  %v3168_v27 = vadd.f32 %v3068_v1, %v11946_v28  ;;  %v3447_v38 = vsel %vm3445_vm2, %v9646_v8, %v3440_v21 }
 0x379   : > { %4057 = vrot.lane.b32.xlu1 %v9856_v4, %s5757_s18  ;;  %v3800_v4 = vadd.f32 %v3700_v53, %v3170_v59  ;;  %v2817_v53 = vsel %vm2815_vm1, %v11944_v15, %v2808_v26  ;;  %v3723_v8 = vmul.f32 %v9839_v14, %v3447_v38  ;;  %v3543_v26 = vsel %vm3445_vm2, %v3440_v21, %v11941_v46  ;;  %v11954_v15 = vld [vmem:[#allocation169_spill] sm:$0xff] }
 0x37a   : > { %v3442_v17 = vpop.permute.xlu0 %3441  ;;  %v9895_v35 = vadd.f32 %v3698_v30, %v3168_v27  ;;  %v11952_v30 = vld [vmem:[#allocation59_spill] sm:$0xff]  ;;  %v3193_v28 = vadd.f32 %v3093_v11, %v11954_v15  ;;  %v3094_v27 = vmul.f32 %v9859_v52, %v2817_v53  ;;  %v11957_v11 = vld [vmem:[#allocation182_spill] sm:$0xff] }
 0x37b   : > { %v9886_v57 = vpop.permute.xlu1 %3443  ;;  %v3540_v20 = vsel %vm3445_vm2, %v11952_v30, %v11951_v60  ;;  %v11960_v53 = vld [vmem:[#allocation75_spill] sm:$0xff] }
 0x37c   : > { %4176 = vrot.lane.b32.xlu0 %v3775_v49, %s5758_s17  ;;  %11947 = vst [vmem:[#allocation194_spill] sm:$0xff] %v9895_v35  ;;  %v11949_v49 = vld [vmem:[#allocation93_spill] sm:$0xff] }
 0x37d   : > { %3877 = vrot.lane.b32.xlu1 %v3800_v4, %s5757_s18  ;;  %v3169_v1 = vadd.f32 %v3069_v6, %v11949_v49  ;;  %v11955_v6 = vld [vmem:[#allocation6_spill] sm:$0xff] }
 0x37e   : > { %v9898_v55 = vpop.permute.xlu0 %3971  ;;  %v3195_v38 = vadd.f32 %v3095_v56, %v11955_v6 }
 0x37f   : > { %11948 = vst [vmem:[#allocation61_spill] sm:$0xff] %v9898_v55  ;;  %v9905_v59 = vpop.permute.xlu1 %3965  ;;  %v9923_v49 = vadd.f32 %v3699_v16, %v3169_v1  ;;  %v3725_v55 = vmul.f32 %v9787_v2, %v3540_v20  ;;  %v2822_v16 = vsel %vm2815_vm1, %v9157_v24, %v11957_v11  ;;  %v11961_v1 = vld [vmem:[#allocation66_spill] sm:$0xff]  ;;  %v3448_v20 = vsel %vm3445_vm2, %v9722_v37, %v3442_v17  ;;  %v11962_v24 = vld [vmem:[#allocation8_spill] sm:$0xff] }
 0x380   : > { %11950 = vst [vmem:[#allocation166_spill] sm:$0xff] %v9905_v59  ;;  %4059 = vrot.lane.b32.xlu0 %v9895_v35, %s5757_s18  ;;  %v3724_v59 = vmul.f32 %v9868_v32, %v3543_v26  ;;  %v9931_v35 = vadd.f32 %v3723_v8, %v3193_v28  ;;  %v3541_v8 = vsel %vm3445_vm2, %v11961_v1, %v11960_v53 }
 0x381   : > { %4178 = vrot.lane.b32.xlu1 %v3800_v4, %s5758_s17  ;;  %v11958_v4 = vld [vmem:[#allocation37_spill] sm:$0xff]  ;;  %v3825_v56 = vadd.f32 %v3725_v55, %v3195_v38  ;;  %v3118_v34 = vmul.f32 %v9819_v40, %v2822_v16  ;;  %v3220_v26 = vadd.f32 %v3120_v41, %v11962_v24  ;;  %v2818_v55 = vsel %vm2815_vm1, %v11957_v11, %v9781_v18  ;;  %v11965_v16 = vld [vmem:[#allocation174_spill] sm:$0xff]  ;;  %v11969_v24 = vld [vmem:[#allocation140_spill] sm:$0xff] }
 0x382   : > { %v9926_v60 = vpop.permute.xlu0 %3979  ;;  %v3194_v21 = vadd.f32 %v11958_v4, %v3094_v27  ;;  %v3750_v27 = vmul.f32 %v9787_v2, %v3541_v8  ;;  %v3748_v6 = vmul.f32 %v9839_v14, %v3448_v20  ;;  %v3544_v41 = vsel %vm3445_vm2, %v3442_v17, %v11952_v30 }
 0x383   : > { %11956 = vst [vmem:[#allocation200_spill] sm:$0xff] %v9926_v60  ;;  %v9933_v46 = vpop.permute.xlu1 %3973  ;;  %v3218_v18 = vadd.f32 %v3118_v34, %v11965_v16  ;;  %v3119_v2 = vmul.f32 %v9859_v52, %v2818_v55  ;;  %v3749_v53 = vmul.f32 %v9868_v32, %v3544_v41  ;;  %v3545_v55 = vsel %vm3445_vm2, %v9886_v57, %v11961_v1  ;;  %v11973_v1 = vld [vmem:[#allocation139_spill] sm:$0xff]  ;;  %v12000_v60 = vld [vmem:[#allocation92_spill] sm:$0xff] }
 0x384   : > { %4067 = vrot.lane.b32.xlu0 %v9923_v49, %s5757_s18  ;;  %v9955_v15 = vadd.f32 %v3724_v59, %v3194_v21  ;;  %v11964_v59 = vld [vmem:[#allocation187_spill] sm:$0xff]  ;;  %v3850_v4 = vadd.f32 %v3750_v27, %v3220_v26  ;;  %v3449_v21 = vsel %vm3445_vm2, %v9767_v39, %v9886_v57 }
 0x385   : > { %4061 = vrot.lane.b32.xlu1 %v9931_v35, %s5757_s18  ;;  %v2823_v38 = vsel %vm2815_vm1, %v11928_v61, %v11964_v59  ;;  %v9988_v8 = vadd.f32 %v3748_v6, %v3218_v18  ;;  %v2819_v30 = vsel %vm2815_vm1, %v11964_v59, %v9825_v42  ;;  %v3773_v34 = vmul.f32 %v9839_v14, %v3449_v21  ;;  %v11970_v42 = vld [vmem:[#allocation143_spill] sm:$0xff] }
 0x386   : > { %v9944_v12 = vpop.permute.xlu0 %3987  ;;  %v3143_v61 = vmul.f32 %v9819_v40, %v2823_v38  ;;  %v11968_v40 = vld [vmem:[#allocation162_spill] sm:$0xff]  ;;  %v11971_v27 = vld [vmem:[#allocation179_spill] sm:$0xff]  ;;  %v3144_v59 = vmul.f32 %v9859_v52, %v2819_v30  ;;  %v3774_v18 = vmul.f32 %v9868_v32, %v3545_v55 }
 0x387   : > { %11959 = vst [vmem:[#allocation58_spill] sm:$0xff] %v9944_v12  ;;  %v9957_v28 = vpop.permute.xlu1 %3981  ;;  %v4159_v26 = vsel %vm4075_vm3, %v11969_v24, %v11968_v40  ;;  %v11979_v24 = vld [vmem:[#allocation152_spill] sm:$0xff]  ;;  %v11980_v55 = vld [vmem:[#allocation159_spill] sm:$0xff] }
 0x388   : > { %11963 = vst [vmem:[#allocation100_spill] sm:$0xff] %v9957_v28  ;;  %3879 = vrot.lane.b32.xlu0 %v3825_v56, %s5757_s18  ;;  %v3243_v6 = vadd.f32 %v3143_v61, %v11971_v27  ;;  %v11974_v61 = vld [vmem:[#allocation193_spill] sm:$0xff] }
 0x389   : > { %4069 = vrot.lane.b32.xlu1 %v9955_v15, %s5757_s18  ;;  %v3244_v52 = vadd.f32 %v11974_v61, %v3144_v59 }
 0x38a   : > { %v9968_v37 = vpop.permute.xlu0 %3967  ;;  %v10023_v57 = vadd.f32 %v3773_v34, %v3243_v6  ;;  %v11978_v34 = vld [vmem:[#allocation115_spill] sm:$0xff]  ;;  %v11982_v6 = vld [vmem:[#allocation94_spill] sm:$0xff] }
 0x38b   : > { %v9979_v11 = vpop.permute.xlu1 %3989  ;;  %v10035_v30 = vadd.f32 %v3774_v18, %v3244_v52  ;;  %v10061_v18 = vld [vmem:[%s11022_s2 + $0x2] ss:$4 sm:$0xff] }
 0x38c   : > { %11966 = vst [vmem:[#allocation202_spill] sm:$0xff] %v9979_v11  ;;  %4180 = vrot.lane.b32.xlu0 %v3825_v56, %s5758_s17  ;;  %v11967_v56 = vld [vmem:[#allocation195_spill] sm:$0xff]  ;;  %v11984_v52 = vld [vmem:[#allocation82_spill] sm:$0xff]  ;;  %v11989_v11 = vld [vmem:[#allocation9_spill] sm:$0xff] }
 0x38d   : > { %3881 = vrot.lane.b32.xlu1 %v3850_v4, %s5757_s18  ;;  %v3219_v20 = vadd.f32 %v3119_v2, %v11967_v56  ;;  %v11977_v56 = vld [vmem:[#allocation136_spill] sm:$0xff] }
 0x38e   : > { %v9991_v17 = vpop.permute.xlu0 %3975 }
 0x38f   : > { %v9999_v39 = vpop.permute.xlu1 %4222  ;;  %v10017_v38 = vadd.f32 %v3749_v53, %v3219_v20 }
 0x390   : > { %4063 = vrot.lane.b32.xlu0 %v9988_v8, %s5757_s18  ;;  %v4456_v14 = vsel %vm4376_vm4, %v11970_v42, %v9999_v39 }
 0x391   : > { %v4556_v41 = vsub.f32 %v4456_v14, %v4159_v26  ;;  %4182 = vrot.lane.b32.xlu1 %v3850_v4, %s5758_s17 }
 0x392   : > { %v10020_v16 = vpop.permute.xlu0 %3983 }
 0x393   : > { %11972 = vst [vmem:[#allocation62_spill] sm:$0xff] %v10020_v16  ;;  %v4785_v2 = vmul.f32 %v11973_v1, %v4556_v41  ;;  %v10026_v21 = vpop.permute.xlu1 %3969  ;;  %v11983_v41 = vld [vmem:[#allocation154_spill] sm:$0xff] }
 0x394   : > { %4071 = vrot.lane.b32.xlu0 %v10017_v38, %s5757_s18 }
 0x395   : > { %v4885_v53 = vadd.f32 %v4785_v2, %v4159_v26  ;;  %4065 = vrot.lane.b32.xlu1 %v10023_v57, %s5757_s18  ;;  %v4158_v26 = vsel %vm4075_vm3, %v11979_v24, %v11978_v34  ;;  %v4604_v2 = vrot.slane %v10061_v18, %v11774_v48  ;;  %v11986_v24 = vld [vmem:[#allocation86_spill] sm:$0xff] }
 0x396   : > { %v10033_v4 = vpop.permute.xlu0 %3991 }
 0x397   : > { %11975 = vst [vmem:[#allocation206_spill] sm:$0xff] %v10033_v4  ;;  %4985 = vst [vmem:[%s8493_s28 + $0x278] sm:$0xff] %v4885_v53  ;;  %v10038_v32 = vpop.permute.xlu1 %3977  ;;  %v11985_v53 = vld [vmem:[#allocation160_spill] sm:$0xff] }
 0x398   : > { %11976 = vst [vmem:[#allocation40_spill] sm:$0xff] %v10038_v32  ;;  %4236 = vrot.lane.b32.xlu0 %v11977_v56, %s5758_s17  ;;  %v4152_v56 = vsel %vm4075_vm3, %v11985_v53, %v11984_v52  ;;  %v11990_v53 = vld [vmem:[#allocation34_spill] sm:$0xff] }
 0x399   : > { %4073 = vrot.lane.b32.xlu1 %v10035_v30, %s5757_s18 }
 0x39a   : > { %v4221_v20 = vpop.permute.xlu0 %4220 }
 0x39b   : > { %v4455_v42 = vsel %vm4376_vm4, %v11980_v55, %v4221_v20  ;;  %v10051_v14 = vpop.permute.xlu1 %3985 }
 0x39c   : > { %11981 = vst [vmem:[#allocation16_spill] sm:$0xff] %v10051_v14  ;;  %v4531_v27 = vsub.f32 %v4455_v42, %v4158_v26  ;;  %4240 = vrot.lane.b32.xlu0 %v11982_v6, %s5758_s17  ;;  %v11988_v6 = vld [vmem:[#allocation10_spill] sm:$0xff]  ;;  %v11994_v14 = vld [vmem:[#allocation88_spill] sm:$0xff] }
 0x39d   : > { %4238 = vrot.lane.b32.xlu1 %v11983_v41, %s5758_s17 }
 0x39e   : > { %v4760_v59 = vmul.f32 %v11973_v1, %v4531_v27  ;;  %v4225_v61 = vpop.permute.xlu0 %4224 }
 0x39f   : > { %v4449_v1 = vsel %vm4376_vm4, %v11986_v24, %v4225_v61  ;;  %v10072_v42 = vpop.permute.xlu1 %3993  ;;  %v4154_v24 = vsel %vm4075_vm3, %v11978_v34, %v11990_v53 }
 0x3a0   : > { %v4860_v55 = vadd.f32 %v4760_v59, %v4158_v26  ;;  %11987 = vst [vmem:[#allocation63_spill] sm:$0xff] %v10072_v42  ;;  %v4482_v27 = vsub.f32 %v4449_v1, %v4152_v56  ;;  %4244 = vrot.lane.b32.xlu0 %v11988_v6, %s5758_s17  ;;  %v11993_v6 = vld [vmem:[#allocation135_spill] sm:$0xff] }
 0x3a1   : > { %4242 = vrot.lane.b32.xlu1 %v11989_v11, %s5758_s17 }
 0x3a2   : > { %4960 = vst [vmem:[%s8493_s28 + $0x1b0] sm:$0xff] %v4860_v55  ;;  %v4711_v41 = vmul.f32 %v4604_v2, %v4482_v27  ;;  %v10079_v4 = vpop.permute.xlu0 %4228  ;;  %v11991_v55 = vld [vmem:[#allocation149_spill] sm:$0xff] }
 0x3a3   : > { %v4451_v26 = vsel %vm4376_vm4, %v4221_v20, %v10079_v4  ;;  %v4227_v1 = vpop.permute.xlu1 %4226  ;;  %v11992_v27 = vld [vmem:[#allocation161_spill] sm:$0xff] }
 0x3a4   : > { %v4811_v59 = vadd.f32 %v4711_v41, %v4152_v56  ;;  %v4532_v42 = vsub.f32 %v4451_v26, %v4154_v24  ;;  %4248 = vrot.lane.b32.xlu0 %v11991_v55, %s5758_s17  ;;  %v4153_v11 = vsel %vm4075_vm3, %v11993_v6, %v11992_v27  ;;  %v4450_v12 = vsel %vm4376_vm4, %v11994_v14, %v4227_v1  ;;  %v11995_v20 = vld [vmem:[#allocation29_spill] sm:$0xff]  ;;  %v11996_v26 = vld [vmem:[#allocation147_spill] sm:$0xff] }
 0x3a5   : > { %v4507_v34 = vsub.f32 %v4450_v12, %v4153_v11  ;;  %4246 = vrot.lane.b32.xlu1 %v11995_v20, %s5758_s17  ;;  %v10102_v56 = vrot.slane %v10061_v18, %v11782_v36  ;;  %v4148_v55 = vsel %vm4075_vm3, %v11984_v52, %v11996_v26  ;;  %v11997_v20 = vld [vmem:[#allocation108_spill] sm:$0xff] }
 0x3a6   : > { %4911 = vst [vmem:[%s8493_s28 + $0x28] sm:$0xff] %v4811_v59  ;;  %v4761_v28 = vmul.f32 %v4604_v2, %v4532_v42  ;;  %v10104_v41 = vpop.permute.xlu0 %4232  ;;  %v11998_v36 = vld [vmem:[#allocation144_spill] sm:$0xff] }
 0x3a7   : > { %v4445_v12 = vsel %vm4376_vm4, %v4225_v61, %v10104_v41  ;;  %v4736_v14 = vmul.f32 %v4604_v2, %v4507_v34  ;;  %v10113_v59 = vpop.permute.xlu1 %4230  ;;  %v4155_v16 = vsel %vm4075_vm3, %v11968_v40, %v11998_v36  ;;  %v11999_v34 = vld [vmem:[#allocation157_spill] sm:$0xff] }
 0x3a8   : > { %v4861_v42 = vadd.f32 %v4761_v28, %v4154_v24  ;;  %v4483_v6 = vsub.f32 %v4445_v12, %v4148_v55  ;;  %4252 = vrot.lane.b32.xlu0 %v11997_v20, %s5758_s17  ;;  %v4452_v52 = vsel %vm4376_vm4, %v9999_v39, %v10113_v59  ;;  %v12001_v39 = vld [vmem:[#allocation163_spill] sm:$0xff] }
 0x3a9   : > { %v4836_v61 = vadd.f32 %v4736_v14, %v4153_v11  ;;  %v4557_v28 = vsub.f32 %v4452_v52, %v4155_v16  ;;  %4250 = vrot.lane.b32.xlu1 %v11999_v34, %s5758_s17  ;;  %v4149_v11 = vsel %vm4075_vm3, %v11992_v27, %v12001_v39  ;;  %v12007_v34 = vld [vmem:[#allocation30_spill] sm:$0xff] }
 0x3aa   : > { %4961 = vst [vmem:[%s8493_s28 + $0x1b8] sm:$0xff] %v4861_v42  ;;  %v4712_v24 = vmul.f32 %v10102_v56, %v4483_v6  ;;  %v10129_v12 = vpop.permute.xlu0 %3995 }
 0x3ab   : > { %4936 = vst [vmem:[%s8493_s28 + $0xf0] sm:$0xff] %v4836_v61  ;;  %v4786_v20 = vmul.f32 %v4604_v2, %v4557_v28  ;;  %v10132_v32 = vpop.permute.xlu1 %4234  ;;  %v12002_v2 = vld [vmem:[#allocation44_spill] sm:$0xff]  ;;  %v12003_v61 = vld [vmem:[#allocation33_spill] sm:$0xff] }
 0x3ac   : > { %v4812_v40 = vadd.f32 %v4712_v24, %v4148_v55  ;;  %4256 = vrot.lane.b32.xlu0 %v12000_v60, %s5758_s17  ;;  %v4446_v14 = vsel %vm4376_vm4, %v4227_v1, %v10132_v32  ;;  %v12004_v28 = vld [vmem:[#allocation28_spill] sm:$0xff]  ;;  %v12006_v24 = vld [vmem:[#allocation142_spill] sm:$0xff] }
 0x3ad   : > { %v4886_v42 = vadd.f32 %v4786_v20, %v4155_v16  ;;  %v4508_v6 = vsub.f32 %v4446_v14, %v4149_v11  ;;  %4254 = vrot.lane.b32.xlu1 %v12002_v2, %s5758_s17  ;;  %v12011_v14 = vld [vmem:[#allocation165_spill] sm:$0xff]  ;;  %v12013_v2 = vld [vmem:[#allocation27_spill] sm:$0xff] }
 0x3ae   : > { %4912 = vst [vmem:[%s8493_s28 + $0x30] sm:$0xff] %v4812_v40  ;;  %v10146_v55 = vpop.permute.xlu0 %4003 }
 0x3af   : > { %4986 = vst [vmem:[%s8493_s28 + $0x280] sm:$0xff] %v4886_v42  ;;  %v4737_v60 = vmul.f32 %v10102_v56, %v4508_v6  ;;  %v10150_v52 = vpop.permute.xlu1 %3997 }
 0x3b0   : > { %4260 = vrot.lane.b32.xlu0 %v12003_v61, %s5758_s17 }
 0x3b1   : > { %v4837_v27 = vadd.f32 %v4737_v60, %v4149_v11  ;;  %4258 = vrot.lane.b32.xlu1 %v12004_v28, %s5758_s17  ;;  %v12010_v11 = vld [vmem:[#allocation145_spill] sm:$0xff]  ;;  %v12014_v60 = vld [vmem:[#allocation7_spill] sm:$0xff] }
 0x3b2   : > { %v10156_v16 = vpop.permute.xlu0 %4011  ;;  %v12015_v28 = vld [vmem:[#allocation97_spill] sm:$0xff] }
 0x3b3   : > { %12005 = vst [vmem:[#allocation146_spill] sm:$0xff] %v10156_v16  ;;  %4937 = vst [vmem:[%s8493_s28 + $0xf8] sm:$0xff] %v4837_v27  ;;  %v10159_v1 = vpop.permute.xlu1 %4005  ;;  %v12056_v16 = vld [vmem:[#allocation52_spill] sm:$0xff] }
 0x3b4   : > { %4264 = vrot.lane.b32.xlu0 %v12006_v24, %s5758_s17  ;;  %v12016_v24 = vld [vmem:[#allocation95_spill] sm:$0xff] }
 0x3b5   : > { %4262 = vrot.lane.b32.xlu1 %v12007_v34, %s5758_s17 }
 0x3b6   : > { %v10165_v20 = vpop.permute.xlu0 %4019 }
 0x3b7   : > { %12008 = vst [vmem:[#allocation204_spill] sm:$0xff] %v10165_v20  ;;  %v10167_v40 = vpop.permute.xlu1 %4013  ;;  %v12023_v20 = vld [vmem:[#allocation43_spill] sm:$0xff] }
 0x3b8   : > { %12009 = vst [vmem:[#allocation65_spill] sm:$0xff] %v10167_v40  ;;  %4268 = vrot.lane.b32.xlu0 %v12010_v11, %s5758_s17 }
 0x3b9   : > { %4266 = vrot.lane.b32.xlu1 %v12011_v14, %s5758_s17  ;;  %v12019_v14 = vld [vmem:[#allocation78_spill] sm:$0xff] }
 0x3ba   : > { %v10173_v42 = vpop.permute.xlu0 %3999 }
 0x3bb   : > { %v10175_v6 = vpop.permute.xlu1 %4021 }
 0x3bc   : > { %12012 = vst [vmem:[#allocation12_spill] sm:$0xff] %v10175_v6  ;;  %4272 = vrot.lane.b32.xlu0 %v12013_v2, %s5758_s17  ;;  %v12020_v2 = vld [vmem:[#allocation101_spill] sm:$0xff] }
 0x3bd   : > { %4270 = vrot.lane.b32.xlu1 %v12014_v60, %s5758_s17 }
 0x3be   : > { %v10181_v61 = vpop.permute.xlu0 %4007 }
 0x3bf   : > { %v10183_v27 = vpop.permute.xlu1 %4001 }
 0x3c0   : > { %4276 = vrot.lane.b32.xlu0 %v12015_v28, %s5758_s17  ;;  %v12024_v28 = vld [vmem:[#allocation41_spill] sm:$0xff] }
 0x3c1   : > { %4274 = vrot.lane.b32.xlu1 %v12016_v24, %s5758_s17 }
 0x3c2   : > { %v10189_v34 = vpop.permute.xlu0 %4015 }
 0x3c3   : > { %12017 = vst [vmem:[#allocation205_spill] sm:$0xff] %v10189_v34  ;;  %v10191_v11 = vpop.permute.xlu1 %4009  ;;  %v12027_v34 = vld [vmem:[#allocation38_spill] sm:$0xff] }
 0x3c4   : > { %12018 = vst [vmem:[#allocation106_spill] sm:$0xff] %v10191_v11  ;;  %4280 = vrot.lane.b32.xlu0 %v12019_v14, %s5758_s17  ;;  %v12028_v14 = vld [vmem:[#allocation138_spill] sm:$0xff]  ;;  %v12055_v11 = vld [vmem:[#allocation99_spill] sm:$0xff] }
 0x3c5   : > { %4278 = vrot.lane.b32.xlu1 %v12020_v2, %s5758_s17 }
 0x3c6   : > { %v10197_v60 = vpop.permute.xlu0 %4023 }
 0x3c7   : > { %12021 = vst [vmem:[#allocation208_spill] sm:$0xff] %v10197_v60  ;;  %v10199_v6 = vpop.permute.xlu1 %4017 }
 0x3c8   : > { %12022 = vst [vmem:[#allocation67_spill] sm:$0xff] %v10199_v6  ;;  %4284 = vrot.lane.b32.xlu0 %v12023_v20, %s5758_s17  ;;  %v12031_v6 = vld [vmem:[#allocation180_spill] sm:$0xff]  ;;  %v12032_v20 = vld [vmem:[#allocation39_spill] sm:$0xff] }
 0x3c9   : > { %4282 = vrot.lane.b32.xlu1 %v12024_v28, %s5758_s17 }
 0x3ca   : > { %v10205_v24 = vpop.permute.xlu0 %4027 }
 0x3cb   : > { %12025 = vst [vmem:[#allocation209_spill] sm:$0xff] %v10205_v24  ;;  %v10207_v40 = vpop.permute.xlu1 %4025 }
 0x3cc   : > { %12026 = vst [vmem:[#allocation45_spill] sm:$0xff] %v10207_v40  ;;  %4288 = vrot.lane.b32.xlu0 %v12027_v34, %s5758_s17  ;;  %v12035_v40 = vld [vmem:[#allocation98_spill] sm:$0xff]  ;;  %v12036_v34 = vld [vmem:[#allocation185_spill] sm:$0xff] }
 0x3cd   : > { %4286 = vrot.lane.b32.xlu1 %v12028_v14, %s5758_s17 }
 0x3ce   : > { %v10213_v2 = vpop.permute.xlu0 %4035 }
 0x3cf   : > { %12029 = vst [vmem:[#allocation181_spill] sm:$0xff] %v10213_v2  ;;  %v10215_v60 = vpop.permute.xlu1 %4029 }
 0x3d0   : > { %12030 = vst [vmem:[#allocation172_spill] sm:$0xff] %v10215_v60  ;;  %4292 = vrot.lane.b32.xlu0 %v12031_v6, %s5758_s17 }
 0x3d1   : > { %4290 = vrot.lane.b32.xlu1 %v12032_v20, %s5758_s17 }
 0x3d2   : > { %v10221_v28 = vpop.permute.xlu0 %4043 }
 0x3d3   : > { %12033 = vst [vmem:[#allocation68_spill] sm:$0xff] %v10221_v28  ;;  %v10223_v24 = vpop.permute.xlu1 %4037 }
 0x3d4   : > { %12034 = vst [vmem:[#allocation207_spill] sm:$0xff] %v10223_v24  ;;  %4296 = vrot.lane.b32.xlu0 %v12035_v40, %s5758_s17  ;;  %v12040_v24 = vld [vmem:[#allocation137_spill] sm:$0xff] }
 0x3d5   : > { %4294 = vrot.lane.b32.xlu1 %v12036_v34, %s5758_s17 }
 0x3d6   : > { %v4052_v14 = vpop.permute.xlu0 %4051 }
 0x3d7   : > { %v10232_v2 = vsel %vm4075_vm3, %v10221_v28, %v4052_v14  ;;  %v10234_v6 = vpop.permute.xlu1 %4045 }
 0x3d8   : > { %12037 = vst [vmem:[#allocation71_spill] sm:$0xff] %v10232_v2  ;;  %12038 = vst [vmem:[#allocation109_spill] sm:$0xff] %v10234_v6  ;;  %4300 = vrot.lane.b32.xlu0 %v9451_v45, %s5758_s17 }
 0x3d9   : > { %4298 = vrot.lane.b32.xlu1 %v9362_v43, %s5758_s17 }
 0x3da   : > { %v10240_v20 = vpop.permute.xlu0 %4031 }
 0x3db   : > { %12039 = vst [vmem:[#allocation211_spill] sm:$0xff] %v10240_v20  ;;  %v4054_v40 = vpop.permute.xlu1 %4053 }
 0x3dc   : > { %4304 = vrot.lane.b32.xlu0 %v12040_v24, %s5758_s17  ;;  %v10247_v34 = vsel %vm4075_vm3, %v10234_v6, %v4054_v40  ;;  %v12045_v6 = vld [vmem:[#allocation5_spill] sm:$0xff] }
 0x3dd   : > { %12041 = vst [vmem:[#allocation72_spill] sm:$0xff] %v10247_v34  ;;  %4302 = vrot.lane.b32.xlu1 %v9500_v51, %s5758_s17 }
 0x3de   : > { %v4040_v2 = vpop.permute.xlu0 %4039 }
 0x3df   : > { %v10254_v45 = vsel %vm4075_vm3, %v10240_v20, %v4040_v2  ;;  %v10256_v43 = vpop.permute.xlu1 %4033 }
 0x3e0   : > { %12042 = vst [vmem:[#allocation24_spill] sm:$0xff] %v10254_v45  ;;  %12043 = vst [vmem:[#allocation73_spill] sm:$0xff] %v10256_v43  ;;  %4308 = vrot.lane.b32.xlu0 %v9482_v3, %s5758_s17  ;;  %v12050_v45 = vld [vmem:[#allocation11_spill] sm:$0xff] }
 0x3e1   : > { %4306 = vrot.lane.b32.xlu1 %v9397_v7, %s5758_s17 }
 0x3e2   : > { %v4048_v24 = vpop.permute.xlu0 %4047 }
 0x3e3   : > { %v10264_v34 = vsel %vm4075_vm3, %v4040_v2, %v4048_v24  ;;  %v4042_v51 = vpop.permute.xlu1 %4041 }
 0x3e4   : > { %12044 = vst [vmem:[#allocation17_spill] sm:$0xff] %v10264_v34  ;;  %4312 = vrot.lane.b32.xlu0 %v12045_v6, %s5758_s17  ;;  %v10271_v28 = vsel %vm4075_vm3, %v10256_v43, %v4042_v51  ;;  %v12049_v34 = vld [vmem:[#allocation110_spill] sm:$0xff] }
 0x3e5   : > { %12046 = vst [vmem:[#allocation76_spill] sm:$0xff] %v10271_v28  ;;  %4310 = vrot.lane.b32.xlu1 %v9540_v54, %s5758_s17  ;;  %v10292_v54 = vrot.slane %v10061_v18, %v12049_v34  ;;  %v12052_v43 = vld [vmem:[#allocation18_spill] sm:$0xff] }
 0x3e6   : > { %v10275_v3 = vpop.permute.xlu0 %4055 }
 0x3e7   : > { %v10280_v7 = vsel %vm4075_vm3, %v4048_v24, %v10275_v3  ;;  %v4050_v2 = vpop.permute.xlu1 %4049  ;;  %v12051_v24 = vld [vmem:[#allocation91_spill] sm:$0xff] }
 0x3e8   : > { %12047 = vst [vmem:[#allocation113_spill] sm:$0xff] %v10280_v7  ;;  %4316 = vrot.lane.b32.xlu0 %v9521_v25, %s5758_s17  ;;  %v10286_v6 = vsel %vm4075_vm3, %v4042_v51, %v4050_v2  ;;  %v4465_v7 = vsel %vm4376_vm4, %v12051_v24, %v12050_v45 }
 0x3e9   : > { %12048 = vst [vmem:[#allocation22_spill] sm:$0xff] %v10286_v6  ;;  %4314 = vrot.lane.b32.xlu1 %v9430_v44, %s5758_s17 }
 0x3ea   : > { %v3876_v28 = vpop.permute.xlu0 %3875 }
 0x3eb   : > { %v4168_v25 = vsel %vm4075_vm3, %v3876_v28, %v12052_v43  ;;  %v10301_v51 = vpop.permute.xlu1 %4057 }
 0x3ec   : > { %v4478_v6 = vsub.f32 %v4465_v7, %v4168_v25  ;;  %4320 = vrot.lane.b32.xlu0 %v9417_v63, %s5758_s17  ;;  %v10308_v44 = vsel %vm4075_vm3, %v4050_v2, %v10301_v51  ;;  %v12054_v7 = vld [vmem:[#allocation96_spill] sm:$0xff] }
 0x3ed   : > { %12053 = vst [vmem:[#allocation210_spill] sm:$0xff] %v10308_v44  ;;  %4318 = vrot.lane.b32.xlu1 %v9574_v47, %s5758_s17  ;;  %v4466_v63 = vsel %vm4376_vm4, %v12055_v11, %v12054_v7  ;;  %v12060_v44 = vld [vmem:[#allocation25_spill] sm:$0xff] }
 0x3ee   : > { %v4707_v60 = vmul.f32 %v10292_v54, %v4478_v6  ;;  %v10313_v45 = vpop.permute.xlu0 %4176 }
 0x3ef   : > { %v3878_v43 = vpop.permute.xlu1 %3877 }
 0x3f0   : > { %v4807_v20 = vadd.f32 %v4707_v60, %v4168_v25  ;;  %4324 = vrot.lane.b32.xlu0 %v9558_v5, %s5758_s17  ;;  %v4169_v2 = vsel %vm4075_vm3, %v3878_v43, %v12056_v16  ;;  %v10340_v16 = vrot.slane %v10061_v18, %v11849_v23 }
 0x3f1   : > { %v4503_v6 = vsub.f32 %v4466_v63, %v4169_v2  ;;  %4322 = vrot.lane.b32.xlu1 %v9464_v31, %s5758_s17 }
 0x3f2   : > { %4907 = vst [vmem:[%s8493_s28 + $0x8] sm:$0xff] %v4807_v20  ;;  %v4060_v47 = vpop.permute.xlu0 %4059 }
 0x3f3   : > { %v10329_v60 = vsel %vm4075_vm3, %v4052_v14, %v4060_v47  ;;  %v4732_v5 = vmul.f32 %v10292_v54, %v4503_v6  ;;  %v10332_v25 = vpop.permute.xlu1 %4178  ;;  %v4469_v14 = vsel %vm4376_vm4, %v10313_v45, %v12051_v24  ;;  %v12058_v6 = vld [vmem:[#allocation199_spill] sm:$0xff] }
 0x3f4   : > { %4328 = vrot.lane.b32.xlu0 %v9589_v29, %s5758_s17 }
 0x3f5   : > { %v4832_v7 = vadd.f32 %v4732_v5, %v4169_v2  ;;  %4326 = vrot.lane.b32.xlu1 %v9610_v19, %s5758_s17  ;;  %v12059_v5 = vld [vmem:[#allocation26_spill] sm:$0xff] }
 0x3f6   : > { %v4068_v31 = vpop.permute.xlu0 %4067 }
 0x3f7   : > { %v10348_v20 = vsel %vm4075_vm3, %v4060_v47, %v4068_v31  ;;  %v4172_v29 = vsel %vm4075_vm3, %v4068_v31, %v3876_v28  ;;  %4932 = vst [vmem:[%s8493_s28 + $0xd0] sm:$0xff] %v4832_v7  ;;  %v4062_v63 = vpop.permute.xlu1 %4061  ;;  %v4467_v28 = vsel %vm4376_vm4, %v12060_v44, %v12059_v5  ;;  %v12061_v7 = vld [vmem:[#allocation20_spill] sm:$0xff] }
 0x3f8   : > { %12057 = vst [vmem:[#allocation83_spill] sm:$0xff] %v10348_v20  ;;  %v4477_v19 = vsub.f32 %v4469_v14, %v4172_v29  ;;  %4332 = vrot.lane.b32.xlu0 %v9717_v58, %s5758_s17  ;;  %v10357_v2 = vsel %vm4075_vm3, %v4054_v40, %v4062_v63  ;;  %v12062_v40 = vld [vmem:[#allocation46_spill] sm:$0xff] }
 0x3f9   : > { %4330 = vrot.lane.b32.xlu1 %v12058_v6, %s5758_s17 }
 0x3fa   : > { %v4706_v24 = vmul.f32 %v10340_v16, %v4477_v19  ;;  %v3880_v47 = vpop.permute.xlu0 %3879  ;;  %v4470_v19 = vsel %vm4376_vm4, %v10332_v25, %v12055_v11 }
 0x3fb   : > { %v4170_v31 = vsel %vm4075_vm3, %v3880_v47, %v12061_v7  ;;  %v4070_v14 = vpop.permute.xlu1 %4069 }
 0x3fc   : > { %v4806_v58 = vadd.f32 %v4706_v24, %v4172_v29  ;;  %v4528_v20 = vsub.f32 %v4467_v28, %v4170_v31  ;;  %4336 = vrot.lane.b32.xlu0 %v12062_v40, %s5758_s17  ;;  %v10377_v6 = vsel %vm4075_vm3, %v4062_v63, %v4070_v14  ;;  %v4173_v5 = vsel %vm4075_vm3, %v4070_v14, %v3878_v43  ;;  %v12064_v63 = vld [vmem:[#allocation186_spill] sm:$0xff] }
 0x3fd   : > { %12063 = vst [vmem:[#allocation176_spill] sm:$0xff] %v10377_v6  ;;  %v4502_v29 = vsub.f32 %v4470_v19, %v4173_v5  ;;  %4334 = vrot.lane.b32.xlu1 %v9764_v50, %s5758_s17  ;;  %v12065_v6 = vld [vmem:[#allocation184_spill] sm:$0xff] }
 0x3fe   : > { %4906 = vst [vmem:[%s8493_s28] sm:$0xff] %v4806_v58  ;;  %v4757_v24 = vmul.f32 %v10292_v54, %v4528_v20  ;;  %v10385_v28 = vpop.permute.xlu0 %4180  ;;  %v4468_v43 = vsel %vm4376_vm4, %v12065_v6, %v12064_v63  ;;  %v12066_v58 = vld [vmem:[#allocation105_spill] sm:$0xff] }
 0x3ff   : > { %v4731_v7 = vmul.f32 %v10340_v16, %v4502_v29  ;;  %v3882_v40 = vpop.permute.xlu1 %3881 }
 0x400   : > { %v4857_v11 = vadd.f32 %v4757_v24, %v4170_v31  ;;  %4340 = vrot.lane.b32.xlu0 %v9742_v33, %s5758_s17  ;;  %v4171_v20 = vsel %vm4075_vm3, %v3882_v40, %v12066_v58  ;;  %v12067_v24 = vld [vmem:[#allocation36_spill] sm:$0xff]  ;;  %v12068_v58 = vld [vmem:[#allocation23_spill] sm:$0xff] }
 0x401   : > { %v4831_v14 = vadd.f32 %v4731_v7, %v4173_v5  ;;  %v4553_v50 = vsub.f32 %v4468_v43, %v4171_v20  ;;  %4338 = vrot.lane.b32.xlu1 %v9673_v62, %s5758_s17  ;;  %v4471_v62 = vsel %vm4376_vm4, %v10385_v28, %v12060_v44 }
 0x402   : > { %4957 = vst [vmem:[%s8493_s28 + $0x198] sm:$0xff] %v4857_v11  ;;  %v4064_v31 = vpop.permute.xlu0 %4063 }
 0x403   : > { %v10403_v33 = vsel %vm4075_vm3, %v10275_v3, %v4064_v31  ;;  %4931 = vst [vmem:[%s8493_s28 + $0xc8] sm:$0xff] %v4831_v14  ;;  %v4782_v19 = vmul.f32 %v10292_v54, %v4553_v50  ;;  %v10407_v29 = vpop.permute.xlu1 %4182 }
 0x404   : > { %4344 = vrot.lane.b32.xlu0 %v12067_v24, %s5758_s17  ;;  %v12070_v24 = vld [vmem:[#allocation104_spill] sm:$0xff] }
 0x405   : > { %v4882_v5 = vadd.f32 %v4782_v19, %v4171_v20  ;;  %4342 = vrot.lane.b32.xlu1 %v9799_v9, %s5758_s17 }
 0x406   : > { %v4072_v7 = vpop.permute.xlu0 %4071 }
 0x407   : > { %v10419_v3 = vsel %vm4075_vm3, %v4064_v31, %v4072_v7  ;;  %v4174_v54 = vsel %vm4075_vm3, %v4072_v7, %v3880_v47  ;;  %4982 = vst [vmem:[%s8493_s28 + $0x260] sm:$0xff] %v4882_v5  ;;  %v4066_v11 = vpop.permute.xlu1 %4065  ;;  %v4150_v47 = vsel %vm4075_vm3, %v11990_v53, %v12068_v58  ;;  %v4612_v5 = vrot.slane %v10061_v18, %v12070_v24  ;;  %v12073_v18 = vld [vmem:[#allocation35_spill] sm:$0xff] }
 0x408   : > { %v4527_v63 = vsub.f32 %v4471_v62, %v4174_v54  ;;  %4348 = vrot.lane.b32.xlu0 %v9775_v0, %s5758_s17  ;;  %v10429_v9 = vsel %vm4075_vm3, %v10301_v51, %v4066_v11  ;;  %v12069_v51 = vld [vmem:[#allocation201_spill] sm:$0xff] }
 0x409   : > { %4346 = vrot.lane.b32.xlu1 %v9699_v10, %s5758_s17  ;;  %v4472_v10 = vsel %vm4376_vm4, %v10407_v29, %v12065_v6  ;;  %v12071_v6 = vld [vmem:[#allocation111_spill] sm:$0xff] }
 0x40a   : > { %v4756_v44 = vmul.f32 %v10340_v16, %v4527_v63  ;;  %v4237_v43 = vpop.permute.xlu0 %4236  ;;  %v4144_v62 = vsel %vm4075_vm3, %v11996_v26, %v12071_v6 }
 0x40b   : > { %v4447_v0 = vsel %vm4376_vm4, %v10079_v4, %v4237_v43  ;;  %v4074_v14 = vpop.permute.xlu1 %4073 }
 0x40c   : > { %v4856_v20 = vadd.f32 %v4756_v44, %v4174_v54  ;;  %v4533_v50 = vsub.f32 %v4447_v0, %v4150_v47  ;;  %4352 = vrot.lane.b32.xlu0 %v12069_v51, %s5758_s17  ;;  %v10449_v31 = vsel %vm4075_vm3, %v4066_v11, %v4074_v14  ;;  %v4175_v53 = vsel %vm4075_vm3, %v4074_v14, %v3882_v40 }
 0x40d   : > { %v4552_v4 = vsub.f32 %v4472_v10, %v4175_v53  ;;  %4350 = vrot.lane.b32.xlu1 %v9821_v22, %s5758_s17  ;;  %v12072_v22 = vld [vmem:[#allocation197_spill] sm:$0xff]  ;;  %v4151_v0 = vsel %vm4075_vm3, %v11998_v36, %v12073_v18 }
 0x40e   : > { %4956 = vst [vmem:[%s8493_s28 + $0x190] sm:$0xff] %v4856_v20  ;;  %v4762_v19 = vmul.f32 %v10102_v56, %v4533_v50  ;;  %v4241_v7 = vpop.permute.xlu0 %4240  ;;  %v12075_v50 = vld [vmem:[#allocation191_spill] sm:$0xff] }
 0x40f   : > { %v4441_v40 = vsel %vm4376_vm4, %v10104_v41, %v4241_v7  ;;  %v4781_v54 = vmul.f32 %v10340_v16, %v4552_v4  ;;  %v4239_v63 = vpop.permute.xlu1 %4238  ;;  %v4146_v51 = vsel %vm4075_vm3, %v12068_v58, %v12075_v50 }
 0x410   : > { %v4862_v11 = vadd.f32 %v4762_v19, %v4150_v47  ;;  %v4484_v44 = vsub.f32 %v4441_v40, %v4144_v62  ;;  %4356 = vrot.lane.b32.xlu0 %v12072_v22, %s5758_s17  ;;  %v4448_v26 = vsel %vm4376_vm4, %v10113_v59, %v4239_v63  ;;  %v12074_v47 = vld [vmem:[#allocation167_spill] sm:$0xff]  ;;  %v12076_v40 = vld [vmem:[#allocation194_spill] sm:$0xff] }
 0x411   : > { %v4881_v20 = vadd.f32 %v4781_v54, %v4175_v53  ;;  %v4558_v41 = vsub.f32 %v4448_v26, %v4151_v0  ;;  %4354 = vrot.lane.b32.xlu1 %v12074_v47, %s5758_s17  ;;  %v10488_v59 = vld [vmem:[%s11022_s2 + $0x22] ss:$4 sm:$0xff] }
 0x412   : > { %4962 = vst [vmem:[%s8493_s28 + $0x1c0] sm:$0xff] %v4862_v11  ;;  %v4713_v16 = vmul.f32 %v4612_v5, %v4484_v44  ;;  %v4245_v14 = vpop.permute.xlu0 %4244  ;;  %v12077_v54 = vld [vmem:[#allocation80_spill] sm:$0xff]  ;;  %v4616_v22 = vrot.slane %v10488_v59, %v11849_v23 }
 0x413   : > { %v4443_v36 = vsel %vm4376_vm4, %v4237_v43, %v4245_v14  ;;  %4981 = vst [vmem:[%s8493_s28 + $0x258] sm:$0xff] %v4881_v20  ;;  %v4787_v10 = vmul.f32 %v10102_v56, %v4558_v41  ;;  %v4243_v4 = vpop.permute.xlu1 %4242  ;;  %v4145_v43 = vsel %vm4075_vm3, %v12001_v39, %v12077_v54  ;;  %v12079_v20 = vld [vmem:[#allocation192_spill] sm:$0xff] }
 0x414   : > { %v4813_v53 = vadd.f32 %v4713_v16, %v4144_v62  ;;  %v4534_v19 = vsub.f32 %v4443_v36, %v4146_v51  ;;  %4360 = vrot.lane.b32.xlu0 %v12076_v40, %s5758_s17  ;;  %v4442_v58 = vsel %vm4376_vm4, %v10132_v32, %v4243_v4  ;;  %v12078_v62 = vld [vmem:[#allocation77_spill] sm:$0xff]  ;;  %v4140_v39 = vsel %vm4075_vm3, %v12071_v6, %v12079_v20  ;;  %v12080_v36 = vld [vmem:[#allocation155_spill] sm:$0xff] }
 0x415   : > { %v4887_v11 = vadd.f32 %v4787_v10, %v4151_v0  ;;  %v4509_v44 = vsub.f32 %v4442_v58, %v4145_v43  ;;  %4358 = vrot.lane.b32.xlu1 %v12078_v62, %s5758_s17  ;;  %v4147_v10 = vsel %vm4075_vm3, %v12073_v18, %v12080_v36  ;;  %v12081_v40 = vld [vmem:[#allocation189_spill] sm:$0xff]  ;;  %v4620_v62 = vrot.slane %v10488_v59, %v12049_v34 }
 0x416   : > { %4913 = vst [vmem:[%s8493_s28 + $0x38] sm:$0xff] %v4813_v53  ;;  %v4763_v56 = vmul.f32 %v4612_v5, %v4534_v19  ;;  %v4249_v26 = vpop.permute.xlu0 %4248 }
 0x417   : > { %v4437_v32 = vsel %vm4376_vm4, %v4241_v7, %v4249_v26  ;;  %4987 = vst [vmem:[%s8493_s28 + $0x288] sm:$0xff] %v4887_v11  ;;  %v4738_v0 = vmul.f32 %v4612_v5, %v4509_v44  ;;  %v4247_v16 = vpop.permute.xlu1 %4246  ;;  %v12082_v44 = vld [vmem:[#allocation198_spill] sm:$0xff] }
 0x418   : > { %v4863_v41 = vadd.f32 %v4763_v56, %v4146_v51  ;;  %v4485_v47 = vsub.f32 %v4437_v32, %v4140_v39  ;;  %4364 = vrot.lane.b32.xlu0 %v9988_v8, %s5758_s17  ;;  %v4444_v6 = vsel %vm4376_vm4, %v4239_v63, %v4247_v16  ;;  %v4142_v8 = vsel %vm4075_vm3, %v12075_v50, %v12081_v40 }
 0x419   : > { %v4838_v53 = vadd.f32 %v4738_v0, %v4145_v43  ;;  %v4559_v7 = vsub.f32 %v4444_v6, %v4147_v10  ;;  %4362 = vrot.lane.b32.xlu1 %v9931_v35, %s5758_s17  ;;  %v4141_v35 = vsel %vm4075_vm3, %v12077_v54, %v12082_v44 }
 0x41a   : > { %4963 = vst [vmem:[%s8493_s28 + $0x1c8] sm:$0xff] %v4863_v41  ;;  %v4714_v19 = vmul.f32 %v4616_v22, %v4485_v47  ;;  %v4253_v51 = vpop.permute.xlu0 %4252 }
 0x41b   : > { %v4439_v18 = vsel %vm4376_vm4, %v4245_v14, %v4253_v51  ;;  %4938 = vst [vmem:[%s8493_s28 + $0x100] sm:$0xff] %v4838_v53  ;;  %v4788_v58 = vmul.f32 %v4612_v5, %v4559_v7  ;;  %v4251_v43 = vpop.permute.xlu1 %4250 }
 0x41c   : > { %v4814_v63 = vadd.f32 %v4714_v19, %v4140_v39  ;;  %v4535_v11 = vsub.f32 %v4439_v18, %v4142_v8  ;;  %4368 = vrot.lane.b32.xlu0 %v9923_v49, %s5758_s17  ;;  %v4438_v50 = vsel %vm4376_vm4, %v4243_v4, %v4251_v43  ;;  %v12083_v39 = vld [vmem:[#allocation32_spill] sm:$0xff] }
 0x41d   : > { %v4888_v56 = vadd.f32 %v4788_v58, %v4147_v10  ;;  %v4510_v14 = vsub.f32 %v4438_v50, %v4141_v35  ;;  %4366 = vrot.lane.b32.xlu1 %v10023_v57, %s5758_s17  ;;  %v4136_v54 = vsel %vm4075_vm3, %v12079_v20, %v12083_v39  ;;  %v12084_v57 = vld [vmem:[#allocation103_spill] sm:$0xff]  ;;  %v12085_v19 = vld [vmem:[#allocation196_spill] sm:$0xff] }
 0x41e   : > { %4914 = vst [vmem:[%s8493_s28 + $0x40] sm:$0xff] %v4814_v63  ;;  %v4764_v5 = vmul.f32 %v4616_v22, %v4535_v11  ;;  %v4257_v49 = vpop.permute.xlu0 %4256  ;;  %v4143_v10 = vsel %vm4075_vm3, %v12080_v36, %v12084_v57  ;;  %v12086_v63 = vld [vmem:[#allocation141_spill] sm:$0xff] }
 0x41f   : > { %v4433_v4 = vsel %vm4376_vm4, %v4249_v26, %v4257_v49  ;;  %4988 = vst [vmem:[%s8493_s28 + $0x290] sm:$0xff] %v4888_v56  ;;  %v4739_v32 = vmul.f32 %v4616_v22, %v4510_v14  ;;  %v4255_v41 = vpop.permute.xlu1 %4254  ;;  %v12088_v14 = vld [vmem:[#allocation190_spill] sm:$0xff] }
 0x420   : > { %v4864_v0 = vadd.f32 %v4764_v5, %v4142_v8  ;;  %v4486_v47 = vsub.f32 %v4433_v4, %v4136_v54  ;;  %4372 = vrot.lane.b32.xlu0 %v10017_v38, %s5758_s17  ;;  %v4440_v20 = vsel %vm4376_vm4, %v4247_v16, %v4255_v41  ;;  %v4138_v38 = vsel %vm4075_vm3, %v12081_v40, %v12085_v19 }
 0x421   : > { %v4839_v6 = vadd.f32 %v4739_v32, %v4141_v35  ;;  %v4560_v26 = vsub.f32 %v4440_v20, %v4143_v10  ;;  %4370 = vrot.lane.b32.xlu1 %v9955_v15, %s5758_s17  ;;  %v4137_v15 = vsel %vm4075_vm3, %v12082_v44, %v12086_v63  ;;  %v4132_v44 = vsel %vm4075_vm3, %v12083_v39, %v12088_v14 }
 0x422   : > { %4964 = vst [vmem:[%s8493_s28 + $0x1d0] sm:$0xff] %v4864_v0  ;;  %v4715_v53 = vmul.f32 %v4620_v62, %v4486_v47  ;;  %v4261_v7 = vpop.permute.xlu0 %4260  ;;  %v12089_v0 = vld [vmem:[#allocation55_spill] sm:$0xff] }
 0x423   : > { %v4435_v36 = vsel %vm4376_vm4, %v4253_v51, %v4261_v7  ;;  %4939 = vst [vmem:[%s8493_s28 + $0x108] sm:$0xff] %v4839_v6  ;;  %v4789_v16 = vmul.f32 %v4616_v22, %v4560_v26  ;;  %v4259_v18 = vpop.permute.xlu1 %4258  ;;  %v12087_v22 = vld [vmem:[#allocation114_spill] sm:$0xff] }
 0x424   : > { %v4815_v8 = vadd.f32 %v4715_v53, %v4136_v54  ;;  %v4536_v58 = vsub.f32 %v4435_v36, %v4138_v38  ;;  %v4434_v11 = vsel %vm4376_vm4, %v4251_v43, %v4259_v18  ;;  %v4624_v51 = vrot.slane %v10488_v59, %v12087_v22 }
 0x425   : > { %v4889_v35 = vadd.f32 %v4789_v16, %v4143_v10  ;;  %v4511_v40 = vsub.f32 %v4434_v11, %v4137_v15  ;;  %4374 = vrot.lane.b32.xlu1 %v10035_v30, %s5758_s17  ;;  %v4139_v30 = vsel %vm4075_vm3, %v12084_v57, %v12089_v0  ;;  %v12091_v16 = vld [vmem:[#allocation107_spill] sm:$0xff] }
 0x426   : > { %4915 = vst [vmem:[%s8493_s28 + $0x48] sm:$0xff] %v4815_v8  ;;  %v4765_v50 = vmul.f32 %v4620_v62, %v4536_v58  ;;  %v4265_v56 = vpop.permute.xlu0 %4264  ;;  %v4133_v8 = vsel %vm4075_vm3, %v12086_v63, %v12091_v16 }
 0x427   : > { %v4429_v43 = vsel %vm4376_vm4, %v4257_v49, %v4265_v56  ;;  %4989 = vst [vmem:[%s8493_s28 + $0x298] sm:$0xff] %v4889_v35  ;;  %v4740_v5 = vmul.f32 %v4620_v62, %v4511_v40  ;;  %v4263_v4 = vpop.permute.xlu1 %4262  ;;  %v12090_v49 = vld [vmem:[#allocation188_spill] sm:$0xff]  ;;  %v12093_v40 = vld [vmem:[#allocation57_spill] sm:$0xff] }
 0x428   : > { %v4865_v54 = vadd.f32 %v4765_v50, %v4138_v38  ;;  %v4487_v32 = vsub.f32 %v4429_v43, %v4132_v44  ;;  %v4436_v47 = vsel %vm4376_vm4, %v4255_v41, %v4263_v4  ;;  %v4134_v26 = vsel %vm4075_vm3, %v12085_v19, %v12090_v49 }
 0x429   : > { %v4840_v10 = vadd.f32 %v4740_v5, %v4137_v15  ;;  %v4561_v39 = vsub.f32 %v4436_v47, %v4139_v30  ;;  %v4128_v50 = vsel %vm4075_vm3, %v12088_v14, %v12093_v40 }
 0x42a   : > { %4965 = vst [vmem:[%s8493_s28 + $0x1d8] sm:$0xff] %v4865_v54  ;;  %v4716_v20 = vmul.f32 %v4624_v51, %v4487_v32  ;;  %v4269_v6 = vpop.permute.xlu0 %4268  ;;  %v12094_v54 = vld [vmem:[#allocation203_spill] sm:$0xff] }
 0x42b   : > { %v4431_v53 = vsel %vm4376_vm4, %v4261_v7, %v4269_v6  ;;  %4940 = vst [vmem:[%s8493_s28 + $0x110] sm:$0xff] %v4840_v10  ;;  %v4790_v57 = vmul.f32 %v4620_v62, %v4561_v39  ;;  %v4267_v36 = vpop.permute.xlu1 %4266  ;;  %v12092_v7 = vld [vmem:[#allocation158_spill] sm:$0xff]  ;;  %v4135_v32 = vsel %vm4075_vm3, %v12089_v0, %v12094_v54 }
 0x42c   : > { %v4816_v38 = vadd.f32 %v4716_v20, %v4132_v44  ;;  %v4537_v41 = vsub.f32 %v4431_v53, %v4134_v26  ;;  %v4430_v58 = vsel %vm4376_vm4, %v4259_v18, %v4267_v36  ;;  %v4628_v35 = vrot.slane %v10488_v59, %v12092_v7 }
 0x42d   : > { %v4890_v15 = vadd.f32 %v4790_v57, %v4139_v30  ;;  %v4512_v19 = vsub.f32 %v4430_v58, %v4133_v8  ;;  %v12095_v57 = vld [vmem:[#allocation166_spill] sm:$0xff] }
 0x42e   : > { %4916 = vst [vmem:[%s8493_s28 + $0x50] sm:$0xff] %v4816_v38  ;;  %v4766_v11 = vmul.f32 %v4624_v51, %v4537_v41  ;;  %v4273_v62 = vpop.permute.xlu0 %4272  ;;  %v4129_v38 = vsel %vm4075_vm3, %v12091_v16, %v12095_v57 }
 0x42f   : > { %v4425_v63 = vsel %vm4376_vm4, %v4265_v56, %v4273_v62  ;;  %4990 = vst [vmem:[%s8493_s28 + $0x2a0] sm:$0xff] %v4890_v15  ;;  %v4741_v18 = vmul.f32 %v4624_v51, %v4512_v19  ;;  %v4271_v43 = vpop.permute.xlu1 %4270  ;;  %v4130_v56 = vsel %vm4075_vm3, %v12090_v49, %v9968_v37  ;;  %v12097_v19 = vld [vmem:[#allocation61_spill] sm:$0xff] }
 0x430   : > { %v4866_v44 = vadd.f32 %v4766_v11, %v4134_v26  ;;  %v4488_v5 = vsub.f32 %v4425_v63, %v4128_v50  ;;  %v4432_v30 = vsel %vm4376_vm4, %v4263_v4, %v4271_v43  ;;  %v4124_v11 = vsel %vm4075_vm3, %v12093_v40, %v12097_v19 }
 0x431   : > { %v4841_v47 = vadd.f32 %v4741_v18, %v4133_v8  ;;  %v4562_v14 = vsub.f32 %v4432_v30, %v4135_v32 }
 0x432   : > { %4966 = vst [vmem:[%s8493_s28 + $0x1e0] sm:$0xff] %v4866_v44  ;;  %v4717_v10 = vmul.f32 %v4628_v35, %v4488_v5  ;;  %v4277_v39 = vpop.permute.xlu0 %4276  ;;  %v4131_v44 = vsel %vm4075_vm3, %v12094_v54, %v10026_v21 }
 0x433   : > { %v4427_v20 = vsel %vm4376_vm4, %v4269_v6, %v4277_v39  ;;  %4941 = vst [vmem:[%s8493_s28 + $0x118] sm:$0xff] %v4841_v47  ;;  %v4791_v0 = vmul.f32 %v4624_v51, %v4562_v14  ;;  %v4275_v53 = vpop.permute.xlu1 %4274  ;;  %v12096_v6 = vld [vmem:[#allocation3_spill] sm:$0xff] }
 0x434   : > { %v4817_v26 = vadd.f32 %v4717_v10, %v4128_v50  ;;  %v4538_v4 = vsub.f32 %v4427_v20, %v4130_v56  ;;  %v4426_v41 = vsel %vm4376_vm4, %v4267_v36, %v4275_v53  ;;  %v4632_v15 = vrot.slane %v10488_v59, %v12096_v6 }
 0x435   : > { %v4891_v8 = vadd.f32 %v4791_v0, %v4135_v32  ;;  %v4513_v49 = vsub.f32 %v4426_v41, %v4129_v38  ;;  %v4125_v20 = vsel %vm4075_vm3, %v12095_v57, %v9933_v46 }
 0x436   : > { %4917 = vst [vmem:[%s8493_s28 + $0x58] sm:$0xff] %v4817_v26  ;;  %v4767_v58 = vmul.f32 %v4628_v35, %v4538_v4  ;;  %v4281_v51 = vpop.permute.xlu0 %4280 }
 0x437   : > { %v4421_v16 = vsel %vm4376_vm4, %v4273_v62, %v4281_v51  ;;  %4991 = vst [vmem:[%s8493_s28 + $0x2a8] sm:$0xff] %v4891_v8  ;;  %v4742_v36 = vmul.f32 %v4628_v35, %v4513_v49  ;;  %v4279_v63 = vpop.permute.xlu1 %4278  ;;  %v4126_v62 = vsel %vm4075_vm3, %v9968_v37, %v9991_v17 }
 0x438   : > { %v4867_v50 = vadd.f32 %v4767_v58, %v4130_v56  ;;  %v4489_v18 = vsub.f32 %v4421_v16, %v4124_v11  ;;  %v4428_v5 = vsel %vm4376_vm4, %v4271_v43, %v4279_v63 }
 0x439   : > { %v4842_v32 = vadd.f32 %v4742_v36, %v4129_v38  ;;  %v4563_v40 = vsub.f32 %v4428_v5, %v4131_v44  ;;  %v12098_v38 = vld [vmem:[#allocation200_spill] sm:$0xff] }
 0x43a   : > { %4967 = vst [vmem:[%s8493_s28 + $0x1e8] sm:$0xff] %v4867_v50  ;;  %v4718_v30 = vmul.f32 %v4632_v15, %v4489_v18  ;;  %v4285_v47 = vpop.permute.xlu0 %4284  ;;  %v4120_v41 = vsel %vm4075_vm3, %v12097_v19, %v12098_v38 }
 0x43b   : > { %v4423_v14 = vsel %vm4376_vm4, %v4277_v39, %v4285_v47  ;;  %4942 = vst [vmem:[%s8493_s28 + $0x120] sm:$0xff] %v4842_v32  ;;  %v4792_v54 = vmul.f32 %v4628_v35, %v4563_v40  ;;  %v4283_v56 = vpop.permute.xlu1 %4282  ;;  %v4636_v39 = vrot.slane %v10488_v59, %v11774_v48 }
 0x43c   : > { %v4818_v10 = vadd.f32 %v4718_v30, %v4124_v11  ;;  %v4539_v43 = vsub.f32 %v4423_v14, %v4126_v62  ;;  %v4422_v0 = vsel %vm4376_vm4, %v4275_v53, %v4283_v56  ;;  %v12099_v11 = vld [vmem:[#allocation40_spill] sm:$0xff] }
 0x43d   : > { %v4892_v26 = vadd.f32 %v4792_v54, %v4131_v44  ;;  %v4514_v37 = vsub.f32 %v4422_v0, %v4125_v20  ;;  %v4127_v16 = vsel %vm4075_vm3, %v10026_v21, %v12099_v11  ;;  %v12103_v0 = vld [vmem:[#allocation58_spill] sm:$0xff] }
 0x43e   : > { %4918 = vst [vmem:[%s8493_s28 + $0x60] sm:$0xff] %v4818_v10  ;;  %v4768_v4 = vmul.f32 %v4632_v15, %v4539_v43  ;;  %v4289_v35 = vpop.permute.xlu0 %4288 }
 0x43f   : > { %v4417_v57 = vsel %vm4376_vm4, %v4281_v51, %v4289_v35  ;;  %4992 = vst [vmem:[%s8493_s28 + $0x2b0] sm:$0xff] %v4892_v26  ;;  %v4743_v53 = vmul.f32 %v4632_v15, %v4514_v37  ;;  %v4287_v49 = vpop.permute.xlu1 %4286  ;;  %v12100_v51 = vld [vmem:[#allocation62_spill] sm:$0xff]  ;;  %v4116_v26 = vsel %vm4075_vm3, %v12098_v38, %v12103_v0 }
 0x440   : > { %v4868_v8 = vadd.f32 %v4768_v4, %v4126_v62  ;;  %v4490_v58 = vsub.f32 %v4417_v57, %v4120_v41  ;;  %v4424_v36 = vsel %vm4376_vm4, %v4279_v63, %v4287_v49  ;;  %v4122_v5 = vsel %vm4075_vm3, %v9991_v17, %v12100_v51  ;;  %v12101_v62 = vld [vmem:[#allocation100_spill] sm:$0xff] }
 0x441   : > { %v4843_v50 = vadd.f32 %v4743_v53, %v4125_v20  ;;  %v4564_v19 = vsub.f32 %v4424_v36, %v4127_v16  ;;  %v4121_v14 = vsel %vm4075_vm3, %v9933_v46, %v12101_v62  ;;  %v12104_v57 = vld [vmem:[#allocation16_spill] sm:$0xff] }
 0x442   : > { %4968 = vst [vmem:[%s8493_s28 + $0x1f0] sm:$0xff] %v4868_v8  ;;  %v4719_v18 = vmul.f32 %v4636_v39, %v4490_v58  ;;  %v4293_v44 = vpop.permute.xlu0 %4292  ;;  %v4123_v53 = vsel %vm4075_vm3, %v12099_v11, %v12104_v57 }
 0x443   : > { %v4419_v32 = vsel %vm4376_vm4, %v4285_v47, %v4293_v44  ;;  %4943 = vst [vmem:[%s8493_s28 + $0x128] sm:$0xff] %v4843_v50  ;;  %v4793_v21 = vmul.f32 %v4632_v15, %v4564_v19  ;;  %v4291_v30 = vpop.permute.xlu1 %4290  ;;  %v12102_v47 = vld [vmem:[#allocation117_spill] sm:$0xff] }
 0x444   : > { %v4819_v40 = vadd.f32 %v4719_v18, %v4120_v41  ;;  %v4540_v63 = vsub.f32 %v4419_v32, %v4122_v5  ;;  %v4418_v54 = vsel %vm4376_vm4, %v4283_v56, %v4291_v30  ;;  %v4640_v20 = vrot.slane %v10488_v59, %v12102_v47  ;;  %v12106_v32 = vld [vmem:[#allocation202_spill] sm:$0xff] }
 0x445   : > { %v4893_v10 = vadd.f32 %v4793_v21, %v4127_v16  ;;  %v4515_v17 = vsub.f32 %v4418_v54, %v4121_v14  ;;  %v4117_v21 = vsel %vm4075_vm3, %v12101_v62, %v12106_v32  ;;  %v4112_v54 = vsel %vm4075_vm3, %v12103_v0, %v10129_v12 }
 0x446   : > { %4919 = vst [vmem:[%s8493_s28 + $0x68] sm:$0xff] %v4819_v40  ;;  %v4769_v43 = vmul.f32 %v4636_v39, %v4540_v63  ;;  %v4297_v15 = vpop.permute.xlu0 %4296 }
 0x447   : > { %v4413_v46 = vsel %vm4376_vm4, %v4289_v35, %v4297_v15  ;;  %4993 = vst [vmem:[%s8493_s28 + $0x2b8] sm:$0xff] %v4893_v10  ;;  %v4744_v56 = vmul.f32 %v4636_v39, %v4515_v17  ;;  %v4295_v4 = vpop.permute.xlu1 %4294  ;;  %v12105_v35 = vld [vmem:[#allocation206_spill] sm:$0xff] }
 0x448   : > { %v4869_v37 = vadd.f32 %v4769_v43, %v4122_v5  ;;  %v4491_v41 = vsub.f32 %v4413_v46, %v4116_v26  ;;  %v4420_v8 = vsel %vm4376_vm4, %v4287_v49, %v4295_v4  ;;  %v4118_v50 = vsel %vm4075_vm3, %v12100_v51, %v12105_v35 }
 0x449   : > { %v4844_v58 = vadd.f32 %v4744_v56, %v4121_v14  ;;  %v4565_v38 = vsub.f32 %v4420_v8, %v4123_v53 }
 0x44a   : > { %4969 = vst [vmem:[%s8493_s28 + $0x1f8] sm:$0xff] %v4869_v37  ;;  %v4720_v16 = vmul.f32 %v4640_v20, %v4491_v41  ;;  %v4301_v36 = vpop.permute.xlu0 %4300  ;;  %v4114_v41 = vsel %vm4075_vm3, %v12105_v35, %v10173_v42 }
 0x44b   : > { %v4415_v19 = vsel %vm4376_vm4, %v4293_v44, %v4301_v36  ;;  %4944 = vst [vmem:[%s8493_s28 + $0x130] sm:$0xff] %v4844_v58  ;;  %v4794_v11 = vmul.f32 %v4636_v39, %v4565_v38  ;;  %v4299_v5 = vpop.permute.xlu1 %4298  ;;  %v4644_v44 = vrot.slane %v10488_v59, %v12070_v24 }
 0x44c   : > { %v4820_v18 = vadd.f32 %v4720_v16, %v4116_v26  ;;  %v4541_v49 = vsub.f32 %v4415_v19, %v4118_v50  ;;  %v4414_v40 = vsel %vm4376_vm4, %v4291_v30, %v4299_v5  ;;  %v12107_v26 = vld [vmem:[#allocation63_spill] sm:$0xff]  ;;  %v4113_v16 = vsel %vm4075_vm3, %v12106_v32, %v10150_v52 }
 0x44d   : > { %v4894_v63 = vadd.f32 %v4794_v11, %v4123_v53  ;;  %v4516_v51 = vsub.f32 %v4414_v40, %v4117_v21  ;;  %v4119_v59 = vsel %vm4075_vm3, %v12104_v57, %v12107_v26  ;;  %v10753_v57 = vld [vmem:[%s11022_s2 + $0x42] ss:$4 sm:$0xff] }
 0x44e   : > { %4920 = vst [vmem:[%s8493_s28 + $0x70] sm:$0xff] %v4820_v18  ;;  %v4770_v14 = vmul.f32 %v4640_v20, %v4541_v49  ;;  %v4305_v39 = vpop.permute.xlu0 %4304  ;;  %v4648_v11 = vrot.slane %v10753_v57, %v11849_v23  ;;  %v4108_v18 = vsel %vm4075_vm3, %v10129_v12, %v10146_v55 }
 0x44f   : > { %v4409_v62 = vsel %vm4376_vm4, %v4297_v15, %v4305_v39  ;;  %4994 = vst [vmem:[%s8493_s28 + $0x2c0] sm:$0xff] %v4894_v63  ;;  %v4745_v30 = vmul.f32 %v4640_v20, %v4516_v51  ;;  %v4303_v17 = vpop.permute.xlu1 %4302  ;;  %v4115_v63 = vsel %vm4075_vm3, %v12107_v26, %v10183_v27 }
 0x450   : > { %v4870_v10 = vadd.f32 %v4770_v14, %v4118_v50  ;;  %v4492_v43 = vsub.f32 %v4409_v62, %v4112_v54  ;;  %v4416_v46 = vsel %vm4376_vm4, %v4295_v4, %v4303_v17 }
 0x451   : > { %v4845_v56 = vadd.f32 %v4745_v30, %v4117_v21  ;;  %v4566_v0 = vsub.f32 %v4416_v46, %v4119_v59 }
 0x452   : > { %4970 = vst [vmem:[%s8493_s28 + $0x200] sm:$0xff] %v4870_v10  ;;  %v4721_v37 = vmul.f32 %v4644_v44, %v4492_v43  ;;  %v4309_v15 = vpop.permute.xlu0 %4308 }
 0x453   : > { %v4411_v53 = vsel %vm4376_vm4, %v4301_v36, %v4309_v15  ;;  %4945 = vst [vmem:[%s8493_s28 + $0x138] sm:$0xff] %v4845_v56  ;;  %v4795_v4 = vmul.f32 %v4640_v20, %v4566_v0  ;;  %v4307_v58 = vpop.permute.xlu1 %4306 }
 0x454   : > { %v4821_v8 = vadd.f32 %v4721_v37, %v4112_v54  ;;  %v4542_v38 = vsub.f32 %v4411_v53, %v4114_v41  ;;  %v4410_v35 = vsel %vm4376_vm4, %v4299_v5, %v4307_v58  ;;  %v4652_v37 = vrot.slane %v10753_v57, %v12049_v34 }
 0x455   : > { %v4895_v36 = vadd.f32 %v4795_v4, %v4119_v59  ;;  %v4517_v50 = vsub.f32 %v4410_v35, %v4113_v16  ;;  %v4109_v59 = vsel %vm4075_vm3, %v10150_v52, %v10159_v1 }
 0x456   : > { %4921 = vst [vmem:[%s8493_s28 + $0x78] sm:$0xff] %v4821_v8  ;;  %v4771_v19 = vmul.f32 %v4644_v44, %v4542_v38  ;;  %v4313_v20 = vpop.permute.xlu0 %4312  ;;  %v12109_v38 = vld [vmem:[#allocation106_spill] sm:$0xff] }
 0x457   : > { %v4405_v49 = vsel %vm4376_vm4, %v4305_v39, %v4313_v20  ;;  %4995 = vst [vmem:[%s8493_s28 + $0x2c8] sm:$0xff] %v4895_v36  ;;  %v4746_v5 = vmul.f32 %v4644_v44, %v4517_v50  ;;  %v4311_v21 = vpop.permute.xlu1 %4310  ;;  %v4110_v39 = vsel %vm4075_vm3, %v10173_v42, %v10181_v61  ;;  %v4111_v34 = vsel %vm4075_vm3, %v10183_v27, %v12109_v38 }
 0x458   : > { %v4871_v32 = vadd.f32 %v4771_v19, %v4114_v41  ;;  %v4493_v40 = vsub.f32 %v4405_v49, %v4108_v18  ;;  %v4412_v51 = vsel %vm4376_vm4, %v4303_v17, %v4311_v21  ;;  %v12110_v19 = vld [vmem:[#allocation205_spill] sm:$0xff] }
 0x459   : > { %v4846_v14 = vadd.f32 %v4746_v5, %v4113_v16  ;;  %v4567_v12 = vsub.f32 %v4412_v51, %v4115_v63 }
 0x45a   : > { %4971 = vst [vmem:[%s8493_s28 + $0x208] sm:$0xff] %v4871_v32  ;;  %v4722_v54 = vmul.f32 %v4648_v11, %v4493_v40  ;;  %v4317_v62 = vpop.permute.xlu0 %4316 }
 0x45b   : > { %v4407_v30 = vsel %vm4376_vm4, %v4309_v15, %v4317_v62  ;;  %4946 = vst [vmem:[%s8493_s28 + $0x140] sm:$0xff] %v4846_v14  ;;  %v4796_v10 = vmul.f32 %v4644_v44, %v4567_v12  ;;  %v4315_v26 = vpop.permute.xlu1 %4314  ;;  %v12108_v15 = vld [vmem:[#allocation146_spill] sm:$0xff]  ;;  %v4656_v12 = vrot.slane %v10753_v57, %v12087_v22 }
 0x45c   : > { %v4822_v43 = vadd.f32 %v4722_v54, %v4108_v18  ;;  %v4543_v17 = vsub.f32 %v4407_v30, %v4110_v39  ;;  %v4406_v46 = vsel %vm4376_vm4, %v4307_v58, %v4315_v26  ;;  %v4104_v41 = vsel %vm4075_vm3, %v10146_v55, %v12108_v15  ;;  %v12112_v54 = vld [vmem:[#allocation204_spill] sm:$0xff] }
 0x45d   : > { %v4896_v56 = vadd.f32 %v4796_v10, %v4115_v63  ;;  %v4518_v42 = vsub.f32 %v4406_v46, %v4109_v59 }
 0x45e   : > { %4922 = vst [vmem:[%s8493_s28 + $0x80] sm:$0xff] %v4822_v43  ;;  %v4772_v0 = vmul.f32 %v4648_v11, %v4543_v17  ;;  %v4321_v44 = vpop.permute.xlu0 %4320 }
 0x45f   : > { %v4401_v52 = vsel %vm4376_vm4, %v4313_v20, %v4321_v44  ;;  %4996 = vst [vmem:[%s8493_s28 + $0x2d0] sm:$0xff] %v4896_v56  ;;  %v4747_v53 = vmul.f32 %v4648_v11, %v4518_v42  ;;  %v4319_v8 = vpop.permute.xlu1 %4318  ;;  %v4106_v20 = vsel %vm4075_vm3, %v10181_v61, %v12110_v19 }
 0x460   : > { %v4872_v4 = vadd.f32 %v4772_v0, %v4110_v39  ;;  %v4494_v58 = vsub.f32 %v4401_v52, %v4104_v41  ;;  %v4408_v16 = vsel %vm4376_vm4, %v4311_v21, %v4319_v8  ;;  %v12111_v21 = vld [vmem:[#allocation65_spill] sm:$0xff]  ;;  %v12114_v0 = vld [vmem:[#allocation208_spill] sm:$0xff] }
 0x461   : > { %v4847_v35 = vadd.f32 %v4747_v53, %v4109_v59  ;;  %v4568_v55 = vsub.f32 %v4408_v16, %v4111_v34  ;;  %v4105_v40 = vsel %vm4075_vm3, %v10159_v1, %v12111_v21 }
 0x462   : > { %4972 = vst [vmem:[%s8493_s28 + $0x210] sm:$0xff] %v4872_v4  ;;  %v4723_v36 = vmul.f32 %v4652_v37, %v4494_v58  ;;  %v4325_v50 = vpop.permute.xlu0 %4324 }
 0x463   : > { %v4403_v18 = vsel %vm4376_vm4, %v4317_v62, %v4325_v50  ;;  %4947 = vst [vmem:[%s8493_s28 + $0x148] sm:$0xff] %v4847_v35  ;;  %v4797_v27 = vmul.f32 %v4648_v11, %v4568_v55  ;;  %v4323_v5 = vpop.permute.xlu1 %4322  ;;  %v4100_v62 = vsel %vm4075_vm3, %v12108_v15, %v12112_v54  ;;  %v4660_v55 = vrot.slane %v10753_v57, %v12092_v7 }
 0x464   : > { %v4823_v49 = vadd.f32 %v4723_v36, %v4104_v41  ;;  %v4544_v32 = vsub.f32 %v4403_v18, %v4106_v20  ;;  %v4402_v63 = vsel %vm4376_vm4, %v4315_v26, %v4323_v5  ;;  %v12113_v26 = vld [vmem:[#allocation67_spill] sm:$0xff]  ;;  %v12116_v36 = vld [vmem:[#allocation209_spill] sm:$0xff] }
 0x465   : > { %v4897_v51 = vadd.f32 %v4797_v27, %v4111_v34  ;;  %v4519_v61 = vsub.f32 %v4402_v63, %v4105_v40  ;;  %v4107_v22 = vsel %vm4075_vm3, %v12109_v38, %v12113_v26 }
 0x466   : > { %4923 = vst [vmem:[%s8493_s28 + $0x88] sm:$0xff] %v4823_v49  ;;  %v4773_v14 = vmul.f32 %v4652_v37, %v4544_v32  ;;  %v4329_v11 = vpop.permute.xlu0 %4328 }
 0x467   : > { %v4397_v1 = vsel %vm4376_vm4, %v4321_v44, %v4329_v11  ;;  %4997 = vst [vmem:[%s8493_s28 + $0x2d8] sm:$0xff] %v4897_v51  ;;  %v4748_v39 = vmul.f32 %v4652_v37, %v4519_v61  ;;  %v4327_v10 = vpop.permute.xlu1 %4326  ;;  %v4102_v44 = vsel %vm4075_vm3, %v12110_v19, %v12114_v0  ;;  %v12118_v61 = vld [vmem:[#allocation211_spill] sm:$0xff] }
 0x468   : > { %v4873_v30 = vadd.f32 %v4773_v14, %v4106_v20  ;;  %v4495_v43 = vsub.f32 %v4397_v1, %v4100_v62  ;;  %v4404_v17 = vsel %vm4376_vm4, %v4319_v8, %v4327_v10  ;;  %v12115_v8 = vld [vmem:[#allocation12_spill] sm:$0xff]  ;;  %v4098_v14 = vsel %vm4075_vm3, %v12114_v0, %v12118_v61 }
 0x469   : > { %v4848_v59 = vadd.f32 %v4748_v39, %v4105_v40  ;;  %v4569_v46 = vsub.f32 %v4404_v17, %v4107_v22  ;;  %v4101_v58 = vsel %vm4075_vm3, %v12111_v21, %v12115_v8 }
 0x46a   : > { %4973 = vst [vmem:[%s8493_s28 + $0x218] sm:$0xff] %v4873_v30  ;;  %v4724_v56 = vmul.f32 %v4656_v12, %v4495_v43  ;;  %v4333_v42 = vpop.permute.xlu0 %4332  ;;  %v12119_v30 = vld [vmem:[#allocation172_spill] sm:$0xff] }
 0x46b   : > { %v4399_v15 = vsel %vm4376_vm4, %v4325_v50, %v4333_v42  ;;  %4948 = vst [vmem:[%s8493_s28 + $0x150] sm:$0xff] %v4848_v59  ;;  %v4798_v41 = vmul.f32 %v4652_v37, %v4569_v46  ;;  %v4331_v53 = vpop.permute.xlu1 %4330  ;;  %v4096_v50 = vsel %vm4075_vm3, %v12112_v54, %v12116_v36  ;;  %v4664_v59 = vrot.slane %v10753_v57, %v12096_v6  ;;  %v12120_v46 = vld [vmem:[#allocation181_spill] sm:$0xff] }
 0x46c   : > { %v4824_v52 = vadd.f32 %v4724_v56, %v4100_v62  ;;  %v4545_v4 = vsub.f32 %v4399_v15, %v4102_v44  ;;  %v4398_v38 = vsel %vm4376_vm4, %v4323_v5, %v4331_v53  ;;  %v12117_v5 = vld [vmem:[#allocation45_spill] sm:$0xff]  ;;  %v4092_v56 = vsel %vm4075_vm3, %v12116_v36, %v12120_v46  ;;  %v12122_v36 = vld [vmem:[#allocation24_spill] sm:$0xff] }
 0x46d   : > { %v4898_v34 = vadd.f32 %v4798_v41, %v4107_v22  ;;  %v4520_v16 = vsub.f32 %v4398_v38, %v4101_v58  ;;  %v4103_v7 = vsel %vm4075_vm3, %v12113_v26, %v12117_v5 }
 0x46e   : > { %4924 = vst [vmem:[%s8493_s28 + $0x90] sm:$0xff] %v4824_v52  ;;  %v4774_v35 = vmul.f32 %v4656_v12, %v4545_v4  ;;  %v4337_v37 = vpop.permute.xlu0 %4336  ;;  %v12121_v52 = vld [vmem:[#allocation73_spill] sm:$0xff] }
 0x46f   : > { %v4393_v19 = vsel %vm4376_vm4, %v4329_v11, %v4337_v37  ;;  %4998 = vst [vmem:[%s8493_s28 + $0x2e0] sm:$0xff] %v4898_v34  ;;  %v4749_v20 = vmul.f32 %v4656_v12, %v4520_v16  ;;  %v4335_v27 = vpop.permute.xlu1 %4334  ;;  %v4099_v6 = vsel %vm4075_vm3, %v12117_v5, %v12121_v52 }
 0x470   : > { %v4874_v18 = vadd.f32 %v4774_v35, %v4102_v44  ;;  %v4496_v49 = vsub.f32 %v4393_v19, %v4096_v50  ;;  %v4400_v32 = vsel %vm4376_vm4, %v4327_v10, %v4335_v27  ;;  %v4097_v10 = vsel %vm4075_vm3, %v12115_v8, %v12119_v30  ;;  %v12123_v19 = vld [vmem:[#allocation207_spill] sm:$0xff] }
 0x471   : > { %v4849_v21 = vadd.f32 %v4749_v20, %v4101_v58  ;;  %v4570_v40 = vsub.f32 %v4400_v32, %v4103_v7  ;;  %v4093_v20 = vsel %vm4075_vm3, %v12119_v30, %v12123_v19  ;;  %v12124_v32 = vld [vmem:[#allocation68_spill] sm:$0xff] }
 0x472   : > { %4974 = vst [vmem:[%s8493_s28 + $0x220] sm:$0xff] %v4874_v18  ;;  %v4725_v63 = vmul.f32 %v4660_v55, %v4496_v49  ;;  %v4341_v51 = vpop.permute.xlu0 %4340 }
 0x473   : > { %v4395_v11 = vsel %vm4376_vm4, %v4333_v42, %v4341_v51  ;;  %4949 = vst [vmem:[%s8493_s28 + $0x158] sm:$0xff] %v4849_v21  ;;  %v4799_v54 = vmul.f32 %v4656_v12, %v4570_v40  ;;  %v4339_v1 = vpop.permute.xlu1 %4338  ;;  %v4088_v21 = vsel %vm4075_vm3, %v12120_v46, %v12124_v32  ;;  %v12131_v32 = vld [vmem:[#allocation72_spill] sm:$0xff] }
 0x474   : > { %v4825_v62 = vadd.f32 %v4725_v63, %v4096_v50  ;;  %v4546_v39 = vsub.f32 %v4395_v11, %v4098_v14  ;;  %v4394_v43 = vsel %vm4376_vm4, %v4331_v53, %v4339_v1 }
 0x475   : > { %v4899_v26 = vadd.f32 %v4799_v54, %v4103_v7  ;;  %v4521_v22 = vsub.f32 %v4394_v43, %v4097_v10  ;;  %v12125_v54 = vld [vmem:[#allocation76_spill] sm:$0xff] }
 0x476   : > { %4925 = vst [vmem:[%s8493_s28 + $0x98] sm:$0xff] %v4825_v62  ;;  %v4775_v17 = vmul.f32 %v4660_v55, %v4546_v39  ;;  %v4345_v12 = vpop.permute.xlu0 %4344 }
 0x477   : > { %v4389_v42 = vsel %vm4376_vm4, %v4337_v37, %v4345_v12  ;;  %4999 = vst [vmem:[%s8493_s28 + $0x2e8] sm:$0xff] %v4899_v26  ;;  %v4750_v0 = vmul.f32 %v4660_v55, %v4521_v22  ;;  %v4343_v15 = vpop.permute.xlu1 %4342  ;;  %v12126_v22 = vld [vmem:[#allocation17_spill] sm:$0xff] }
 0x478   : > { %v4875_v44 = vadd.f32 %v4775_v17, %v4098_v14  ;;  %v4497_v41 = vsub.f32 %v4389_v42, %v4092_v56  ;;  %v4396_v53 = vsel %vm4376_vm4, %v4335_v27, %v4343_v15 }
 0x479   : > { %v4850_v4 = vadd.f32 %v4750_v0, %v4097_v10  ;;  %v4571_v8 = vsub.f32 %v4396_v53, %v4099_v6 }
 0x47a   : > { %4975 = vst [vmem:[%s8493_s28 + $0x228] sm:$0xff] %v4875_v44  ;;  %v4726_v58 = vmul.f32 %v4664_v59, %v4497_v41  ;;  %v4349_v38 = vpop.permute.xlu0 %4348 }
 0x47b   : > { %v4391_v34 = vsel %vm4376_vm4, %v4341_v51, %v4349_v38  ;;  %4950 = vst [vmem:[%s8493_s28 + $0x160] sm:$0xff] %v4850_v4  ;;  %v4800_v16 = vmul.f32 %v4660_v55, %v4571_v8  ;;  %v4347_v37 = vpop.permute.xlu1 %4346  ;;  %v4668_v55 = vrot.slane %v10753_v57, %v11774_v48  ;;  %v12128_v4 = vld [vmem:[#allocation71_spill] sm:$0xff] }
 0x47c   : > { %v4826_v35 = vadd.f32 %v4726_v58, %v4092_v56  ;;  %v4547_v50 = vsub.f32 %v4391_v34, %v12122_v36  ;;  %v4390_v18 = vsel %vm4376_vm4, %v4339_v1, %v4347_v37  ;;  %v12129_v34 = vld [vmem:[#allocation22_spill] sm:$0xff] }
 0x47d   : > { %v4900_v27 = vadd.f32 %v4800_v16, %v4099_v6  ;;  %v4522_v49 = vsub.f32 %v4390_v18, %v4093_v20  ;;  %v12130_v18 = vld [vmem:[#allocation113_spill] sm:$0xff] }
 0x47e   : > { %4926 = vst [vmem:[%s8493_s28 + $0xa0] sm:$0xff] %v4826_v35  ;;  %v4776_v5 = vmul.f32 %v4664_v59, %v4547_v50  ;;  %v4353_v7 = vpop.permute.xlu0 %4352 }
 0x47f   : > { %v4385_v40 = vsel %vm4376_vm4, %v4345_v12, %v4353_v7  ;;  %5000 = vst [vmem:[%s8493_s28 + $0x2f0] sm:$0xff] %v4900_v27  ;;  %v4751_v63 = vmul.f32 %v4664_v59, %v4522_v49  ;;  %v4351_v61 = vpop.permute.xlu1 %4350  ;;  %v12127_v12 = vld [vmem:[#allocation109_spill] sm:$0xff] }
 0x480   : > { %v4876_v51 = vadd.f32 %v4776_v5, %v12122_v36  ;;  %v4498_v14 = vsub.f32 %v4385_v40, %v4088_v21  ;;  %v4392_v48 = vsel %vm4376_vm4, %v4343_v15, %v4351_v61  ;;  %v4089_v46 = vsel %vm4075_vm3, %v12123_v19, %v12127_v12  ;;  %v5434_v36 = vld [vmem:[%s11022_s2 + $0x62] ss:$4 sm:$0x1] }
 0x481   : > { %v4851_v11 = vadd.f32 %v4751_v63, %v4093_v20  ;;  %v4572_v62 = vsub.f32 %v4392_v48, %v12125_v54  ;;  %v4676_v5 = vrot.slane %v10753_v57, %v12070_v24 }
 0x482   : > { %4976 = vst [vmem:[%s8493_s28 + $0x230] sm:$0xff] %v4876_v51  ;;  %v4727_v1 = vmul.f32 %v4668_v55, %v4498_v14  ;;  %v4357_v39 = vpop.permute.xlu0 %4356 }
 0x483   : > { %v4387_v30 = vsel %vm4376_vm4, %v4349_v38, %v4357_v39  ;;  %4951 = vst [vmem:[%s8493_s28 + $0x168] sm:$0xff] %v4851_v11  ;;  %v4801_v10 = vmul.f32 %v4664_v59, %v4572_v62  ;;  %v4355_v26 = vpop.permute.xlu1 %4354  ;;  %v4672_v59 = vrot.slane %v10753_v57, %v12102_v47  ;;  %v12132_v11 = vld [vmem:[#allocation83_spill] sm:$0xff] }
 0x484   : > { %v4827_v43 = vadd.f32 %v4727_v1, %v4088_v21  ;;  %v4548_v17 = vsub.f32 %v4387_v30, %v12126_v22  ;;  %v4386_v56 = vsel %vm4376_vm4, %v4347_v37, %v4355_v26  ;;  %v12133_v1 = vld [vmem:[#allocation210_spill] sm:$0xff] }
 0x485   : > { %v4901_v42 = vadd.f32 %v4801_v10, %v12125_v54  ;;  %v4523_v0 = vsub.f32 %v4386_v56, %v4089_v46 }
 0x486   : > { %4927 = vst [vmem:[%s8493_s28 + $0xa8] sm:$0xff] %v4827_v43  ;;  %v4777_v44 = vmul.f32 %v4668_v55, %v4548_v17  ;;  %v4361_v15 = vpop.permute.xlu0 %4360 }
 0x487   : > { %v4381_v41 = vsel %vm4376_vm4, %v4353_v7, %v4361_v15  ;;  %5001 = vst [vmem:[%s8493_s28 + $0x2f8] sm:$0xff] %v4901_v42  ;;  %v4752_v52 = vmul.f32 %v4668_v55, %v4523_v0  ;;  %v4359_v53 = vpop.permute.xlu1 %4358 }
 0x488   : > { %v4877_v6 = vadd.f32 %v4777_v44, %v12126_v22  ;;  %v4499_v8 = vsub.f32 %v4381_v41, %v12128_v4  ;;  %v4388_v58 = vsel %vm4376_vm4, %v4351_v61, %v4359_v53 }
 0x489   : > { %v4852_v38 = vadd.f32 %v4752_v52, %v4089_v46  ;;  %v4573_v47 = vsub.f32 %v4388_v58, %v12129_v34 }
 0x48a   : > { %4977 = vst [vmem:[%s8493_s28 + $0x238] sm:$0xff] %v4877_v6  ;;  %v4728_v16 = vmul.f32 %v4672_v59, %v4499_v8  ;;  %v4365_v35 = vpop.permute.xlu0 %4364 }
 0x48b   : > { %v4383_v37 = vsel %vm4376_vm4, %v4357_v39, %v4365_v35  ;;  %4952 = vst [vmem:[%s8493_s28 + $0x170] sm:$0xff] %v4852_v38  ;;  %v4802_v50 = vmul.f32 %v4668_v55, %v4573_v47  ;;  %v4363_v20 = vpop.permute.xlu1 %4362  ;;  %v4680_v55 = vrot.slane %v5434_v36, %v11849_v23 }
 0x48c   : > { %v4828_v19 = vadd.f32 %v4728_v16, %v12128_v4  ;;  %v4549_v27 = vsub.f32 %v4383_v37, %v12130_v18  ;;  %v4382_v49 = vsel %vm4376_vm4, %v4355_v26, %v4363_v20 }
 0x48d   : > { %v4902_v7 = vadd.f32 %v4802_v50, %v12129_v34  ;;  %v4524_v21 = vsub.f32 %v4382_v49, %v12131_v32 }
 0x48e   : > { %4928 = vst [vmem:[%s8493_s28 + $0xb0] sm:$0xff] %v4828_v19  ;;  %v4778_v40 = vmul.f32 %v4672_v59, %v4549_v27  ;;  %v4369_v63 = vpop.permute.xlu0 %4368 }
 0x48f   : > { %v4377_v51 = vsel %vm4376_vm4, %v4361_v15, %v4369_v63  ;;  %v4473_v61 = vsel %vm4376_vm4, %v4369_v63, %v10313_v45  ;;  %5002 = vst [vmem:[%s8493_s28 + $0x300] sm:$0xff] %v4902_v7  ;;  %v4753_v24 = vmul.f32 %v4672_v59, %v4524_v21  ;;  %v4367_v14 = vpop.permute.xlu1 %4366 }
 0x490   : > { %v4878_v57 = vadd.f32 %v4778_v40, %v12130_v18  ;;  %v4500_v48 = vsub.f32 %v4377_v51, %v10329_v60  ;;  %v4501_v54 = vsub.f32 %v4473_v61, %v12132_v11  ;;  %v4384_v23 = vsel %vm4376_vm4, %v4359_v53, %v4367_v14 }
 0x491   : > { %v4853_v62 = vadd.f32 %v4753_v24, %v12131_v32  ;;  %v4574_v39 = vsub.f32 %v4384_v23, %v12133_v1 }
 0x492   : > { %4978 = vst [vmem:[%s8493_s28 + $0x240] sm:$0xff] %v4878_v57  ;;  %v4729_v45 = vmul.f32 %v4676_v5, %v4500_v48  ;;  %v4730_v30 = vmul.f32 %v4680_v55, %v4501_v54  ;;  %v4373_v10 = vpop.permute.xlu0 %4372 }
 0x493   : > { %v4379_v43 = vsel %vm4376_vm4, %v4365_v35, %v4373_v10  ;;  %v4475_v26 = vsel %vm4376_vm4, %v4373_v10, %v10385_v28  ;;  %4953 = vst [vmem:[%s8493_s28 + $0x178] sm:$0xff] %v4853_v62  ;;  %v4803_v22 = vmul.f32 %v4672_v59, %v4574_v39  ;;  %v4371_v46 = vpop.permute.xlu1 %4370  ;;  %v12134_v59 = vld [vmem:[#allocation176_spill] sm:$0xff] }
 0x494   : > { %v4829_v17 = vadd.f32 %v4729_v45, %v10329_v60  ;;  %v4830_v12 = vadd.f32 %v4730_v30, %v12132_v11  ;;  %v4550_v56 = vsub.f32 %v4379_v43, %v10403_v33  ;;  %v4378_v42 = vsel %vm4376_vm4, %v4363_v20, %v4371_v46 }
 0x495   : > { %v4474_v0 = vsel %vm4376_vm4, %v4371_v46, %v10332_v25  ;;  %v4551_v44 = vsub.f32 %v4475_v26, %v10419_v3  ;;  %v4903_v28 = vadd.f32 %v4803_v22, %v12133_v1  ;;  %v4525_v60 = vsub.f32 %v4378_v42, %v10357_v2 }
 0x496   : > { %4929 = vst [vmem:[%s8493_s28 + $0xb8] sm:$0xff] %v4829_v17  ;;  %4930 = vst [vmem:[%s8493_s28 + $0xc0] sm:$0xff] %v4830_v12  ;;  %v4526_v15 = vsub.f32 %v4474_v0, %v12134_v59  ;;  %v4779_v41 = vmul.f32 %v4676_v5, %v4550_v56 }
 0x497   : > { %v4780_v52 = vmul.f32 %v4680_v55, %v4551_v44  ;;  %5003 = vst [vmem:[%s8493_s28 + $0x308] sm:$0xff] %v4903_v28  ;;  %v4754_v6 = vmul.f32 %v4676_v5, %v4525_v60  ;;  %v4375_v4 = vpop.permute.xlu1 %4374 }
 0x498   : > { %v4755_v53 = vmul.f32 %v4680_v55, %v4526_v15  ;;  %v4879_v25 = vadd.f32 %v4779_v41, %v10403_v33  ;;  %v4380_v58 = vsel %vm4376_vm4, %v4367_v14, %v4375_v4  ;;  %v4476_v38 = vsel %vm4376_vm4, %v4375_v4, %v10407_v29 }
 0x499   : > { %v4880_v8 = vadd.f32 %v4780_v52, %v10419_v3  ;;  %v4854_v34 = vadd.f32 %v4754_v6, %v10357_v2  ;;  %v4575_v16 = vsub.f32 %v4380_v58, %v10429_v9  ;;  %v4576_v33 = vsub.f32 %v4476_v38, %v10449_v31 }
 0x49a   : > { %v4855_v47 = vadd.f32 %v4755_v53, %v12134_v59  ;;  %4979 = vst [vmem:[%s8493_s28 + $0x248] sm:$0xff] %v4879_v25 }
 0x49b   : > { %4980 = vst [vmem:[%s8493_s28 + $0x250] sm:$0xff] %v4880_v8  ;;  %4954 = vst [vmem:[%s8493_s28 + $0x180] sm:$0xff] %v4854_v34  ;;  %v4804_v3 = vmul.f32 %v4676_v5, %v4575_v16  ;;  %v4805_v35 = vmul.f32 %v4680_v55, %v4576_v33 }
 0x49c   : > { %4955 = vst [vmem:[%s8493_s28 + $0x188] sm:$0xff] %v4855_v47 }
 0x49d   : > { %v4904_v37 = vadd.f32 %v4804_v3, %v10429_v9  ;;  %v4905_v36 = vadd.f32 %v4805_v35, %v10449_v31 }
 0x49f   : > { %5004 = vst [vmem:[%s8493_s28 + $0x310] sm:$0xff] %v4904_v37  ;;  %5005 = vst [vmem:[%s8493_s28 + $0x318] sm:$0xff] %v4905_v36 }
 0x4a0 PF: > { %s13_s12 = sadd.s32 1, %s5752_s12  }
 0x4a1   : > { %p10_p4 = scmp.ge.s32.totalorder %s13_s12, 4  }
 0x4a3   :  { %12 = sbr.rel (!%p10_p4) target bundleno = 1 (0x1), region = 74 }

</bundles_post_ra>
